<compile_context>
chip_gen: v6e
topology: v6e:2x2x1
jax: 0.10.0
libtpu: 0.0.40
codegen_flags: <defaults>
</compile_context>

<pallas_src>
import math
import jax
import jax.numpy as jnp
from jax.experimental import pallas as pl
from jax.experimental.pallas import tpu as pltpu


def _round_up(x, m):
    return (x + m - 1) // m * m


# ------------------------------------------------------------------
# Fused conv (im2col matmul) + BatchNorm (batch stats) + residual + ReLU
# ------------------------------------------------------------------
def _make_conv_bn_kernel(m_true, relu, has_res, eps):
    inv_m = 1.0 / float(m_true)

    def _finish(y, g, b, res):
        # per-channel batch stats over the M rows of this 128-channel tile
        mean = jnp.sum(y, axis=0, keepdims=True) * inv_m
        ex2 = jnp.sum(y * y, axis=0, keepdims=True) * inv_m
        var = jnp.maximum(ex2 - mean * mean, 0.0)          # guard f32 cancellation
        inv = jax.lax.rsqrt(var + eps)                     # EUP rsqrt
        scale = g * inv
        shift = b - mean * scale
        out = y * scale + shift
        if res is not None:
            out = out + res
        if relu:
            out = jnp.maximum(out, 0.0)
        return out

    if has_res:
        def kernel(a_ref, w_ref, g_ref, b_ref, r_ref, o_ref):
            y = jnp.dot(a_ref[...], w_ref[...],
                        preferred_element_type=jnp.float32)
            o_ref[...] = _finish(y, g_ref[...], b_ref[...], r_ref[...])
    else:
        def kernel(a_ref, w_ref, g_ref, b_ref, o_ref):
            y = jnp.dot(a_ref[...], w_ref[...],
                        preferred_element_type=jnp.float32)
            o_ref[...] = _finish(y, g_ref[...], b_ref[...], None)
    return kernel


def _fused_conv_bn_call(patches, w, g, b, residual, relu, m_true, eps=1e-5):
    """patches [Mp,Kp] bf16, w [Kp,Np] bf16, g/b [1,Np] f32, residual [Mp,Np] f32."""
    Mp, Kp = patches.shape
    _, Np = w.shape
    tn = 128
    has_res = residual is not None

    in_specs = [
        pl.BlockSpec((Mp, Kp), lambda j: (0, 0)),    # activations resident across j
        pl.BlockSpec((Kp, tn), lambda j: (0, j)),
        pl.BlockSpec((1, tn), lambda j: (0, j)),
        pl.BlockSpec((1, tn), lambda j: (0, j)),
    ]
    args = [patches, w, g, b]
    if has_res:
        in_specs.append(pl.BlockSpec((Mp, tn), lambda j: (0, j)))
        args.append(residual)

    return pl.pallas_call(
        _make_conv_bn_kernel(m_true, relu, has_res, eps),
        out_shape=jax.ShapeDtypeStruct((Mp, Np), jnp.float32),
        grid_spec=pltpu.PrefetchScalarGridSpec(
            num_scalar_prefetch=0,
            grid=(Np // tn,),
            in_specs=in_specs,
            out_specs=pl.BlockSpec((Mp, tn), lambda j: (0, j))),
        compiler_params=pltpu.CompilerParams(
            dimension_semantics=("parallel",)),
    )(*args)


# ------------------------------------------------------------------
# maxpool / (avgpool + fc) kernels — axis reductions, lane-dense slabs
# ------------------------------------------------------------------
def _maxpool_kernel(t_ref, o_ref):
    o_ref[...] = jnp.max(t_ref[...], axis=0)


def _head_kernel(x_ref, w_ref, b_ref, o_ref):
    hw = x_ref.shape[1]
    pooled = jnp.sum(x_ref[...], axis=1) * (1.0 / hw)            # global avg pool
    o_ref[...] = jnp.dot(pooled, w_ref[...],
                         preferred_element_type=jnp.float32) + b_ref[...]


# ------------------------------------------------------------------
# JAX glue: im2col, conv wrapper, pools, blocks, forward
# ------------------------------------------------------------------
def _im2col(x_nhwc, kh, kw, stride, pad):
    N, H, W, C = x_nhwc.shape
    xp = jnp.pad(x_nhwc, ((0, 0), (pad, pad), (pad, pad), (0, 0)))
    Ho = (H + 2 * pad - kh) // stride + 1
    Wo = (W + 2 * pad - kw) // stride + 1
    cols = []
    for i in range(kh):
        for j in range(kw):
            cols.append(xp[:, i:i + stride * Ho:stride, j:j + stride * Wo:stride, :])
    patches = jnp.stack(cols, axis=3)                 # [N, Ho, Wo, kh*kw, C]
    return patches.reshape(N * Ho * Wo, kh * kw * C), N, Ho, Wo


def conv_bn_pallas(x_nhwc, cp, relu, residual=None):
    """conv (bias=False) -> BatchNorm (batch stats) -> (+residual) -> (ReLU).
    Channel dim of the result is padded to a multiple of 128 (padded channels are
    exactly zero by construction)."""
    kh, kw, stride, pad = cp['kh'], cp['kw'], cp['stride'], cp['pad']
    patches, N, Ho, Wo = _im2col(x_nhwc, kh, kw, stride, pad)
    M, K = patches.shape
    Kp, Np = cp['w'].shape
    Mp = _round_up(M, 8)
    patches = jnp.pad(patches, ((0, Mp - M), (0, Kp - K))).astype(jnp.bfloat16)
    if residual is not None:
        Mr, Cr = residual.shape
        residual = jnp.pad(residual, ((0, Mp - Mr), (0, Np - Cr)))
    out2d = _fused_conv_bn_call(patches, cp['w'], cp['g'], cp['b'],
                                residual, relu, m_true=M)
    return out2d[:M].reshape(N, Ho, Wo, Np)


def maxpool_pallas(x_nhwc):
    """MaxPool2d(kernel=3, stride=2, padding=1)."""
    N, H, W, C = x_nhwc.shape
    xp = jnp.pad(x_nhwc, ((0, 0), (1, 1), (1, 1), (0, 0)),
                 constant_values=-jnp.inf)
    Ho = (H + 2 - 3) // 2 + 1
    Wo = (W + 2 - 3) // 2 + 1
    cols = [xp[:, i:i + 2 * Ho:2, j:j + 2 * Wo:2, :]
            for i in range(3) for j in range(3)]
    taps = jnp.stack(cols, axis=0).reshape(9, N * Ho * Wo, C)
    out = pl.pallas_call(
        _maxpool_kernel,
        out_shape=jax.ShapeDtypeStruct((N * Ho * Wo, C), jnp.float32),
    )(taps)
    return out.reshape(N, Ho, Wo, C)


def head_pallas(x_nhwc, fc_w, fc_b, num_classes):
    N, H, W, C = x_nhwc.shape
    x3 = x_nhwc.reshape(N, H * W, C)
    out = pl.pallas_call(
        _head_kernel,
        out_shape=jax.ShapeDtypeStruct((N, fc_w.shape[1]), jnp.float32),
    )(x3, fc_w, fc_b)
    return out[:, :num_classes]


def basic_block(x, bp):
    out = conv_bn_pallas(x, bp['conv1'], relu=True)
    if 'down' in bp:
        identity = conv_bn_pallas(x, bp['down'], relu=False)
    else:
        identity = x
    N, H, W, Cp = identity.shape
    out = conv_bn_pallas(out, bp['conv2'], relu=True,
                         residual=identity.reshape(N * H * W, Cp))
    return out


def resnet_forward(p, x_nchw):
    x = jnp.transpose(x_nchw, (0, 2, 3, 1)).astype(jnp.float32)    # NCHW -> NHWC
    x = conv_bn_pallas(x, p['conv1'], relu=True)                   # 7x7 stem
    x = maxpool_pallas(x)
    for blocks in p['layers']:
        for bp in blocks:
            x = basic_block(x, bp)
    return head_pallas(x, p['fc_w'], p['fc_b'], p['num_classes'])  # avgpool + fc


# ------------------------------------------------------------------
# Deterministic parameter init (matches the module's shapes + init scheme);
# weight packing (transpose/reshape/pad/bf16 cast) is hoisted here (done once).
# ------------------------------------------------------------------
def _kaiming(key, cout, cin, kh, kw):
    fan_out = cout * kh * kw
    std = math.sqrt(2.0 / fan_out)
    return std * jax.random.normal(key, (cout, cin, kh, kw), jnp.float32)


def _pack_conv_weight(w_oihw, cin_runtime):
    """OIHW -> [round_up(kh*kw*cin_runtime,128), round_up(cout,128)] bf16."""
    cout, cin, kh, kw = w_oihw.shape
    w_t = jnp.transpose(w_oihw, (2, 3, 1, 0))                 # (kh, kw, cin, cout)
    w_t = jnp.pad(w_t, ((0, 0), (0, 0), (0, cin_runtime - cin), (0, 0)))
    K = kh * kw * cin_runtime
    Kp, Np = _round_up(K, 128), _round_up(cout, 128)
    w2 = w_t.reshape(K, cout)
    w2 = jnp.pad(w2, ((0, Kp - K), (0, Np - cout)))
    return w2.astype(jnp.bfloat16)


def init_params(key):
    keys = iter(jax.random.split(key, 64))

    def conv_params(cin, cin_runtime, cout, kh, kw, stride, pad, zero_gamma=False):
        w = _kaiming(next(keys), cout, cin, kh, kw)
        wp = _pack_conv_weight(w, cin_runtime)
        Np = wp.shape[1]
        g_val = 0.0 if zero_gamma else 1.0                    # bn2 zero-init as in __init__
        g = jnp.concatenate([jnp.full((cout,), g_val, jnp.float32),
                             jnp.zeros((Np - cout,), jnp.float32)])[None, :]
        b = jnp.zeros((1, Np), jnp.float32)
        return {'w': wp, 'g': g, 'b': b,
                'kh': kh, 'kw': kw, 'stride': stride, 'pad': pad}

    p = {'conv1': conv_params(3, 3, 64, 7, 7, 1, 3)}          # stem: raw 3-ch input

    def make_block(inpl, planes, stride, downsample):
        in_rt = _round_up(inpl, 128)
        planes_rt = _round_up(planes, 128)
        bp = {'conv1': conv_params(inpl, in_rt, planes, 3, 3, stride, 1),
              'conv2': conv_params(planes, planes_rt, planes, 3, 3, 1, 1,
                                   zero_gamma=True)}
        if downsample:
            bp['down'] = conv_params(inpl, in_rt, planes, 1, 1, stride, 0)
        return bp

    layers = []
    inplanes = 64
    for planes, nblocks, stride in [(64, 2, 1), (128, 2, 2), (256, 2, 2)]:
        blocks = []
        for b in range(nblocks):
            s = stride if b == 0 else 1
            ds = (b == 0) and (s != 1 or inplanes != planes)
            blocks.append(make_block(inplanes, planes, s, ds))
            inplanes = planes
        layers.append(blocks)
    p['layers'] = layers

    num_classes, feat = 10, 256
    bound = 1.0 / math.sqrt(feat)
    fc_w = jax.random.uniform(next(keys), (num_classes, feat), jnp.float32,
                              -bound, bound)
    fc_b = jax.random.uniform(next(keys), (num_classes,), jnp.float32,
                              -bound, bound)
    ncp = _round_up(num_classes, 128)
    p['fc_w'] = jnp.pad(fc_w.T, ((0, 0), (0, ncp - num_classes)))   # [256, 128] f32
    p['fc_b'] = jnp.pad(fc_b, (0, ncp - num_classes))[None, :]      # [1, 128] f32
    p['num_classes'] = num_classes
    return p


if __name__ == "__main__":
    key = jax.random.PRNGKey(0)
    pkey, xkey = jax.random.split(key)
    params = init_params(pkey)
    # small input consistent with the module: batch=2, 3 channels, 16x16 spatial
    x = jax.random.normal(xkey, (2, 3, 16, 16), jnp.float32)

    fwd = jax.jit(lambda inp: resnet_forward(params, inp))   # params closed over (static metadata)
    out = fwd(x)
    out = jax.block_until_ready(out)
    assert out.shape == (2, 10), out.shape
    assert jnp.isfinite(out).all()
    print("KERNEL_OK")
</pallas_src>

<mosaic_0001>
module attributes {stable_mosaic.version = 11 : i64} {
  func.func @kernel(%arg0: i32, %arg1: memref<512x256xbf16, #tpu.memory_space<vmem>>, %arg2: memref<256x128xbf16, #tpu.memory_space<vmem>>, %arg3: memref<1x128xf32, #tpu.memory_space<vmem>>, %arg4: memref<1x128xf32, #tpu.memory_space<vmem>>, %arg5: memref<512x128xf32, #tpu.memory_space<vmem>>) attributes {dimension_semantics = [#tpu.dimension_semantics<parallel>], iteration_bounds = array<i64: 1>, scalar_prefetch = 0 : i64, scratch_operands = 0 : i64, tpu.core_type = #tpu.core_type<tc>, window_params = [{pipeline_mode = #tpu.pipeline_mode<synchronous>, transform_indices = @transform_0, window_bounds = array<i64: 512, 256>}, {transform_indices = @transform_1, window_bounds = array<i64: 256, 128>}, {transform_indices = @transform_2, window_bounds = array<i64: 1, 128>}, {transform_indices = @transform_3, window_bounds = array<i64: 1, 128>}, {transform_indices = @transform_4, window_bounds = array<i64: 512, 128>}]} {
    %c0 = arith.constant 0 : index
    %c0_0 = arith.constant 0 : index
    %0 = vector.load %arg1[%c0, %c0_0] : memref<512x256xbf16, #tpu.memory_space<vmem>>, vector<512x256xbf16>
    %c0_1 = arith.constant 0 : index
    %c0_2 = arith.constant 0 : index
    %1 = vector.load %arg2[%c0_1, %c0_2] : memref<256x128xbf16, #tpu.memory_space<vmem>>, vector<256x128xbf16>
    %cst = arith.constant dense<0.000000e+00> : vector<512x128xf32>
    %2 = tpu.matmul %0, %1, %cst {dimension_numbers = #tpu.dot_dimension_numbers<[1], [0], [0], [1], [0, 0, 1, 1], [], []>} : vector<512x256xbf16>, vector<256x128xbf16>, vector<512x128xf32> -> vector<512x128xf32>
    %c0_3 = arith.constant 0 : index
    %c0_4 = arith.constant 0 : index
    %3 = vector.load %arg3[%c0_3, %c0_4] : memref<1x128xf32, #tpu.memory_space<vmem>>, vector<1x128xf32>
    %c0_5 = arith.constant 0 : index
    %c0_6 = arith.constant 0 : index
    %4 = vector.load %arg4[%c0_5, %c0_6] : memref<1x128xf32, #tpu.memory_space<vmem>>, vector<1x128xf32>
    %cst_7 = arith.constant dense<0.000000e+00> : vector<128xf32>
    %5 = vector.multi_reduction <add>, %2, %cst_7 [0] : vector<512x128xf32> to vector<128xf32>
    %6 = vector.shape_cast %5 : vector<128xf32> to vector<1x128xf32>
    %cst_8 = arith.constant 0.001953125 : f32
    %7 = vector.broadcast %cst_8 : f32 to vector<1x128xf32>
    %8 = arith.mulf %6, %7 : vector<1x128xf32>
    %9 = arith.mulf %2, %2 : vector<512x128xf32>
    %cst_9 = arith.constant dense<0.000000e+00> : vector<128xf32>
    %10 = vector.multi_reduction <add>, %9, %cst_9 [0] : vector<512x128xf32> to vector<128xf32>
    %11 = vector.shape_cast %10 : vector<128xf32> to vector<1x128xf32>
    %cst_10 = arith.constant 0.001953125 : f32
    %12 = vector.broadcast %cst_10 : f32 to vector<1x128xf32>
    %13 = arith.mulf %11, %12 : vector<1x128xf32>
    %14 = arith.mulf %8, %8 : vector<1x128xf32>
    %15 = arith.subf %13, %14 : vector<1x128xf32>
    %cst_11 = arith.constant 0.000000e+00 : f32
    %16 = vector.broadcast %cst_11 : f32 to vector<1x128xf32>
    %17 = arith.maximumf %15, %16 : vector<1x128xf32>
    %cst_12 = arith.constant 9.99999974E-6 : f32
    %18 = vector.broadcast %cst_12 : f32 to vector<1x128xf32>
    %19 = arith.addf %17, %18 : vector<1x128xf32>
    %20 = math.rsqrt %19 : vector<1x128xf32>
    %21 = arith.mulf %3, %20 : vector<1x128xf32>
    %22 = arith.mulf %8, %21 : vector<1x128xf32>
    %23 = arith.subf %4, %22 : vector<1x128xf32>
    %24 = vector.broadcast %21 : vector<1x128xf32> to vector<512x128xf32>
    %25 = arith.mulf %2, %24 : vector<512x128xf32>
    %26 = vector.broadcast %23 : vector<1x128xf32> to vector<512x128xf32>
    %27 = arith.addf %25, %26 : vector<512x128xf32>
    %cst_13 = arith.constant 0.000000e+00 : f32
    %28 = vector.broadcast %cst_13 : f32 to vector<512x128xf32>
    %29 = arith.maximumf %27, %28 : vector<512x128xf32>
    %c0_14 = arith.constant 0 : index
    %c0_15 = arith.constant 0 : index
    %30 = vector.load %arg5[%c0_14, %c0_15] : memref<512x128xf32, #tpu.memory_space<vmem>>, vector<512x128xf32>
    tpu.vector_store %arg5[%c0_14, %c0_15], %29 {strides = array<i32>} : memref<512x128xf32, #tpu.memory_space<vmem>>, vector<512x128xf32>,
    return
  }
  func.func @transform_0(%arg0: i32) -> (i32, i32) {
    %c0_i32 = arith.constant 0 : i32
    %c0_i32_0 = arith.constant 0 : i32
    %c0_i32_1 = arith.constant 0 : i32
    return %c0_i32, %c0_i32_0 : i32, i32
  }
  func.func @transform_1(%arg0: i32) -> (i32, i32) {
    %c0_i32 = arith.constant 0 : i32
    %c0_i32_0 = arith.constant 0 : i32
    return %c0_i32, %arg0 : i32, i32
  }
  func.func @transform_2(%arg0: i32) -> (i32, i32) {
    %c0_i32 = arith.constant 0 : i32
    %c0_i32_0 = arith.constant 0 : i32
    return %c0_i32, %arg0 : i32, i32
  }
  func.func @transform_3(%arg0: i32) -> (i32, i32) {
    %c0_i32 = arith.constant 0 : i32
    %c0_i32_0 = arith.constant 0 : i32
    return %c0_i32, %arg0 : i32, i32
  }
  func.func @transform_4(%arg0: i32) -> (i32, i32) {
    %c0_i32 = arith.constant 0 : i32
    %c0_i32_0 = arith.constant 0 : i32
    return %c0_i32, %arg0 : i32, i32
  }
}

module attributes {stable_mosaic.version = 11 : i64} {
  func.func @_maxpool_kernel(%arg0: memref<9x128x128xf32, #tpu.memory_space<vmem>>, %arg1: memref<128x128xf32, #tpu.memory_space<vmem>>) attributes {dimension_semantics = [], scalar_prefetch = 0 : i64, scratch_operands = 0 : i64, tpu.core_type = #tpu.core_type<tc>} {
    %c0 = arith.constant 0 : index
    %c0_0 = arith.constant 0 : index
    %c0_1 = arith.constant 0 : index
    %0 = vector.load %arg0[%c0, %c0_0, %c0_1] : memref<9x128x128xf32, #tpu.memory_space<vmem>>, vector<9x128x128xf32>
    %cst = arith.constant dense<0xFF800000> : vector<128x128xf32>
    %1 = vector.multi_reduction <maximumf>, %0, %cst [0] : vector<9x128x128xf32> to vector<128x128xf32>
    %c0_2 = arith.constant 0 : index
    %c0_3 = arith.constant 0 : index
    %2 = vector.load %arg1[%c0_2, %c0_3] : memref<128x128xf32, #tpu.memory_space<vmem>>, vector<128x128xf32>
    tpu.vector_store %arg1[%c0_2, %c0_3], %1 {strides = array<i32>} : memref<128x128xf32, #tpu.memory_space<vmem>>, vector<128x128xf32>,
    return
  }
}

module attributes {stable_mosaic.version = 11 : i64} {
  func.func @kernel(%arg0: i32, %arg1: memref<128x1152xbf16, #tpu.memory_space<vmem>>, %arg2: memref<1152x128xbf16, #tpu.memory_space<vmem>>, %arg3: memref<1x128xf32, #tpu.memory_space<vmem>>, %arg4: memref<1x128xf32, #tpu.memory_space<vmem>>, %arg5: memref<128x128xf32, #tpu.memory_space<vmem>>) attributes {dimension_semantics = [#tpu.dimension_semantics<parallel>], iteration_bounds = array<i64: 1>, scalar_prefetch = 0 : i64, scratch_operands = 0 : i64, tpu.core_type = #tpu.core_type<tc>, window_params = [{pipeline_mode = #tpu.pipeline_mode<synchronous>, transform_indices = @transform_0, window_bounds = array<i64: 128, 1152>}, {transform_indices = @transform_1, window_bounds = array<i64: 1152, 128>}, {transform_indices = @transform_2, window_bounds = array<i64: 1, 128>}, {transform_indices = @transform_3, window_bounds = array<i64: 1, 128>}, {transform_indices = @transform_4, window_bounds = array<i64: 128, 128>}]} {
    %c0 = arith.constant 0 : index
    %c0_0 = arith.constant 0 : index
    %0 = vector.load %arg1[%c0, %c0_0] : memref<128x1152xbf16, #tpu.memory_space<vmem>>, vector<128x1152xbf16>
    %c0_1 = arith.constant 0 : index
    %c0_2 = arith.constant 0 : index
    %1 = vector.load %arg2[%c0_1, %c0_2] : memref<1152x128xbf16, #tpu.memory_space<vmem>>, vector<1152x128xbf16>
    %cst = arith.constant dense<0.000000e+00> : vector<128x128xf32>
    %2 = tpu.matmul %0, %1, %cst {dimension_numbers = #tpu.dot_dimension_numbers<[1], [0], [0], [1], [0, 0, 1, 1], [], []>} : vector<128x1152xbf16>, vector<1152x128xbf16>, vector<128x128xf32> -> vector<128x128xf32>
    %c0_3 = arith.constant 0 : index
    %c0_4 = arith.constant 0 : index
    %3 = vector.load %arg3[%c0_3, %c0_4] : memref<1x128xf32, #tpu.memory_space<vmem>>, vector<1x128xf32>
    %c0_5 = arith.constant 0 : index
    %c0_6 = arith.constant 0 : index
    %4 = vector.load %arg4[%c0_5, %c0_6] : memref<1x128xf32, #tpu.memory_space<vmem>>, vector<1x128xf32>
    %cst_7 = arith.constant dense<0.000000e+00> : vector<128xf32>
    %5 = vector.multi_reduction <add>, %2, %cst_7 [0] : vector<128x128xf32> to vector<128xf32>
    %6 = vector.shape_cast %5 : vector<128xf32> to vector<1x128xf32>
    %cst_8 = arith.constant 7.812500e-03 : f32
    %7 = vector.broadcast %cst_8 : f32 to vector<1x128xf32>
    %8 = arith.mulf %6, %7 : vector<1x128xf32>
    %9 = arith.mulf %2, %2 : vector<128x128xf32>
    %cst_9 = arith.constant dense<0.000000e+00> : vector<128xf32>
    %10 = vector.multi_reduction <add>, %9, %cst_9 [0] : vector<128x128xf32> to vector<128xf32>
    %11 = vector.shape_cast %10 : vector<128xf32> to vector<1x128xf32>
    %cst_10 = arith.constant 7.812500e-03 : f32
    %12 = vector.broadcast %cst_10 : f32 to vector<1x128xf32>
    %13 = arith.mulf %11, %12 : vector<1x128xf32>
    %14 = arith.mulf %8, %8 : vector<1x128xf32>
    %15 = arith.subf %13, %14 : vector<1x128xf32>
    %cst_11 = arith.constant 0.000000e+00 : f32
    %16 = vector.broadcast %cst_11 : f32 to vector<1x128xf32>
    %17 = arith.maximumf %15, %16 : vector<1x128xf32>
    %cst_12 = arith.constant 9.99999974E-6 : f32
    %18 = vector.broadcast %cst_12 : f32 to vector<1x128xf32>
    %19 = arith.addf %17, %18 : vector<1x128xf32>
    %20 = math.rsqrt %19 : vector<1x128xf32>
    %21 = arith.mulf %3, %20 : vector<1x128xf32>
    %22 = arith.mulf %8, %21 : vector<1x128xf32>
    %23 = arith.subf %4, %22 : vector<1x128xf32>
    %24 = vector.broadcast %21 : vector<1x128xf32> to vector<128x128xf32>
    %25 = arith.mulf %2, %24 : vector<128x128xf32>
    %26 = vector.broadcast %23 : vector<1x128xf32> to vector<128x128xf32>
    %27 = arith.addf %25, %26 : vector<128x128xf32>
    %cst_13 = arith.constant 0.000000e+00 : f32
    %28 = vector.broadcast %cst_13 : f32 to vector<128x128xf32>
    %29 = arith.maximumf %27, %28 : vector<128x128xf32>
    %c0_14 = arith.constant 0 : index
    %c0_15 = arith.constant 0 : index
    %30 = vector.load %arg5[%c0_14, %c0_15] : memref<128x128xf32, #tpu.memory_space<vmem>>, vector<128x128xf32>
    tpu.vector_store %arg5[%c0_14, %c0_15], %29 {strides = array<i32>} : memref<128x128xf32, #tpu.memory_space<vmem>>, vector<128x128xf32>,
    return
  }
  func.func @transform_0(%arg0: i32) -> (i32, i32) {
    %c0_i32 = arith.constant 0 : i32
    %c0_i32_0 = arith.constant 0 : i32
    %c0_i32_1 = arith.constant 0 : i32
    return %c0_i32, %c0_i32_0 : i32, i32
  }
  func.func @transform_1(%arg0: i32) -> (i32, i32) {
    %c0_i32 = arith.constant 0 : i32
    %c0_i32_0 = arith.constant 0 : i32
    return %c0_i32, %arg0 : i32, i32
  }
  func.func @transform_2(%arg0: i32) -> (i32, i32) {
    %c0_i32 = arith.constant 0 : i32
    %c0_i32_0 = arith.constant 0 : i32
    return %c0_i32, %arg0 : i32, i32
  }
  func.func @transform_3(%arg0: i32) -> (i32, i32) {
    %c0_i32 = arith.constant 0 : i32
    %c0_i32_0 = arith.constant 0 : i32
    return %c0_i32, %arg0 : i32, i32
  }
  func.func @transform_4(%arg0: i32) -> (i32, i32) {
    %c0_i32 = arith.constant 0 : i32
    %c0_i32_0 = arith.constant 0 : i32
    return %c0_i32, %arg0 : i32, i32
  }
}

module attributes {stable_mosaic.version = 11 : i64} {
  func.func @kernel(%arg0: i32, %arg1: memref<128x1152xbf16, #tpu.memory_space<vmem>>, %arg2: memref<1152x128xbf16, #tpu.memory_space<vmem>>, %arg3: memref<1x128xf32, #tpu.memory_space<vmem>>, %arg4: memref<1x128xf32, #tpu.memory_space<vmem>>, %arg5: memref<128x128xf32, #tpu.memory_space<vmem>>, %arg6: memref<128x128xf32, #tpu.memory_space<vmem>>) attributes {dimension_semantics = [#tpu.dimension_semantics<parallel>], iteration_bounds = array<i64: 1>, scalar_prefetch = 0 : i64, scratch_operands = 0 : i64, tpu.core_type = #tpu.core_type<tc>, window_params = [{pipeline_mode = #tpu.pipeline_mode<synchronous>, transform_indices = @transform_0, window_bounds = array<i64: 128, 1152>}, {transform_indices = @transform_1, window_bounds = array<i64: 1152, 128>}, {transform_indices = @transform_2, window_bounds = array<i64: 1, 128>}, {transform_indices = @transform_3, window_bounds = array<i64: 1, 128>}, {transform_indices = @transform_4, window_bounds = array<i64: 128, 128>}, {transform_indices = @transform_5, window_bounds = array<i64: 128, 128>}]} {
    %c0 = arith.constant 0 : index
    %c0_0 = arith.constant 0 : index
    %0 = vector.load %arg1[%c0, %c0_0] : memref<128x1152xbf16, #tpu.memory_space<vmem>>, vector<128x1152xbf16>
    %c0_1 = arith.constant 0 : index
    %c0_2 = arith.constant 0 : index
    %1 = vector.load %arg2[%c0_1, %c0_2] : memref<1152x128xbf16, #tpu.memory_space<vmem>>, vector<1152x128xbf16>
    %cst = arith.constant dense<0.000000e+00> : vector<128x128xf32>
    %2 = tpu.matmul %0, %1, %cst {dimension_numbers = #tpu.dot_dimension_numbers<[1], [0], [0], [1], [0, 0, 1, 1], [], []>} : vector<128x1152xbf16>, vector<1152x128xbf16>, vector<128x128xf32> -> vector<128x128xf32>
    %c0_3 = arith.constant 0 : index
    %c0_4 = arith.constant 0 : index
    %3 = vector.load %arg3[%c0_3, %c0_4] : memref<1x128xf32, #tpu.memory_space<vmem>>, vector<1x128xf32>
    %c0_5 = arith.constant 0 : index
    %c0_6 = arith.constant 0 : index
    %4 = vector.load %arg4[%c0_5, %c0_6] : memref<1x128xf32, #tpu.memory_space<vmem>>, vector<1x128xf32>
    %c0_7 = arith.constant 0 : index
    %c0_8 = arith.constant 0 : index
    %5 = vector.load %arg5[%c0_7, %c0_8] : memref<128x128xf32, #tpu.memory_space<vmem>>, vector<128x128xf32>
    %cst_9 = arith.constant dense<0.000000e+00> : vector<128xf32>
    %6 = vector.multi_reduction <add>, %2, %cst_9 [0] : vector<128x128xf32> to vector<128xf32>
    %7 = vector.shape_cast %6 : vector<128xf32> to vector<1x128xf32>
    %cst_10 = arith.constant 7.812500e-03 : f32
    %8 = vector.broadcast %cst_10 : f32 to vector<1x128xf32>
    %9 = arith.mulf %7, %8 : vector<1x128xf32>
    %10 = arith.mulf %2, %2 : vector<128x128xf32>
    %cst_11 = arith.constant dense<0.000000e+00> : vector<128xf32>
    %11 = vector.multi_reduction <add>, %10, %cst_11 [0] : vector<128x128xf32> to vector<128xf32>
    %12 = vector.shape_cast %11 : vector<128xf32> to vector<1x128xf32>
    %cst_12 = arith.constant 7.812500e-03 : f32
    %13 = vector.broadcast %cst_12 : f32 to vector<1x128xf32>
    %14 = arith.mulf %12, %13 : vector<1x128xf32>
    %15 = arith.mulf %9, %9 : vector<1x128xf32>
    %16 = arith.subf %14, %15 : vector<1x128xf32>
    %cst_13 = arith.constant 0.000000e+00 : f32
    %17 = vector.broadcast %cst_13 : f32 to vector<1x128xf32>
    %18 = arith.maximumf %16, %17 : vector<1x128xf32>
    %cst_14 = arith.constant 9.99999974E-6 : f32
    %19 = vector.broadcast %cst_14 : f32 to vector<1x128xf32>
    %20 = arith.addf %18, %19 : vector<1x128xf32>
    %21 = math.rsqrt %20 : vector<1x128xf32>
    %22 = arith.mulf %3, %21 : vector<1x128xf32>
    %23 = arith.mulf %9, %22 : vector<1x128xf32>
    %24 = arith.subf %4, %23 : vector<1x128xf32>
    %25 = vector.broadcast %22 : vector<1x128xf32> to vector<128x128xf32>
    %26 = arith.mulf %2, %25 : vector<128x128xf32>
    %27 = vector.broadcast %24 : vector<1x128xf32> to vector<128x128xf32>
    %28 = arith.addf %26, %27 : vector<128x128xf32>
    %29 = arith.addf %28, %5 : vector<128x128xf32>
    %cst_15 = arith.constant 0.000000e+00 : f32
    %30 = vector.broadcast %cst_15 : f32 to vector<128x128xf32>
    %31 = arith.maximumf %29, %30 : vector<128x128xf32>
    %c0_16 = arith.constant 0 : index
    %c0_17 = arith.constant 0 : index
    %32 = vector.load %arg6[%c0_16, %c0_17] : memref<128x128xf32, #tpu.memory_space<vmem>>, vector<128x128xf32>
    tpu.vector_store %arg6[%c0_16, %c0_17], %31 {strides = array<i32>} : memref<128x128xf32, #tpu.memory_space<vmem>>, vector<128x128xf32>,
    return
  }
  func.func @transform_0(%arg0: i32) -> (i32, i32) {
    %c0_i32 = arith.constant 0 : i32
    %c0_i32_0 = arith.constant 0 : i32
    %c0_i32_1 = arith.constant 0 : i32
    return %c0_i32, %c0_i32_0 : i32, i32
  }
  func.func @transform_1(%arg0: i32) -> (i32, i32) {
    %c0_i32 = arith.constant 0 : i32
    %c0_i32_0 = arith.constant 0 : i32
    return %c0_i32, %arg0 : i32, i32
  }
  func.func @transform_2(%arg0: i32) -> (i32, i32) {
    %c0_i32 = arith.constant 0 : i32
    %c0_i32_0 = arith.constant 0 : i32
    return %c0_i32, %arg0 : i32, i32
  }
  func.func @transform_3(%arg0: i32) -> (i32, i32) {
    %c0_i32 = arith.constant 0 : i32
    %c0_i32_0 = arith.constant 0 : i32
    return %c0_i32, %arg0 : i32, i32
  }
  func.func @transform_4(%arg0: i32) -> (i32, i32) {
    %c0_i32 = arith.constant 0 : i32
    %c0_i32_0 = arith.constant 0 : i32
    return %c0_i32, %arg0 : i32, i32
  }
  func.func @transform_5(%arg0: i32) -> (i32, i32) {
    %c0_i32 = arith.constant 0 : i32
    %c0_i32_0 = arith.constant 0 : i32
    return %c0_i32, %arg0 : i32, i32
  }
}

module attributes {stable_mosaic.version = 11 : i64} {
  func.func @kernel(%arg0: i32, %arg1: memref<32x1152xbf16, #tpu.memory_space<vmem>>, %arg2: memref<1152x128xbf16, #tpu.memory_space<vmem>>, %arg3: memref<1x128xf32, #tpu.memory_space<vmem>>, %arg4: memref<1x128xf32, #tpu.memory_space<vmem>>, %arg5: memref<32x128xf32, #tpu.memory_space<vmem>>) attributes {dimension_semantics = [#tpu.dimension_semantics<parallel>], iteration_bounds = array<i64: 1>, scalar_prefetch = 0 : i64, scratch_operands = 0 : i64, tpu.core_type = #tpu.core_type<tc>, window_params = [{pipeline_mode = #tpu.pipeline_mode<synchronous>, transform_indices = @transform_0, window_bounds = array<i64: 32, 1152>}, {transform_indices = @transform_1, window_bounds = array<i64: 1152, 128>}, {transform_indices = @transform_2, window_bounds = array<i64: 1, 128>}, {transform_indices = @transform_3, window_bounds = array<i64: 1, 128>}, {transform_indices = @transform_4, window_bounds = array<i64: 32, 128>}]} {
    %c0 = arith.constant 0 : index
    %c0_0 = arith.constant 0 : index
    %0 = vector.load %arg1[%c0, %c0_0] : memref<32x1152xbf16, #tpu.memory_space<vmem>>, vector<32x1152xbf16>
    %c0_1 = arith.constant 0 : index
    %c0_2 = arith.constant 0 : index
    %1 = vector.load %arg2[%c0_1, %c0_2] : memref<1152x128xbf16, #tpu.memory_space<vmem>>, vector<1152x128xbf16>
    %cst = arith.constant dense<0.000000e+00> : vector<32x128xf32>
    %2 = tpu.matmul %0, %1, %cst {dimension_numbers = #tpu.dot_dimension_numbers<[1], [0], [0], [1], [0, 0, 1, 1], [], []>} : vector<32x1152xbf16>, vector<1152x128xbf16>, vector<32x128xf32> -> vector<32x128xf32>
    %c0_3 = arith.constant 0 : index
    %c0_4 = arith.constant 0 : index
    %3 = vector.load %arg3[%c0_3, %c0_4] : memref<1x128xf32, #tpu.memory_space<vmem>>, vector<1x128xf32>
    %c0_5 = arith.constant 0 : index
    %c0_6 = arith.constant 0 : index
    %4 = vector.load %arg4[%c0_5, %c0_6] : memref<1x128xf32, #tpu.memory_space<vmem>>, vector<1x128xf32>
    %cst_7 = arith.constant dense<0.000000e+00> : vector<128xf32>
    %5 = vector.multi_reduction <add>, %2, %cst_7 [0] : vector<32x128xf32> to vector<128xf32>
    %6 = vector.shape_cast %5 : vector<128xf32> to vector<1x128xf32>
    %cst_8 = arith.constant 3.125000e-02 : f32
    %7 = vector.broadcast %cst_8 : f32 to vector<1x128xf32>
    %8 = arith.mulf %6, %7 : vector<1x128xf32>
    %9 = arith.mulf %2, %2 : vector<32x128xf32>
    %cst_9 = arith.constant dense<0.000000e+00> : vector<128xf32>
    %10 = vector.multi_reduction <add>, %9, %cst_9 [0] : vector<32x128xf32> to vector<128xf32>
    %11 = vector.shape_cast %10 : vector<128xf32> to vector<1x128xf32>
    %cst_10 = arith.constant 3.125000e-02 : f32
    %12 = vector.broadcast %cst_10 : f32 to vector<1x128xf32>
    %13 = arith.mulf %11, %12 : vector<1x128xf32>
    %14 = arith.mulf %8, %8 : vector<1x128xf32>
    %15 = arith.subf %13, %14 : vector<1x128xf32>
    %cst_11 = arith.constant 0.000000e+00 : f32
    %16 = vector.broadcast %cst_11 : f32 to vector<1x128xf32>
    %17 = arith.maximumf %15, %16 : vector<1x128xf32>
    %cst_12 = arith.constant 9.99999974E-6 : f32
    %18 = vector.broadcast %cst_12 : f32 to vector<1x128xf32>
    %19 = arith.addf %17, %18 : vector<1x128xf32>
    %20 = math.rsqrt %19 : vector<1x128xf32>
    %21 = arith.mulf %3, %20 : vector<1x128xf32>
    %22 = arith.mulf %8, %21 : vector<1x128xf32>
    %23 = arith.subf %4, %22 : vector<1x128xf32>
    %24 = vector.broadcast %21 : vector<1x128xf32> to vector<32x128xf32>
    %25 = arith.mulf %2, %24 : vector<32x128xf32>
    %26 = vector.broadcast %23 : vector<1x128xf32> to vector<32x128xf32>
    %27 = arith.addf %25, %26 : vector<32x128xf32>
    %cst_13 = arith.constant 0.000000e+00 : f32
    %28 = vector.broadcast %cst_13 : f32 to vector<32x128xf32>
    %29 = arith.maximumf %27, %28 : vector<32x128xf32>
    %c0_14 = arith.constant 0 : index
    %c0_15 = arith.constant 0 : index
    %30 = vector.load %arg5[%c0_14, %c0_15] : memref<32x128xf32, #tpu.memory_space<vmem>>, vector<32x128xf32>
    tpu.vector_store %arg5[%c0_14, %c0_15], %29 {strides = array<i32>} : memref<32x128xf32, #tpu.memory_space<vmem>>, vector<32x128xf32>,
    return
  }
  func.func @transform_0(%arg0: i32) -> (i32, i32) {
    %c0_i32 = arith.constant 0 : i32
    %c0_i32_0 = arith.constant 0 : i32
    %c0_i32_1 = arith.constant 0 : i32
    return %c0_i32, %c0_i32_0 : i32, i32
  }
  func.func @transform_1(%arg0: i32) -> (i32, i32) {
    %c0_i32 = arith.constant 0 : i32
    %c0_i32_0 = arith.constant 0 : i32
    return %c0_i32, %arg0 : i32, i32
  }
  func.func @transform_2(%arg0: i32) -> (i32, i32) {
    %c0_i32 = arith.constant 0 : i32
    %c0_i32_0 = arith.constant 0 : i32
    return %c0_i32, %arg0 : i32, i32
  }
  func.func @transform_3(%arg0: i32) -> (i32, i32) {
    %c0_i32 = arith.constant 0 : i32
    %c0_i32_0 = arith.constant 0 : i32
    return %c0_i32, %arg0 : i32, i32
  }
  func.func @transform_4(%arg0: i32) -> (i32, i32) {
    %c0_i32 = arith.constant 0 : i32
    %c0_i32_0 = arith.constant 0 : i32
    return %c0_i32, %arg0 : i32, i32
  }
}

module attributes {stable_mosaic.version = 11 : i64} {
  func.func @kernel(%arg0: i32, %arg1: memref<32x128xbf16, #tpu.memory_space<vmem>>, %arg2: memref<128x128xbf16, #tpu.memory_space<vmem>>, %arg3: memref<1x128xf32, #tpu.memory_space<vmem>>, %arg4: memref<1x128xf32, #tpu.memory_space<vmem>>, %arg5: memref<32x128xf32, #tpu.memory_space<vmem>>) attributes {dimension_semantics = [#tpu.dimension_semantics<parallel>], iteration_bounds = array<i64: 1>, scalar_prefetch = 0 : i64, scratch_operands = 0 : i64, tpu.core_type = #tpu.core_type<tc>, window_params = [{pipeline_mode = #tpu.pipeline_mode<synchronous>, transform_indices = @transform_0, window_bounds = array<i64: 32, 128>}, {transform_indices = @transform_1, window_bounds = array<i64: 128, 128>}, {transform_indices = @transform_2, window_bounds = array<i64: 1, 128>}, {transform_indices = @transform_3, window_bounds = array<i64: 1, 128>}, {transform_indices = @transform_4, window_bounds = array<i64: 32, 128>}]} {
    %c0 = arith.constant 0 : index
    %c0_0 = arith.constant 0 : index
    %0 = vector.load %arg1[%c0, %c0_0] : memref<32x128xbf16, #tpu.memory_space<vmem>>, vector<32x128xbf16>
    %c0_1 = arith.constant 0 : index
    %c0_2 = arith.constant 0 : index
    %1 = vector.load %arg2[%c0_1, %c0_2] : memref<128x128xbf16, #tpu.memory_space<vmem>>, vector<128x128xbf16>
    %cst = arith.constant dense<0.000000e+00> : vector<32x128xf32>
    %2 = tpu.matmul %0, %1, %cst {dimension_numbers = #tpu.dot_dimension_numbers<[1], [0], [0], [1], [0, 0, 1, 1], [], []>} : vector<32x128xbf16>, vector<128x128xbf16>, vector<32x128xf32> -> vector<32x128xf32>
    %c0_3 = arith.constant 0 : index
    %c0_4 = arith.constant 0 : index
    %3 = vector.load %arg3[%c0_3, %c0_4] : memref<1x128xf32, #tpu.memory_space<vmem>>, vector<1x128xf32>
    %c0_5 = arith.constant 0 : index
    %c0_6 = arith.constant 0 : index
    %4 = vector.load %arg4[%c0_5, %c0_6] : memref<1x128xf32, #tpu.memory_space<vmem>>, vector<1x128xf32>
    %cst_7 = arith.constant dense<0.000000e+00> : vector<128xf32>
    %5 = vector.multi_reduction <add>, %2, %cst_7 [0] : vector<32x128xf32> to vector<128xf32>
    %6 = vector.shape_cast %5 : vector<128xf32> to vector<1x128xf32>
    %cst_8 = arith.constant 3.125000e-02 : f32
    %7 = vector.broadcast %cst_8 : f32 to vector<1x128xf32>
    %8 = arith.mulf %6, %7 : vector<1x128xf32>
    %9 = arith.mulf %2, %2 : vector<32x128xf32>
    %cst_9 = arith.constant dense<0.000000e+00> : vector<128xf32>
    %10 = vector.multi_reduction <add>, %9, %cst_9 [0] : vector<32x128xf32> to vector<128xf32>
    %11 = vector.shape_cast %10 : vector<128xf32> to vector<1x128xf32>
    %cst_10 = arith.constant 3.125000e-02 : f32
    %12 = vector.broadcast %cst_10 : f32 to vector<1x128xf32>
    %13 = arith.mulf %11, %12 : vector<1x128xf32>
    %14 = arith.mulf %8, %8 : vector<1x128xf32>
    %15 = arith.subf %13, %14 : vector<1x128xf32>
    %cst_11 = arith.constant 0.000000e+00 : f32
    %16 = vector.broadcast %cst_11 : f32 to vector<1x128xf32>
    %17 = arith.maximumf %15, %16 : vector<1x128xf32>
    %cst_12 = arith.constant 9.99999974E-6 : f32
    %18 = vector.broadcast %cst_12 : f32 to vector<1x128xf32>
    %19 = arith.addf %17, %18 : vector<1x128xf32>
    %20 = math.rsqrt %19 : vector<1x128xf32>
    %21 = arith.mulf %3, %20 : vector<1x128xf32>
    %22 = arith.mulf %8, %21 : vector<1x128xf32>
    %23 = arith.subf %4, %22 : vector<1x128xf32>
    %24 = vector.broadcast %21 : vector<1x128xf32> to vector<32x128xf32>
    %25 = arith.mulf %2, %24 : vector<32x128xf32>
    %26 = vector.broadcast %23 : vector<1x128xf32> to vector<32x128xf32>
    %27 = arith.addf %25, %26 : vector<32x128xf32>
    %c0_13 = arith.constant 0 : index
    %c0_14 = arith.constant 0 : index
    %28 = vector.load %arg5[%c0_13, %c0_14] : memref<32x128xf32, #tpu.memory_space<vmem>>, vector<32x128xf32>
    tpu.vector_store %arg5[%c0_13, %c0_14], %27 {strides = array<i32>} : memref<32x128xf32, #tpu.memory_space<vmem>>, vector<32x128xf32>,
    return
  }
  func.func @transform_0(%arg0: i32) -> (i32, i32) {
    %c0_i32 = arith.constant 0 : i32
    %c0_i32_0 = arith.constant 0 : i32
    %c0_i32_1 = arith.constant 0 : i32
    return %c0_i32, %c0_i32_0 : i32, i32
  }
  func.func @transform_1(%arg0: i32) -> (i32, i32) {
    %c0_i32 = arith.constant 0 : i32
    %c0_i32_0 = arith.constant 0 : i32
    return %c0_i32, %arg0 : i32, i32
  }
  func.func @transform_2(%arg0: i32) -> (i32, i32) {
    %c0_i32 = arith.constant 0 : i32
    %c0_i32_0 = arith.constant 0 : i32
    return %c0_i32, %arg0 : i32, i32
  }
  func.func @transform_3(%arg0: i32) -> (i32, i32) {
    %c0_i32 = arith.constant 0 : i32
    %c0_i32_0 = arith.constant 0 : i32
    return %c0_i32, %arg0 : i32, i32
  }
  func.func @transform_4(%arg0: i32) -> (i32, i32) {
    %c0_i32 = arith.constant 0 : i32
    %c0_i32_0 = arith.constant 0 : i32
    return %c0_i32, %arg0 : i32, i32
  }
}

module attributes {stable_mosaic.version = 11 : i64} {
  func.func @kernel(%arg0: i32, %arg1: memref<32x1152xbf16, #tpu.memory_space<vmem>>, %arg2: memref<1152x128xbf16, #tpu.memory_space<vmem>>, %arg3: memref<1x128xf32, #tpu.memory_space<vmem>>, %arg4: memref<1x128xf32, #tpu.memory_space<vmem>>, %arg5: memref<32x128xf32, #tpu.memory_space<vmem>>, %arg6: memref<32x128xf32, #tpu.memory_space<vmem>>) attributes {dimension_semantics = [#tpu.dimension_semantics<parallel>], iteration_bounds = array<i64: 1>, scalar_prefetch = 0 : i64, scratch_operands = 0 : i64, tpu.core_type = #tpu.core_type<tc>, window_params = [{pipeline_mode = #tpu.pipeline_mode<synchronous>, transform_indices = @transform_0, window_bounds = array<i64: 32, 1152>}, {transform_indices = @transform_1, window_bounds = array<i64: 1152, 128>}, {transform_indices = @transform_2, window_bounds = array<i64: 1, 128>}, {transform_indices = @transform_3, window_bounds = array<i64: 1, 128>}, {transform_indices = @transform_4, window_bounds = array<i64: 32, 128>}, {transform_indices = @transform_5, window_bounds = array<i64: 32, 128>}]} {
    %c0 = arith.constant 0 : index
    %c0_0 = arith.constant 0 : index
    %0 = vector.load %arg1[%c0, %c0_0] : memref<32x1152xbf16, #tpu.memory_space<vmem>>, vector<32x1152xbf16>
    %c0_1 = arith.constant 0 : index
    %c0_2 = arith.constant 0 : index
    %1 = vector.load %arg2[%c0_1, %c0_2] : memref<1152x128xbf16, #tpu.memory_space<vmem>>, vector<1152x128xbf16>
    %cst = arith.constant dense<0.000000e+00> : vector<32x128xf32>
    %2 = tpu.matmul %0, %1, %cst {dimension_numbers = #tpu.dot_dimension_numbers<[1], [0], [0], [1], [0, 0, 1, 1], [], []>} : vector<32x1152xbf16>, vector<1152x128xbf16>, vector<32x128xf32> -> vector<32x128xf32>
    %c0_3 = arith.constant 0 : index
    %c0_4 = arith.constant 0 : index
    %3 = vector.load %arg3[%c0_3, %c0_4] : memref<1x128xf32, #tpu.memory_space<vmem>>, vector<1x128xf32>
    %c0_5 = arith.constant 0 : index
    %c0_6 = arith.constant 0 : index
    %4 = vector.load %arg4[%c0_5, %c0_6] : memref<1x128xf32, #tpu.memory_space<vmem>>, vector<1x128xf32>
    %c0_7 = arith.constant 0 : index
    %c0_8 = arith.constant 0 : index
    %5 = vector.load %arg5[%c0_7, %c0_8] : memref<32x128xf32, #tpu.memory_space<vmem>>, vector<32x128xf32>
    %cst_9 = arith.constant dense<0.000000e+00> : vector<128xf32>
    %6 = vector.multi_reduction <add>, %2, %cst_9 [0] : vector<32x128xf32> to vector<128xf32>
    %7 = vector.shape_cast %6 : vector<128xf32> to vector<1x128xf32>
    %cst_10 = arith.constant 3.125000e-02 : f32
    %8 = vector.broadcast %cst_10 : f32 to vector<1x128xf32>
    %9 = arith.mulf %7, %8 : vector<1x128xf32>
    %10 = arith.mulf %2, %2 : vector<32x128xf32>
    %cst_11 = arith.constant dense<0.000000e+00> : vector<128xf32>
    %11 = vector.multi_reduction <add>, %10, %cst_11 [0] : vector<32x128xf32> to vector<128xf32>
    %12 = vector.shape_cast %11 : vector<128xf32> to vector<1x128xf32>
    %cst_12 = arith.constant 3.125000e-02 : f32
    %13 = vector.broadcast %cst_12 : f32 to vector<1x128xf32>
    %14 = arith.mulf %12, %13 : vector<1x128xf32>
    %15 = arith.mulf %9, %9 : vector<1x128xf32>
    %16 = arith.subf %14, %15 : vector<1x128xf32>
    %cst_13 = arith.constant 0.000000e+00 : f32
    %17 = vector.broadcast %cst_13 : f32 to vector<1x128xf32>
    %18 = arith.maximumf %16, %17 : vector<1x128xf32>
    %cst_14 = arith.constant 9.99999974E-6 : f32
    %19 = vector.broadcast %cst_14 : f32 to vector<1x128xf32>
    %20 = arith.addf %18, %19 : vector<1x128xf32>
    %21 = math.rsqrt %20 : vector<1x128xf32>
    %22 = arith.mulf %3, %21 : vector<1x128xf32>
    %23 = arith.mulf %9, %22 : vector<1x128xf32>
    %24 = arith.subf %4, %23 : vector<1x128xf32>
    %25 = vector.broadcast %22 : vector<1x128xf32> to vector<32x128xf32>
    %26 = arith.mulf %2, %25 : vector<32x128xf32>
    %27 = vector.broadcast %24 : vector<1x128xf32> to vector<32x128xf32>
    %28 = arith.addf %26, %27 : vector<32x128xf32>
    %29 = arith.addf %28, %5 : vector<32x128xf32>
    %cst_15 = arith.constant 0.000000e+00 : f32
    %30 = vector.broadcast %cst_15 : f32 to vector<32x128xf32>
    %31 = arith.maximumf %29, %30 : vector<32x128xf32>
    %c0_16 = arith.constant 0 : index
    %c0_17 = arith.constant 0 : index
    %32 = vector.load %arg6[%c0_16, %c0_17] : memref<32x128xf32, #tpu.memory_space<vmem>>, vector<32x128xf32>
    tpu.vector_store %arg6[%c0_16, %c0_17], %31 {strides = array<i32>} : memref<32x128xf32, #tpu.memory_space<vmem>>, vector<32x128xf32>,
    return
  }
  func.func @transform_0(%arg0: i32) -> (i32, i32) {
    %c0_i32 = arith.constant 0 : i32
    %c0_i32_0 = arith.constant 0 : i32
    %c0_i32_1 = arith.constant 0 : i32
    return %c0_i32, %c0_i32_0 : i32, i32
  }
  func.func @transform_1(%arg0: i32) -> (i32, i32) {
    %c0_i32 = arith.constant 0 : i32
    %c0_i32_0 = arith.constant 0 : i32
    return %c0_i32, %arg0 : i32, i32
  }
  func.func @transform_2(%arg0: i32) -> (i32, i32) {
    %c0_i32 = arith.constant 0 : i32
    %c0_i32_0 = arith.constant 0 : i32
    return %c0_i32, %arg0 : i32, i32
  }
  func.func @transform_3(%arg0: i32) -> (i32, i32) {
    %c0_i32 = arith.constant 0 : i32
    %c0_i32_0 = arith.constant 0 : i32
    return %c0_i32, %arg0 : i32, i32
  }
  func.func @transform_4(%arg0: i32) -> (i32, i32) {
    %c0_i32 = arith.constant 0 : i32
    %c0_i32_0 = arith.constant 0 : i32
    return %c0_i32, %arg0 : i32, i32
  }
  func.func @transform_5(%arg0: i32) -> (i32, i32) {
    %c0_i32 = arith.constant 0 : i32
    %c0_i32_0 = arith.constant 0 : i32
    return %c0_i32, %arg0 : i32, i32
  }
}

module attributes {stable_mosaic.version = 11 : i64} {
  func.func @kernel(%arg0: i32, %arg1: memref<8x1152xbf16, #tpu.memory_space<vmem>>, %arg2: memref<1152x128xbf16, #tpu.memory_space<vmem>>, %arg3: memref<1x128xf32, #tpu.memory_space<vmem>>, %arg4: memref<1x128xf32, #tpu.memory_space<vmem>>, %arg5: memref<8x128xf32, #tpu.memory_space<vmem>>) attributes {dimension_semantics = [#tpu.dimension_semantics<parallel>], iteration_bounds = array<i64: 2>, scalar_prefetch = 0 : i64, scratch_operands = 0 : i64, tpu.core_type = #tpu.core_type<tc>, window_params = [{pipeline_mode = #tpu.pipeline_mode<synchronous>, transform_indices = @transform_0, window_bounds = array<i64: 8, 1152>}, {transform_indices = @transform_1, window_bounds = array<i64: 1152, 128>}, {transform_indices = @transform_2, window_bounds = array<i64: 1, 128>}, {transform_indices = @transform_3, window_bounds = array<i64: 1, 128>}, {transform_indices = @transform_4, window_bounds = array<i64: 8, 128>}]} {
    %c0 = arith.constant 0 : index
    %c0_0 = arith.constant 0 : index
    %0 = vector.load %arg1[%c0, %c0_0] : memref<8x1152xbf16, #tpu.memory_space<vmem>>, vector<8x1152xbf16>
    %c0_1 = arith.constant 0 : index
    %c0_2 = arith.constant 0 : index
    %1 = vector.load %arg2[%c0_1, %c0_2] : memref<1152x128xbf16, #tpu.memory_space<vmem>>, vector<1152x128xbf16>
    %cst = arith.constant dense<0.000000e+00> : vector<8x128xf32>
    %2 = tpu.matmul %0, %1, %cst {dimension_numbers = #tpu.dot_dimension_numbers<[1], [0], [0], [1], [0, 0, 1, 1], [], []>} : vector<8x1152xbf16>, vector<1152x128xbf16>, vector<8x128xf32> -> vector<8x128xf32>
    %c0_3 = arith.constant 0 : index
    %c0_4 = arith.constant 0 : index
    %3 = vector.load %arg3[%c0_3, %c0_4] : memref<1x128xf32, #tpu.memory_space<vmem>>, vector<1x128xf32>
    %c0_5 = arith.constant 0 : index
    %c0_6 = arith.constant 0 : index
    %4 = vector.load %arg4[%c0_5, %c0_6] : memref<1x128xf32, #tpu.memory_space<vmem>>, vector<1x128xf32>
    %cst_7 = arith.constant dense<0.000000e+00> : vector<128xf32>
    %5 = vector.multi_reduction <add>, %2, %cst_7 [0] : vector<8x128xf32> to vector<128xf32>
    %6 = vector.shape_cast %5 : vector<128xf32> to vector<1x128xf32>
    %cst_8 = arith.constant 1.250000e-01 : f32
    %7 = vector.broadcast %cst_8 : f32 to vector<1x128xf32>
    %8 = arith.mulf %6, %7 : vector<1x128xf32>
    %9 = arith.mulf %2, %2 : vector<8x128xf32>
    %cst_9 = arith.constant dense<0.000000e+00> : vector<128xf32>
    %10 = vector.multi_reduction <add>, %9, %cst_9 [0] : vector<8x128xf32> to vector<128xf32>
    %11 = vector.shape_cast %10 : vector<128xf32> to vector<1x128xf32>
    %cst_10 = arith.constant 1.250000e-01 : f32
    %12 = vector.broadcast %cst_10 : f32 to vector<1x128xf32>
    %13 = arith.mulf %11, %12 : vector<1x128xf32>
    %14 = arith.mulf %8, %8 : vector<1x128xf32>
    %15 = arith.subf %13, %14 : vector<1x128xf32>
    %cst_11 = arith.constant 0.000000e+00 : f32
    %16 = vector.broadcast %cst_11 : f32 to vector<1x128xf32>
    %17 = arith.maximumf %15, %16 : vector<1x128xf32>
    %cst_12 = arith.constant 9.99999974E-6 : f32
    %18 = vector.broadcast %cst_12 : f32 to vector<1x128xf32>
    %19 = arith.addf %17, %18 : vector<1x128xf32>
    %20 = math.rsqrt %19 : vector<1x128xf32>
    %21 = arith.mulf %3, %20 : vector<1x128xf32>
    %22 = arith.mulf %8, %21 : vector<1x128xf32>
    %23 = arith.subf %4, %22 : vector<1x128xf32>
    %24 = vector.broadcast %21 : vector<1x128xf32> to vector<8x128xf32>
    %25 = arith.mulf %2, %24 : vector<8x128xf32>
    %26 = vector.broadcast %23 : vector<1x128xf32> to vector<8x128xf32>
    %27 = arith.addf %25, %26 : vector<8x128xf32>
    %cst_13 = arith.constant 0.000000e+00 : f32
    %28 = vector.broadcast %cst_13 : f32 to vector<8x128xf32>
    %29 = arith.maximumf %27, %28 : vector<8x128xf32>
    %c0_14 = arith.constant 0 : index
    %c0_15 = arith.constant 0 : index
    %30 = vector.load %arg5[%c0_14, %c0_15] : memref<8x128xf32, #tpu.memory_space<vmem>>, vector<8x128xf32>
    tpu.vector_store %arg5[%c0_14, %c0_15], %29 {strides = array<i32>} : memref<8x128xf32, #tpu.memory_space<vmem>>, vector<8x128xf32>,
    return
  }
  func.func @transform_0(%arg0: i32) -> (i32, i32) {
    %c0_i32 = arith.constant 0 : i32
    %c0_i32_0 = arith.constant 0 : i32
    %c0_i32_1 = arith.constant 0 : i32
    return %c0_i32, %c0_i32_0 : i32, i32
  }
  func.func @transform_1(%arg0: i32) -> (i32, i32) {
    %c0_i32 = arith.constant 0 : i32
    %c0_i32_0 = arith.constant 0 : i32
    return %c0_i32, %arg0 : i32, i32
  }
  func.func @transform_2(%arg0: i32) -> (i32, i32) {
    %c0_i32 = arith.constant 0 : i32
    %c0_i32_0 = arith.constant 0 : i32
    return %c0_i32, %arg0 : i32, i32
  }
  func.func @transform_3(%arg0: i32) -> (i32, i32) {
    %c0_i32 = arith.constant 0 : i32
    %c0_i32_0 = arith.constant 0 : i32
    return %c0_i32, %arg0 : i32, i32
  }
  func.func @transform_4(%arg0: i32) -> (i32, i32) {
    %c0_i32 = arith.constant 0 : i32
    %c0_i32_0 = arith.constant 0 : i32
    return %c0_i32, %arg0 : i32, i32
  }
}

module attributes {stable_mosaic.version = 11 : i64} {
  func.func @kernel(%arg0: i32, %arg1: memref<8x128xbf16, #tpu.memory_space<vmem>>, %arg2: memref<128x128xbf16, #tpu.memory_space<vmem>>, %arg3: memref<1x128xf32, #tpu.memory_space<vmem>>, %arg4: memref<1x128xf32, #tpu.memory_space<vmem>>, %arg5: memref<8x128xf32, #tpu.memory_space<vmem>>) attributes {dimension_semantics = [#tpu.dimension_semantics<parallel>], iteration_bounds = array<i64: 2>, scalar_prefetch = 0 : i64, scratch_operands = 0 : i64, tpu.core_type = #tpu.core_type<tc>, window_params = [{pipeline_mode = #tpu.pipeline_mode<synchronous>, transform_indices = @transform_0, window_bounds = array<i64: 8, 128>}, {transform_indices = @transform_1, window_bounds = array<i64: 128, 128>}, {transform_indices = @transform_2, window_bounds = array<i64: 1, 128>}, {transform_indices = @transform_3, window_bounds = array<i64: 1, 128>}, {transform_indices = @transform_4, window_bounds = array<i64: 8, 128>}]} {
    %c0 = arith.constant 0 : index
    %c0_0 = arith.constant 0 : index
    %0 = vector.load %arg1[%c0, %c0_0] : memref<8x128xbf16, #tpu.memory_space<vmem>>, vector<8x128xbf16>
    %c0_1 = arith.constant 0 : index
    %c0_2 = arith.constant 0 : index
    %1 = vector.load %arg2[%c0_1, %c0_2] : memref<128x128xbf16, #tpu.memory_space<vmem>>, vector<128x128xbf16>
    %cst = arith.constant dense<0.000000e+00> : vector<8x128xf32>
    %2 = tpu.matmul %0, %1, %cst {dimension_numbers = #tpu.dot_dimension_numbers<[1], [0], [0], [1], [0, 0, 1, 1], [], []>} : vector<8x128xbf16>, vector<128x128xbf16>, vector<8x128xf32> -> vector<8x128xf32>
    %c0_3 = arith.constant 0 : index
    %c0_4 = arith.constant 0 : index
    %3 = vector.load %arg3[%c0_3, %c0_4] : memref<1x128xf32, #tpu.memory_space<vmem>>, vector<1x128xf32>
    %c0_5 = arith.constant 0 : index
    %c0_6 = arith.constant 0 : index
    %4 = vector.load %arg4[%c0_5, %c0_6] : memref<1x128xf32, #tpu.memory_space<vmem>>, vector<1x128xf32>
    %cst_7 = arith.constant dense<0.000000e+00> : vector<128xf32>
    %5 = vector.multi_reduction <add>, %2, %cst_7 [0] : vector<8x128xf32> to vector<128xf32>
    %6 = vector.shape_cast %5 : vector<128xf32> to vector<1x128xf32>
    %cst_8 = arith.constant 1.250000e-01 : f32
    %7 = vector.broadcast %cst_8 : f32 to vector<1x128xf32>
    %8 = arith.mulf %6, %7 : vector<1x128xf32>
    %9 = arith.mulf %2, %2 : vector<8x128xf32>
    %cst_9 = arith.constant dense<0.000000e+00> : vector<128xf32>
    %10 = vector.multi_reduction <add>, %9, %cst_9 [0] : vector<8x128xf32> to vector<128xf32>
    %11 = vector.shape_cast %10 : vector<128xf32> to vector<1x128xf32>
    %cst_10 = arith.constant 1.250000e-01 : f32
    %12 = vector.broadcast %cst_10 : f32 to vector<1x128xf32>
    %13 = arith.mulf %11, %12 : vector<1x128xf32>
    %14 = arith.mulf %8, %8 : vector<1x128xf32>
    %15 = arith.subf %13, %14 : vector<1x128xf32>
    %cst_11 = arith.constant 0.000000e+00 : f32
    %16 = vector.broadcast %cst_11 : f32 to vector<1x128xf32>
    %17 = arith.maximumf %15, %16 : vector<1x128xf32>
    %cst_12 = arith.constant 9.99999974E-6 : f32
    %18 = vector.broadcast %cst_12 : f32 to vector<1x128xf32>
    %19 = arith.addf %17, %18 : vector<1x128xf32>
    %20 = math.rsqrt %19 : vector<1x128xf32>
    %21 = arith.mulf %3, %20 : vector<1x128xf32>
    %22 = arith.mulf %8, %21 : vector<1x128xf32>
    %23 = arith.subf %4, %22 : vector<1x128xf32>
    %24 = vector.broadcast %21 : vector<1x128xf32> to vector<8x128xf32>
    %25 = arith.mulf %2, %24 : vector<8x128xf32>
    %26 = vector.broadcast %23 : vector<1x128xf32> to vector<8x128xf32>
    %27 = arith.addf %25, %26 : vector<8x128xf32>
    %c0_13 = arith.constant 0 : index
    %c0_14 = arith.constant 0 : index
    %28 = vector.load %arg5[%c0_13, %c0_14] : memref<8x128xf32, #tpu.memory_space<vmem>>, vector<8x128xf32>
    tpu.vector_store %arg5[%c0_13, %c0_14], %27 {strides = array<i32>} : memref<8x128xf32, #tpu.memory_space<vmem>>, vector<8x128xf32>,
    return
  }
  func.func @transform_0(%arg0: i32) -> (i32, i32) {
    %c0_i32 = arith.constant 0 : i32
    %c0_i32_0 = arith.constant 0 : i32
    %c0_i32_1 = arith.constant 0 : i32
    return %c0_i32, %c0_i32_0 : i32, i32
  }
  func.func @transform_1(%arg0: i32) -> (i32, i32) {
    %c0_i32 = arith.constant 0 : i32
    %c0_i32_0 = arith.constant 0 : i32
    return %c0_i32, %arg0 : i32, i32
  }
  func.func @transform_2(%arg0: i32) -> (i32, i32) {
    %c0_i32 = arith.constant 0 : i32
    %c0_i32_0 = arith.constant 0 : i32
    return %c0_i32, %arg0 : i32, i32
  }
  func.func @transform_3(%arg0: i32) -> (i32, i32) {
    %c0_i32 = arith.constant 0 : i32
    %c0_i32_0 = arith.constant 0 : i32
    return %c0_i32, %arg0 : i32, i32
  }
  func.func @transform_4(%arg0: i32) -> (i32, i32) {
    %c0_i32 = arith.constant 0 : i32
    %c0_i32_0 = arith.constant 0 : i32
    return %c0_i32, %arg0 : i32, i32
  }
}

module attributes {stable_mosaic.version = 11 : i64} {
  func.func @kernel(%arg0: i32, %arg1: memref<8x2304xbf16, #tpu.memory_space<vmem>>, %arg2: memref<2304x128xbf16, #tpu.memory_space<vmem>>, %arg3: memref<1x128xf32, #tpu.memory_space<vmem>>, %arg4: memref<1x128xf32, #tpu.memory_space<vmem>>, %arg5: memref<8x128xf32, #tpu.memory_space<vmem>>, %arg6: memref<8x128xf32, #tpu.memory_space<vmem>>) attributes {dimension_semantics = [#tpu.dimension_semantics<parallel>], iteration_bounds = array<i64: 2>, scalar_prefetch = 0 : i64, scratch_operands = 0 : i64, tpu.core_type = #tpu.core_type<tc>, window_params = [{pipeline_mode = #tpu.pipeline_mode<synchronous>, transform_indices = @transform_0, window_bounds = array<i64: 8, 2304>}, {transform_indices = @transform_1, window_bounds = array<i64: 2304, 128>}, {transform_indices = @transform_2, window_bounds = array<i64: 1, 128>}, {transform_indices = @transform_3, window_bounds = array<i64: 1, 128>}, {transform_indices = @transform_4, window_bounds = array<i64: 8, 128>}, {transform_indices = @transform_5, window_bounds = array<i64: 8, 128>}]} {
    %c0 = arith.constant 0 : index
    %c0_0 = arith.constant 0 : index
    %0 = vector.load %arg1[%c0, %c0_0] : memref<8x2304xbf16, #tpu.memory_space<vmem>>, vector<8x2304xbf16>
    %c0_1 = arith.constant 0 : index
    %c0_2 = arith.constant 0 : index
    %1 = vector.load %arg2[%c0_1, %c0_2] : memref<2304x128xbf16, #tpu.memory_space<vmem>>, vector<2304x128xbf16>
    %cst = arith.constant dense<0.000000e+00> : vector<8x128xf32>
    %2 = tpu.matmul %0, %1, %cst {dimension_numbers = #tpu.dot_dimension_numbers<[1], [0], [0], [1], [0, 0, 1, 1], [], []>} : vector<8x2304xbf16>, vector<2304x128xbf16>, vector<8x128xf32> -> vector<8x128xf32>
    %c0_3 = arith.constant 0 : index
    %c0_4 = arith.constant 0 : index
    %3 = vector.load %arg3[%c0_3, %c0_4] : memref<1x128xf32, #tpu.memory_space<vmem>>, vector<1x128xf32>
    %c0_5 = arith.constant 0 : index
    %c0_6 = arith.constant 0 : index
    %4 = vector.load %arg4[%c0_5, %c0_6] : memref<1x128xf32, #tpu.memory_space<vmem>>, vector<1x128xf32>
    %c0_7 = arith.constant 0 : index
    %c0_8 = arith.constant 0 : index
    %5 = vector.load %arg5[%c0_7, %c0_8] : memref<8x128xf32, #tpu.memory_space<vmem>>, vector<8x128xf32>
    %cst_9 = arith.constant dense<0.000000e+00> : vector<128xf32>
    %6 = vector.multi_reduction <add>, %2, %cst_9 [0] : vector<8x128xf32> to vector<128xf32>
    %7 = vector.shape_cast %6 : vector<128xf32> to vector<1x128xf32>
    %cst_10 = arith.constant 1.250000e-01 : f32
    %8 = vector.broadcast %cst_10 : f32 to vector<1x128xf32>
    %9 = arith.mulf %7, %8 : vector<1x128xf32>
    %10 = arith.mulf %2, %2 : vector<8x128xf32>
    %cst_11 = arith.constant dense<0.000000e+00> : vector<128xf32>
    %11 = vector.multi_reduction <add>, %10, %cst_11 [0] : vector<8x128xf32> to vector<128xf32>
    %12 = vector.shape_cast %11 : vector<128xf32> to vector<1x128xf32>
    %cst_12 = arith.constant 1.250000e-01 : f32
    %13 = vector.broadcast %cst_12 : f32 to vector<1x128xf32>
    %14 = arith.mulf %12, %13 : vector<1x128xf32>
    %15 = arith.mulf %9, %9 : vector<1x128xf32>
    %16 = arith.subf %14, %15 : vector<1x128xf32>
    %cst_13 = arith.constant 0.000000e+00 : f32
    %17 = vector.broadcast %cst_13 : f32 to vector<1x128xf32>
    %18 = arith.maximumf %16, %17 : vector<1x128xf32>
    %cst_14 = arith.constant 9.99999974E-6 : f32
    %19 = vector.broadcast %cst_14 : f32 to vector<1x128xf32>
    %20 = arith.addf %18, %19 : vector<1x128xf32>
    %21 = math.rsqrt %20 : vector<1x128xf32>
    %22 = arith.mulf %3, %21 : vector<1x128xf32>
    %23 = arith.mulf %9, %22 : vector<1x128xf32>
    %24 = arith.subf %4, %23 : vector<1x128xf32>
    %25 = vector.broadcast %22 : vector<1x128xf32> to vector<8x128xf32>
    %26 = arith.mulf %2, %25 : vector<8x128xf32>
    %27 = vector.broadcast %24 : vector<1x128xf32> to vector<8x128xf32>
    %28 = arith.addf %26, %27 : vector<8x128xf32>
    %29 = arith.addf %28, %5 : vector<8x128xf32>
    %cst_15 = arith.constant 0.000000e+00 : f32
    %30 = vector.broadcast %cst_15 : f32 to vector<8x128xf32>
    %31 = arith.maximumf %29, %30 : vector<8x128xf32>
    %c0_16 = arith.constant 0 : index
    %c0_17 = arith.constant 0 : index
    %32 = vector.load %arg6[%c0_16, %c0_17] : memref<8x128xf32, #tpu.memory_space<vmem>>, vector<8x128xf32>
    tpu.vector_store %arg6[%c0_16, %c0_17], %31 {strides = array<i32>} : memref<8x128xf32, #tpu.memory_space<vmem>>, vector<8x128xf32>,
    return
  }
  func.func @transform_0(%arg0: i32) -> (i32, i32) {
    %c0_i32 = arith.constant 0 : i32
    %c0_i32_0 = arith.constant 0 : i32
    %c0_i32_1 = arith.constant 0 : i32
    return %c0_i32, %c0_i32_0 : i32, i32
  }
  func.func @transform_1(%arg0: i32) -> (i32, i32) {
    %c0_i32 = arith.constant 0 : i32
    %c0_i32_0 = arith.constant 0 : i32
    return %c0_i32, %arg0 : i32, i32
  }
  func.func @transform_2(%arg0: i32) -> (i32, i32) {
    %c0_i32 = arith.constant 0 : i32
    %c0_i32_0 = arith.constant 0 : i32
    return %c0_i32, %arg0 : i32, i32
  }
  func.func @transform_3(%arg0: i32) -> (i32, i32) {
    %c0_i32 = arith.constant 0 : i32
    %c0_i32_0 = arith.constant 0 : i32
    return %c0_i32, %arg0 : i32, i32
  }
  func.func @transform_4(%arg0: i32) -> (i32, i32) {
    %c0_i32 = arith.constant 0 : i32
    %c0_i32_0 = arith.constant 0 : i32
    return %c0_i32, %arg0 : i32, i32
  }
  func.func @transform_5(%arg0: i32) -> (i32, i32) {
    %c0_i32 = arith.constant 0 : i32
    %c0_i32_0 = arith.constant 0 : i32
    return %c0_i32, %arg0 : i32, i32
  }
}

module attributes {stable_mosaic.version = 11 : i64} {
  func.func @kernel(%arg0: i32, %arg1: memref<8x2304xbf16, #tpu.memory_space<vmem>>, %arg2: memref<2304x128xbf16, #tpu.memory_space<vmem>>, %arg3: memref<1x128xf32, #tpu.memory_space<vmem>>, %arg4: memref<1x128xf32, #tpu.memory_space<vmem>>, %arg5: memref<8x128xf32, #tpu.memory_space<vmem>>) attributes {dimension_semantics = [#tpu.dimension_semantics<parallel>], iteration_bounds = array<i64: 2>, scalar_prefetch = 0 : i64, scratch_operands = 0 : i64, tpu.core_type = #tpu.core_type<tc>, window_params = [{pipeline_mode = #tpu.pipeline_mode<synchronous>, transform_indices = @transform_0, window_bounds = array<i64: 8, 2304>}, {transform_indices = @transform_1, window_bounds = array<i64: 2304, 128>}, {transform_indices = @transform_2, window_bounds = array<i64: 1, 128>}, {transform_indices = @transform_3, window_bounds = array<i64: 1, 128>}, {transform_indices = @transform_4, window_bounds = array<i64: 8, 128>}]} {
    %c0 = arith.constant 0 : index
    %c0_0 = arith.constant 0 : index
    %0 = vector.load %arg1[%c0, %c0_0] : memref<8x2304xbf16, #tpu.memory_space<vmem>>, vector<8x2304xbf16>
    %c0_1 = arith.constant 0 : index
    %c0_2 = arith.constant 0 : index
    %1 = vector.load %arg2[%c0_1, %c0_2] : memref<2304x128xbf16, #tpu.memory_space<vmem>>, vector<2304x128xbf16>
    %cst = arith.constant dense<0.000000e+00> : vector<8x128xf32>
    %2 = tpu.matmul %0, %1, %cst {dimension_numbers = #tpu.dot_dimension_numbers<[1], [0], [0], [1], [0, 0, 1, 1], [], []>} : vector<8x2304xbf16>, vector<2304x128xbf16>, vector<8x128xf32> -> vector<8x128xf32>
    %c0_3 = arith.constant 0 : index
    %c0_4 = arith.constant 0 : index
    %3 = vector.load %arg3[%c0_3, %c0_4] : memref<1x128xf32, #tpu.memory_space<vmem>>, vector<1x128xf32>
    %c0_5 = arith.constant 0 : index
    %c0_6 = arith.constant 0 : index
    %4 = vector.load %arg4[%c0_5, %c0_6] : memref<1x128xf32, #tpu.memory_space<vmem>>, vector<1x128xf32>
    %cst_7 = arith.constant dense<0.000000e+00> : vector<128xf32>
    %5 = vector.multi_reduction <add>, %2, %cst_7 [0] : vector<8x128xf32> to vector<128xf32>
    %6 = vector.shape_cast %5 : vector<128xf32> to vector<1x128xf32>
    %cst_8 = arith.constant 1.250000e-01 : f32
    %7 = vector.broadcast %cst_8 : f32 to vector<1x128xf32>
    %8 = arith.mulf %6, %7 : vector<1x128xf32>
    %9 = arith.mulf %2, %2 : vector<8x128xf32>
    %cst_9 = arith.constant dense<0.000000e+00> : vector<128xf32>
    %10 = vector.multi_reduction <add>, %9, %cst_9 [0] : vector<8x128xf32> to vector<128xf32>
    %11 = vector.shape_cast %10 : vector<128xf32> to vector<1x128xf32>
    %cst_10 = arith.constant 1.250000e-01 : f32
    %12 = vector.broadcast %cst_10 : f32 to vector<1x128xf32>
    %13 = arith.mulf %11, %12 : vector<1x128xf32>
    %14 = arith.mulf %8, %8 : vector<1x128xf32>
    %15 = arith.subf %13, %14 : vector<1x128xf32>
    %cst_11 = arith.constant 0.000000e+00 : f32
    %16 = vector.broadcast %cst_11 : f32 to vector<1x128xf32>
    %17 = arith.maximumf %15, %16 : vector<1x128xf32>
    %cst_12 = arith.constant 9.99999974E-6 : f32
    %18 = vector.broadcast %cst_12 : f32 to vector<1x128xf32>
    %19 = arith.addf %17, %18 : vector<1x128xf32>
    %20 = math.rsqrt %19 : vector<1x128xf32>
    %21 = arith.mulf %3, %20 : vector<1x128xf32>
    %22 = arith.mulf %8, %21 : vector<1x128xf32>
    %23 = arith.subf %4, %22 : vector<1x128xf32>
    %24 = vector.broadcast %21 : vector<1x128xf32> to vector<8x128xf32>
    %25 = arith.mulf %2, %24 : vector<8x128xf32>
    %26 = vector.broadcast %23 : vector<1x128xf32> to vector<8x128xf32>
    %27 = arith.addf %25, %26 : vector<8x128xf32>
    %cst_13 = arith.constant 0.000000e+00 : f32
    %28 = vector.broadcast %cst_13 : f32 to vector<8x128xf32>
    %29 = arith.maximumf %27, %28 : vector<8x128xf32>
    %c0_14 = arith.constant 0 : index
    %c0_15 = arith.constant 0 : index
    %30 = vector.load %arg5[%c0_14, %c0_15] : memref<8x128xf32, #tpu.memory_space<vmem>>, vector<8x128xf32>
    tpu.vector_store %arg5[%c0_14, %c0_15], %29 {strides = array<i32>} : memref<8x128xf32, #tpu.memory_space<vmem>>, vector<8x128xf32>,
    return
  }
  func.func @transform_0(%arg0: i32) -> (i32, i32) {
    %c0_i32 = arith.constant 0 : i32
    %c0_i32_0 = arith.constant 0 : i32
    %c0_i32_1 = arith.constant 0 : i32
    return %c0_i32, %c0_i32_0 : i32, i32
  }
  func.func @transform_1(%arg0: i32) -> (i32, i32) {
    %c0_i32 = arith.constant 0 : i32
    %c0_i32_0 = arith.constant 0 : i32
    return %c0_i32, %arg0 : i32, i32
  }
  func.func @transform_2(%arg0: i32) -> (i32, i32) {
    %c0_i32 = arith.constant 0 : i32
    %c0_i32_0 = arith.constant 0 : i32
    return %c0_i32, %arg0 : i32, i32
  }
  func.func @transform_3(%arg0: i32) -> (i32, i32) {
    %c0_i32 = arith.constant 0 : i32
    %c0_i32_0 = arith.constant 0 : i32
    return %c0_i32, %arg0 : i32, i32
  }
  func.func @transform_4(%arg0: i32) -> (i32, i32) {
    %c0_i32 = arith.constant 0 : i32
    %c0_i32_0 = arith.constant 0 : i32
    return %c0_i32, %arg0 : i32, i32
  }
}

module attributes {stable_mosaic.version = 11 : i64} {
  func.func @_head_kernel(%arg0: memref<2x4x256xf32, #tpu.memory_space<vmem>>, %arg1: memref<256x128xf32, #tpu.memory_space<vmem>>, %arg2: memref<1x128xf32, #tpu.memory_space<vmem>>, %arg3: memref<2x128xf32, #tpu.memory_space<vmem>>) attributes {dimension_semantics = [], scalar_prefetch = 0 : i64, scratch_operands = 0 : i64, tpu.core_type = #tpu.core_type<tc>} {
    %c0 = arith.constant 0 : index
    %c0_0 = arith.constant 0 : index
    %c0_1 = arith.constant 0 : index
    %0 = vector.load %arg0[%c0, %c0_0, %c0_1] : memref<2x4x256xf32, #tpu.memory_space<vmem>>, vector<2x4x256xf32>
    %cst = arith.constant dense<0.000000e+00> : vector<2x256xf32>
    %1 = vector.multi_reduction <add>, %0, %cst [1] : vector<2x4x256xf32> to vector<2x256xf32>
    %cst_2 = arith.constant 2.500000e-01 : f32
    %2 = vector.broadcast %cst_2 : f32 to vector<2x256xf32>
    %3 = arith.mulf %1, %2 : vector<2x256xf32>
    %c0_3 = arith.constant 0 : index
    %c0_4 = arith.constant 0 : index
    %4 = vector.load %arg1[%c0_3, %c0_4] : memref<256x128xf32, #tpu.memory_space<vmem>>, vector<256x128xf32>
    %cst_5 = arith.constant dense<0.000000e+00> : vector<2x128xf32>
    %5 = tpu.matmul %3, %4, %cst_5 {dimension_numbers = #tpu.dot_dimension_numbers<[1], [0], [0], [1], [0, 0, 1, 1], [], []>} : vector<2x256xf32>, vector<256x128xf32>, vector<2x128xf32> -> vector<2x128xf32>
    %c0_6 = arith.constant 0 : index
    %c0_7 = arith.constant 0 : index
    %6 = vector.load %arg2[%c0_6, %c0_7] : memref<1x128xf32, #tpu.memory_space<vmem>>, vector<1x128xf32>
    %7 = vector.broadcast %6 : vector<1x128xf32> to vector<2x128xf32>
    %8 = arith.addf %5, %7 : vector<2x128xf32>
    %c0_8 = arith.constant 0 : index
    %c0_9 = arith.constant 0 : index
    %9 = vector.load %arg3[%c0_8, %c0_9] : memref<2x128xf32, #tpu.memory_space<vmem>>, vector<2x128xf32>
    tpu.vector_store %arg3[%c0_8, %c0_9], %8 {strides = array<i32>} : memref<2x128xf32, #tpu.memory_space<vmem>>, vector<2x128xf32>,
    return
  }
}

</mosaic_0001>

<bundles_post_ra>
// kernel: _lambda_.17
= control target key start
LH: loop header
LB: loop body
LE: loop exit
PB: predicated region body
PF: predicated region fallthrough
CT: control target
= control target key end

     0   :  { %v1532_v0 = vmov 0   ;;  %s2941_s1 = inlined_call_operand.vmem [shape: bf16[256,128], index: 1, kind: input, shape index: {}]   ;;  %s2942_s0 = inlined_call_operand.vmem [shape: bf16[512,256], index: 0, kind: input, shape index: {}]   ;;  %s2943_s2 = inlined_call_operand.vmem [shape: f32[1,128], index: 2, kind: input, shape index: {}]   ;;  %s2944_s3 = inlined_call_operand.vmem [shape: f32[1,128], index: 3, kind: input, shape index: {}]   ;;  %s2945_s4 = inlined_call_operand.vmem [shape: f32[512,128], index: 4, kind: output, shape index: {}]  }
   0x1   :  { %530 = vmatprep.subr.bf16.mxu0 %v1532_v0  ;;  %v1418_v1 = vld [vmem:[%s2941_s1 + $0x38] sm:$0xff]   ;;  %1385 = vmatprep.subr.bf16.mxu1 %v1532_v0  ;;  %v1419_v2 = vld [vmem:[%s2941_s1 + $0x30] sm:$0xff]   ;;  %v1420_v3 = vld [vmem:[%s2941_s1 + $0x28] sm:$0xff]  }
   0x2   :  { %531 = vmatpush1.bf16.msra.mxu0 %v1418_v1  ;;  %1401 = vmatpush1.bf16.msra.mxu1 %v1418_v1  ;;  %v1421_v4 = vld [vmem:[%s2941_s1 + $0x20] sm:$0xff]   ;;  %v1422_v5 = vld [vmem:[%s2941_s1 + $0x18] sm:$0xff]   ;;  %v1423_v7 = vld [vmem:[%s2941_s1 + $0x10] sm:$0xff]  }
   0x3   :  { %532 = vmatprep.subr.bf16.mxu0 %v1532_v0  ;;  %1386 = vmatprep.subr.bf16.mxu1 %v1532_v0  ;;  %v1436_v6 = vld [vmem:[%s2942_s0 + $0x4] ss:$8 sps:$4 sm:$0xff]   ;;  %v1426_v11 = vld [vmem:[%s2941_s1 + $0x78] sm:$0xff]   ;;  %v1427_v12 = vld [vmem:[%s2941_s1 + $0x70] sm:$0xff]  }
   0x4   :  { %562 = vmatprep.mubr.bf16.mxu0 %v1436_v6  ;;  %v1424_v8 = vld [vmem:[%s2941_s1 + $0x8] sm:$0xff]   ;;  %v1425_v9 = vld [vmem:[%s2941_s1] sm:$0xff]   ;;  %v1430_v15 = vld [vmem:[%s2941_s1 + $0x58] sm:$0xff]  }
   0x5   :  { %v1460_v10 = vld [vmem:[%s2942_s0 + $0x104] ss:$8 sps:$4 sm:$0xff]   ;;  %v1431_v16 = vld [vmem:[%s2941_s1 + $0x50] sm:$0xff]   ;;  %v1434_v19 = vld [vmem:[%s2942_s0] ss:$8 sps:$4 sm:$0xff]  }
   0x6   :  { %533 = vmatpush1.bf16.msra.mxu0 %v1419_v2  ;;  %1402 = vmatpush1.bf16.msra.mxu1 %v1419_v2  ;;  %v1428_v13 = vld [vmem:[%s2941_s1 + $0x68] sm:$0xff]   ;;  %v1429_v14 = vld [vmem:[%s2941_s1 + $0x60] sm:$0xff]   ;;  %v1437_v21 = vld [vmem:[%s2942_s0 + $0x14] ss:$8 sps:$4 sm:$0xff]  }
   0x7   :  { %534 = vmatprep.subr.bf16.mxu0 %v1532_v0  ;;  %1387 = vmatprep.subr.bf16.mxu1 %v1532_v0  ;;  %v1432_v17 = vld [vmem:[%s2941_s1 + $0x48] sm:$0xff]   ;;  %v1433_v18 = vld [vmem:[%s2941_s1 + $0x40] sm:$0xff]   ;;  %v1464_v22 = vld [vmem:[%s2942_s0 + $0x114] ss:$8 sps:$4 sm:$0xff]  }
   0x8   :  { %690 = vmatprep.mubr.bf16.mxu1 %v1460_v10  ;;  %v1458_v20 = vld [vmem:[%s2942_s0 + $0x100] ss:$8 sps:$4 sm:$0xff]   ;;  %v1439_v23 = vld [vmem:[%s2942_s0 + $0x10] ss:$8 sps:$4 sm:$0xff]   ;;  %v1440_v25 = vld [vmem:[%s2942_s0 + $0x24] ss:$8 sps:$4 sm:$0xff]  }
   0x9   :  { %v1466_v24 = vld [vmem:[%s2942_s0 + $0x110] ss:$8 sps:$4 sm:$0xff]   ;;  %v1470_v26 = vld [vmem:[%s2942_s0 + $0x124] ss:$8 sps:$4 sm:$0xff]   ;;  %v1442_v27 = vld [vmem:[%s2942_s0 + $0x20] ss:$8 sps:$4 sm:$0xff]  }
   0xa   :  { %535 = vmatpush1.bf16.msra.mxu0 %v1420_v3  ;;  %1403 = vmatpush1.bf16.msra.mxu1 %v1420_v3  ;;  %v1472_v28 = vld [vmem:[%s2942_s0 + $0x120] ss:$8 sps:$4 sm:$0xff]   ;;  %v1443_v29 = vld [vmem:[%s2942_s0 + $0x34] ss:$8 sps:$4 sm:$0xff]   ;;  %v1445_v31 = vld [vmem:[%s2942_s0 + $0x30] ss:$8 sps:$4 sm:$0xff]  }
   0xb   :  { %536 = vmatprep.subr.bf16.mxu0 %v1532_v0  ;;  %1388 = vmatprep.subr.bf16.mxu1 %v1532_v0  ;;  %v1476_v30 = vld [vmem:[%s2942_s0 + $0x134] ss:$8 sps:$4 sm:$0xff]   ;;  %v1478_v32 = vld [vmem:[%s2942_s0 + $0x130] ss:$8 sps:$4 sm:$0xff]   ;;  %v1446_v33 = vld [vmem:[%s2942_s0 + $0x44] ss:$8 sps:$4 sm:$0xff]  }
   0xc   :  { %v1482_v34 = vld [vmem:[%s2942_s0 + $0x144] ss:$8 sps:$4 sm:$0xff]   ;;  %v1448_v35 = vld [vmem:[%s2942_s0 + $0x40] ss:$8 sps:$4 sm:$0xff]   ;;  %v1449_v37 = vld [vmem:[%s2942_s0 + $0x54] ss:$8 sps:$4 sm:$0xff]  }
   0xd   :  { %v1484_v36 = vld [vmem:[%s2942_s0 + $0x140] ss:$8 sps:$4 sm:$0xff]   ;;  %v1488_v38 = vld [vmem:[%s2942_s0 + $0x154] ss:$8 sps:$4 sm:$0xff]   ;;  %v1451_v39 = vld [vmem:[%s2942_s0 + $0x50] ss:$8 sps:$4 sm:$0xff]  }
   0xe   :  { %537 = vmatpush1.bf16.msra.mxu0 %v1421_v4  ;;  %1404 = vmatpush1.bf16.msra.mxu1 %v1421_v4  ;;  %v1490_v40 = vld [vmem:[%s2942_s0 + $0x150] ss:$8 sps:$4 sm:$0xff]   ;;  %v1452_v41 = vld [vmem:[%s2942_s0 + $0x64] ss:$8 sps:$4 sm:$0xff]   ;;  %v1454_v43 = vld [vmem:[%s2942_s0 + $0x60] ss:$8 sps:$4 sm:$0xff]  }
   0xf   :  { %538 = vmatprep.subr.bf16.mxu0 %v1532_v0  ;;  %1389 = vmatprep.subr.bf16.mxu1 %v1532_v0  ;;  %v1494_v42 = vld [vmem:[%s2942_s0 + $0x164] ss:$8 sps:$4 sm:$0xff]   ;;  %v1496_v44 = vld [vmem:[%s2942_s0 + $0x160] ss:$8 sps:$4 sm:$0xff]   ;;  %v1455_v45 = vld [vmem:[%s2942_s0 + $0x74] ss:$8 sps:$4 sm:$0xff]  }
  0x10   :  { %v1500_v46 = vld [vmem:[%s2942_s0 + $0x174] ss:$8 sps:$4 sm:$0xff]   ;;  %v1457_v47 = vld [vmem:[%s2942_s0 + $0x70] ss:$8 sps:$4 sm:$0xff]   ;;  %v1461_v49 = vld [vmem:[%s2942_s0 + $0x84] ss:$8 sps:$4 sm:$0xff]  }
  0x11   :  { %v1502_v48 = vld [vmem:[%s2942_s0 + $0x170] ss:$8 sps:$4 sm:$0xff]   ;;  %v1506_v50 = vld [vmem:[%s2942_s0 + $0x184] ss:$8 sps:$4 sm:$0xff]   ;;  %v1463_v51 = vld [vmem:[%s2942_s0 + $0x80] ss:$8 sps:$4 sm:$0xff]  }
  0x12   :  { %539 = vmatpush1.bf16.msra.mxu0 %v1422_v5  ;;  %1405 = vmatpush1.bf16.msra.mxu1 %v1422_v5  ;;  %v1508_v52 = vld [vmem:[%s2942_s0 + $0x180] ss:$8 sps:$4 sm:$0xff]   ;;  %v1467_v53 = vld [vmem:[%s2942_s0 + $0x94] ss:$8 sps:$4 sm:$0xff]   ;;  %v1469_v55 = vld [vmem:[%s2942_s0 + $0x90] ss:$8 sps:$4 sm:$0xff]  }
  0x13   :  { %540 = vmatprep.subr.bf16.mxu0 %v1532_v0  ;;  %1390 = vmatprep.subr.bf16.mxu1 %v1532_v0  ;;  %v1509_v54 = vld [vmem:[%s2942_s0 + $0x194] ss:$8 sps:$4 sm:$0xff]   ;;  %v1511_v56 = vld [vmem:[%s2942_s0 + $0x190] ss:$8 sps:$4 sm:$0xff]   ;;  %v1473_v57 = vld [vmem:[%s2942_s0 + $0xa4] ss:$8 sps:$4 sm:$0xff]  }
  0x14   :  { %v1512_v58 = vld [vmem:[%s2942_s0 + $0x1a4] ss:$8 sps:$4 sm:$0xff]   ;;  %v1475_v59 = vld [vmem:[%s2942_s0 + $0xa0] ss:$8 sps:$4 sm:$0xff]   ;;  %v1479_v61 = vld [vmem:[%s2942_s0 + $0xb4] ss:$8 sps:$4 sm:$0xff]  }
  0x15   :  { %v1514_v60 = vld [vmem:[%s2942_s0 + $0x1a0] ss:$8 sps:$4 sm:$0xff]   ;;  %v1515_v62 = vld [vmem:[%s2942_s0 + $0x1b4] ss:$8 sps:$4 sm:$0xff]   ;;  %v1481_v63 = vld [vmem:[%s2942_s0 + $0xb0] ss:$8 sps:$4 sm:$0xff]  }
  0x16   :  { %541 = vmatpush1.bf16.msra.mxu0 %v1423_v7  ;;  %1406 = vmatpush1.bf16.msra.mxu1 %v1423_v7  ;;  %v1485_v1 = vld [vmem:[%s2942_s0 + $0xc4] ss:$8 sps:$4 sm:$0xff]   ;;  %v1487_v3 = vld [vmem:[%s2942_s0 + $0xc0] ss:$8 sps:$4 sm:$0xff]   ;;  %v1491_v5 = vld [vmem:[%s2942_s0 + $0xd4] ss:$8 sps:$4 sm:$0xff]  }
  0x17   :  { %542 = vmatprep.subr.bf16.mxu0 %v1532_v0  ;;  %1391 = vmatprep.subr.bf16.mxu1 %v1532_v0  ;;  %v1518_v2 = vld [vmem:[%s2942_s0 + $0x1c4] ss:$8 sps:$4 sm:$0xff]   ;;  %v1520_v4 = vld [vmem:[%s2942_s0 + $0x1c0] ss:$8 sps:$4 sm:$0xff]   ;;  %v1521_v6 = vld [vmem:[%s2942_s0 + $0x1d4] ss:$8 sps:$4 sm:$0xff]  }
  0x18   :  { %v1493_v7 = vld [vmem:[%s2942_s0 + $0xd0] ss:$8 sps:$4 sm:$0xff]   ;;  %v1524_v10 = vld [vmem:[%s2942_s0 + $0x1e4] ss:$8 sps:$4 sm:$0xff]  }
  0x1a   :  { %543 = vmatpush1.bf16.msra.mxu0 %v1424_v8  ;;  %1407 = vmatpush1.bf16.msra.mxu1 %v1424_v8  ;;  %v1523_v8 = vld [vmem:[%s2942_s0 + $0x1d0] ss:$8 sps:$4 sm:$0xff]  }
  0x1b   :  { %544 = vmatprep.subr.bf16.mxu0 %v1532_v0  ;;  %1392 = vmatprep.subr.bf16.mxu1 %v1532_v0 }
  0x1e   :  { %545 = vmatpush1.bf16.msra.mxu0 %v1425_v9  ;;  %1408 = vmatpush1.bf16.msra.mxu1 %v1425_v9  ;;  %v1497_v9 = vld [vmem:[%s2942_s0 + $0xe4] ss:$8 sps:$4 sm:$0xff]  }
  0x1f   :  { %546 = vmatprep.subr.bf16.mxu0 %v1532_v0  ;;  %1393 = vmatprep.subr.bf16.mxu1 %v1532_v0 }
  0x22   :  { %547 = vmatpush2.bf16.msra.mxu0 %v1426_v11  ;;  %1409 = vmatpush2.bf16.msra.mxu1 %v1426_v11  ;;  %v1499_v11 = vld [vmem:[%s2942_s0 + $0xe0] ss:$8 sps:$4 sm:$0xff]  }
  0x23   :  { %548 = vmatprep.subr.bf16.mxu0 %v1532_v0  ;;  %1394 = vmatprep.subr.bf16.mxu1 %v1532_v0 }
  0x26   :  { %549 = vmatpush2.bf16.msra.mxu0 %v1427_v12  ;;  %1410 = vmatpush2.bf16.msra.mxu1 %v1427_v12  ;;  %v1526_v12 = vld [vmem:[%s2942_s0 + $0x1e0] ss:$8 sps:$4 sm:$0xff]  }
  0x27   :  { %550 = vmatprep.subr.bf16.mxu0 %v1532_v0  ;;  %1395 = vmatprep.subr.bf16.mxu1 %v1532_v0 }
  0x2a   :  { %551 = vmatpush2.bf16.msra.mxu0 %v1428_v13  ;;  %1411 = vmatpush2.bf16.msra.mxu1 %v1428_v13  ;;  %v1503_v13 = vld [vmem:[%s2942_s0 + $0xf4] ss:$8 sps:$4 sm:$0xff]  }
  0x2b   :  { %552 = vmatprep.subr.bf16.mxu0 %v1532_v0  ;;  %1396 = vmatprep.subr.bf16.mxu1 %v1532_v0 }
  0x2e   :  { %553 = vmatpush2.bf16.msra.mxu0 %v1429_v14  ;;  %1412 = vmatpush2.bf16.msra.mxu1 %v1429_v14  ;;  %v1527_v14 = vld [vmem:[%s2942_s0 + $0x1f4] ss:$8 sps:$4 sm:$0xff]  }
  0x2f   :  { %554 = vmatprep.subr.bf16.mxu0 %v1532_v0  ;;  %1397 = vmatprep.subr.bf16.mxu1 %v1532_v0 }
  0x32   :  { %555 = vmatpush2.bf16.msra.mxu0 %v1430_v15  ;;  %1413 = vmatpush2.bf16.msra.mxu1 %v1430_v15  ;;  %v1505_v15 = vld [vmem:[%s2942_s0 + $0xf0] ss:$8 sps:$4 sm:$0xff]  }
  0x33   :  { %556 = vmatprep.subr.bf16.mxu0 %v1532_v0  ;;  %1398 = vmatprep.subr.bf16.mxu1 %v1532_v0 }
  0x36   :  { %557 = vmatpush2.bf16.msra.mxu0 %v1431_v16  ;;  %1414 = vmatpush2.bf16.msra.mxu1 %v1431_v16  ;;  %v1529_v16 = vld [vmem:[%s2942_s0 + $0x1f0] ss:$8 sps:$4 sm:$0xff]  }
  0x37   :  { %558 = vmatprep.subr.bf16.mxu0 %v1532_v0  ;;  %1399 = vmatprep.subr.bf16.mxu1 %v1532_v0 }
  0x3a   :  { %559 = vmatpush2.bf16.msra.mxu0 %v1432_v17  ;;  %1415 = vmatpush2.bf16.msra.mxu1 %v1432_v17 }
  0x3b   :  { %560 = vmatprep.subr.bf16.mxu0 %v1532_v0  ;;  %1400 = vmatprep.subr.bf16.mxu1 %v1532_v0  ;;  %v1517_v0 = vld [vmem:[%s2942_s0 + $0x1b0] ss:$8 sps:$4 sm:$0xff]  }
  0x3e   :  { %561 = vmatpush2.bf16.msra.mxu0 %v1433_v18  ;;  %1416 = vmatpush2.bf16.msra.mxu1 %v1433_v18 }
  0x41   :  { %563 = vmatmul.mubr.bf16.vlgmr.msra.gmra.mxu0 %v1434_v19  ;;  %691 = vmatmul.mubr.bf16.vlgmr.msra.gmra.mxu1 %v1458_v20 }
  0x42   :  { %570 = vmatprep.mubr.bf16.mxu0 %v1437_v21  ;;  %698 = vmatprep.mubr.bf16.mxu1 %v1464_v22 }
  0x49   :  { %571 = vmatmul.mubr.bf16.gmra.mxu0 %v1439_v23  ;;  %699 = vmatmul.mubr.bf16.gmra.mxu1 %v1466_v24 }
  0x4a   :  { %578 = vmatprep.mubr.bf16.mxu0 %v1440_v25  ;;  %706 = vmatprep.mubr.bf16.mxu1 %v1470_v26 }
  0x51   :  { %579 = vmatmul.mubr.bf16.gmra.mxu0 %v1442_v27  ;;  %707 = vmatmul.mubr.bf16.gmra.mxu1 %v1472_v28 }
  0x52   :  { %586 = vmatprep.mubr.bf16.mxu0 %v1443_v29  ;;  %714 = vmatprep.mubr.bf16.mxu1 %v1476_v30 }
  0x59   :  { %587 = vmatmul.mubr.bf16.gmra.mxu0 %v1445_v31  ;;  %715 = vmatmul.mubr.bf16.gmra.mxu1 %v1478_v32 }
  0x5a   :  { %594 = vmatprep.mubr.bf16.mxu0 %v1446_v33  ;;  %722 = vmatprep.mubr.bf16.mxu1 %v1482_v34 }
  0x61   :  { %595 = vmatmul.mubr.bf16.gmra.mxu0 %v1448_v35  ;;  %723 = vmatmul.mubr.bf16.gmra.mxu1 %v1484_v36 }
  0x62   :  { %602 = vmatprep.mubr.bf16.mxu0 %v1449_v37  ;;  %730 = vmatprep.mubr.bf16.mxu1 %v1488_v38 }
  0x69   :  { %603 = vmatmul.mubr.bf16.gmra.mxu0 %v1451_v39  ;;  %731 = vmatmul.mubr.bf16.gmra.mxu1 %v1490_v40 }
  0x6a   :  { %610 = vmatprep.mubr.bf16.mxu0 %v1452_v41  ;;  %738 = vmatprep.mubr.bf16.mxu1 %v1494_v42 }
  0x71   :  { %611 = vmatmul.mubr.bf16.gmra.mxu0 %v1454_v43  ;;  %739 = vmatmul.mubr.bf16.gmra.mxu1 %v1496_v44 }
  0x72   :  { %618 = vmatprep.mubr.bf16.mxu0 %v1455_v45  ;;  %746 = vmatprep.mubr.bf16.mxu1 %v1500_v46 }
  0x79   :  { %619 = vmatmul.mubr.bf16.gmra.mxu0 %v1457_v47  ;;  %747 = vmatmul.mubr.bf16.gmra.mxu1 %v1502_v48 }
  0x7a   :  { %626 = vmatprep.mubr.bf16.mxu0 %v1461_v49  ;;  %754 = vmatprep.mubr.bf16.mxu1 %v1506_v50 }
  0x81   :  { %627 = vmatmul.mubr.bf16.gmra.mxu0 %v1463_v51  ;;  %755 = vmatmul.mubr.bf16.gmra.mxu1 %v1508_v52 }
  0x82   :  { %634 = vmatprep.mubr.bf16.mxu0 %v1467_v53  ;;  %762 = vmatprep.mubr.bf16.mxu1 %v1509_v54 }
  0x89   :  { %635 = vmatmul.mubr.bf16.gmra.mxu0 %v1469_v55  ;;  %763 = vmatmul.mubr.bf16.gmra.mxu1 %v1511_v56 }
  0x8a   :  { %642 = vmatprep.mubr.bf16.mxu0 %v1473_v57  ;;  %770 = vmatprep.mubr.bf16.mxu1 %v1512_v58 }
  0x91   :  { %643 = vmatmul.mubr.bf16.gmra.mxu0 %v1475_v59  ;;  %771 = vmatmul.mubr.bf16.gmra.mxu1 %v1514_v60 }
  0x92   :  { %650 = vmatprep.mubr.bf16.mxu0 %v1479_v61  ;;  %778 = vmatprep.mubr.bf16.mxu1 %v1515_v62 }
  0x99   :  { %651 = vmatmul.mubr.bf16.gmra.mxu0 %v1481_v63  ;;  %779 = vmatmul.mubr.bf16.gmra.mxu1 %v1517_v0 }
  0x9a   :  { %658 = vmatprep.mubr.bf16.mxu0 %v1485_v1  ;;  %786 = vmatprep.mubr.bf16.mxu1 %v1518_v2 }
  0xa1   :  { %659 = vmatmul.mubr.bf16.gmra.mxu0 %v1487_v3  ;;  %787 = vmatmul.mubr.bf16.gmra.mxu1 %v1520_v4 }
  0xa2   :  { %666 = vmatprep.mubr.bf16.mxu0 %v1491_v5  ;;  %794 = vmatprep.mubr.bf16.mxu1 %v1521_v6 }
  0xa9   :  { %667 = vmatmul.mubr.bf16.gmra.mxu0 %v1493_v7  ;;  %795 = vmatmul.mubr.bf16.gmra.mxu1 %v1523_v8 }
  0xaa   :  { %674 = vmatprep.mubr.bf16.mxu0 %v1497_v9  ;;  %802 = vmatprep.mubr.bf16.mxu1 %v1524_v10 }
  0xb1   :  { %675 = vmatmul.mubr.bf16.gmra.mxu0 %v1499_v11  ;;  %803 = vmatmul.mubr.bf16.gmra.mxu1 %v1526_v12 }
  0xb2   :  { %682 = vmatprep.mubr.bf16.mxu0 %v1503_v13  ;;  %810 = vmatprep.mubr.bf16.mxu1 %v1527_v14 }
  0xb9   :  { %683 = vmatmul.mubr.bf16.gmra.mxu0 %v1505_v15  ;;  %811 = vmatmul.mubr.bf16.gmra.mxu1 %v1529_v16 }
 0x101   :  { %v1830_v17 = vpop.f32.mrf.mxu0  ;;  %v1832_v18 = vpop.f32.mrf.mxu1 }
 0x103   :  { %v566_v19 = vpop.f32.mrf.mxu0  ;;  %v694_v20 = vpop.f32.mrf.mxu1 }
 0x105   :  { %v1834_v21 = vpop.f32.mrf.mxu0  ;;  %v1836_v22 = vpop.f32.mrf.mxu1 }
 0x106   :  { %v892_v19 = vmul.f32 %v1834_v21, %v1834_v21 }
 0x107   :  { %v569_v23 = vpop.f32.mrf.mxu0  ;;  %v697_v24 = vpop.f32.mrf.mxu1 }
 0x108   :  { %v891_v24 = vmul.f32 %v1830_v17, %v1830_v17 }
 0x109   :  { %v1838_v25 = vpop.f32.mrf.mxu0  ;;  %v1840_v26 = vpop.f32.mrf.mxu1 }
 0x10b   :  { %v574_v27 = vpop.f32.mrf.mxu0  ;;  %v702_v28 = vpop.f32.mrf.mxu1 }
 0x10c   :  { %v821_v27 = vadd.f32 %v1834_v21, %v1830_v17  ;;  %v893_v28 = vmul.f32 %v1838_v25, %v1838_v25 }
 0x10d   :  { %v1842_v29 = vpop.f32.mrf.mxu0  ;;  %v1844_v30 = vpop.f32.mrf.mxu1 }
 0x10f   :  { %v577_v31 = vpop.f32.mrf.mxu0  ;;  %v705_v32 = vpop.f32.mrf.mxu1 }
 0x111   :  { %v1846_v33 = vpop.f32.mrf.mxu0  ;;  %v1848_v34 = vpop.f32.mrf.mxu1 }
 0x113   :  { %v582_v35 = vpop.f32.mrf.mxu0  ;;  %v710_v36 = vpop.f32.mrf.mxu1 }
 0x114   :  { %v955_v35 = vadd.f32 %v892_v19, %v891_v24  ;;  %v822_v36 = vadd.f32 %v821_v27, %v1838_v25 }
 0x115   :  { %v1850_v37 = vpop.f32.mrf.mxu0  ;;  %v1852_v38 = vpop.f32.mrf.mxu1 }
 0x117   :  { %v585_v39 = vpop.f32.mrf.mxu0  ;;  %v713_v40 = vpop.f32.mrf.mxu1 }
 0x118   :  { %v894_v39 = vmul.f32 %v1842_v29, %v1842_v29 }
 0x119   :  { %v1854_v41 = vpop.f32.mrf.mxu0  ;;  %v1856_v42 = vpop.f32.mrf.mxu1 }
 0x11b   :  { %v590_v43 = vpop.f32.mrf.mxu0  ;;  %v718_v44 = vpop.f32.mrf.mxu1 }
 0x11c   :  { %v956_v44 = vadd.f32 %v955_v35, %v893_v28 }
 0x11d   :  { %v1858_v45 = vpop.f32.mrf.mxu0  ;;  %v1860_v46 = vpop.f32.mrf.mxu1 }
 0x11f   :  { %v593_v47 = vpop.f32.mrf.mxu0  ;;  %v721_v48 = vpop.f32.mrf.mxu1 }
 0x120   :  { %v823_v47 = vadd.f32 %v822_v36, %v1842_v29  ;;  %v895_v48 = vmul.f32 %v1846_v33, %v1846_v33 }
 0x121   :  { %v1862_v49 = vpop.f32.mrf.mxu0  ;;  %v1864_v50 = vpop.f32.mrf.mxu1 }
 0x122   :  { %v899_v28 = vmul.f32 %v1862_v49, %v1862_v49 }
 0x123   :  { %v598_v51 = vpop.f32.mrf.mxu0  ;;  %v726_v52 = vpop.f32.mrf.mxu1 }
 0x125   :  { %v1866_v53 = vpop.f32.mrf.mxu0  ;;  %v1868_v54 = vpop.f32.mrf.mxu1 }
 0x127   :  { %v601_v55 = vpop.f32.mrf.mxu0  ;;  %v729_v56 = vpop.f32.mrf.mxu1 }
 0x128   :  { %v957_v55 = vadd.f32 %v956_v44, %v894_v39  ;;  %v824_v56 = vadd.f32 %v823_v47, %v1846_v33  ;;  %v900_v39 = vmul.f32 %v1866_v53, %v1866_v53 }
 0x129   :  { %v1870_v57 = vpop.f32.mrf.mxu0  ;;  %v1872_v58 = vpop.f32.mrf.mxu1 }
 0x12b   :  { %v606_v59 = vpop.f32.mrf.mxu0  ;;  %v734_v60 = vpop.f32.mrf.mxu1 }
 0x12c   :  { %v896_v59 = vmul.f32 %v1850_v37, %v1850_v37 }
 0x12d   :  { %v1874_v61 = vpop.f32.mrf.mxu0  ;;  %v1876_v62 = vpop.f32.mrf.mxu1 }
 0x12f   :  { %v609_v63 = vpop.f32.mrf.mxu0  ;;  %v737_v0 = vpop.f32.mrf.mxu1 }
 0x130   :  { %v958_v0 = vadd.f32 %v957_v55, %v895_v48 }
 0x131   :  { %v1878_v1 = vpop.f32.mrf.mxu0  ;;  %v1880_v2 = vpop.f32.mrf.mxu1 }
 0x133   :  { %v614_v3 = vpop.f32.mrf.mxu0  ;;  %v742_v4 = vpop.f32.mrf.mxu1 }
 0x134   :  { %v825_v3 = vadd.f32 %v824_v56, %v1850_v37  ;;  %v897_v4 = vmul.f32 %v1854_v41, %v1854_v41 }
 0x135   :  { %v1882_v5 = vpop.f32.mrf.mxu0  ;;  %v1884_v6 = vpop.f32.mrf.mxu1 }
 0x137   :  { %v617_v7 = vpop.f32.mrf.mxu0  ;;  %v745_v8 = vpop.f32.mrf.mxu1 }
 0x139   :  { %v1886_v9 = vpop.f32.mrf.mxu0  ;;  %v1888_v10 = vpop.f32.mrf.mxu1 }
 0x13b   :  { %v622_v11 = vpop.f32.mrf.mxu0  ;;  %v750_v12 = vpop.f32.mrf.mxu1 }
 0x13c   :  { %v959_v11 = vadd.f32 %v958_v0, %v896_v59  ;;  %v826_v12 = vadd.f32 %v825_v3, %v1854_v41  ;;  %v902_v3 = vmul.f32 %v1874_v61, %v1874_v61 }
 0x13d   :  { %v1890_v13 = vpop.f32.mrf.mxu0  ;;  %v1892_v14 = vpop.f32.mrf.mxu1 }
 0x13e   :  { %v960_v24 = vadd.f32 %v959_v11, %v897_v4  ;;  %v827_v27 = vadd.f32 %v826_v12, %v1858_v45  ;;  %v903_v12 = vmul.f32 %v1878_v1, %v1878_v1 }
 0x13f   :  { %v625_v15 = vpop.f32.mrf.mxu0  ;;  %v753_v16 = vpop.f32.mrf.mxu1 }
 0x140   :  { %v898_v15 = vmul.f32 %v1858_v45, %v1858_v45  ;;  %v828_v36 = vadd.f32 %v827_v27, %v1862_v49 }
 0x141   :  { %v1896_v20 = vpop.f32.mrf.mxu0  ;;  %v1898_v23 = vpop.f32.mrf.mxu1 }
 0x142   :  { %2970 = vst [vmem:[#allocation2_spill] sm:$0xff] %v1896_v20  ;;  %v961_v35 = vadd.f32 %v960_v24, %v898_v15 }
 0x143   :  { %v630_v31 = vpop.f32.mrf.mxu0  ;;  %v758_v32 = vpop.f32.mrf.mxu1 }
 0x144   :  { %v962_v48 = vadd.f32 %v961_v35, %v899_v28 }
 0x145   :  { %v1909_v40 = vpop.f32.mrf.mxu0  ;;  %v1911_v43 = vpop.f32.mrf.mxu1 }
 0x146   :  { %2971 = vst [vmem:[#allocation3_spill] sm:$0xff] %v1909_v40  ;;  %v963_v59 = vadd.f32 %v962_v48, %v900_v39  ;;  %v905_v48 = vmul.f32 %v1886_v9, %v1886_v9 }
 0x147   :  { %v633_v51 = vpop.f32.mrf.mxu0  ;;  %v761_v52 = vpop.f32.mrf.mxu1 }
 0x148   :  { %v829_v51 = vadd.f32 %v828_v36, %v1866_v53  ;;  %v901_v52 = vmul.f32 %v1870_v57, %v1870_v57 }
 0x149   :  { %v1919_v60 = vpop.f32.mrf.mxu0  ;;  %v1921_v63 = vpop.f32.mrf.mxu1 }
 0x14a   :  { %2972 = vst [vmem:[#allocation4_spill] sm:$0xff] %v1919_v60  ;;  %v830_v0 = vadd.f32 %v829_v51, %v1870_v57 }
 0x14b   :  { %v638_v7 = vpop.f32.mrf.mxu0  ;;  %v766_v8 = vpop.f32.mrf.mxu1 }
 0x14c   :  { %v964_v8 = vadd.f32 %v963_v59, %v901_v52  ;;  %v831_v11 = vadd.f32 %v830_v0, %v1874_v61  ;;  %v906_v59 = vmul.f32 %v1890_v13, %v1890_v13 }
 0x14d   :  { %v1929_v16 = vpop.f32.mrf.mxu0  ;;  %v1931_v19 = vpop.f32.mrf.mxu1 }
 0x14e   :  { %2973 = vst [vmem:[#allocation5_spill] sm:$0xff] %v1929_v16  ;;  %v965_v27 = vadd.f32 %v964_v8, %v902_v3  ;;  %v832_v28 = vadd.f32 %v831_v11, %v1878_v1 }
 0x14f   :  { %v641_v31 = vpop.f32.mrf.mxu0  ;;  %v769_v32 = vpop.f32.mrf.mxu1 }
 0x150   :  { %v904_v31 = vmul.f32 %v1882_v5, %v1882_v5  ;;  %v966_v36 = vadd.f32 %v965_v27, %v903_v12  ;;  %v833_v39 = vadd.f32 %v832_v28, %v1882_v5  ;;  %v907_v12 = vmul.f32 %v1896_v20, %v1896_v20 }
 0x151   :  { %v1939_v44 = vpop.f32.mrf.mxu0  ;;  %v1941_v47 = vpop.f32.mrf.mxu1 }
 0x152   :  { %2974 = vst [vmem:[#allocation6_spill] sm:$0xff] %v1939_v44 }
 0x153   :  { %v646_v55 = vpop.f32.mrf.mxu0  ;;  %v774_v56 = vpop.f32.mrf.mxu1 }
 0x154   :  { %v967_v55 = vadd.f32 %v966_v36, %v904_v31  ;;  %v834_v56 = vadd.f32 %v833_v39, %v1886_v9  ;;  %v908_v31 = vmul.f32 %v1909_v40, %v1909_v40 }
 0x155   :  { %v1949_v4 = vpop.f32.mrf.mxu0  ;;  %v1951_v7 = vpop.f32.mrf.mxu1 }
 0x156   :  { %2975 = vst [vmem:[#allocation7_spill] sm:$0xff] %v1949_v4  ;;  %v968_v8 = vadd.f32 %v967_v55, %v905_v48  ;;  %v835_v11 = vadd.f32 %v834_v56, %v1890_v13 }
 0x157   :  { %v649_v15 = vpop.f32.mrf.mxu0  ;;  %v777_v24 = vpop.f32.mrf.mxu1 }
 0x158   :  { %v969_v27 = vadd.f32 %v968_v8, %v906_v59  ;;  %v836_v28 = vadd.f32 %v835_v11, %v1896_v20  ;;  %v910_v8 = vmul.f32 %v1929_v16, %v1929_v16 }
 0x159   :  { %v1959_v32 = vpop.f32.mrf.mxu0  ;;  %v1961_v35 = vpop.f32.mrf.mxu1 }
 0x15a   :  { %2976 = vst [vmem:[#allocation8_spill] sm:$0xff] %v1959_v32  ;;  %v837_v48 = vadd.f32 %v836_v28, %v1909_v40 }
 0x15b   :  { %v654_v51 = vpop.f32.mrf.mxu0  ;;  %v782_v52 = vpop.f32.mrf.mxu1 }
 0x15c   :  { %v970_v51 = vadd.f32 %v969_v27, %v907_v12  ;;  %v909_v52 = vmul.f32 %v1919_v60, %v1919_v60  ;;  %v838_v59 = vadd.f32 %v837_v48, %v1919_v60  ;;  %v911_v27 = vmul.f32 %v1939_v44, %v1939_v44 }
 0x15d   :  { %v1969_v0 = vpop.f32.mrf.mxu0  ;;  %v1971_v3 = vpop.f32.mrf.mxu1 }
 0x15e   :  { %2977 = vst [vmem:[#allocation9_spill] sm:$0xff] %v1969_v0  ;;  %v839_v12 = vadd.f32 %v838_v59, %v1929_v16 }
 0x15f   :  { %v657_v15 = vpop.f32.mrf.mxu0  ;;  %v785_v24 = vpop.f32.mrf.mxu1 }
 0x160   :  { %v971_v15 = vadd.f32 %v970_v51, %v908_v31  ;;  %v840_v31 = vadd.f32 %v839_v12, %v1939_v44  ;;  %v912_v51 = vmul.f32 %v1949_v4, %v1949_v4 }
 0x161   :  { %v1979_v36 = vpop.f32.mrf.mxu0  ;;  %v1981_v39 = vpop.f32.mrf.mxu1 }
 0x162   :  { %2978 = vst [vmem:[#allocation10_spill] sm:$0xff] %v1979_v36  ;;  %2979 = vst [vmem:[#allocation11_spill] sm:$0xff] %v1981_v39  ;;  %v972_v20 = vadd.f32 %v971_v15, %v909_v52  ;;  %v841_v52 = vadd.f32 %v840_v31, %v1949_v4  ;;  %v913_v15 = vmul.f32 %v1959_v32, %v1959_v32 }
 0x163   :  { %v662_v55 = vpop.f32.mrf.mxu0  ;;  %v790_v56 = vpop.f32.mrf.mxu1 }
 0x164   :  { %v973_v55 = vadd.f32 %v972_v20, %v910_v8  ;;  %v842_v20 = vadd.f32 %v841_v52, %v1959_v32 }
 0x165   :  { %v1989_v11 = vpop.f32.mrf.mxu0  ;;  %v1991_v24 = vpop.f32.mrf.mxu1 }
 0x166   :  { %2980 = vst [vmem:[#allocation12_spill] sm:$0xff] %v1989_v11  ;;  %2981 = vst [vmem:[#allocation13_spill] sm:$0xff] %v1991_v24  ;;  %v974_v60 = vadd.f32 %v973_v55, %v911_v27  ;;  %v843_v27 = vadd.f32 %v842_v20, %v1969_v0  ;;  %v915_v55 = vmul.f32 %v1979_v36, %v1979_v36 }
 0x167   :  { %v665_v28 = vpop.f32.mrf.mxu0  ;;  %v793_v40 = vpop.f32.mrf.mxu1 }
 0x168   :  { %v975_v28 = vadd.f32 %v974_v60, %v912_v51  ;;  %v914_v40 = vmul.f32 %v1969_v0, %v1969_v0  ;;  %v844_v60 = vadd.f32 %v843_v27, %v1979_v36 }
 0x169   :  { %v1999_v48 = vpop.f32.mrf.mxu0  ;;  %v2001_v56 = vpop.f32.mrf.mxu1 }
 0x16a   :  { %2982 = vst [vmem:[#allocation14_spill] sm:$0xff] %v1999_v48  ;;  %2983 = vst [vmem:[#allocation15_spill] sm:$0xff] %v2001_v56  ;;  %v976_v44 = vadd.f32 %v975_v28, %v913_v15  ;;  %v845_v15 = vadd.f32 %v844_v60, %v1989_v11  ;;  %v917_v28 = vmul.f32 %v1999_v48, %v1999_v48 }
 0x16b   :  { %v670_v59 = vpop.f32.mrf.mxu0  ;;  %v798_v16 = vpop.f32.mrf.mxu1 }
 0x16c   :  { %v977_v59 = vadd.f32 %v976_v44, %v914_v40  ;;  %v916_v16 = vmul.f32 %v1989_v11, %v1989_v11  ;;  %v846_v44 = vadd.f32 %v845_v15, %v1999_v48 }
 0x16d   :  { %v2009_v8 = vpop.f32.mrf.mxu0  ;;  %v2011_v12 = vpop.f32.mrf.mxu1 }
 0x16e   :  { %2984 = vst [vmem:[#allocation16_spill] sm:$0xff] %v2009_v8  ;;  %2985 = vst [vmem:[#allocation17_spill] sm:$0xff] %v2011_v12  ;;  %v978_v32 = vadd.f32 %v977_v59, %v915_v55  ;;  %v847_v55 = vadd.f32 %v846_v44, %v2009_v8 }
 0x16f   :  { %v673_v31 = vpop.f32.mrf.mxu0  ;;  %v801_v4 = vpop.f32.mrf.mxu1 }
 0x170   :  { %v979_v31 = vadd.f32 %v978_v32, %v916_v16  ;;  %v918_v4 = vmul.f32 %v2009_v8, %v2009_v8 }
 0x171   :  { %v2019_v51 = vpop.f32.mrf.mxu0  ;;  %v2021_v52 = vpop.f32.mrf.mxu1 }
 0x172   :  { %2986 = vst [vmem:[#allocation18_spill] sm:$0xff] %v2019_v51  ;;  %2987 = vst [vmem:[#allocation19_spill] sm:$0xff] %v2021_v52  ;;  %v980_v36 = vadd.f32 %v979_v31, %v917_v28  ;;  %v919_v59 = vmul.f32 %v2019_v51, %v2019_v51  ;;  %v848_v32 = vadd.f32 %v847_v55, %v2019_v51 }
 0x173   :  { %v678_v20 = vpop.f32.mrf.mxu0  ;;  %v806_v0 = vpop.f32.mrf.mxu1 }
 0x174   :  { %v981_v20 = vadd.f32 %v980_v36, %v918_v4 }
 0x175   :  { %v2029_v40 = vpop.f32.mrf.mxu0  ;;  %v2031_v27 = vpop.f32.mrf.mxu1 }
 0x176   :  { %2988 = vst [vmem:[#allocation20_spill] sm:$0xff] %v2029_v40  ;;  %2989 = vst [vmem:[#allocation21_spill] sm:$0xff] %v2031_v27  ;;  %v920_v0 = vmul.f32 %v2029_v40, %v2029_v40  ;;  %v982_v48 = vadd.f32 %v981_v20, %v919_v59  ;;  %v849_v28 = vadd.f32 %v848_v32, %v2029_v40 }
 0x177   :  { %v681_v60 = vpop.f32.mrf.mxu0  ;;  %v809_v11 = vpop.f32.mrf.mxu1  ;;  %v923_v40 = vmul.f32 %v1832_v18, %v1832_v18 }
 0x178   :  { %v983_v60 = vadd.f32 %v982_v48, %v920_v0  ;;  %v924_v0 = vmul.f32 %v1836_v22, %v1836_v22 }
 0x179   :  { %v2039_v16 = vpop.f32.mrf.mxu0  ;;  %v2041_v15 = vpop.f32.mrf.mxu1 }
 0x17a   :  { %2990 = vst [vmem:[#allocation22_spill] sm:$0xff] %v2041_v15  ;;  %v921_v31 = vmul.f32 %v2039_v16, %v2039_v16  ;;  %v850_v36 = vadd.f32 %v849_v28, %v2039_v16 }
 0x17b   :  { %v686_v44 = vpop.f32.mrf.mxu0  ;;  %v814_v8 = vpop.f32.mrf.mxu1 }
 0x17c   :  { %v984_v55 = vadd.f32 %v983_v60, %v921_v31  ;;  %v925_v31 = vmul.f32 %v1840_v26, %v1840_v26 }
 0x17d   :  { %v2047_v11 = vpop.f32.mrf.mxu0  ;;  %v2049_v4 = vpop.f32.mrf.mxu1 }
 0x17e   :  { %2991 = vst [vmem:[#allocation23_spill] sm:$0xff] %v2047_v11  ;;  %2992 = vst [vmem:[#allocation24_spill] sm:$0xff] %v2049_v4  ;;  %v851_v51 = vadd.f32 %v850_v36, %v2047_v11  ;;  %v922_v59 = vmul.f32 %v2047_v11, %v2047_v11 }
 0x17f   :  { %v689_v20 = vpop.f32.mrf.mxu0  ;;  %v817_v32 = vpop.f32.mrf.mxu1 }
 0x180   :  { %v852_v8 = vadd.f32 %v851_v51, %v1832_v18  ;;  %v985_v48 = vadd.f32 %v984_v55, %v922_v59  ;;  %v926_v20 = vmul.f32 %v1844_v30, %v1844_v30  ;;  %v927_v51 = vmul.f32 %v1848_v34, %v1848_v34 }
 0x182   :  { %v853_v28 = vadd.f32 %v852_v8, %v1836_v22  ;;  %v986_v44 = vadd.f32 %v985_v48, %v923_v40  ;;  %v928_v40 = vmul.f32 %v1852_v38, %v1852_v38 }
 0x184   :  { %v854_v60 = vadd.f32 %v853_v28, %v1840_v26  ;;  %v987_v36 = vadd.f32 %v986_v44, %v924_v0  ;;  %v929_v0 = vmul.f32 %v1856_v42, %v1856_v42 }
 0x186   :  { %v855_v32 = vadd.f32 %v854_v60, %v1844_v30  ;;  %v988_v11 = vadd.f32 %v987_v36, %v925_v31  ;;  %v930_v31 = vmul.f32 %v1860_v46, %v1860_v46 }
 0x188   :  { %v856_v55 = vadd.f32 %v855_v32, %v1848_v34  ;;  %v989_v59 = vadd.f32 %v988_v11, %v926_v20  ;;  %v931_v11 = vmul.f32 %v1864_v50, %v1864_v50 }
 0x18a   :  { %v857_v8 = vadd.f32 %v856_v55, %v1852_v38  ;;  %v990_v48 = vadd.f32 %v989_v59, %v927_v51  ;;  %v932_v51 = vmul.f32 %v1868_v54, %v1868_v54 }
 0x18c   :  { %v858_v28 = vadd.f32 %v857_v8, %v1856_v42  ;;  %v991_v44 = vadd.f32 %v990_v48, %v928_v40  ;;  %v933_v40 = vmul.f32 %v1872_v58, %v1872_v58 }
 0x18e   :  { %v859_v60 = vadd.f32 %v858_v28, %v1860_v46  ;;  %v992_v36 = vadd.f32 %v991_v44, %v929_v0  ;;  %v934_v0 = vmul.f32 %v1876_v62, %v1876_v62 }
 0x190   :  { %v993_v20 = vadd.f32 %v992_v36, %v930_v31  ;;  %v860_v32 = vadd.f32 %v859_v60, %v1864_v50  ;;  %v935_v31 = vmul.f32 %v1880_v2, %v1880_v2 }
 0x192   :  { %v861_v55 = vadd.f32 %v860_v32, %v1868_v54  ;;  %v994_v59 = vadd.f32 %v993_v20, %v931_v11  ;;  %v936_v11 = vmul.f32 %v1884_v6, %v1884_v6 }
 0x194   :  { %v862_v8 = vadd.f32 %v861_v55, %v1872_v58  ;;  %v995_v48 = vadd.f32 %v994_v59, %v932_v51  ;;  %v937_v51 = vmul.f32 %v1888_v10, %v1888_v10 }
 0x196   :  { %v863_v28 = vadd.f32 %v862_v8, %v1876_v62  ;;  %v996_v44 = vadd.f32 %v995_v48, %v933_v40  ;;  %v938_v40 = vmul.f32 %v1892_v14, %v1892_v14 }
 0x198   :  { %v864_v60 = vadd.f32 %v863_v28, %v1880_v2  ;;  %v997_v36 = vadd.f32 %v996_v44, %v934_v0  ;;  %v939_v0 = vmul.f32 %v1898_v23, %v1898_v23 }
 0x19a   :  { %v865_v20 = vadd.f32 %v864_v60, %v1884_v6  ;;  %v998_v32 = vadd.f32 %v997_v36, %v935_v31  ;;  %v940_v60 = vmul.f32 %v1911_v43, %v1911_v43 }
 0x19c   :  { %v866_v55 = vadd.f32 %v865_v20, %v1888_v10  ;;  %v999_v59 = vadd.f32 %v998_v32, %v936_v11  ;;  %v941_v32 = vmul.f32 %v1921_v63, %v1921_v63 }
 0x19e   :  { %v867_v8 = vadd.f32 %v866_v55, %v1892_v14  ;;  %v1000_v48 = vadd.f32 %v999_v59, %v937_v51  ;;  %v942_v59 = vmul.f32 %v1931_v19, %v1931_v19 }
 0x1a0   :  { %v868_v28 = vadd.f32 %v867_v8, %v1898_v23  ;;  %v1001_v44 = vadd.f32 %v1000_v48, %v938_v40  ;;  %v943_v48 = vmul.f32 %v1941_v47, %v1941_v47 }
 0x1a2   :  { %v869_v31 = vadd.f32 %v868_v28, %v1911_v43  ;;  %v1002_v36 = vadd.f32 %v1001_v44, %v939_v0  ;;  %v944_v44 = vmul.f32 %v1951_v7, %v1951_v7 }
 0x1a4   :  { %v1003_v20 = vadd.f32 %v1002_v36, %v940_v60  ;;  %v870_v11 = vadd.f32 %v869_v31, %v1921_v63  ;;  %v945_v36 = vmul.f32 %v1961_v35, %v1961_v35 }
 0x1a6   :  { %v1004_v55 = vadd.f32 %v1003_v20, %v941_v32  ;;  %v871_v51 = vadd.f32 %v870_v11, %v1931_v19  ;;  %v946_v32 = vmul.f32 %v1971_v3, %v1971_v3 }
 0x1a8   :  { %v1005_v8 = vadd.f32 %v1004_v55, %v942_v59  ;;  %v872_v40 = vadd.f32 %v871_v51, %v1941_v47  ;;  %v947_v59 = vmul.f32 %v1981_v39, %v1981_v39 }
 0x1aa   :  { %v1006_v28 = vadd.f32 %v1005_v8, %v943_v48  ;;  %v873_v0 = vadd.f32 %v872_v40, %v1951_v7  ;;  %v948_v48 = vmul.f32 %v1991_v24, %v1991_v24 }
 0x1ac   :  { %v1007_v31 = vadd.f32 %v1006_v28, %v944_v44  ;;  %v874_v60 = vadd.f32 %v873_v0, %v1961_v35  ;;  %v949_v44 = vmul.f32 %v2001_v56, %v2001_v56 }
 0x1ae   :  { %v1008_v20 = vadd.f32 %v1007_v31, %v945_v36  ;;  %v875_v11 = vadd.f32 %v874_v60, %v1971_v3  ;;  %v950_v36 = vmul.f32 %v2011_v12, %v2011_v12 }
 0x1b0   :  { %v1009_v55 = vadd.f32 %v1008_v20, %v946_v32  ;;  %v876_v51 = vadd.f32 %v875_v11, %v1981_v39  ;;  %v951_v32 = vmul.f32 %v2021_v52, %v2021_v52 }
 0x1b2   :  { %v1010_v8 = vadd.f32 %v1009_v55, %v947_v59  ;;  %v877_v40 = vadd.f32 %v876_v51, %v1991_v24  ;;  %v952_v59 = vmul.f32 %v2031_v27, %v2031_v27 }
 0x1b4   :  { %v1011_v28 = vadd.f32 %v1010_v8, %v948_v48  ;;  %v878_v0 = vadd.f32 %v877_v40, %v2001_v56  ;;  %v953_v48 = vmul.f32 %v2041_v15, %v2041_v15 }
 0x1b6   :  { %v1012_v31 = vadd.f32 %v1011_v28, %v949_v44  ;;  %v879_v60 = vadd.f32 %v878_v0, %v2011_v12  ;;  %v954_v44 = vmul.f32 %v2049_v4, %v2049_v4 }
 0x1b8   :  { %v1013_v20 = vadd.f32 %v1012_v31, %v950_v36  ;;  %v880_v11 = vadd.f32 %v879_v60, %v2021_v52 }
 0x1ba   :  { %v1014_v55 = vadd.f32 %v1013_v20, %v951_v32  ;;  %v881_v51 = vadd.f32 %v880_v11, %v2031_v27 }
 0x1bc   :  { %v1015_v8 = vadd.f32 %v1014_v55, %v952_v59  ;;  %v882_v40 = vadd.f32 %v881_v51, %v2041_v15 }
 0x1be   :  { %v1016_v28 = vadd.f32 %v1015_v8, %v953_v48  ;;  %v883_v0 = vadd.f32 %v882_v40, %v2049_v4  ;;  %v1034_v4 = vlaneseq }
 0x1c0   :  { %v884_v31 = vrot.slane %v883_v0, 4  ;;  %v1017_v60 = vadd.f32 %v1016_v28, %v954_v44  ;;  %v2150_v28 = vshrl.u32 %v1034_v4, 7 }
 0x1c2   :  { %v885_v36 = vadd.f32 %v884_v31, %v883_v0  ;;  %v1018_v20 = vrot.slane %v1017_v60, 4  ;;  %v819_v0 = vld [vmem:[%s2943_s2] sm:$0x1]  ;;  %v2969_v44 = vsub.s32 0, %v2150_v28 }
 0x1c4   :  { %v886_v11 = vrot.slane %v885_v36, 2  ;;  %v1019_v32 = vadd.f32 %v1018_v20, %v1017_v60  ;;  %v2993_v20 = vld [vmem:[#allocation2_spill] sm:$0xff] }
 0x1c6   :  { %v887_v52 = vadd.f32 %v886_v11, %v885_v36  ;;  %v1020_v27 = vrot.slane %v1019_v32, 2  ;;  %v2994_v11 = vld [vmem:[#allocation3_spill] sm:$0xff] }
 0x1c8   :  { %v888_v55 = vrot.slane %v887_v52, 1  ;;  %v1021_v59 = vadd.f32 %v1020_v27, %v1019_v32  ;;  %v2995_v32 = vld [vmem:[#allocation4_spill] sm:$0xff] }
 0x1ca   :  { %v889_v51 = vadd.f32 %v888_v55, %v887_v52  ;;  %v1022_v12 = vrot.slane %v1021_v59, 1  ;;  %v2996_v55 = vld [vmem:[#allocation5_spill] sm:$0xff] }
 0x1cc   :  { %v890_v56 = vmul.f32 0.001953125, %v889_v51  ;;  %v1023_v15 = vadd.f32 %v1022_v12, %v1021_v59  ;;  %v2159_v12 = vld [vmem:[%s2944_s3] sm:$0x1]  ;;  %v2998_v51 = vld [vmem:[#allocation7_spill] sm:$0xff] }
 0x1cd   :  { %v2997_v59 = vld [vmem:[#allocation6_spill] sm:$0xff] }
 0x1ce   :  { %v1024_v8 = vmul.f32 0.001953125, %v1023_v15  ;;  %v1025_v48 = vmul.f32 %v890_v56, %v890_v56 }
 0x1d0   :  { %v1026_v40 = vsub.f32 %v1024_v8, %v1025_v48  ;;  %v2999_v48 = vld [vmem:[#allocation8_spill] sm:$0xff] }
 0x1d2   :  { %v1027_v24 = vmax.f32 %v1026_v40, 0.0 }
 0x1d4   :  { %v1028_v39 = vadd.f32 1e-05, %v1027_v24 }
 0x1d6   :  { %1530 = vrsqrt.f32 %v1028_v39 }
 0x1e3   :  { %v1531_v27 = vpop.eup %1530 }
 0x1e4   :  { %v1030_v52 = vmul.f32 %v1531_v27, %v819_v0  ;;  %v3000_v0 = vld [vmem:[#allocation9_spill] sm:$0xff] }
 0x1e6   :  { %v2161_v15 = vmul.f32 %v1030_v52, %v890_v56  ;;  %v2165_v39 = vrot.slane %v1030_v52, %v2969_v44  ;;  %v3001_v52 = vld [vmem:[#allocation10_spill] sm:$0xff]  ;;  %v3007_v44 = vld [vmem:[#allocation23_spill] sm:$0xff] }
 0x1e8   :  { %v1032_v24 = vsub.f32 %v2159_v12, %v2161_v15  ;;  %v2171_v4 = vmul.f32 %v2165_v39, %v1830_v17  ;;  %v2175_v31 = vmul.f32 %v2165_v39, %v1834_v21  ;;  %v2179_v60 = vmul.f32 %v2165_v39, %v1838_v25  ;;  %v3002_v15 = vld [vmem:[#allocation12_spill] sm:$0xff] }
 0x1e9   :  { %v2183_v56 = vmul.f32 %v2165_v39, %v1842_v29  ;;  %v2187_v36 = vmul.f32 %v2165_v39, %v1846_v33  ;;  %v2191_v17 = vmul.f32 %v2165_v39, %v1850_v37  ;;  %v2195_v21 = vmul.f32 %v2165_v39, %v1854_v41 }
 0x1ea   :  { %v2199_v25 = vmul.f32 %v2165_v39, %v1858_v45  ;;  %v2203_v29 = vmul.f32 %v2165_v39, %v1862_v49  ;;  %v2207_v33 = vmul.f32 %v2165_v39, %v1866_v53  ;;  %v2211_v37 = vmul.f32 %v2165_v39, %v1870_v57 }
 0x1eb   :  { %v2215_v41 = vmul.f32 %v2165_v39, %v1874_v61  ;;  %v2219_v45 = vmul.f32 %v2165_v39, %v1878_v1  ;;  %v2223_v49 = vmul.f32 %v2165_v39, %v1882_v5  ;;  %v2227_v53 = vmul.f32 %v2165_v39, %v1886_v9 }
 0x1ec   :  { %v2231_v57 = vmul.f32 %v2165_v39, %v1890_v13  ;;  %v2235_v61 = vmul.f32 %v2165_v39, %v2993_v20  ;;  %v2239_v1 = vmul.f32 %v2165_v39, %v2994_v11  ;;  %v2243_v5 = vmul.f32 %v2165_v39, %v2995_v32  ;;  %v3003_v11 = vld [vmem:[#allocation14_spill] sm:$0xff] }
 0x1ed   :  { %v2247_v9 = vmul.f32 %v2165_v39, %v2996_v55  ;;  %v2251_v13 = vmul.f32 %v2165_v39, %v2997_v59  ;;  %v2255_v8 = vmul.f32 %v2165_v39, %v2998_v51  ;;  %v2259_v40 = vmul.f32 %v2165_v39, %v2999_v48  ;;  %v3004_v55 = vld [vmem:[#allocation16_spill] sm:$0xff]  ;;  %v3005_v51 = vld [vmem:[#allocation18_spill] sm:$0xff] }
 0x1ee   :  { %v2263_v27 = vmul.f32 %v2165_v39, %v3000_v0  ;;  %v2267_v12 = vmul.f32 %v2165_v39, %v3001_v52  ;;  %v2271_v20 = vmul.f32 %v2165_v39, %v3002_v15  ;;  %v2275_v32 = vmul.f32 %v2165_v39, %v3003_v11  ;;  %v3006_v0 = vld [vmem:[#allocation20_spill] sm:$0xff] }
 0x1ef   :  { %v2279_v59 = vmul.f32 %v2165_v39, %v3004_v55  ;;  %v2283_v48 = vmul.f32 %v2165_v39, %v3005_v51  ;;  %v2287_v52 = vmul.f32 %v2165_v39, %v3006_v0  ;;  %v2291_v15 = vmul.f32 %v2165_v39, %v2039_v16 }
 0x1f0   :  { %v2295_v11 = vmul.f32 %v2165_v39, %v3007_v44  ;;  %v2299_v55 = vmul.f32 %v2165_v39, %v1832_v18  ;;  %v2303_v51 = vmul.f32 %v2165_v39, %v1836_v22  ;;  %v2307_v0 = vmul.f32 %v2165_v39, %v1840_v26 }
 0x1f1   :  { %v2311_v16 = vmul.f32 %v2165_v39, %v1844_v30  ;;  %v2315_v44 = vmul.f32 %v2165_v39, %v1848_v34  ;;  %v2319_v18 = vmul.f32 %v2165_v39, %v1852_v38  ;;  %v2323_v22 = vmul.f32 %v2165_v39, %v1856_v42 }
 0x1f2   :  { %v2327_v26 = vmul.f32 %v2165_v39, %v1860_v46  ;;  %v2331_v30 = vmul.f32 %v2165_v39, %v1864_v50  ;;  %v2335_v34 = vmul.f32 %v2165_v39, %v1868_v54  ;;  %v2339_v38 = vmul.f32 %v2165_v39, %v1872_v58 }
 0x1f3   :  { %v2343_v42 = vmul.f32 %v2165_v39, %v1876_v62  ;;  %v2347_v46 = vmul.f32 %v2165_v39, %v1880_v2  ;;  %v2351_v50 = vmul.f32 %v2165_v39, %v1884_v6  ;;  %v2355_v54 = vmul.f32 %v2165_v39, %v1888_v10 }
 0x1f4   :  { %v2359_v58 = vmul.f32 %v2165_v39, %v1892_v14  ;;  %v2363_v62 = vmul.f32 %v2165_v39, %v1898_v23  ;;  %v2367_v2 = vmul.f32 %v2165_v39, %v1911_v43  ;;  %v2371_v6 = vmul.f32 %v2165_v39, %v1921_v63 }
 0x1f5   :  { %v2375_v10 = vmul.f32 %v2165_v39, %v1931_v19  ;;  %v2379_v14 = vmul.f32 %v2165_v39, %v1941_v47  ;;  %v2383_v23 = vmul.f32 %v2165_v39, %v1951_v7  ;;  %v2387_v43 = vmul.f32 %v2165_v39, %v1961_v35 }
 0x1f6   :  { %3008 = vst [vmem:[#allocation2_spill] sm:$0xff] %v2371_v6  ;;  %v2391_v63 = vmul.f32 %v2165_v39, %v1971_v3  ;;  %v3014_v6 = vld [vmem:[#allocation11_spill] sm:$0xff] }
 0x1f7   :  { %3009 = vst [vmem:[#allocation3_spill] sm:$0xff] %v2375_v10  ;;  %3010 = vst [vmem:[#allocation4_spill] sm:$0xff] %v2379_v14  ;;  %v2395_v19 = vmul.f32 %v2165_v39, %v3014_v6  ;;  %v3016_v10 = vld [vmem:[#allocation13_spill] sm:$0xff]  ;;  %v3018_v14 = vld [vmem:[#allocation15_spill] sm:$0xff] }
 0x1f8   :  { %3011 = vst [vmem:[#allocation5_spill] sm:$0xff] %v2383_v23  ;;  %3012 = vst [vmem:[#allocation6_spill] sm:$0xff] %v2387_v43  ;;  %v2399_v47 = vmul.f32 %v2165_v39, %v3016_v10  ;;  %v2403_v7 = vmul.f32 %v2165_v39, %v3018_v14  ;;  %v3020_v23 = vld [vmem:[#allocation17_spill] sm:$0xff]  ;;  %v3021_v43 = vsub.s32 0, %v2150_v28 }
 0x1f9   :  { %3013 = vst [vmem:[#allocation7_spill] sm:$0xff] %v2391_v63  ;;  %3015 = vst [vmem:[#allocation8_spill] sm:$0xff] %v2395_v19  ;;  %v2407_v35 = vmul.f32 %v2165_v39, %v3020_v23  ;;  %v3022_v63 = vld [vmem:[#allocation19_spill] sm:$0xff]  ;;  %v3023_v19 = vld [vmem:[#allocation21_spill] sm:$0xff] }
 0x1fa   :  { %3017 = vst [vmem:[#allocation9_spill] sm:$0xff] %v2399_v47  ;;  %3019 = vst [vmem:[#allocation10_spill] sm:$0xff] %v2403_v7  ;;  %v2411_v3 = vrot.slane %v1032_v24, %v3021_v43  ;;  %v2415_v6 = vmul.f32 %v2165_v39, %v3022_v63  ;;  %v2419_v10 = vmul.f32 %v2165_v39, %v3023_v19  ;;  %v3024_v47 = vld [vmem:[#allocation22_spill] sm:$0xff]  ;;  %v3025_v7 = vld [vmem:[#allocation24_spill] sm:$0xff] }
 0x1fb   :  { %v2423_v14 = vmul.f32 %v2165_v39, %v3024_v47  ;;  %v2427_v23 = vmul.f32 %v2165_v39, %v3025_v7 }
 0x1fc   :  { %v2431_v28 = vadd.f32 %v2411_v3, %v2171_v4  ;;  %v2435_v24 = vadd.f32 %v2411_v3, %v2175_v31  ;;  %v2439_v43 = vadd.f32 %v2411_v3, %v2179_v60  ;;  %v2443_v63 = vadd.f32 %v2411_v3, %v2183_v56 }
 0x1fd   :  { %v2447_v39 = vadd.f32 %v2411_v3, %v2187_v36  ;;  %v2451_v4 = vadd.f32 %v2411_v3, %v2191_v17  ;;  %v2455_v31 = vadd.f32 %v2411_v3, %v2195_v21  ;;  %v2459_v60 = vadd.f32 %v2411_v3, %v2199_v25  ;;  %v3029_v19 = vld [vmem:[#allocation2_spill] sm:$0xff] }
 0x1fe   :  { %v2463_v56 = vadd.f32 %v2411_v3, %v2203_v29  ;;  %v2467_v36 = vadd.f32 %v2411_v3, %v2207_v33  ;;  %v2471_v17 = vadd.f32 %v2411_v3, %v2211_v37  ;;  %v2475_v21 = vadd.f32 %v2411_v3, %v2215_v41  ;;  %v3031_v47 = vld [vmem:[#allocation3_spill] sm:$0xff]  ;;  %v3033_v7 = vld [vmem:[#allocation4_spill] sm:$0xff] }
 0x1ff   :  { %v2479_v25 = vadd.f32 %v2411_v3, %v2219_v45  ;;  %v2483_v29 = vadd.f32 %v2411_v3, %v2223_v49  ;;  %v2487_v33 = vadd.f32 %v2411_v3, %v2227_v53  ;;  %v2491_v37 = vadd.f32 %v2411_v3, %v2231_v57 }
 0x200   :  { %v2495_v41 = vadd.f32 %v2411_v3, %v2235_v61  ;;  %v2499_v45 = vadd.f32 %v2411_v3, %v2239_v1  ;;  %v2503_v49 = vadd.f32 %v2411_v3, %v2243_v5  ;;  %v2507_v53 = vadd.f32 %v2411_v3, %v2247_v9 }
 0x201   :  { %v2511_v57 = vadd.f32 %v2411_v3, %v2251_v13  ;;  %v2515_v61 = vadd.f32 %v2411_v3, %v2255_v8  ;;  %v2519_v1 = vadd.f32 %v2411_v3, %v2259_v40  ;;  %v2523_v5 = vadd.f32 %v2411_v3, %v2263_v27 }
 0x202   :  { %v2527_v9 = vadd.f32 %v2411_v3, %v2267_v12  ;;  %v2531_v13 = vadd.f32 %v2411_v3, %v2271_v20  ;;  %v2535_v8 = vadd.f32 %v2411_v3, %v2275_v32  ;;  %v2539_v40 = vadd.f32 %v2411_v3, %v2279_v59 }
 0x203   :  { %v2543_v27 = vadd.f32 %v2411_v3, %v2283_v48  ;;  %v2547_v12 = vadd.f32 %v2411_v3, %v2287_v52  ;;  %v2551_v20 = vadd.f32 %v2411_v3, %v2291_v15  ;;  %v2555_v32 = vadd.f32 %v2411_v3, %v2295_v11 }
 0x204   :  { %v2559_v59 = vadd.f32 %v2411_v3, %v2299_v55  ;;  %v2563_v48 = vadd.f32 %v2411_v3, %v2303_v51  ;;  %v2567_v52 = vadd.f32 %v2411_v3, %v2307_v0  ;;  %v2571_v15 = vadd.f32 %v2411_v3, %v2311_v16 }
 0x205   :  { %v2575_v11 = vadd.f32 %v2411_v3, %v2315_v44  ;;  %v2579_v55 = vadd.f32 %v2411_v3, %v2319_v18  ;;  %v2583_v51 = vadd.f32 %v2411_v3, %v2323_v22  ;;  %v2587_v0 = vadd.f32 %v2411_v3, %v2327_v26 }
 0x206   :  { %v2591_v16 = vadd.f32 %v2411_v3, %v2331_v30  ;;  %v2595_v44 = vadd.f32 %v2411_v3, %v2335_v34  ;;  %v2599_v18 = vadd.f32 %v2411_v3, %v2339_v38  ;;  %v2603_v22 = vadd.f32 %v2411_v3, %v2343_v42 }
 0x207   :  { %v2607_v26 = vadd.f32 %v2411_v3, %v2347_v46  ;;  %v2611_v30 = vadd.f32 %v2411_v3, %v2351_v50  ;;  %v2615_v34 = vadd.f32 %v2411_v3, %v2355_v54  ;;  %v2619_v38 = vadd.f32 %v2411_v3, %v2359_v58 }
 0x208   :  { %v2623_v42 = vadd.f32 %v2411_v3, %v2363_v62  ;;  %v2627_v46 = vadd.f32 %v2411_v3, %v2367_v2  ;;  %v2631_v50 = vadd.f32 %v2411_v3, %v3029_v19  ;;  %v2635_v54 = vadd.f32 %v2411_v3, %v3031_v47 }
 0x209   :  { %3026 = vst [vmem:[#allocation12_spill] sm:$0xff] %v2619_v38  ;;  %v2639_v58 = vadd.f32 %v2411_v3, %v3033_v7  ;;  %v3035_v38 = vld [vmem:[#allocation5_spill] sm:$0xff] }
 0x20a   :  { %3027 = vst [vmem:[#allocation14_spill] sm:$0xff] %v2623_v42  ;;  %3028 = vst [vmem:[#allocation16_spill] sm:$0xff] %v2627_v46  ;;  %v2643_v62 = vadd.f32 %v2411_v3, %v3035_v38  ;;  %v3036_v42 = vld [vmem:[#allocation6_spill] sm:$0xff]  ;;  %v3037_v46 = vld [vmem:[#allocation7_spill] sm:$0xff] }
 0x20b   :  { %3030 = vst [vmem:[#allocation18_spill] sm:$0xff] %v2631_v50  ;;  %3032 = vst [vmem:[#allocation20_spill] sm:$0xff] %v2635_v54  ;;  %v2647_v2 = vadd.f32 %v2411_v3, %v3036_v42  ;;  %v2651_v19 = vadd.f32 %v2411_v3, %v3037_v46  ;;  %v3038_v50 = vld [vmem:[#allocation8_spill] sm:$0xff]  ;;  %v3039_v54 = vld [vmem:[#allocation9_spill] sm:$0xff]  ;;  %v2667_v42 = vadd.f32 %v2411_v3, %v2407_v35  ;;  %v1174_v35 = vmax.f32 %v2435_v24, 0.0 }
 0x20c   :  { %3034 = vst [vmem:[#allocation23_spill] sm:$0xff] %v2639_v58  ;;  %v2655_v47 = vadd.f32 %v2411_v3, %v3038_v50  ;;  %v2659_v7 = vadd.f32 %v2411_v3, %v3039_v54  ;;  %v3040_v58 = vld [vmem:[#allocation10_spill] sm:$0xff]  ;;  %v2671_v46 = vadd.f32 %v2411_v3, %v2415_v6  ;;  %v2675_v50 = vadd.f32 %v2411_v3, %v2419_v10 }
 0x20d   :  { %v2663_v38 = vadd.f32 %v2411_v3, %v3040_v58  ;;  %3042 = vst [vmem:[#allocation13_spill] sm:$0xff] %v2667_v42  ;;  %v2679_v54 = vadd.f32 %v2411_v3, %v2423_v14  ;;  %v2683_v58 = vadd.f32 %v2411_v3, %v2427_v23  ;;  %v1175_v42 = vmax.f32 %v2439_v43, 0.0  ;;  %1238 = vst [vmem:[%s2945_s4 + $0x8] sm:$0xff] %v1174_v35 }
 0x20e   :  { %3043 = vst [vmem:[#allocation15_spill] sm:$0xff] %v2671_v46  ;;  %3044 = vst [vmem:[#allocation17_spill] sm:$0xff] %v2675_v50  ;;  %v1176_v6 = vmax.f32 %v2443_v63, 0.0  ;;  %v1177_v46 = vmax.f32 %v2447_v39, 0.0  ;;  %v1178_v10 = vmax.f32 %v2451_v4, 0.0  ;;  %v1179_v50 = vmax.f32 %v2455_v31, 0.0 }
 0x20f   :  { %3041 = vst [vmem:[#allocation11_spill] sm:$0xff] %v2663_v38  ;;  %3045 = vst [vmem:[#allocation19_spill] sm:$0xff] %v2679_v54  ;;  %v1173_v38 = vmax.f32 %v2431_v28, 0.0  ;;  %v1180_v14 = vmax.f32 %v2459_v60, 0.0  ;;  %v1181_v54 = vmax.f32 %v2463_v56, 0.0  ;;  %v1182_v3 = vmax.f32 %v2467_v36, 0.0 }
 0x210   :  { %v1183_v23 = vmax.f32 %v2471_v17, 0.0  ;;  %v1184_v28 = vmax.f32 %v2475_v21, 0.0  ;;  %1239 = vst [vmem:[%s2945_s4 + $0x10] sm:$0xff] %v1175_v42  ;;  %1240 = vst [vmem:[%s2945_s4 + $0x18] sm:$0xff] %v1176_v6  ;;  %v1185_v24 = vmax.f32 %v2479_v25, 0.0  ;;  %v1186_v43 = vmax.f32 %v2483_v29, 0.0 }
 0x211   :  { %1237 = vst [vmem:[%s2945_s4] sm:$0xff] %v1173_v38  ;;  %v1187_v63 = vmax.f32 %v2487_v33, 0.0  ;;  %v1188_v39 = vmax.f32 %v2491_v37, 0.0  ;;  %1241 = vst [vmem:[%s2945_s4 + $0x20] sm:$0xff] %v1177_v46  ;;  %v1189_v4 = vmax.f32 %v2495_v41, 0.0  ;;  %v1190_v31 = vmax.f32 %v2499_v45, 0.0 }
 0x212   :  { %1242 = vst [vmem:[%s2945_s4 + $0x28] sm:$0xff] %v1178_v10  ;;  %1243 = vst [vmem:[%s2945_s4 + $0x30] sm:$0xff] %v1179_v50  ;;  %v1191_v60 = vmax.f32 %v2503_v49, 0.0  ;;  %v1192_v56 = vmax.f32 %v2507_v53, 0.0  ;;  %v1193_v36 = vmax.f32 %v2511_v57, 0.0  ;;  %v1194_v17 = vmax.f32 %v2515_v61, 0.0 }
 0x213   :  { %1244 = vst [vmem:[%s2945_s4 + $0x38] sm:$0xff] %v1180_v14  ;;  %1245 = vst [vmem:[%s2945_s4 + $0x40] sm:$0xff] %v1181_v54  ;;  %v1195_v21 = vmax.f32 %v2519_v1, 0.0  ;;  %v1196_v25 = vmax.f32 %v2523_v5, 0.0  ;;  %v1197_v29 = vmax.f32 %v2527_v9, 0.0  ;;  %v1198_v33 = vmax.f32 %v2531_v13, 0.0 }
 0x214   :  { %1246 = vst [vmem:[%s2945_s4 + $0x48] sm:$0xff] %v1182_v3  ;;  %1247 = vst [vmem:[%s2945_s4 + $0x50] sm:$0xff] %v1183_v23  ;;  %v1199_v37 = vmax.f32 %v2535_v8, 0.0  ;;  %v1200_v41 = vmax.f32 %v2539_v40, 0.0  ;;  %v1201_v45 = vmax.f32 %v2543_v27, 0.0  ;;  %v1202_v49 = vmax.f32 %v2547_v12, 0.0 }
 0x215   :  { %1248 = vst [vmem:[%s2945_s4 + $0x58] sm:$0xff] %v1184_v28  ;;  %1249 = vst [vmem:[%s2945_s4 + $0x60] sm:$0xff] %v1185_v24  ;;  %v1203_v53 = vmax.f32 %v2551_v20, 0.0  ;;  %v1204_v57 = vmax.f32 %v2555_v32, 0.0  ;;  %v1205_v61 = vmax.f32 %v2559_v59, 0.0  ;;  %v1206_v1 = vmax.f32 %v2563_v48, 0.0 }
 0x216   :  { %1250 = vst [vmem:[%s2945_s4 + $0x68] sm:$0xff] %v1186_v43  ;;  %1251 = vst [vmem:[%s2945_s4 + $0x70] sm:$0xff] %v1187_v63  ;;  %v1207_v5 = vmax.f32 %v2567_v52, 0.0  ;;  %v1208_v9 = vmax.f32 %v2571_v15, 0.0  ;;  %v1209_v13 = vmax.f32 %v2575_v11, 0.0  ;;  %v1210_v8 = vmax.f32 %v2579_v55, 0.0 }
 0x217   :  { %1252 = vst [vmem:[%s2945_s4 + $0x78] sm:$0xff] %v1188_v39  ;;  %1253 = vst [vmem:[%s2945_s4 + $0x80] sm:$0xff] %v1189_v4  ;;  %v1211_v40 = vmax.f32 %v2583_v51, 0.0  ;;  %v1212_v27 = vmax.f32 %v2587_v0, 0.0  ;;  %v1213_v12 = vmax.f32 %v2591_v16, 0.0  ;;  %v1214_v20 = vmax.f32 %v2595_v44, 0.0 }
 0x218   :  { %1254 = vst [vmem:[%s2945_s4 + $0x88] sm:$0xff] %v1190_v31  ;;  %1255 = vst [vmem:[%s2945_s4 + $0x90] sm:$0xff] %v1191_v60  ;;  %v1215_v32 = vmax.f32 %v2599_v18, 0.0  ;;  %v1216_v59 = vmax.f32 %v2603_v22, 0.0  ;;  %v1217_v48 = vmax.f32 %v2607_v26, 0.0  ;;  %v1218_v52 = vmax.f32 %v2611_v30, 0.0 }
 0x219   :  { %1256 = vst [vmem:[%s2945_s4 + $0x98] sm:$0xff] %v1192_v56  ;;  %1257 = vst [vmem:[%s2945_s4 + $0xa0] sm:$0xff] %v1193_v36  ;;  %v1219_v15 = vmax.f32 %v2615_v34, 0.0  ;;  %v3046_v11 = vld [vmem:[#allocation12_spill] sm:$0xff]  ;;  %v3047_v51 = vld [vmem:[#allocation14_spill] sm:$0xff]  ;;  %v1226_v42 = vmax.f32 %v2643_v62, 0.0 }
 0x21a   :  { %1258 = vst [vmem:[%s2945_s4 + $0xa8] sm:$0xff] %v1194_v17  ;;  %1259 = vst [vmem:[%s2945_s4 + $0xb0] sm:$0xff] %v1195_v21  ;;  %v1220_v55 = vmax.f32 %v3046_v11, 0.0  ;;  %v1221_v0 = vmax.f32 %v3047_v51, 0.0  ;;  %v3048_v16 = vld [vmem:[#allocation16_spill] sm:$0xff]  ;;  %v3049_v18 = vld [vmem:[#allocation18_spill] sm:$0xff] }
 0x21b   :  { %1260 = vst [vmem:[%s2945_s4 + $0xb8] sm:$0xff] %v1196_v25  ;;  %1261 = vst [vmem:[%s2945_s4 + $0xc0] sm:$0xff] %v1197_v29  ;;  %v1222_v44 = vmax.f32 %v3048_v16, 0.0  ;;  %v1223_v22 = vmax.f32 %v3049_v18, 0.0  ;;  %v3050_v26 = vld [vmem:[#allocation20_spill] sm:$0xff]  ;;  %v3051_v34 = vld [vmem:[#allocation23_spill] sm:$0xff] }
 0x21c   :  { %1262 = vst [vmem:[%s2945_s4 + $0xc8] sm:$0xff] %v1198_v33  ;;  %1263 = vst [vmem:[%s2945_s4 + $0xd0] sm:$0xff] %v1199_v37  ;;  %v1224_v30 = vmax.f32 %v3050_v26, 0.0  ;;  %v1225_v38 = vmax.f32 %v3051_v34, 0.0  ;;  %v1227_v46 = vmax.f32 %v2647_v2, 0.0  ;;  %v1228_v50 = vmax.f32 %v2651_v19, 0.0 }
 0x21d   :  { %1264 = vst [vmem:[%s2945_s4 + $0xd8] sm:$0xff] %v1200_v41  ;;  %1265 = vst [vmem:[%s2945_s4 + $0xe0] sm:$0xff] %v1201_v45  ;;  %v1229_v62 = vmax.f32 %v2655_v47, 0.0  ;;  %v1230_v2 = vmax.f32 %v2659_v7, 0.0  ;;  %v3052_v19 = vld [vmem:[#allocation11_spill] sm:$0xff]  ;;  %v3053_v35 = vld [vmem:[#allocation13_spill] sm:$0xff] }
 0x21e   :  { %1266 = vst [vmem:[%s2945_s4 + $0xe8] sm:$0xff] %v1202_v49  ;;  %1267 = vst [vmem:[%s2945_s4 + $0xf0] sm:$0xff] %v1203_v53  ;;  %v1231_v54 = vmax.f32 %v3052_v19, 0.0  ;;  %v1232_v6 = vmax.f32 %v3053_v35, 0.0  ;;  %v3054_v47 = vld [vmem:[#allocation15_spill] sm:$0xff]  ;;  %v3055_v10 = vld [vmem:[#allocation17_spill] sm:$0xff] }
 0x21f   :  { %1268 = vst [vmem:[%s2945_s4 + $0xf8] sm:$0xff] %v1204_v57  ;;  %1269 = vst [vmem:[%s2945_s4 + $0x100] sm:$0xff] %v1205_v61  ;;  %v1233_v7 = vmax.f32 %v3054_v47, 0.0  ;;  %v1234_v14 = vmax.f32 %v3055_v10, 0.0  ;;  %v3056_v3 = vld [vmem:[#allocation19_spill] sm:$0xff]  ;;  %v1236_v28 = vmax.f32 %v2683_v58, 0.0 }
 0x220   :  { %1270 = vst [vmem:[%s2945_s4 + $0x108] sm:$0xff] %v1206_v1  ;;  %1271 = vst [vmem:[%s2945_s4 + $0x110] sm:$0xff] %v1207_v5  ;;  %v1235_v23 = vmax.f32 %v3056_v3, 0.0 }
 0x221   :  { %1272 = vst [vmem:[%s2945_s4 + $0x118] sm:$0xff] %v1208_v9  ;;  %1273 = vst [vmem:[%s2945_s4 + $0x120] sm:$0xff] %v1209_v13 }
 0x222   :  { %1274 = vst [vmem:[%s2945_s4 + $0x128] sm:$0xff] %v1210_v8  ;;  %1275 = vst [vmem:[%s2945_s4 + $0x130] sm:$0xff] %v1211_v40 }
 0x223   :  { %1276 = vst [vmem:[%s2945_s4 + $0x138] sm:$0xff] %v1212_v27  ;;  %1277 = vst [vmem:[%s2945_s4 + $0x140] sm:$0xff] %v1213_v12 }
 0x224   :  { %1278 = vst [vmem:[%s2945_s4 + $0x148] sm:$0xff] %v1214_v20  ;;  %1279 = vst [vmem:[%s2945_s4 + $0x150] sm:$0xff] %v1215_v32 }
 0x225   :  { %1280 = vst [vmem:[%s2945_s4 + $0x158] sm:$0xff] %v1216_v59  ;;  %1281 = vst [vmem:[%s2945_s4 + $0x160] sm:$0xff] %v1217_v48 }
 0x226   :  { %1282 = vst [vmem:[%s2945_s4 + $0x168] sm:$0xff] %v1218_v52  ;;  %1283 = vst [vmem:[%s2945_s4 + $0x170] sm:$0xff] %v1219_v15 }
 0x227   :  { %1284 = vst [vmem:[%s2945_s4 + $0x178] sm:$0xff] %v1220_v55  ;;  %1285 = vst [vmem:[%s2945_s4 + $0x180] sm:$0xff] %v1221_v0 }
 0x228   :  { %1286 = vst [vmem:[%s2945_s4 + $0x188] sm:$0xff] %v1222_v44  ;;  %1287 = vst [vmem:[%s2945_s4 + $0x190] sm:$0xff] %v1223_v22 }
 0x229   :  { %1288 = vst [vmem:[%s2945_s4 + $0x198] sm:$0xff] %v1224_v30  ;;  %1289 = vst [vmem:[%s2945_s4 + $0x1a0] sm:$0xff] %v1225_v38 }
 0x22a   :  { %1290 = vst [vmem:[%s2945_s4 + $0x1a8] sm:$0xff] %v1226_v42  ;;  %1291 = vst [vmem:[%s2945_s4 + $0x1b0] sm:$0xff] %v1227_v46 }
 0x22b   :  { %1292 = vst [vmem:[%s2945_s4 + $0x1b8] sm:$0xff] %v1228_v50  ;;  %1293 = vst [vmem:[%s2945_s4 + $0x1c0] sm:$0xff] %v1229_v62 }
 0x22c   :  { %1294 = vst [vmem:[%s2945_s4 + $0x1c8] sm:$0xff] %v1230_v2  ;;  %1295 = vst [vmem:[%s2945_s4 + $0x1d0] sm:$0xff] %v1231_v54 }
 0x22d   :  { %1296 = vst [vmem:[%s2945_s4 + $0x1d8] sm:$0xff] %v1232_v6  ;;  %1297 = vst [vmem:[%s2945_s4 + $0x1e0] sm:$0xff] %v1233_v7 }
 0x22e   :  { %1298 = vst [vmem:[%s2945_s4 + $0x1e8] sm:$0xff] %v1234_v14  ;;  %1299 = vst [vmem:[%s2945_s4 + $0x1f0] sm:$0xff] %v1235_v23 }
 0x22f   :  { %1300 = vst [vmem:[%s2945_s4 + $0x1f8] sm:$0xff] %v1236_v28 }

// kernel: _lambda_.18
= control target key start
LH: loop header
LB: loop body
LE: loop exit
PB: predicated region body
PF: predicated region fallthrough
CT: control target
= control target key end

     0   :  { %s790_s0 = inlined_call_operand.vmem [shape: f32[9,128,128], index: 0, kind: input, shape index: {}]   ;;  %s791_s1 = inlined_call_operand.vmem [shape: f32[128,128], index: 1, kind: output, shape index: {}]  }
   0x1   :  { %v8_v0 = vld [vmem:[%s790_s0] sm:$0xff]  ;;  %v9_v6 = vld [vmem:[%s790_s0 + $0x8] sm:$0xff]  ;;  %v10_v15 = vld [vmem:[%s790_s0 + $0x10] sm:$0xff] }
   0x2   :  { %v24_v1 = vld [vmem:[%s790_s0 + $0x80] sm:$0xff]  ;;  %v25_v7 = vld [vmem:[%s790_s0 + $0x88] sm:$0xff]  ;;  %v26_v16 = vld [vmem:[%s790_s0 + $0x90] sm:$0xff] }
   0x3   :  { %v40_v2 = vld [vmem:[%s790_s0 + $0x100] sm:$0xff]  ;;  %v152_v3 = vmax.f32 %v8_v0, %v24_v1  ;;  %v41_v8 = vld [vmem:[%s790_s0 + $0x108] sm:$0xff]  ;;  %v160_v10 = vmax.f32 %v9_v6, %v25_v7  ;;  %v42_v17 = vld [vmem:[%s790_s0 + $0x110] sm:$0xff]  ;;  %v168_v20 = vmax.f32 %v10_v15, %v26_v16 }
   0x4   :  { %v56_v4 = vld [vmem:[%s790_s0 + $0x180] sm:$0xff]  ;;  %v57_v13 = vld [vmem:[%s790_s0 + $0x188] sm:$0xff]  ;;  %v58_v24 = vld [vmem:[%s790_s0 + $0x190] sm:$0xff] }
   0x5   :  { %v153_v5 = vmax.f32 %v152_v3, %v40_v2  ;;  %v72_v9 = vld [vmem:[%s790_s0 + $0x200] sm:$0xff]  ;;  %v161_v14 = vmax.f32 %v160_v10, %v41_v8  ;;  %v73_v19 = vld [vmem:[%s790_s0 + $0x208] sm:$0xff]  ;;  %v169_v26 = vmax.f32 %v168_v20, %v42_v17  ;;  %v11_v27 = vld [vmem:[%s790_s0 + $0x18] sm:$0xff] }
   0x6   :  { %v88_v11 = vld [vmem:[%s790_s0 + $0x280] sm:$0xff]  ;;  %v89_v22 = vld [vmem:[%s790_s0 + $0x288] sm:$0xff]  ;;  %v27_v28 = vld [vmem:[%s790_s0 + $0x98] sm:$0xff] }
   0x7   :  { %v154_v12 = vmax.f32 %v153_v5, %v56_v4  ;;  %v104_v21 = vld [vmem:[%s790_s0 + $0x300] sm:$0xff]  ;;  %v162_v23 = vmax.f32 %v161_v14, %v57_v13  ;;  %v43_v29 = vld [vmem:[%s790_s0 + $0x118] sm:$0xff]  ;;  %v74_v33 = vld [vmem:[%s790_s0 + $0x210] sm:$0xff]  ;;  %v176_v34 = vmax.f32 %v11_v27, %v27_v28  ;;  %v170_v38 = vmax.f32 %v169_v26, %v58_v24 }
   0x8   :  { %v120_v30 = vld [vmem:[%s790_s0 + $0x380] sm:$0xff]  ;;  %v105_v36 = vld [vmem:[%s790_s0 + $0x308] sm:$0xff]  ;;  %v90_v37 = vld [vmem:[%s790_s0 + $0x290] sm:$0xff] }
   0x9   :  { %v155_v18 = vmax.f32 %v154_v12, %v72_v9  ;;  %v136_v31 = vld [vmem:[%s790_s0 + $0x400] sm:$0xff]  ;;  %v163_v32 = vmax.f32 %v162_v23, %v73_v19  ;;  %v59_v39 = vld [vmem:[%s790_s0 + $0x198] sm:$0xff]  ;;  %v177_v41 = vmax.f32 %v176_v34, %v43_v29  ;;  %v121_v46 = vld [vmem:[%s790_s0 + $0x388] sm:$0xff]  ;;  %v171_v48 = vmax.f32 %v170_v38, %v74_v33 }
   0xa   :  { %v12_v42 = vld [vmem:[%s790_s0 + $0x20] sm:$0xff]  ;;  %v137_v47 = vld [vmem:[%s790_s0 + $0x408] sm:$0xff]  ;;  %v75_v49 = vld [vmem:[%s790_s0 + $0x218] sm:$0xff] }
   0xb   :  { %v156_v25 = vmax.f32 %v155_v18, %v88_v11  ;;  %v164_v40 = vmax.f32 %v163_v32, %v89_v22  ;;  %v28_v43 = vld [vmem:[%s790_s0 + $0xa0] sm:$0xff]  ;;  %v106_v52 = vld [vmem:[%s790_s0 + $0x310] sm:$0xff]  ;;  %v91_v53 = vld [vmem:[%s790_s0 + $0x298] sm:$0xff]  ;;  %v178_v54 = vmax.f32 %v177_v41, %v59_v39  ;;  %v172_v57 = vmax.f32 %v171_v48, %v90_v37 }
   0xc   :  { %v44_v44 = vld [vmem:[%s790_s0 + $0x120] sm:$0xff]  ;;  %v184_v50 = vmax.f32 %v12_v42, %v28_v43  ;;  %v13_v59 = vld [vmem:[%s790_s0 + $0x28] sm:$0xff]  ;;  %v122_v63 = vld [vmem:[%s790_s0 + $0x390] sm:$0xff] }
   0xd   :  { %v157_v35 = vmax.f32 %v156_v25, %v104_v21  ;;  %v165_v51 = vmax.f32 %v164_v40, %v105_v36  ;;  %v60_v55 = vld [vmem:[%s790_s0 + $0x1a0] sm:$0xff]  ;;  %v29_v60 = vld [vmem:[%s790_s0 + $0xa8] sm:$0xff]  ;;  %v138_v0 = vld [vmem:[%s790_s0 + $0x410] sm:$0xff]  ;;  %v179_v1 = vmax.f32 %v178_v54, %v75_v49  ;;  %v173_v4 = vmax.f32 %v172_v57, %v106_v52 }
   0xe   :  { %v185_v58 = vmax.f32 %v184_v50, %v44_v44  ;;  %v45_v61 = vld [vmem:[%s790_s0 + $0x128] sm:$0xff]  ;;  %v76_v2 = vld [vmem:[%s790_s0 + $0x220] sm:$0xff]  ;;  %v192_v3 = vmax.f32 %v13_v59, %v29_v60  ;;  %v107_v5 = vld [vmem:[%s790_s0 + $0x318] sm:$0xff] }
   0xf   :  { %v158_v45 = vmax.f32 %v157_v35, %v120_v30  ;;  %v166_v62 = vmax.f32 %v165_v51, %v121_v46  ;;  %v92_v6 = vld [vmem:[%s790_s0 + $0x2a0] sm:$0xff]  ;;  %v61_v8 = vld [vmem:[%s790_s0 + $0x1a8] sm:$0xff]  ;;  %v180_v10 = vmax.f32 %v179_v1, %v91_v53  ;;  %v14_v12 = vld [vmem:[%s790_s0 + $0x30] sm:$0xff]  ;;  %v174_v15 = vmax.f32 %v173_v4, %v122_v63 }
  0x10   :  { %v186_v7 = vmax.f32 %v185_v58, %v60_v55  ;;  %v193_v11 = vmax.f32 %v192_v3, %v45_v61  ;;  %v30_v13 = vld [vmem:[%s790_s0 + $0xb0] sm:$0xff]  ;;  %v123_v16 = vld [vmem:[%s790_s0 + $0x398] sm:$0xff]  ;;  %v77_v19 = vld [vmem:[%s790_s0 + $0x228] sm:$0xff] }
  0x11   :  { %v159_v56 = vmax.f32 %v158_v45, %v136_v31  ;;  %v167_v9 = vmax.f32 %v166_v62, %v137_v47  ;;  %v46_v14 = vld [vmem:[%s790_s0 + $0x130] sm:$0xff]  ;;  %v139_v17 = vld [vmem:[%s790_s0 + $0x418] sm:$0xff]  ;;  %v200_v20 = vmax.f32 %v14_v12, %v30_v13  ;;  %v181_v21 = vmax.f32 %v180_v10, %v107_v5  ;;  %v108_v22 = vld [vmem:[%s790_s0 + $0x320] sm:$0xff] }
  0x12   :  { %v187_v18 = vmax.f32 %v186_v7, %v76_v2  ;;  %v93_v23 = vld [vmem:[%s790_s0 + $0x2a8] sm:$0xff]  ;;  %v194_v24 = vmax.f32 %v193_v11, %v61_v8  ;;  %v62_v25 = vld [vmem:[%s790_s0 + $0x1b0] sm:$0xff]  ;;  %v175_v26 = vmax.f32 %v174_v15, %v138_v0  ;;  %v15_v29 = vld [vmem:[%s790_s0 + $0x38] sm:$0xff] }
  0x13   :  { %280 = vst [vmem:[%s791_s1] sm:$0xff] %v159_v56  ;;  %281 = vst [vmem:[%s791_s1 + $0x8] sm:$0xff] %v167_v9  ;;  %v201_v28 = vmax.f32 %v200_v20, %v46_v14  ;;  %v31_v30 = vld [vmem:[%s790_s0 + $0xb8] sm:$0xff]  ;;  %v182_v32 = vmax.f32 %v181_v21, %v123_v16  ;;  %v124_v33 = vld [vmem:[%s790_s0 + $0x3a0] sm:$0xff] }
  0x14   :  { %v188_v27 = vmax.f32 %v187_v18, %v92_v6  ;;  %v47_v31 = vld [vmem:[%s790_s0 + $0x138] sm:$0xff]  ;;  %v140_v34 = vld [vmem:[%s790_s0 + $0x420] sm:$0xff]  ;;  %v195_v35 = vmax.f32 %v194_v24, %v77_v19  ;;  %v78_v36 = vld [vmem:[%s790_s0 + $0x230] sm:$0xff]  ;;  %v208_v37 = vmax.f32 %v15_v29, %v31_v30  ;;  %282 = vst [vmem:[%s791_s1 + $0x10] sm:$0xff] %v175_v26 }
  0x15   :  { %v109_v39 = vld [vmem:[%s790_s0 + $0x328] sm:$0xff]  ;;  %v94_v40 = vld [vmem:[%s790_s0 + $0x2b0] sm:$0xff]  ;;  %v202_v41 = vmax.f32 %v201_v28, %v62_v25  ;;  %v63_v42 = vld [vmem:[%s790_s0 + $0x1b8] sm:$0xff]  ;;  %v183_v43 = vmax.f32 %v182_v32, %v139_v17 }
  0x16   :  { %v189_v38 = vmax.f32 %v188_v27, %v108_v22  ;;  %v196_v44 = vmax.f32 %v195_v35, %v93_v23  ;;  %v209_v45 = vmax.f32 %v208_v37, %v47_v31  ;;  %v16_v46 = vld [vmem:[%s790_s0 + $0x40] sm:$0xff]  ;;  %v125_v50 = vld [vmem:[%s790_s0 + $0x3a8] sm:$0xff]  ;;  %v79_v53 = vld [vmem:[%s790_s0 + $0x238] sm:$0xff] }
  0x17   :  { %v32_v47 = vld [vmem:[%s790_s0 + $0xc0] sm:$0xff]  ;;  %v141_v51 = vld [vmem:[%s790_s0 + $0x428] sm:$0xff]  ;;  %v203_v52 = vmax.f32 %v202_v41, %v78_v36  ;;  %283 = vst [vmem:[%s791_s1 + $0x18] sm:$0xff] %v183_v43  ;;  %v110_v56 = vld [vmem:[%s790_s0 + $0x330] sm:$0xff] }
  0x18   :  { %v48_v48 = vld [vmem:[%s790_s0 + $0x140] sm:$0xff]  ;;  %v190_v49 = vmax.f32 %v189_v38, %v124_v33  ;;  %v216_v54 = vmax.f32 %v16_v46, %v32_v47  ;;  %v197_v55 = vmax.f32 %v196_v44, %v109_v39  ;;  %v95_v57 = vld [vmem:[%s790_s0 + $0x2b8] sm:$0xff]  ;;  %v210_v58 = vmax.f32 %v209_v45, %v63_v42  ;;  %v17_v63 = vld [vmem:[%s790_s0 + $0x48] sm:$0xff] }
  0x19   :  { %v64_v59 = vld [vmem:[%s790_s0 + $0x1c0] sm:$0xff]  ;;  %v204_v61 = vmax.f32 %v203_v52, %v94_v40  ;;  %v33_v0 = vld [vmem:[%s790_s0 + $0xc8] sm:$0xff]  ;;  %v126_v3 = vld [vmem:[%s790_s0 + $0x3b0] sm:$0xff] }
  0x1a   :  { %v191_v60 = vmax.f32 %v190_v49, %v140_v34  ;;  %v217_v62 = vmax.f32 %v216_v54, %v48_v48  ;;  %v49_v1 = vld [vmem:[%s790_s0 + $0x148] sm:$0xff]  ;;  %v198_v2 = vmax.f32 %v197_v55, %v125_v50  ;;  %v142_v4 = vld [vmem:[%s790_s0 + $0x430] sm:$0xff]  ;;  %v211_v5 = vmax.f32 %v210_v58, %v79_v53  ;;  %v80_v6 = vld [vmem:[%s790_s0 + $0x240] sm:$0xff] }
  0x1b   :  { %v224_v7 = vmax.f32 %v17_v63, %v33_v0  ;;  %v205_v8 = vmax.f32 %v204_v61, %v110_v56  ;;  %v111_v9 = vld [vmem:[%s790_s0 + $0x338] sm:$0xff]  ;;  %v96_v10 = vld [vmem:[%s790_s0 + $0x2c0] sm:$0xff]  ;;  %v65_v12 = vld [vmem:[%s790_s0 + $0x1c8] sm:$0xff] }
  0x1c   :  { %284 = vst [vmem:[%s791_s1 + $0x20] sm:$0xff] %v191_v60  ;;  %v218_v11 = vmax.f32 %v217_v62, %v64_v59  ;;  %v199_v13 = vmax.f32 %v198_v2, %v141_v51  ;;  %v212_v14 = vmax.f32 %v211_v5, %v95_v57  ;;  %v18_v16 = vld [vmem:[%s790_s0 + $0x50] sm:$0xff]  ;;  %v127_v20 = vld [vmem:[%s790_s0 + $0x3b8] sm:$0xff]  ;;  %v81_v23 = vld [vmem:[%s790_s0 + $0x248] sm:$0xff] }
  0x1d   :  { %v225_v15 = vmax.f32 %v224_v7, %v49_v1  ;;  %v34_v17 = vld [vmem:[%s790_s0 + $0xd0] sm:$0xff]  ;;  %v206_v19 = vmax.f32 %v205_v8, %v126_v3  ;;  %v143_v21 = vld [vmem:[%s790_s0 + $0x438] sm:$0xff]  ;;  %v112_v26 = vld [vmem:[%s790_s0 + $0x340] sm:$0xff] }
  0x1e   :  { %v50_v18 = vld [vmem:[%s790_s0 + $0x150] sm:$0xff]  ;;  %v219_v22 = vmax.f32 %v218_v11, %v80_v6  ;;  %v232_v24 = vmax.f32 %v18_v16, %v34_v17  ;;  %285 = vst [vmem:[%s791_s1 + $0x28] sm:$0xff] %v199_v13  ;;  %v213_v25 = vmax.f32 %v212_v14, %v111_v9  ;;  %v97_v27 = vld [vmem:[%s790_s0 + $0x2c8] sm:$0xff]  ;;  %v19_v33 = vld [vmem:[%s790_s0 + $0x58] sm:$0xff] }
  0x1f   :  { %v226_v28 = vmax.f32 %v225_v15, %v65_v12  ;;  %v66_v29 = vld [vmem:[%s790_s0 + $0x1d0] sm:$0xff]  ;;  %v207_v30 = vmax.f32 %v206_v19, %v142_v4  ;;  %v35_v34 = vld [vmem:[%s790_s0 + $0xd8] sm:$0xff]  ;;  %v128_v37 = vld [vmem:[%s790_s0 + $0x3c0] sm:$0xff] }
  0x20   :  { %v220_v31 = vmax.f32 %v219_v22, %v96_v10  ;;  %v233_v32 = vmax.f32 %v232_v24, %v50_v18  ;;  %v51_v35 = vld [vmem:[%s790_s0 + $0x158] sm:$0xff]  ;;  %v214_v36 = vmax.f32 %v213_v25, %v127_v20  ;;  %v144_v38 = vld [vmem:[%s790_s0 + $0x440] sm:$0xff]  ;;  %v82_v40 = vld [vmem:[%s790_s0 + $0x250] sm:$0xff]  ;;  %v240_v41 = vmax.f32 %v19_v33, %v35_v34 }
  0x21   :  { %v227_v39 = vmax.f32 %v226_v28, %v81_v23  ;;  %286 = vst [vmem:[%s791_s1 + $0x30] sm:$0xff] %v207_v30  ;;  %v113_v43 = vld [vmem:[%s790_s0 + $0x348] sm:$0xff]  ;;  %v98_v44 = vld [vmem:[%s790_s0 + $0x2d0] sm:$0xff]  ;;  %v67_v46 = vld [vmem:[%s790_s0 + $0x1d8] sm:$0xff] }
  0x22   :  { %v221_v42 = vmax.f32 %v220_v31, %v112_v26  ;;  %v234_v45 = vmax.f32 %v233_v32, %v66_v29  ;;  %v215_v47 = vmax.f32 %v214_v36, %v143_v21  ;;  %v241_v49 = vmax.f32 %v240_v41, %v51_v35  ;;  %v20_v50 = vld [vmem:[%s790_s0 + $0x60] sm:$0xff]  ;;  %v129_v54 = vld [vmem:[%s790_s0 + $0x3c8] sm:$0xff]  ;;  %v83_v57 = vld [vmem:[%s790_s0 + $0x258] sm:$0xff] }
  0x23   :  { %v228_v48 = vmax.f32 %v227_v39, %v97_v27  ;;  %v36_v51 = vld [vmem:[%s790_s0 + $0xe0] sm:$0xff]  ;;  %v145_v55 = vld [vmem:[%s790_s0 + $0x448] sm:$0xff]  ;;  %v114_v60 = vld [vmem:[%s790_s0 + $0x350] sm:$0xff] }
  0x24   :  { %v52_v52 = vld [vmem:[%s790_s0 + $0x160] sm:$0xff]  ;;  %v222_v53 = vmax.f32 %v221_v42, %v128_v37  ;;  %v235_v56 = vmax.f32 %v234_v45, %v82_v40  ;;  %v248_v58 = vmax.f32 %v20_v50, %v36_v51  ;;  %287 = vst [vmem:[%s791_s1 + $0x38] sm:$0xff] %v215_v47  ;;  %v99_v61 = vld [vmem:[%s790_s0 + $0x2d8] sm:$0xff]  ;;  %v242_v62 = vmax.f32 %v241_v49, %v67_v46  ;;  %v21_v3 = vld [vmem:[%s790_s0 + $0x68] sm:$0xff] }
  0x25   :  { %v229_v59 = vmax.f32 %v228_v48, %v113_v43  ;;  %v68_v63 = vld [vmem:[%s790_s0 + $0x1e0] sm:$0xff]  ;;  %v37_v4 = vld [vmem:[%s790_s0 + $0xe8] sm:$0xff]  ;;  %v130_v7 = vld [vmem:[%s790_s0 + $0x3d0] sm:$0xff] }
  0x26   :  { %v223_v0 = vmax.f32 %v222_v53, %v144_v38  ;;  %v236_v1 = vmax.f32 %v235_v56, %v98_v44  ;;  %v249_v2 = vmax.f32 %v248_v58, %v52_v52  ;;  %v53_v5 = vld [vmem:[%s790_s0 + $0x168] sm:$0xff]  ;;  %v146_v8 = vld [vmem:[%s790_s0 + $0x450] sm:$0xff]  ;;  %v243_v9 = vmax.f32 %v242_v62, %v83_v57  ;;  %v84_v10 = vld [vmem:[%s790_s0 + $0x260] sm:$0xff] }
  0x27   :  { %v230_v6 = vmax.f32 %v229_v59, %v129_v54  ;;  %v256_v11 = vmax.f32 %v21_v3, %v37_v4  ;;  %v115_v13 = vld [vmem:[%s790_s0 + $0x358] sm:$0xff]  ;;  %v100_v14 = vld [vmem:[%s790_s0 + $0x2e0] sm:$0xff]  ;;  %v69_v16 = vld [vmem:[%s790_s0 + $0x1e8] sm:$0xff] }
  0x28   :  { %288 = vst [vmem:[%s791_s1 + $0x40] sm:$0xff] %v223_v0  ;;  %v237_v12 = vmax.f32 %v236_v1, %v114_v60  ;;  %v250_v15 = vmax.f32 %v249_v2, %v68_v63  ;;  %v244_v18 = vmax.f32 %v243_v9, %v99_v61  ;;  %v22_v20 = vld [vmem:[%s790_s0 + $0x70] sm:$0xff]  ;;  %v131_v24 = vld [vmem:[%s790_s0 + $0x3d8] sm:$0xff]  ;;  %v85_v27 = vld [vmem:[%s790_s0 + $0x268] sm:$0xff] }
  0x29   :  { %v231_v17 = vmax.f32 %v230_v6, %v145_v55  ;;  %v257_v19 = vmax.f32 %v256_v11, %v53_v5  ;;  %v38_v21 = vld [vmem:[%s790_s0 + $0xf0] sm:$0xff]  ;;  %v147_v25 = vld [vmem:[%s790_s0 + $0x458] sm:$0xff]  ;;  %v116_v30 = vld [vmem:[%s790_s0 + $0x360] sm:$0xff] }
  0x2a   :  { %v54_v22 = vld [vmem:[%s790_s0 + $0x170] sm:$0xff]  ;;  %v238_v23 = vmax.f32 %v237_v12, %v130_v7  ;;  %v251_v26 = vmax.f32 %v250_v15, %v84_v10  ;;  %v264_v28 = vmax.f32 %v22_v20, %v38_v21  ;;  %v245_v29 = vmax.f32 %v244_v18, %v115_v13  ;;  %v101_v31 = vld [vmem:[%s790_s0 + $0x2e8] sm:$0xff]  ;;  %v23_v37 = vld [vmem:[%s790_s0 + $0x78] sm:$0xff] }
  0x2b   :  { %289 = vst [vmem:[%s791_s1 + $0x48] sm:$0xff] %v231_v17  ;;  %v258_v32 = vmax.f32 %v257_v19, %v69_v16  ;;  %v70_v33 = vld [vmem:[%s790_s0 + $0x1f0] sm:$0xff]  ;;  %v39_v38 = vld [vmem:[%s790_s0 + $0xf8] sm:$0xff]  ;;  %v132_v41 = vld [vmem:[%s790_s0 + $0x3e0] sm:$0xff] }
  0x2c   :  { %v239_v34 = vmax.f32 %v238_v23, %v146_v8  ;;  %v252_v35 = vmax.f32 %v251_v26, %v100_v14  ;;  %v265_v36 = vmax.f32 %v264_v28, %v54_v22  ;;  %v55_v39 = vld [vmem:[%s790_s0 + $0x178] sm:$0xff]  ;;  %v246_v40 = vmax.f32 %v245_v29, %v131_v24  ;;  %v86_v43 = vld [vmem:[%s790_s0 + $0x270] sm:$0xff]  ;;  %v117_v46 = vld [vmem:[%s790_s0 + $0x368] sm:$0xff] }
  0x2d   :  { %v259_v42 = vmax.f32 %v258_v32, %v85_v27  ;;  %v272_v44 = vmax.f32 %v23_v37, %v39_v38  ;;  %v71_v48 = vld [vmem:[%s790_s0 + $0x1f8] sm:$0xff]  ;;  %v148_v50 = vld [vmem:[%s790_s0 + $0x460] sm:$0xff]  ;;  %v102_v52 = vld [vmem:[%s790_s0 + $0x2f0] sm:$0xff] }
  0x2e   :  { %290 = vst [vmem:[%s791_s1 + $0x50] sm:$0xff] %v239_v34  ;;  %v253_v45 = vmax.f32 %v252_v35, %v116_v30  ;;  %v266_v47 = vmax.f32 %v265_v36, %v70_v33  ;;  %v247_v49 = vmax.f32 %v246_v40, %v147_v25  ;;  %v133_v55 = vld [vmem:[%s790_s0 + $0x3e8] sm:$0xff]  ;;  %v87_v57 = vld [vmem:[%s790_s0 + $0x278] sm:$0xff]  ;;  %v118_v59 = vld [vmem:[%s790_s0 + $0x370] sm:$0xff] }
  0x2f   :  { %v260_v51 = vmax.f32 %v259_v42, %v101_v31  ;;  %v273_v53 = vmax.f32 %v272_v44, %v55_v39  ;;  %v149_v62 = vld [vmem:[%s790_s0 + $0x468] sm:$0xff]  ;;  %v103_v0 = vld [vmem:[%s790_s0 + $0x2f8] sm:$0xff]  ;;  %v134_v2 = vld [vmem:[%s790_s0 + $0x3f0] sm:$0xff] }
  0x30   :  { %v254_v54 = vmax.f32 %v253_v45, %v132_v41  ;;  %v267_v56 = vmax.f32 %v266_v47, %v86_v43  ;;  %291 = vst [vmem:[%s791_s1 + $0x58] sm:$0xff] %v247_v49  ;;  %v119_v5 = vld [vmem:[%s790_s0 + $0x378] sm:$0xff]  ;;  %v150_v7 = vld [vmem:[%s790_s0 + $0x470] sm:$0xff] }
  0x31   :  { %v261_v58 = vmax.f32 %v260_v51, %v117_v46  ;;  %v274_v60 = vmax.f32 %v273_v53, %v71_v48  ;;  %v135_v10 = vld [vmem:[%s790_s0 + $0x3f8] sm:$0xff] }
  0x32   :  { %v255_v61 = vmax.f32 %v254_v54, %v148_v50  ;;  %v268_v63 = vmax.f32 %v267_v56, %v102_v52  ;;  %v151_v13 = vld [vmem:[%s790_s0 + $0x478] sm:$0xff] }
  0x33   :  { %v262_v1 = vmax.f32 %v261_v58, %v133_v55  ;;  %v275_v3 = vmax.f32 %v274_v60, %v87_v57 }
  0x34   :  { %292 = vst [vmem:[%s791_s1 + $0x60] sm:$0xff] %v255_v61  ;;  %v269_v4 = vmax.f32 %v268_v63, %v118_v59 }
  0x35   :  { %v263_v6 = vmax.f32 %v262_v1, %v149_v62  ;;  %v276_v8 = vmax.f32 %v275_v3, %v103_v0 }
  0x36   :  { %v270_v9 = vmax.f32 %v269_v4, %v134_v2 }
  0x37   :  { %293 = vst [vmem:[%s791_s1 + $0x68] sm:$0xff] %v263_v6  ;;  %v277_v11 = vmax.f32 %v276_v8, %v119_v5 }
  0x38   :  { %v271_v12 = vmax.f32 %v270_v9, %v150_v7 }
  0x39   :  { %v278_v14 = vmax.f32 %v277_v11, %v135_v10 }
  0x3a   :  { %294 = vst [vmem:[%s791_s1 + $0x70] sm:$0xff] %v271_v12 }
  0x3b   :  { %v279_v15 = vmax.f32 %v278_v14, %v151_v13 }
  0x3d   :  { %295 = vst [vmem:[%s791_s1 + $0x78] sm:$0xff] %v279_v15 }

// kernel: _lambda_.19
= control target key start
LH: loop header
LB: loop body
LE: loop exit
PB: predicated region body
PF: predicated region fallthrough
CT: control target
= control target key end

     0   :  { %s3103_s1 = inlined_call_operand.vmem [shape: bf16[1152,128], index: 1, kind: input, shape index: {}]   ;;  %s3104_s0 = inlined_call_operand.vmem [shape: bf16[128,1152], index: 0, kind: input, shape index: {}]   ;;  %s3105_s2 = inlined_call_operand.vmem [shape: f32[1,128], index: 2, kind: input, shape index: {}]   ;;  %s3106_s3 = inlined_call_operand.vmem [shape: f32[1,128], index: 3, kind: input, shape index: {}]   ;;  %s3107_s4 = inlined_call_operand.vmem [shape: f32[128,128], index: 4, kind: output, shape index: {}]  }
   0x1   :  { %v2141_v0 = vld [vmem:[%s3103_s1 + $0x78] sm:$0xff]   ;;  %v2145_v4 = vld [vmem:[%s3103_s1 + $0x70] sm:$0xff]   ;;  %v2149_v8 = vld [vmem:[%s3103_s1 + $0x68] sm:$0xff]  }
   0x2   :  { %v2142_v1 = vld [vmem:[%s3103_s1 + $0xf8] sm:$0xff]   ;;  %1821 = vmatprep.subr.bf16.mxu0 %v2141_v0  ;;  %v2146_v5 = vld [vmem:[%s3103_s1 + $0xf0] sm:$0xff]   ;;  %v2150_v9 = vld [vmem:[%s3103_s1 + $0xe8] sm:$0xff]  }
   0x3   :  { %v2143_v2 = vld [vmem:[%s3103_s1 + $0x38] sm:$0xff]   ;;  %1885 = vmatprep.subr.bf16.mxu1 %v2142_v1  ;;  %v2147_v6 = vld [vmem:[%s3103_s1 + $0x30] sm:$0xff]   ;;  %v2151_v10 = vld [vmem:[%s3103_s1 + $0x28] sm:$0xff]  }
   0x4   :  { %v2144_v3 = vld [vmem:[%s3103_s1 + $0xb8] sm:$0xff]   ;;  %1822 = vmatpush3.bf16.msra.mxu0 %v2143_v2  ;;  %v2148_v7 = vld [vmem:[%s3103_s1 + $0xb0] sm:$0xff]   ;;  %v2152_v11 = vld [vmem:[%s3103_s1 + $0xa8] sm:$0xff]  }
   0x5   :  { %1886 = vmatpush3.bf16.msra.mxu1 %v2144_v3  ;;  %1823 = vmatprep.subr.bf16.mxu0 %v2145_v4  ;;  %v2153_v12 = vld [vmem:[%s3103_s1 + $0x60] sm:$0xff]   ;;  %v2157_v16 = vld [vmem:[%s3103_s1 + $0x58] sm:$0xff]   ;;  %v2161_v20 = vld [vmem:[%s3103_s1 + $0x50] sm:$0xff]  }
   0x6   :  { %1887 = vmatprep.subr.bf16.mxu1 %v2146_v5  ;;  %v2154_v13 = vld [vmem:[%s3103_s1 + $0xe0] sm:$0xff]   ;;  %v2158_v17 = vld [vmem:[%s3103_s1 + $0xd8] sm:$0xff]   ;;  %v2162_v21 = vld [vmem:[%s3103_s1 + $0xd0] sm:$0xff]  }
   0x7   :  { %v2155_v14 = vld [vmem:[%s3103_s1 + $0x20] sm:$0xff]   ;;  %v2159_v18 = vld [vmem:[%s3103_s1 + $0x18] sm:$0xff]   ;;  %v2163_v22 = vld [vmem:[%s3103_s1 + $0x10] sm:$0xff]  }
   0x8   :  { %1824 = vmatpush3.bf16.msra.mxu0 %v2147_v6  ;;  %v2156_v15 = vld [vmem:[%s3103_s1 + $0xa0] sm:$0xff]   ;;  %v2160_v19 = vld [vmem:[%s3103_s1 + $0x98] sm:$0xff]   ;;  %v2164_v23 = vld [vmem:[%s3103_s1 + $0x90] sm:$0xff]  }
   0x9   :  { %1888 = vmatpush3.bf16.msra.mxu1 %v2148_v7  ;;  %1825 = vmatprep.subr.bf16.mxu0 %v2149_v8  ;;  %v2165_v24 = vld [vmem:[%s3103_s1 + $0x48] sm:$0xff]   ;;  %v2169_v28 = vld [vmem:[%s3103_s1 + $0x40] sm:$0xff]   ;;  %v2179_v36 = vld [vmem:[%s3103_s1 + $0x178] sm:$0xff]  }
   0xa   :  { %1889 = vmatprep.subr.bf16.mxu1 %v2150_v9  ;;  %v2166_v25 = vld [vmem:[%s3103_s1 + $0xc8] sm:$0xff]   ;;  %v2170_v29 = vld [vmem:[%s3103_s1 + $0xc0] sm:$0xff]   ;;  %v2180_v37 = vld [vmem:[%s3103_s1 + $0x138] sm:$0xff]  }
   0xb   :  { %v2167_v26 = vld [vmem:[%s3103_s1 + $0x8] sm:$0xff]   ;;  %v2171_v30 = vld [vmem:[%s3103_s1] sm:$0xff]   ;;  %v2183_v39 = vld [vmem:[%s3104_s0 + $0x54] ss:$36 sps:$4 sm:$0xff]  }
   0xc   :  { %1826 = vmatpush3.bf16.msra.mxu0 %v2151_v10  ;;  %v2168_v27 = vld [vmem:[%s3103_s1 + $0x88] sm:$0xff]   ;;  %v2172_v31 = vld [vmem:[%s3103_s1 + $0x80] sm:$0xff]   ;;  %v2186_v41 = vld [vmem:[%s3104_s0 + $0x50] ss:$36 sps:$4 sm:$0xff]  }
   0xd   :  { %1890 = vmatpush3.bf16.msra.mxu1 %v2152_v11  ;;  %1827 = vmatprep.subr.bf16.mxu0 %v2153_v12  ;;  %v2173_v32 = vld [vmem:[%s3104_s0] ss:$36 sps:$4 sm:$0xff]   ;;  %v2176_v34 = vld [vmem:[%s3104_s0 + $0x8] ss:$36 sps:$4 sm:$0xff]   ;;  %v2187_v42 = vld [vmem:[%s3103_s1 + $0x170] sm:$0xff]  }
   0xe   :  { %1891 = vmatprep.subr.bf16.mxu1 %v2154_v13  ;;  %v2175_v33 = vld [vmem:[%s3104_s0 + $0x4] ss:$36 sps:$4 sm:$0xff]   ;;  %v2178_v35 = vld [vmem:[%s3104_s0 + $0xc] ss:$36 sps:$4 sm:$0xff]   ;;  %v2189_v44 = vld [vmem:[%s3104_s0 + $0x94] ss:$36 sps:$4 sm:$0xff]  }
   0xf   :  { %1074 = vmatprep.mubr.bf16.mxu0 %v2175_v33  ;;  %1171 = vmatprep.mubr.bf16.mxu1 %v2178_v35  ;;  %v2181_v38 = vld [vmem:[%s3104_s0 + $0x4c] ss:$36 sps:$4 sm:$0xff]   ;;  %v2191_v45 = vld [vmem:[%s3104_s0 + $0x9c] ss:$36 sps:$4 sm:$0xff]   ;;  %v2201_v53 = vld [vmem:[%s3104_s0 + $0xe4] ss:$36 sps:$4 sm:$0xff]  }
  0x10   :  { %1828 = vmatpush3.bf16.msra.mxu0 %v2155_v14  ;;  %v2185_v40 = vld [vmem:[%s3104_s0 + $0x48] ss:$36 sps:$4 sm:$0xff]   ;;  %v2188_v43 = vld [vmem:[%s3103_s1 + $0x130] sm:$0xff]   ;;  %v2196_v47 = vld [vmem:[%s3103_s1 + $0x1f8] sm:$0xff]  }
  0x11   :  { %1892 = vmatpush3.bf16.msra.mxu1 %v2156_v15  ;;  %1829 = vmatprep.subr.bf16.mxu0 %v2157_v16  ;;  %v2195_v46 = vld [vmem:[%s3103_s1 + $0x168] sm:$0xff]   ;;  %v2193_v48 = vld [vmem:[%s3104_s0 + $0x90] ss:$36 sps:$4 sm:$0xff]   ;;  %v2198_v50 = vld [vmem:[%s3103_s1 + $0x1b8] sm:$0xff]  }
  0x12   :  { %1893 = vmatprep.subr.bf16.mxu1 %v2158_v17  ;;  %v2197_v49 = vld [vmem:[%s3103_s1 + $0x128] sm:$0xff]   ;;  %v2194_v51 = vld [vmem:[%s3104_s0 + $0x98] ss:$36 sps:$4 sm:$0xff]   ;;  %v2205_v54 = vld [vmem:[%s3103_s1 + $0x160] sm:$0xff]  }
  0x13   :  { %v2199_v52 = vld [vmem:[%s3104_s0 + $0xdc] ss:$36 sps:$4 sm:$0xff]   ;;  %v2206_v55 = vld [vmem:[%s3103_s1 + $0x1f0] sm:$0xff]   ;;  %v2209_v60 = vld [vmem:[%s3104_s0 + $0x124] ss:$36 sps:$4 sm:$0xff]  }
  0x14   :  { %1830 = vmatpush3.bf16.msra.mxu0 %v2159_v18  ;;  %v2207_v56 = vld [vmem:[%s3103_s1 + $0x120] sm:$0xff]   ;;  %v2208_v57 = vld [vmem:[%s3103_s1 + $0x1b0] sm:$0xff]   ;;  %v2203_v58 = vld [vmem:[%s3104_s0 + $0xd8] ss:$36 sps:$4 sm:$0xff]  }
  0x15   :  { %1894 = vmatpush3.bf16.msra.mxu1 %v2160_v19  ;;  %1831 = vmatprep.subr.bf16.mxu0 %v2161_v20  ;;  %v2204_v59 = vld [vmem:[%s3104_s0 + $0xe0] ss:$36 sps:$4 sm:$0xff]   ;;  %v2211_v61 = vld [vmem:[%s3104_s0 + $0x12c] ss:$36 sps:$4 sm:$0xff]   ;;  %v2215_v62 = vld [vmem:[%s3103_s1 + $0x158] sm:$0xff]  }
  0x16   :  { %1895 = vmatprep.subr.bf16.mxu1 %v2162_v21  ;;  %v2216_v63 = vld [vmem:[%s3103_s1 + $0x1e8] sm:$0xff]   ;;  %v2217_v0 = vld [vmem:[%s3103_s1 + $0x118] sm:$0xff]   ;;  %v2213_v2 = vld [vmem:[%s3104_s0 + $0x120] ss:$36 sps:$4 sm:$0xff]  }
  0x17   :  { %v2218_v1 = vld [vmem:[%s3103_s1 + $0x1a8] sm:$0xff]   ;;  %v2221_v5 = vld [vmem:[%s3104_s0 + $0x174] ss:$36 sps:$4 sm:$0xff]   ;;  %v2226_v7 = vld [vmem:[%s3103_s1 + $0x1e0] sm:$0xff]  }
  0x18   :  { %1832 = vmatpush3.bf16.msra.mxu0 %v2163_v22  ;;  %v2214_v3 = vld [vmem:[%s3104_s0 + $0x128] ss:$36 sps:$4 sm:$0xff]   ;;  %v2225_v6 = vld [vmem:[%s3103_s1 + $0x150] sm:$0xff]   ;;  %v2228_v9 = vld [vmem:[%s3103_s1 + $0x1a0] sm:$0xff]  }
  0x19   :  { %1896 = vmatpush3.bf16.msra.mxu1 %v2164_v23  ;;  %1833 = vmatprep.subr.bf16.mxu0 %v2165_v24  ;;  %v2219_v4 = vld [vmem:[%s3104_s0 + $0x16c] ss:$36 sps:$4 sm:$0xff]   ;;  %v2229_v12 = vld [vmem:[%s3104_s0 + $0x1b4] ss:$36 sps:$4 sm:$0xff]   ;;  %v2231_v14 = vld [vmem:[%s3104_s0 + $0x1bc] ss:$36 sps:$4 sm:$0xff]  }
  0x1a   :  { %1897 = vmatprep.subr.bf16.mxu1 %v2166_v25  ;;  %v2227_v8 = vld [vmem:[%s3103_s1 + $0x110] sm:$0xff]   ;;  %v2223_v10 = vld [vmem:[%s3104_s0 + $0x168] ss:$36 sps:$4 sm:$0xff]   ;;  %v2236_v15 = vld [vmem:[%s3103_s1 + $0x1d8] sm:$0xff]  }
  0x1b   :  { %v2224_v11 = vld [vmem:[%s3104_s0 + $0x170] ss:$36 sps:$4 sm:$0xff]   ;;  %v2235_v13 = vld [vmem:[%s3103_s1 + $0x148] sm:$0xff]   ;;  %v2238_v17 = vld [vmem:[%s3103_s1 + $0x198] sm:$0xff]  }
  0x1c   :  { %1834 = vmatpush3.bf16.msra.mxu0 %v2167_v26  ;;  %v2237_v16 = vld [vmem:[%s3103_s1 + $0x108] sm:$0xff]   ;;  %v2239_v18 = vld [vmem:[%s3103_s1 + $0x1d0] sm:$0xff]   ;;  %v2234_v21 = vld [vmem:[%s3104_s0 + $0x1b8] ss:$36 sps:$4 sm:$0xff]  }
  0x1d   :  { %1898 = vmatpush3.bf16.msra.mxu1 %v2168_v27  ;;  %1835 = vmatprep.subr.bf16.mxu0 %v2169_v28  ;;  %v2240_v19 = vld [vmem:[%s3103_s1 + $0x190] sm:$0xff]   ;;  %v2241_v22 = vld [vmem:[%s3104_s0 + $0x1fc] ss:$36 sps:$4 sm:$0xff]   ;;  %v2243_v23 = vld [vmem:[%s3104_s0 + $0x204] ss:$36 sps:$4 sm:$0xff]  }
  0x1e   :  { %1899 = vmatprep.subr.bf16.mxu1 %v2170_v29  ;;  %v2233_v20 = vld [vmem:[%s3104_s0 + $0x1b0] ss:$36 sps:$4 sm:$0xff]   ;;  %v2247_v24 = vld [vmem:[%s3103_s1 + $0x140] sm:$0xff]   ;;  %v2248_v25 = vld [vmem:[%s3103_s1 + $0x1c8] sm:$0xff]  }
  0x1f   :  { %v2249_v26 = vld [vmem:[%s3103_s1 + $0x100] sm:$0xff]   ;;  %v2250_v27 = vld [vmem:[%s3103_s1 + $0x188] sm:$0xff]   ;;  %v2245_v29 = vld [vmem:[%s3104_s0 + $0x1f8] ss:$36 sps:$4 sm:$0xff]  }
  0x20   :  { %1836 = vmatpush3.bf16.msra.mxu0 %v2171_v30  ;;  %v2251_v28 = vld [vmem:[%s3103_s1 + $0x1c0] sm:$0xff]   ;;  %v2255_v33 = vld [vmem:[%s3104_s0 + $0x14] ss:$36 sps:$4 sm:$0xff]  }
  0x21   :  { %1900 = vmatpush3.bf16.msra.mxu1 %v2172_v31  ;;  %1949 = vmatprep.subr.bf16.mxu0 %v2179_v36  ;;  %v2246_v30 = vld [vmem:[%s3104_s0 + $0x200] ss:$36 sps:$4 sm:$0xff]   ;;  %v2253_v35 = vld [vmem:[%s3104_s0 + $0x10] ss:$36 sps:$4 sm:$0xff]   ;;  %v2256_v36 = vld [vmem:[%s3104_s0 + $0x18] ss:$36 sps:$4 sm:$0xff]  }
  0x22   :  { %2013 = vmatprep.subr.bf16.mxu1 %v2196_v47  ;;  %v2252_v31 = vld [vmem:[%s3103_s1 + $0x180] sm:$0xff]  }
  0x23   :  { %1075 = vmatmul.mubr.bf16.vlgmr.msra.gmra.mxu0 %v2173_v32  ;;  %v2259_v32 = vld [vmem:[%s3103_s1 + $0x238] sm:$0xff]   ;;  %v2271_v47 = vld [vmem:[%s3104_s0 + $0xa0] ss:$36 sps:$4 sm:$0xff]  }
  0x24   :  { %1172 = vmatmul.mubr.bf16.vlgmr.msra.gmra.mxu1 %v2176_v34  ;;  %1950 = vmatpush3.bf16.msra.mxu0 %v2180_v37  ;;  %v2258_v34 = vld [vmem:[%s3104_s0 + $0x1c] ss:$36 sps:$4 sm:$0xff]  }
  0x25   :  { %1082 = vmatprep.mubr.bf16.mxu0 %v2181_v38  ;;  %1179 = vmatprep.mubr.bf16.mxu1 %v2183_v39  ;;  %v2260_v37 = vld [vmem:[%s3104_s0 + $0x5c] ss:$36 sps:$4 sm:$0xff]   ;;  %v2262_v38 = vld [vmem:[%s3104_s0 + $0x64] ss:$36 sps:$4 sm:$0xff]   ;;  %v2266_v39 = vld [vmem:[%s3103_s1 + $0x230] sm:$0xff]  }
  0x26   :  { %1951 = vmatprep.subr.bf16.mxu0 %v2187_v42  ;;  %2014 = vmatpush3.bf16.msra.mxu1 %v2198_v50  ;;  %v2265_v42 = vld [vmem:[%s3104_s0 + $0x60] ss:$36 sps:$4 sm:$0xff]   ;;  %v2276_v50 = vld [vmem:[%s3104_s0 + $0xf4] ss:$36 sps:$4 sm:$0xff]  }
  0x27   :  { %2015 = vmatprep.subr.bf16.mxu1 %v2206_v55  ;;  %v2281_v55 = vld [vmem:[%s3104_s0 + $0x134] ss:$36 sps:$4 sm:$0xff]  }
  0x28   :  { %1952 = vmatpush3.bf16.msra.mxu0 %v2188_v43  ;;  %v2267_v43 = vld [vmem:[%s3104_s0 + $0xa4] ss:$36 sps:$4 sm:$0xff]  }
  0x29   :  { %1953 = vmatprep.subr.bf16.mxu0 %v2195_v46  ;;  %v2287_v46 = vld [vmem:[%s3103_s1 + $0x218] sm:$0xff]  }
  0x2a   :  { %2016 = vmatpush3.bf16.msra.mxu1 %v2208_v57  ;;  %v2308_v57 = vld [vmem:[%s3103_s1 + $0x200] sm:$0xff]  }
  0x2b   :  { %1083 = vmatmul.mubr.bf16.gmra.mxu0 %v2185_v40  ;;  %2017 = vmatprep.subr.bf16.mxu1 %v2216_v63  ;;  %v2273_v40 = vld [vmem:[%s3103_s1 + $0x228] sm:$0xff]   ;;  %v2293_v63 = vld [vmem:[%s3104_s0 + $0x180] ss:$36 sps:$4 sm:$0xff]  }
  0x2c   :  { %1180 = vmatmul.mubr.bf16.gmra.mxu1 %v2186_v41  ;;  %1090 = vmatprep.mubr.bf16.mxu0 %v2189_v44  ;;  %v2264_v41 = vld [vmem:[%s3104_s0 + $0x58] ss:$36 sps:$4 sm:$0xff]   ;;  %v2269_v44 = vld [vmem:[%s3104_s0 + $0xac] ss:$36 sps:$4 sm:$0xff]  }
  0x2d   :  { %1187 = vmatprep.mubr.bf16.mxu1 %v2191_v45  ;;  %1954 = vmatpush3.bf16.msra.mxu0 %v2197_v49  ;;  %v2280_v45 = vld [vmem:[%s3103_s1 + $0x220] sm:$0xff]   ;;  %v2274_v49 = vld [vmem:[%s3104_s0 + $0xec] ss:$36 sps:$4 sm:$0xff]  }
  0x2e   :  { %1955 = vmatprep.subr.bf16.mxu0 %v2205_v54  ;;  %2018 = vmatpush3.bf16.msra.mxu1 %v2218_v1  ;;  %v2279_v54 = vld [vmem:[%s3104_s0 + $0xf0] ss:$36 sps:$4 sm:$0xff]  }
  0x2f   :  { %2019 = vmatprep.subr.bf16.mxu1 %v2226_v7  ;;  %v2297_v1 = vld [vmem:[%s3104_s0 + $0x1cc] ss:$36 sps:$4 sm:$0xff]  }
  0x30   :  { %v2307_v7 = vld [vmem:[%s3104_s0 + $0x210] ss:$36 sps:$4 sm:$0xff]  }
  0x31   :  { %1956 = vmatpush3.bf16.msra.mxu0 %v2207_v56  ;;  %v2283_v56 = vld [vmem:[%s3104_s0 + $0x13c] ss:$36 sps:$4 sm:$0xff]  }
  0x32   :  { %1957 = vmatprep.subr.bf16.mxu0 %v2215_v62  ;;  %2020 = vmatpush3.bf16.msra.mxu1 %v2228_v9  ;;  %v2292_v62 = vld [vmem:[%s3104_s0 + $0x178] ss:$36 sps:$4 sm:$0xff]   ;;  %v2310_v9 = vld [vmem:[%s3104_s0 + $0x140] ss:$36 sps:$4 sm:$0xff]  }
  0x33   :  { %1091 = vmatmul.mubr.bf16.gmra.mxu0 %v2193_v48  ;;  %2021 = vmatprep.subr.bf16.mxu1 %v2236_v15  ;;  %v2272_v48 = vld [vmem:[%s3104_s0 + $0xa8] ss:$36 sps:$4 sm:$0xff]   ;;  %v2316_v15 = vld [vmem:[%s3104_s0 + $0x218] ss:$36 sps:$4 sm:$0xff]  }
  0x34   :  { %1188 = vmatmul.mubr.bf16.gmra.mxu1 %v2194_v51  ;;  %1098 = vmatprep.mubr.bf16.mxu0 %v2199_v52  ;;  %v2294_v51 = vld [vmem:[%s3103_s1 + $0x210] sm:$0xff]   ;;  %v2278_v52 = vld [vmem:[%s3104_s0 + $0xe8] ss:$36 sps:$4 sm:$0xff]  }
  0x35   :  { %1195 = vmatprep.mubr.bf16.mxu1 %v2201_v53  ;;  %1958 = vmatpush3.bf16.msra.mxu0 %v2217_v0  ;;  %v2301_v53 = vld [vmem:[%s3103_s1 + $0x208] sm:$0xff]  }
  0x36   :  { %1959 = vmatprep.subr.bf16.mxu0 %v2225_v6  ;;  %2022 = vmatpush3.bf16.msra.mxu1 %v2238_v17  ;;  %v2295_v0 = vld [vmem:[%s3104_s0 + $0x1c4] ss:$36 sps:$4 sm:$0xff]  }
  0x37   :  { %2023 = vmatprep.subr.bf16.mxu1 %v2239_v18  ;;  %v2306_v6 = vld [vmem:[%s3104_s0 + $0x208] ss:$36 sps:$4 sm:$0xff]  }
  0x39   :  { %1960 = vmatpush3.bf16.msra.mxu0 %v2227_v8  ;;  %v2309_v8 = vld [vmem:[%s3104_s0 + $0x20] ss:$36 sps:$4 sm:$0xff]  }
  0x3a   :  { %1961 = vmatprep.subr.bf16.mxu0 %v2235_v13  ;;  %2024 = vmatpush3.bf16.msra.mxu1 %v2240_v19  ;;  %v2314_v13 = vld [vmem:[%s3104_s0 + $0x1d0] ss:$36 sps:$4 sm:$0xff]  }
  0x3b   :  { %1099 = vmatmul.mubr.bf16.gmra.mxu0 %v2203_v58  ;;  %2025 = vmatprep.subr.bf16.mxu1 %v2248_v25  ;;  %v2285_v58 = vld [vmem:[%s3104_s0 + $0x130] ss:$36 sps:$4 sm:$0xff]  }
  0x3c   :  { %1196 = vmatmul.mubr.bf16.gmra.mxu1 %v2204_v59  ;;  %1106 = vmatprep.mubr.bf16.mxu0 %v2209_v60  ;;  %v2286_v59 = vld [vmem:[%s3104_s0 + $0x138] ss:$36 sps:$4 sm:$0xff]  }
  0x3d   :  { %1203 = vmatprep.mubr.bf16.mxu1 %v2211_v61  ;;  %1962 = vmatpush3.bf16.msra.mxu0 %v2237_v16  ;;  %v2288_v60 = vld [vmem:[%s3104_s0 + $0x17c] ss:$36 sps:$4 sm:$0xff]   ;;  %v2290_v61 = vld [vmem:[%s3104_s0 + $0x184] ss:$36 sps:$4 sm:$0xff]  }
  0x3e   :  { %1963 = vmatprep.subr.bf16.mxu0 %v2247_v24  ;;  %2026 = vmatpush3.bf16.msra.mxu1 %v2250_v27 }
  0x3f   :  { %2027 = vmatprep.subr.bf16.mxu1 %v2251_v28 }
  0x41   :  { %1964 = vmatpush3.bf16.msra.mxu0 %v2249_v26 }
  0x42   :  { %2093 = vmatprep.subr.bf16.mxu0 %v2259_v32  ;;  %2028 = vmatpush3.bf16.msra.mxu1 %v2252_v31 }
  0x43   :  { %1107 = vmatmul.mubr.bf16.gmra.mxu0 %v2213_v2  ;;  %2125 = vmatprep.subr.bf16.mxu1 %v2259_v32  ;;  %v2299_v2 = vld [vmem:[%s3104_s0 + $0x1c0] ss:$36 sps:$4 sm:$0xff]  }
  0x44   :  { %1204 = vmatmul.mubr.bf16.gmra.mxu1 %v2214_v3  ;;  %1114 = vmatprep.mubr.bf16.mxu0 %v2219_v4  ;;  %v2300_v3 = vld [vmem:[%s3104_s0 + $0x1c8] ss:$36 sps:$4 sm:$0xff]  }
  0x45   :  { %1211 = vmatprep.mubr.bf16.mxu1 %v2221_v5  ;;  %v2302_v4 = vld [vmem:[%s3104_s0 + $0x20c] ss:$36 sps:$4 sm:$0xff]   ;;  %v2304_v5 = vld [vmem:[%s3104_s0 + $0x214] ss:$36 sps:$4 sm:$0xff]  }
  0x4b   :  { %1115 = vmatmul.mubr.bf16.gmra.mxu0 %v2223_v10  ;;  %v2311_v10 = vld [vmem:[%s3104_s0 + $0x68] ss:$36 sps:$4 sm:$0xff]  }
  0x4c   :  { %1212 = vmatmul.mubr.bf16.gmra.mxu1 %v2224_v11  ;;  %1122 = vmatprep.mubr.bf16.mxu0 %v2229_v12  ;;  %v2312_v11 = vld [vmem:[%s3104_s0 + $0x188] ss:$36 sps:$4 sm:$0xff]   ;;  %v2313_v12 = vld [vmem:[%s3104_s0 + $0xb0] ss:$36 sps:$4 sm:$0xff]  }
  0x4d   :  { %1219 = vmatprep.mubr.bf16.mxu1 %v2231_v14  ;;  %v2315_v14 = vld [vmem:[%s3104_s0 + $0xf8] ss:$36 sps:$4 sm:$0xff]  }
  0x53   :  { %1123 = vmatmul.mubr.bf16.gmra.mxu0 %v2233_v20 }
  0x54   :  { %1220 = vmatmul.mubr.bf16.gmra.mxu1 %v2234_v21  ;;  %1130 = vmatprep.mubr.bf16.mxu0 %v2241_v22 }
  0x55   :  { %1227 = vmatprep.mubr.bf16.mxu1 %v2243_v23 }
  0x5b   :  { %1131 = vmatmul.mubr.bf16.gmra.mxu0 %v2245_v29 }
  0x5c   :  { %1228 = vmatmul.mubr.bf16.gmra.mxu1 %v2246_v30  ;;  %1268 = vmatprep.mubr.bf16.mxu0 %v2255_v33 }
  0x5d   :  { %1365 = vmatprep.mubr.bf16.mxu1 %v2258_v34 }
  0x63   :  { %1269 = vmatmul.mubr.bf16.vlgmr.msra.gmra.mxu0 %v2253_v35 }
  0x64   :  { %1366 = vmatmul.mubr.bf16.vlgmr.msra.gmra.mxu1 %v2256_v36  ;;  %2094 = vmatpush3.bf16.msra.mxu0 %v2259_v32 }
  0x65   :  { %1276 = vmatprep.mubr.bf16.mxu0 %v2260_v37  ;;  %1373 = vmatprep.mubr.bf16.mxu1 %v2262_v38 }
  0x66   :  { %2095 = vmatprep.subr.bf16.mxu0 %v2266_v39  ;;  %2133 = vmatpush3.bf16.msra.mxu1 %v2259_v32 }
  0x67   :  { %2126 = vmatprep.subr.bf16.mxu1 %v2266_v39 }
  0x68   :  { %2096 = vmatpush3.bf16.msra.mxu0 %v2266_v39 }
  0x69   :  { %2097 = vmatprep.subr.bf16.mxu0 %v2273_v40 }
  0x6a   :  { %2134 = vmatpush3.bf16.msra.mxu1 %v2266_v39 }
  0x6b   :  { %1277 = vmatmul.mubr.bf16.gmra.mxu0 %v2264_v41  ;;  %2127 = vmatprep.subr.bf16.mxu1 %v2273_v40 }
  0x6c   :  { %1374 = vmatmul.mubr.bf16.gmra.mxu1 %v2265_v42  ;;  %1284 = vmatprep.mubr.bf16.mxu0 %v2267_v43 }
  0x6d   :  { %1381 = vmatprep.mubr.bf16.mxu1 %v2269_v44  ;;  %2098 = vmatpush3.bf16.msra.mxu0 %v2273_v40 }
  0x6e   :  { %2099 = vmatprep.subr.bf16.mxu0 %v2280_v45  ;;  %2135 = vmatpush3.bf16.msra.mxu1 %v2273_v40 }
  0x6f   :  { %2128 = vmatprep.subr.bf16.mxu1 %v2280_v45 }
  0x71   :  { %2100 = vmatpush3.bf16.msra.mxu0 %v2280_v45 }
  0x72   :  { %2101 = vmatprep.subr.bf16.mxu0 %v2287_v46  ;;  %2136 = vmatpush3.bf16.msra.mxu1 %v2280_v45 }
  0x73   :  { %1285 = vmatmul.mubr.bf16.gmra.mxu0 %v2271_v47  ;;  %2129 = vmatprep.subr.bf16.mxu1 %v2287_v46 }
  0x74   :  { %1382 = vmatmul.mubr.bf16.gmra.mxu1 %v2272_v48  ;;  %1292 = vmatprep.mubr.bf16.mxu0 %v2274_v49 }
  0x75   :  { %1389 = vmatprep.mubr.bf16.mxu1 %v2276_v50  ;;  %2102 = vmatpush3.bf16.msra.mxu0 %v2287_v46 }
  0x76   :  { %2103 = vmatprep.subr.bf16.mxu0 %v2294_v51  ;;  %2137 = vmatpush3.bf16.msra.mxu1 %v2287_v46 }
  0x77   :  { %2130 = vmatprep.subr.bf16.mxu1 %v2294_v51 }
  0x79   :  { %2104 = vmatpush3.bf16.msra.mxu0 %v2294_v51 }
  0x7a   :  { %2105 = vmatprep.subr.bf16.mxu0 %v2301_v53  ;;  %2138 = vmatpush3.bf16.msra.mxu1 %v2294_v51 }
  0x7b   :  { %1293 = vmatmul.mubr.bf16.gmra.mxu0 %v2278_v52  ;;  %2131 = vmatprep.subr.bf16.mxu1 %v2301_v53 }
  0x7c   :  { %1390 = vmatmul.mubr.bf16.gmra.mxu1 %v2279_v54  ;;  %1300 = vmatprep.mubr.bf16.mxu0 %v2281_v55 }
  0x7d   :  { %1397 = vmatprep.mubr.bf16.mxu1 %v2283_v56  ;;  %2106 = vmatpush3.bf16.msra.mxu0 %v2301_v53 }
  0x7e   :  { %2107 = vmatprep.subr.bf16.mxu0 %v2308_v57  ;;  %2139 = vmatpush3.bf16.msra.mxu1 %v2301_v53 }
  0x7f   :  { %2132 = vmatprep.subr.bf16.mxu1 %v2308_v57 }
  0x81   :  { %2108 = vmatpush3.bf16.msra.mxu0 %v2308_v57 }
  0x82   :  { %2140 = vmatpush3.bf16.msra.mxu1 %v2308_v57 }
  0x83   :  { %1301 = vmatmul.mubr.bf16.gmra.mxu0 %v2285_v58 }
  0x84   :  { %1398 = vmatmul.mubr.bf16.gmra.mxu1 %v2286_v59  ;;  %1308 = vmatprep.mubr.bf16.mxu0 %v2288_v60 }
  0x85   :  { %1405 = vmatprep.mubr.bf16.mxu1 %v2290_v61 }
  0x8b   :  { %1309 = vmatmul.mubr.bf16.gmra.mxu0 %v2292_v62 }
  0x8c   :  { %1406 = vmatmul.mubr.bf16.gmra.mxu1 %v2293_v63  ;;  %1316 = vmatprep.mubr.bf16.mxu0 %v2295_v0 }
  0x8d   :  { %1413 = vmatprep.mubr.bf16.mxu1 %v2297_v1 }
  0x93   :  { %1317 = vmatmul.mubr.bf16.gmra.mxu0 %v2299_v2 }
  0x94   :  { %1414 = vmatmul.mubr.bf16.gmra.mxu1 %v2300_v3  ;;  %1324 = vmatprep.mubr.bf16.mxu0 %v2302_v4 }
  0x95   :  { %1421 = vmatprep.mubr.bf16.mxu1 %v2304_v5 }
  0x9b   :  { %1325 = vmatmul.mubr.bf16.gmra.mxu0 %v2306_v6 }
  0x9c   :  { %1422 = vmatmul.mubr.bf16.gmra.mxu1 %v2307_v7  ;;  %2109 = vmatprep.mubr.bf16.mxu0 %v2309_v8 }
  0x9d   :  { %2117 = vmatprep.mubr.bf16.mxu1 %v2310_v9 }
  0xa3   :  { %2110 = vmatmul.mubr.bf16.vlgmr.msra.gmra.mxu0 %v2311_v10 }
  0xa4   :  { %2118 = vmatmul.mubr.bf16.vlgmr.msra.gmra.mxu1 %v2312_v11  ;;  %2113 = vmatprep.mubr.bf16.mxu0 %v2313_v12 }
  0xa5   :  { %2121 = vmatprep.mubr.bf16.mxu1 %v2314_v13 }
  0xab   :  { %2114 = vmatmul.mubr.bf16.gmra.mxu0 %v2315_v14 }
  0xac   :  { %2122 = vmatmul.mubr.bf16.gmra.mxu1 %v2316_v15 }
  0xe3   :  { %v1837_v16 = vpop.f32.mrf.mxu0 }
  0xe4   :  { %v1901_v17 = vpop.f32.mrf.mxu1 }
  0xe5   :  { %v1838_v18 = vpop.f32.mrf.mxu0 }
  0xe6   :  { %v1839_v19 = vadd.f32 %v1838_v18, %v1837_v16  ;;  %v1902_v20 = vpop.f32.mrf.mxu1 }
  0xe7   :  { %v1903_v21 = vadd.f32 %v1902_v20, %v1901_v17  ;;  %v1840_v22 = vpop.f32.mrf.mxu0 }
  0xe8   :  { %v1904_v23 = vpop.f32.mrf.mxu1 }
  0xe9   :  { %v2776_v24 = vadd.f32 %v1903_v21, %v1839_v19  ;;  %v1841_v25 = vpop.f32.mrf.mxu0 }
  0xea   :  { %v1842_v26 = vadd.f32 %v1841_v25, %v1840_v22  ;;  %v1905_v27 = vpop.f32.mrf.mxu1 }
  0xeb   :  { %v1906_v28 = vadd.f32 %v1905_v27, %v1904_v23  ;;  %v1843_v29 = vpop.f32.mrf.mxu0 }
  0xec   :  { %v1907_v30 = vpop.f32.mrf.mxu1 }
  0xed   :  { %v2778_v31 = vadd.f32 %v1906_v28, %v1842_v26  ;;  %v1844_v32 = vpop.f32.mrf.mxu0 }
  0xee   :  { %v1845_v33 = vadd.f32 %v1844_v32, %v1843_v29  ;;  %v1908_v34 = vpop.f32.mrf.mxu1 }
  0xef   :  { %v1909_v35 = vadd.f32 %v1908_v34, %v1907_v30  ;;  %v1846_v36 = vpop.f32.mrf.mxu0 }
  0xf0   :  { %v1910_v37 = vpop.f32.mrf.mxu1 }
  0xf1   :  { %v2780_v38 = vadd.f32 %v1909_v35, %v1845_v33  ;;  %v1847_v39 = vpop.f32.mrf.mxu0 }
  0xf2   :  { %v1848_v40 = vadd.f32 %v1847_v39, %v1846_v36  ;;  %v1911_v41 = vpop.f32.mrf.mxu1 }
  0xf3   :  { %v1912_v42 = vadd.f32 %v1911_v41, %v1910_v37  ;;  %v1849_v43 = vpop.f32.mrf.mxu0 }
  0xf4   :  { %v1913_v44 = vpop.f32.mrf.mxu1 }
  0xf5   :  { %v2782_v45 = vadd.f32 %v1912_v42, %v1848_v40  ;;  %v1850_v46 = vpop.f32.mrf.mxu0 }
  0xf6   :  { %v1851_v47 = vadd.f32 %v1850_v46, %v1849_v43  ;;  %v1914_v48 = vpop.f32.mrf.mxu1 }
  0xf7   :  { %v1915_v49 = vadd.f32 %v1914_v48, %v1913_v44  ;;  %v1852_v50 = vpop.f32.mrf.mxu0 }
  0xf8   :  { %v1916_v51 = vpop.f32.mrf.mxu1 }
  0xf9   :  { %v2784_v52 = vadd.f32 %v1915_v49, %v1851_v47  ;;  %v1853_v53 = vpop.f32.mrf.mxu0 }
  0xfa   :  { %v1854_v54 = vadd.f32 %v1853_v53, %v1852_v50  ;;  %v1917_v55 = vpop.f32.mrf.mxu1 }
  0xfb   :  { %v1918_v56 = vadd.f32 %v1917_v55, %v1916_v51  ;;  %v1855_v57 = vpop.f32.mrf.mxu0 }
  0xfc   :  { %v1919_v58 = vpop.f32.mrf.mxu1 }
  0xfd   :  { %v2786_v59 = vadd.f32 %v1918_v56, %v1854_v54  ;;  %v1856_v60 = vpop.f32.mrf.mxu0 }
  0xfe   :  { %v1857_v61 = vadd.f32 %v1856_v60, %v1855_v57  ;;  %v1920_v62 = vpop.f32.mrf.mxu1 }
  0xff   :  { %v1921_v63 = vadd.f32 %v1920_v62, %v1919_v58  ;;  %v1858_v0 = vpop.f32.mrf.mxu0 }
 0x100   :  { %v1922_v1 = vpop.f32.mrf.mxu1 }
 0x101   :  { %v2788_v2 = vadd.f32 %v1921_v63, %v1857_v61  ;;  %v1859_v3 = vpop.f32.mrf.mxu0 }
 0x102   :  { %v1860_v4 = vadd.f32 %v1859_v3, %v1858_v0  ;;  %v1923_v5 = vpop.f32.mrf.mxu1 }
 0x103   :  { %v1924_v6 = vadd.f32 %v1923_v5, %v1922_v1  ;;  %v1861_v7 = vpop.f32.mrf.mxu0 }
 0x104   :  { %v1925_v8 = vpop.f32.mrf.mxu1 }
 0x105   :  { %v2790_v9 = vadd.f32 %v1924_v6, %v1860_v4  ;;  %v1862_v10 = vpop.f32.mrf.mxu0 }
 0x106   :  { %v1863_v11 = vadd.f32 %v1862_v10, %v1861_v7  ;;  %v1926_v12 = vpop.f32.mrf.mxu1 }
 0x107   :  { %v1927_v13 = vadd.f32 %v1926_v12, %v1925_v8  ;;  %v1864_v14 = vpop.f32.mrf.mxu0 }
 0x108   :  { %v1928_v15 = vpop.f32.mrf.mxu1 }
 0x109   :  { %v2792_v16 = vadd.f32 %v1927_v13, %v1863_v11  ;;  %v1865_v17 = vpop.f32.mrf.mxu0 }
 0x10a   :  { %v1866_v18 = vadd.f32 %v1865_v17, %v1864_v14  ;;  %v1929_v19 = vpop.f32.mrf.mxu1 }
 0x10b   :  { %v1930_v20 = vadd.f32 %v1929_v19, %v1928_v15  ;;  %v1867_v21 = vpop.f32.mrf.mxu0 }
 0x10c   :  { %v1931_v22 = vpop.f32.mrf.mxu1 }
 0x10d   :  { %v2794_v23 = vadd.f32 %v1930_v20, %v1866_v18  ;;  %v1868_v25 = vpop.f32.mrf.mxu0 }
 0x10e   :  { %v1869_v26 = vadd.f32 %v1868_v25, %v1867_v21  ;;  %v1932_v27 = vpop.f32.mrf.mxu1 }
 0x10f   :  { %v1933_v28 = vadd.f32 %v1932_v27, %v1931_v22  ;;  %v1870_v29 = vpop.f32.mrf.mxu0 }
 0x110   :  { %v1934_v30 = vpop.f32.mrf.mxu1 }
 0x111   :  { %v2796_v32 = vadd.f32 %v1933_v28, %v1869_v26  ;;  %v1871_v33 = vpop.f32.mrf.mxu0 }
 0x112   :  { %v1872_v34 = vadd.f32 %v1871_v33, %v1870_v29  ;;  %v1935_v35 = vpop.f32.mrf.mxu1 }
 0x113   :  { %3108 = vst [vmem:[#allocation2_spill] sm:$0xff] %v2796_v32  ;;  %v1936_v36 = vadd.f32 %v1935_v35, %v1934_v30  ;;  %v1873_v37 = vpop.f32.mrf.mxu0 }
 0x114   :  { %v1937_v39 = vpop.f32.mrf.mxu1 }
 0x115   :  { %v2798_v40 = vadd.f32 %v1936_v36, %v1872_v34  ;;  %v1874_v41 = vpop.f32.mrf.mxu0 }
 0x116   :  { %v1875_v42 = vadd.f32 %v1874_v41, %v1873_v37  ;;  %v1938_v43 = vpop.f32.mrf.mxu1 }
 0x117   :  { %3109 = vst [vmem:[#allocation3_spill] sm:$0xff] %v2798_v40  ;;  %v1939_v44 = vadd.f32 %v1938_v43, %v1937_v39  ;;  %v1876_v46 = vpop.f32.mrf.mxu0 }
 0x118   :  { %v1940_v47 = vpop.f32.mrf.mxu1 }
 0x119   :  { %v2800_v48 = vadd.f32 %v1939_v44, %v1875_v42  ;;  %v1877_v49 = vpop.f32.mrf.mxu0 }
 0x11a   :  { %v1878_v50 = vadd.f32 %v1877_v49, %v1876_v46  ;;  %v1941_v51 = vpop.f32.mrf.mxu1 }
 0x11b   :  { %3110 = vst [vmem:[#allocation4_spill] sm:$0xff] %v2800_v48  ;;  %v1942_v53 = vadd.f32 %v1941_v51, %v1940_v47  ;;  %v1879_v54 = vpop.f32.mrf.mxu0 }
 0x11c   :  { %v1943_v55 = vpop.f32.mrf.mxu1 }
 0x11d   :  { %v2802_v56 = vadd.f32 %v1942_v53, %v1878_v50  ;;  %v1880_v57 = vpop.f32.mrf.mxu0 }
 0x11e   :  { %v1881_v58 = vadd.f32 %v1880_v57, %v1879_v54  ;;  %v1944_v60 = vpop.f32.mrf.mxu1 }
 0x11f   :  { %3111 = vst [vmem:[#allocation5_spill] sm:$0xff] %v2802_v56  ;;  %v1945_v61 = vadd.f32 %v1944_v60, %v1943_v55  ;;  %v1882_v62 = vpop.f32.mrf.mxu0 }
 0x120   :  { %v1946_v63 = vpop.f32.mrf.mxu1 }
 0x121   :  { %v2804_v0 = vadd.f32 %v1945_v61, %v1881_v58  ;;  %v1883_v1 = vpop.f32.mrf.mxu0 }
 0x122   :  { %v1884_v3 = vadd.f32 %v1883_v1, %v1882_v62  ;;  %v1947_v4 = vpop.f32.mrf.mxu1 }
 0x123   :  { %3112 = vst [vmem:[#allocation6_spill] sm:$0xff] %v2804_v0  ;;  %v1948_v5 = vadd.f32 %v1947_v4, %v1946_v63  ;;  %v1965_v6 = vpop.f32.mrf.mxu0 }
 0x124   :  { %v2806_v7 = vpop.f32.mrf.mxu1 }
 0x125   :  { %v2808_v8 = vadd.f32 %v1948_v5, %v1884_v3  ;;  %v1966_v10 = vpop.f32.mrf.mxu0 }
 0x126   :  { %v1967_v11 = vadd.f32 %v1966_v10, %v1965_v6  ;;  %v2810_v12 = vpop.f32.mrf.mxu1 }
 0x127   :  { %3113 = vst [vmem:[#allocation7_spill] sm:$0xff] %v2808_v8  ;;  %v1968_v13 = vpop.f32.mrf.mxu0 }
 0x128   :  { %v2813_v14 = vadd.f32 %v1967_v11, %v2776_v24  ;;  %v2815_v15 = vpop.f32.mrf.mxu1 }
 0x129   :  { %v1969_v17 = vpop.f32.mrf.mxu0 }
 0x12a   :  { %v2817_v18 = vpop.f32.mrf.mxu1 }
 0x12b   :  { %v1971_v19 = vpop.f32.mrf.mxu0 }
 0x12c   :  { %v2819_v20 = vpop.f32.mrf.mxu1 }
 0x12d   :  { %v1972_v21 = vpop.f32.mrf.mxu0 }
 0x12e   :  { %v2036_v22 = vpop.f32.mrf.mxu1 }
 0x12f   :  { %v1974_v25 = vpop.f32.mrf.mxu0 }
 0x130   :  { %v2821_v26 = vpop.f32.mrf.mxu1 }
 0x131   :  { %v1975_v27 = vpop.f32.mrf.mxu0 }
 0x132   :  { %v2039_v28 = vpop.f32.mrf.mxu1 }
 0x133   :  { %v1977_v29 = vpop.f32.mrf.mxu0 }
 0x134   :  { %v2823_v30 = vpop.f32.mrf.mxu1 }
 0x135   :  { %v1978_v24 = vpop.f32.mrf.mxu0 }
 0x136   :  { %v2042_v33 = vpop.f32.mrf.mxu1 }
 0x137   :  { %v1980_v34 = vpop.f32.mrf.mxu0 }
 0x138   :  { %v2825_v35 = vpop.f32.mrf.mxu1 }
 0x139   :  { %v1981_v36 = vpop.f32.mrf.mxu0 }
 0x13a   :  { %v2827_v37 = vpop.f32.mrf.mxu1 }
 0x13b   :  { %v1983_v39 = vpop.f32.mrf.mxu0 }
 0x13c   :  { %v2829_v41 = vpop.f32.mrf.mxu1 }
 0x13d   :  { %v1984_v42 = vpop.f32.mrf.mxu0 }
 0x13e   :  { %v2831_v43 = vpop.f32.mrf.mxu1 }
 0x13f   :  { %v1986_v44 = vpop.f32.mrf.mxu0 }
 0x140   :  { %v2833_v46 = vpop.f32.mrf.mxu1 }
 0x141   :  { %v1987_v47 = vpop.f32.mrf.mxu0 }
 0x142   :  { %v2835_v49 = vpop.f32.mrf.mxu1 }
 0x143   :  { %v2837_v50 = vpop.f32.mrf.mxu0 }
 0x144   :  { %v2839_v51 = vpop.f32.mrf.mxu1 }
 0x145   :  { %v2841_v53 = vpop.f32.mrf.mxu0 }
 0x146   :  { %v2843_v54 = vpop.f32.mrf.mxu1 }
 0x147   :  { %v2845_v55 = vpop.f32.mrf.mxu0 }
 0x148   :  { %v2847_v57 = vpop.f32.mrf.mxu1 }
 0x149   :  { %v2849_v58 = vpop.f32.mrf.mxu0 }
 0x14a   :  { %v2851_v60 = vpop.f32.mrf.mxu1 }
 0x14b   :  { %v2853_v61 = vpop.f32.mrf.mxu0 }
 0x14c   :  { %v2855_v62 = vpop.f32.mrf.mxu1 }
 0x14d   :  { %3114 = vst [vmem:[#allocation8_spill] sm:$0xff] %v2855_v62  ;;  %v2857_v63 = vpop.f32.mrf.mxu0 }
 0x14e   :  { %v2859_v1 = vpop.f32.mrf.mxu1 }
 0x14f   :  { %3115 = vst [vmem:[#allocation9_spill] sm:$0xff] %v2859_v1  ;;  %v2861_v3 = vpop.f32.mrf.mxu0 }
 0x150   :  { %v2863_v4 = vpop.f32.mrf.mxu1 }
 0x151   :  { %3116 = vst [vmem:[#allocation10_spill] sm:$0xff] %v2863_v4  ;;  %v2865_v5 = vpop.f32.mrf.mxu0 }
 0x152   :  { %v2867_v6 = vpop.f32.mrf.mxu1 }
 0x153   :  { %3117 = vst [vmem:[#allocation11_spill] sm:$0xff] %v2867_v6  ;;  %v2869_v10 = vpop.f32.mrf.mxu0 }
 0x154   :  { %3118 = vst [vmem:[#allocation12_spill] sm:$0xff] %v2869_v10  ;;  %v2871_v11 = vpop.f32.mrf.mxu1 }
 0x155   :  { %3119 = vst [vmem:[#allocation13_spill] sm:$0xff] %v2871_v11  ;;  %v2873_v8 = vpop.f32.mrf.mxu0 }
 0x156   :  { %3120 = vst [vmem:[#allocation14_spill] sm:$0xff] %v2873_v8  ;;  %v2875_v0 = vpop.f32.mrf.mxu1  ;;  %v1970_v8 = vadd.f32 %v1969_v17, %v1968_v13  ;;  %v2037_v17 = vadd.f32 %v2036_v22, %v2819_v20 }
 0x157   :  { %3121 = vst [vmem:[#allocation15_spill] sm:$0xff] %v2875_v0  ;;  %v2877_v56 = vpop.f32.mrf.mxu0  ;;  %v1973_v0 = vadd.f32 %v1972_v21, %v1971_v19 }
 0x158   :  { %3122 = vst [vmem:[#allocation16_spill] sm:$0xff] %v2877_v56  ;;  %v2879_v48 = vpop.f32.mrf.mxu1  ;;  %v1976_v56 = vadd.f32 %v1975_v27, %v1974_v25  ;;  %v2040_v25 = vadd.f32 %v2039_v28, %v2821_v26 }
 0x159   :  { %3123 = vst [vmem:[#allocation17_spill] sm:$0xff] %v2879_v48  ;;  %v2881_v40 = vpop.f32.mrf.mxu0  ;;  %v1279_v13 = vadd.f32 %v1973_v0, %v2780_v38  ;;  %v1988_v38 = vadd.f32 %v1987_v47, %v1986_v44 }
 0x15a   :  { %3124 = vst [vmem:[#allocation18_spill] sm:$0xff] %v2881_v40  ;;  %v2883_v1 = vpop.f32.mrf.mxu1  ;;  %v1979_v40 = vadd.f32 %v1978_v24, %v1977_v29  ;;  %v1282_v21 = vadd.f32 %v1976_v56, %v2782_v45  ;;  %v2043_v29 = vadd.f32 %v2042_v33, %v2823_v30  ;;  %v2046_v56 = vadd.f32 %v2827_v37, %v2825_v35 }
 0x15b   :  { %3125 = vst [vmem:[#allocation19_spill] sm:$0xff] %v2883_v1  ;;  %v2885_v4 = vpop.f32.mrf.mxu0  ;;  %v2031_v1 = vadd.f32 %v2810_v12, %v2806_v7  ;;  %v1982_v7 = vadd.f32 %v1981_v36, %v1980_v34  ;;  %v1298_v34 = vadd.f32 %v1988_v38, %v2790_v9  ;;  %v1991_v35 = vadd.f32 %v2841_v53, %v2837_v50 }
 0x15c   :  { %3126 = vst [vmem:[#allocation20_spill] sm:$0xff] %v2885_v4  ;;  %v2887_v62 = vpop.f32.mrf.mxu1  ;;  %v1287_v27 = vadd.f32 %v1979_v40, %v2784_v52  ;;  %v1379_v26 = vadd.f32 %v2040_v25, %v1282_v21  ;;  %v1994_v9 = vadd.f32 %v2849_v58, %v2845_v55 }
 0x15d   :  { %3127 = vst [vmem:[#allocation21_spill] sm:$0xff] %v2887_v62  ;;  %v2889_v6 = vpop.f32.mrf.mxu0  ;;  %v1290_v45 = vadd.f32 %v1982_v7, %v2786_v59  ;;  %v2052_v59 = vadd.f32 %v2835_v49, %v2833_v46  ;;  %v1303_v53 = vadd.f32 %v1991_v35, %v2792_v16  ;;  %v2058_v16 = vadd.f32 %v2851_v60, %v2847_v57  ;;  %v3133_v60 = vld [vmem:[#allocation12_spill] sm:$0xff]  ;;  %v3134_v38 = vld [vmem:[#allocation14_spill] sm:$0xff] }
 0x15e   :  { %3128 = vst [vmem:[#allocation22_spill] sm:$0xff] %v2889_v6  ;;  %v2891_v10 = vpop.f32.mrf.mxu1  ;;  %v1274_v6 = vadd.f32 %v1970_v8, %v2778_v31  ;;  %v1368_v31 = vadd.f32 %v2031_v1, %v2813_v14  ;;  %v2049_v14 = vadd.f32 %v2831_v43, %v2829_v41  ;;  %v1384_v24 = vadd.f32 %v2043_v29, %v1287_v27  ;;  %v3130_v29 = vld [vmem:[#allocation2_spill] sm:$0xff] }
 0x15f   :  { %3129 = vst [vmem:[#allocation23_spill] sm:$0xff] %v2891_v10  ;;  %v2893_v11 = vpop.f32.mrf.mxu0  ;;  %v2034_v10 = vadd.f32 %v2817_v18, %v2815_v15  ;;  %v1985_v15 = vadd.f32 %v1984_v42, %v1983_v39  ;;  %v1376_v18 = vadd.f32 %v2037_v17, %v1279_v13  ;;  %v1387_v44 = vadd.f32 %v2046_v56, %v1290_v45  ;;  %v3135_v56 = vld [vmem:[#allocation3_spill] sm:$0xff] }
 0x160   :  { %v2895_v32 = vpop.f32.mrf.mxu1  ;;  %v1997_v1 = vadd.f32 %v2857_v63, %v2853_v61  ;;  %v1395_v17 = vadd.f32 %v2052_v59, %v1298_v34  ;;  %v1306_v21 = vadd.f32 %v1994_v9, %v2794_v23 }
 0x161   :  { %v2897_v48 = vpop.f32.mrf.mxu0  ;;  %v1371_v22 = vadd.f32 %v2034_v10, %v1274_v6  ;;  %v1295_v33 = vadd.f32 %v1985_v15, %v2788_v2  ;;  %v3132_v15 = vld [vmem:[#allocation9_spill] sm:$0xff]  ;;  %v3139_v34 = vld [vmem:[#allocation18_spill] sm:$0xff] }
 0x162   :  { %v2901_v4 = vpop.f32.mrf.mxu1  ;;  %v1311_v23 = vadd.f32 %v1997_v1, %v3130_v29  ;;  %v1403_v35 = vadd.f32 %v2058_v16, %v1306_v21  ;;  %v3146_v21 = vld [vmem:[#allocation17_spill] sm:$0xff]  ;;  %v3147_v16 = vld [vmem:[#allocation19_spill] sm:$0xff] }
 0x163   :  { %v2111_v62 = vpop.f32.mrf.mxu0  ;;  %v1392_v55 = vadd.f32 %v2049_v14, %v1295_v33  ;;  %v3137_v14 = vld [vmem:[#allocation11_spill] sm:$0xff]  ;;  %v3138_v33 = vld [vmem:[#allocation16_spill] sm:$0xff] }
 0x164   :  { %v2908_v19 = vpop.f32.mrf.mxu1  ;;  %v2926_v28 = vadd.f32 %v2111_v62, %v1376_v18  ;;  %v2055_v62 = vadd.f32 %v2843_v54, %v2839_v51  ;;  %v2000_v51 = vadd.f32 %v2865_v5, %v2861_v3  ;;  %v2003_v3 = vadd.f32 %v3134_v38, %v3133_v60 }
 0x165   :  { %v1464_v12 = vpop.f32.mrf.mxu0  ;;  %v2006_v59 = vadd.f32 %v3139_v34, %v3138_v33 }
 0x166   :  { %v2915_v8 = vpop.f32.mrf.mxu1  ;;  %v2917_v20 = vadd.f32 %v1464_v12, %v1368_v31  ;;  %v1553_v46 = vmul.f32 %v2926_v28, %v2926_v28  ;;  %v3131_v31 = vld [vmem:[#allocation8_spill] sm:$0xff]  ;;  %v1400_v5 = vadd.f32 %v2055_v62, %v1303_v53  ;;  %v3144_v62 = vld [vmem:[#allocation22_spill] sm:$0xff]  ;;  %v3150_v60 = vld [vmem:[#allocation23_spill] sm:$0xff] }
 0x167   :  { %v2112_v0 = vpop.f32.mrf.mxu0  ;;  %v2061_v57 = vadd.f32 %v3132_v15, %v3131_v31  ;;  %v3143_v53 = vld [vmem:[#allocation20_spill] sm:$0xff]  ;;  %v3148_v31 = vld [vmem:[#allocation6_spill] sm:$0xff] }
 0x168   :  { %v2922_v52 = vpop.f32.mrf.mxu1  ;;  %v1551_v37 = vmul.f32 %v2917_v20, %v2917_v20  ;;  %v2938_v39 = vadd.f32 %v2112_v0, %v1379_v26  ;;  %v1314_v26 = vadd.f32 %v2000_v51, %v3135_v56  ;;  %v2009_v1 = vadd.f32 %v3144_v62, %v3143_v53 }
 0x169   :  { %v1467_v40 = vpop.f32.mrf.mxu0  ;;  %v2070_v51 = vadd.f32 %v3147_v16, %v3146_v21 }
 0x16a   :  { %v2928_v30 = vadd.f32 %v1467_v40, %v1371_v22  ;;  %v1499_v42 = vpop.f32.mrf.mxu1  ;;  %v1554_v6 = vmul.f32 %v2938_v39, %v2938_v39  ;;  %v3136_v40 = vld [vmem:[#allocation10_spill] sm:$0xff]  ;;  %v1327_v15 = vadd.f32 %v2009_v1, %v3148_v31 }
 0x16b   :  { %v2115_v36 = vpop.f32.mrf.mxu0 }
 0x16c   :  { %v1529_v41 = vadd.f32 %v2928_v30, %v2917_v20  ;;  %v1552_v2 = vmul.f32 %v2928_v30, %v2928_v30  ;;  %v2964_v54 = vadd.f32 %v2115_v36, %v1392_v55  ;;  %v2123_v61 = vpop.f32.mrf.mxu1  ;;  %v1408_v55 = vadd.f32 %v2061_v57, %v1311_v23  ;;  %v3149_v57 = vld [vmem:[#allocation21_spill] sm:$0xff] }
 0x16d   :  { %v1480_v43 = vpop.f32.mrf.mxu0  ;;  %v2073_v38 = vadd.f32 %v3150_v60, %v3149_v57 }
 0x16e   :  { %v1530_v47 = vadd.f32 %v1529_v41, %v2926_v28  ;;  %v1567_v49 = vadd.f32 %v1552_v2, %v1551_v37  ;;  %v2949_v50 = vadd.f32 %v1480_v43, %v1384_v24  ;;  %v2064_v24 = vadd.f32 %v3137_v14, %v3136_v40  ;;  %v1512_v36 = vpop.f32.mrf.mxu1  ;;  %v3140_v43 = vld [vmem:[#allocation4_spill] sm:$0xff] }
 0x16f   :  { %v2116_v58 = vpop.f32.mrf.mxu0  ;;  %v2987_v37 = vadd.f32 %v2915_v8, %v1400_v5  ;;  %v1557_v41 = vmul.f32 %v2964_v54, %v2964_v54  ;;  %v1424_v33 = vadd.f32 %v2073_v38, %v1327_v15 }
 0x170   :  { %v1568_v10 = vadd.f32 %v1567_v49, %v1553_v46  ;;  %v1531_v13 = vadd.f32 %v1530_v47, %v2938_v39  ;;  %v1555_v7 = vmul.f32 %v2949_v50, %v2949_v50  ;;  %v2976_v18 = vadd.f32 %v2116_v58, %v1395_v17  ;;  %v3141_v46 = vld [vmem:[#allocation13_spill] sm:$0xff]  ;;  %v3142_v47 = vld [vmem:[#allocation15_spill] sm:$0xff] }
 0x171   :  { %v1483_v63 = vpop.f32.mrf.mxu0  ;;  %v2067_v49 = vadd.f32 %v3142_v47, %v3141_v46  ;;  %v2997_v58 = vadd.f32 %v1499_v42, %v1403_v35  ;;  %v1559_v42 = vmul.f32 %v2987_v37, %v2987_v37 }
 0x172   :  { %v1532_v25 = vadd.f32 %v1531_v13, %v2949_v50  ;;  %v1569_v12 = vadd.f32 %v1568_v10, %v1554_v6  ;;  %v2969_v27 = vadd.f32 %v1483_v63, %v1387_v44  ;;  %v1319_v44 = vadd.f32 %v2003_v3, %v3140_v43  ;;  %v3145_v13 = vld [vmem:[#allocation5_spill] sm:$0xff] }
 0x173   :  { %v1558_v8 = vmul.f32 %v2976_v18, %v2976_v18  ;;  %v1322_v17 = vadd.f32 %v2006_v59, %v3145_v13  ;;  %v2012_v63 = vadd.f32 %v2897_v48, %v2893_v11  ;;  %v1560_v48 = vmul.f32 %v2997_v58, %v2997_v58 }
 0x174   :  { %v1570_v0 = vadd.f32 %v1569_v12, %v1555_v7  ;;  %v1533_v22 = vadd.f32 %v1532_v25, %v2969_v27  ;;  %v1556_v45 = vmul.f32 %v2969_v27, %v2969_v27  ;;  %v1411_v25 = vadd.f32 %v2064_v24, %v1314_v26  ;;  %v2124_v7 = vpop.f32.mrf.mxu1 }
 0x175   :  { %v3008_v12 = vadd.f32 %v2908_v19, %v1408_v55  ;;  %v1416_v3 = vadd.f32 %v2067_v49, %v1319_v44  ;;  %v1419_v56 = vadd.f32 %v2070_v51, %v1322_v17 }
 0x176   :  { %v1534_v2 = vadd.f32 %v1533_v22, %v2964_v54  ;;  %v1571_v9 = vadd.f32 %v1570_v0, %v1556_v45  ;;  %v3017_v5 = vadd.f32 %v2922_v52, %v1411_v25  ;;  %v3151_v0 = vld [vmem:[#allocation7_spill] sm:$0xff]  ;;  %v2076_v45 = vadd.f32 %v2901_v4, %v2895_v32  ;;  %v1515_v26 = vpop.f32.mrf.mxu1 }
 0x177   :  { %v1330_v22 = vadd.f32 %v2012_v63, %v3151_v0  ;;  %v1561_v40 = vmul.f32 %v3008_v12, %v3008_v12  ;;  %v3027_v14 = vadd.f32 %v1512_v36, %v1416_v3  ;;  %v1516_v59 = vadd.f32 %v1515_v26, %v1419_v56 }
 0x178   :  { %v1535_v6 = vadd.f32 %v1534_v2, %v2976_v18  ;;  %v1572_v10 = vadd.f32 %v1571_v9, %v1557_v41  ;;  %v1562_v34 = vmul.f32 %v3017_v5, %v3017_v5  ;;  %v1521_v32 = vadd.f32 %v2123_v61, %v1424_v33 }
 0x179   :  { %v1427_v2 = vadd.f32 %v2076_v45, %v1330_v22  ;;  %v1563_v4 = vmul.f32 %v3027_v14, %v3027_v14  ;;  %v1564_v46 = vmul.f32 %v1516_v59, %v1516_v59  ;;  %v1598_v3 = vlaneseq  ;;  %v1528_v45 = vld [vmem:[%s3106_s3] sm:$0x1] }
 0x17a   :  { %v1536_v29 = vadd.f32 %v1535_v6, %v2987_v37  ;;  %v1573_v23 = vadd.f32 %v1572_v10, %v1558_v8  ;;  %v1565_v49 = vmul.f32 %v1521_v32, %v1521_v32 }
 0x17b   :  { %v1524_v43 = vadd.f32 %v2124_v7, %v1427_v2 }
 0x17c   :  { %v1574_v11 = vadd.f32 %v1573_v23, %v1559_v42  ;;  %v1537_v19 = vadd.f32 %v1536_v29, %v2997_v58 }
 0x17d   :  { %v1566_v1 = vmul.f32 %v1524_v43, %v1524_v43 }
 0x17e   :  { %v1538_v52 = vadd.f32 %v1537_v19, %v3008_v12  ;;  %v1575_v24 = vadd.f32 %v1574_v11, %v1560_v48  ;;  %v1599_v48 = vshrl.u32 %v1598_v3, 7  ;;  %v1527_v11 = vld [vmem:[%s3105_s2] sm:$0x1] }
 0x180   :  { %v1539_v35 = vadd.f32 %v1538_v52, %v3017_v5  ;;  %v1576_v41 = vadd.f32 %v1575_v24, %v1561_v40  ;;  %v1600_v19 = vsub.s32 0, %v1599_v48 }
 0x182   :  { %v1540_v9 = vadd.f32 %v1539_v35, %v3027_v14  ;;  %v1577_v36 = vadd.f32 %v1576_v41, %v1562_v34 }
 0x184   :  { %v1541_v44 = vadd.f32 %v1540_v9, %v1516_v59  ;;  %v1578_v47 = vadd.f32 %v1577_v36, %v1563_v4 }
 0x186   :  { %v1542_v53 = vadd.f32 %v1541_v44, %v1521_v32  ;;  %v1579_v62 = vadd.f32 %v1578_v47, %v1564_v46 }
 0x188   :  { %v1543_v55 = vadd.f32 %v1542_v53, %v1524_v43  ;;  %v1580_v8 = vadd.f32 %v1579_v62, %v1565_v49 }
 0x18a   :  { %v1544_v6 = vrot.slane %v1543_v55, 4  ;;  %v1581_v10 = vadd.f32 %v1580_v8, %v1566_v1 }
 0x18c   :  { %v1545_v13 = vadd.f32 %v1544_v6, %v1543_v55  ;;  %v1582_v61 = vrot.slane %v1581_v10, 4 }
 0x18e   :  { %v1546_v17 = vrot.slane %v1545_v13, 2  ;;  %v1583_v21 = vadd.f32 %v1582_v61, %v1581_v10 }
 0x190   :  { %v1547_v16 = vadd.f32 %v1546_v17, %v1545_v13  ;;  %v1584_v51 = vrot.slane %v1583_v21, 2 }
 0x192   :  { %v1548_v63 = vrot.slane %v1547_v16, 1  ;;  %v1585_v25 = vadd.f32 %v1584_v51, %v1583_v21 }
 0x194   :  { %v1549_v7 = vadd.f32 %v1548_v63, %v1547_v16  ;;  %v1586_v42 = vrot.slane %v1585_v25, 1 }
 0x196   :  { %v1550_v29 = vmul.f32 0.0078125, %v1549_v7  ;;  %v1587_v23 = vadd.f32 %v1586_v42, %v1585_v25 }
 0x198   :  { %v1588_v31 = vmul.f32 0.0078125, %v1587_v23  ;;  %v1589_v15 = vmul.f32 %v1550_v29, %v1550_v29 }
 0x19a   :  { %v1590_v57 = vsub.f32 %v1588_v31, %v1589_v15 }
 0x19c   :  { %v1591_v60 = vmax.f32 %v1590_v57, 0.0 }
 0x19e   :  { %v1592_v38 = vadd.f32 1e-05, %v1591_v60 }
 0x1a0   :  { %2317 = vrsqrt.f32 %v1592_v38 }
 0x1ad   :  { %v2318_v0 = vpop.eup %2317 }
 0x1ae   :  { %v1594_v22 = vmul.f32 %v2318_v0, %v1527_v11 }
 0x1b0   :  { %v1595_v56 = vmul.f32 %v1594_v22, %v1550_v29  ;;  %v1601_v26 = vrot.slane %v1594_v22, %v1600_v19 }
 0x1b2   :  { %v1596_v40 = vsub.f32 %v1528_v45, %v1595_v56  ;;  %v1603_v52 = vmul.f32 %v1601_v26, %v2917_v20  ;;  %v1604_v24 = vmul.f32 %v1601_v26, %v2928_v30  ;;  %v1608_v33 = vmul.f32 %v1601_v26, %v2969_v27 }
 0x1b3   :  { %v1609_v34 = vmul.f32 %v1601_v26, %v2964_v54  ;;  %v1610_v35 = vmul.f32 %v1601_v26, %v2976_v18  ;;  %v1611_v41 = vmul.f32 %v1601_v26, %v2987_v37  ;;  %v1612_v2 = vmul.f32 %v1601_v26, %v2997_v58 }
 0x1b4   :  { %v1613_v4 = vmul.f32 %v1601_v26, %v3008_v12  ;;  %v1614_v9 = vmul.f32 %v1601_v26, %v3017_v5  ;;  %v1615_v36 = vmul.f32 %v1601_v26, %v3027_v14  ;;  %v1616_v44 = vmul.f32 %v1601_v26, %v1516_v59 }
 0x1b5   :  { %v1617_v20 = vmul.f32 %v1601_v26, %v1521_v32  ;;  %v1605_v30 = vmul.f32 %v1601_v26, %v2926_v28  ;;  %v1606_v27 = vmul.f32 %v1601_v26, %v2938_v39  ;;  %v1618_v46 = vmul.f32 %v1601_v26, %v1524_v43 }
 0x1b6   :  { %v1623_v54 = vrot.slane %v1596_v40, %v1600_v19  ;;  %v1607_v18 = vmul.f32 %v1601_v26, %v2949_v50 }
 0x1b8   :  { %v1625_v47 = vadd.f32 %v1623_v54, %v1603_v52  ;;  %v1626_v37 = vadd.f32 %v1623_v54, %v1604_v24  ;;  %v1627_v49 = vadd.f32 %v1623_v54, %v1605_v30  ;;  %v1628_v58 = vadd.f32 %v1623_v54, %v1606_v27 }
 0x1b9   :  { %v1629_v53 = vadd.f32 %v1623_v54, %v1607_v18  ;;  %v1630_v12 = vadd.f32 %v1623_v54, %v1608_v33  ;;  %v1631_v62 = vadd.f32 %v1623_v54, %v1609_v34  ;;  %v1632_v5 = vadd.f32 %v1623_v54, %v1610_v35 }
 0x1ba   :  { %v1633_v1 = vadd.f32 %v1623_v54, %v1611_v41  ;;  %v1634_v14 = vadd.f32 %v1623_v54, %v1612_v2  ;;  %v1635_v59 = vadd.f32 %v1623_v54, %v1613_v4  ;;  %v1636_v32 = vadd.f32 %v1623_v54, %v1614_v9 }
 0x1bb   :  { %v1637_v55 = vadd.f32 %v1623_v54, %v1615_v36  ;;  %v1638_v28 = vadd.f32 %v1623_v54, %v1616_v44  ;;  %v1639_v8 = vadd.f32 %v1623_v54, %v1617_v20  ;;  %v1640_v39 = vadd.f32 %v1623_v54, %v1618_v46 }
 0x1bc   :  { %v1641_v43 = vmax.f32 %v1625_v47, 0.0  ;;  %v1642_v6 = vmax.f32 %v1626_v37, 0.0  ;;  %v1643_v10 = vmax.f32 %v1627_v49, 0.0  ;;  %v1644_v50 = vmax.f32 %v1628_v58, 0.0 }
 0x1bd   :  { %v1645_v13 = vmax.f32 %v1629_v53, 0.0  ;;  %v1646_v61 = vmax.f32 %v1630_v12, 0.0  ;;  %v1647_v17 = vmax.f32 %v1631_v62, 0.0  ;;  %v1648_v21 = vmax.f32 %v1632_v5, 0.0 }
 0x1be   :  { %v1649_v16 = vmax.f32 %v1633_v1, 0.0  ;;  %v1650_v51 = vmax.f32 %v1634_v14, 0.0  ;;  %v1651_v63 = vmax.f32 %v1635_v59, 0.0  ;;  %v1652_v25 = vmax.f32 %v1636_v32, 0.0  ;;  %1657 = vst [vmem:[%s3107_s4] sm:$0xff] %v1641_v43  ;;  %1658 = vst [vmem:[%s3107_s4 + $0x8] sm:$0xff] %v1642_v6 }
 0x1bf   :  { %1659 = vst [vmem:[%s3107_s4 + $0x10] sm:$0xff] %v1643_v10  ;;  %1660 = vst [vmem:[%s3107_s4 + $0x18] sm:$0xff] %v1644_v50  ;;  %v1653_v7 = vmax.f32 %v1637_v55, 0.0  ;;  %v1654_v42 = vmax.f32 %v1638_v28, 0.0  ;;  %v1655_v29 = vmax.f32 %v1639_v8, 0.0  ;;  %v1656_v23 = vmax.f32 %v1640_v39, 0.0 }
 0x1c0   :  { %1661 = vst [vmem:[%s3107_s4 + $0x20] sm:$0xff] %v1645_v13  ;;  %1662 = vst [vmem:[%s3107_s4 + $0x28] sm:$0xff] %v1646_v61 }
 0x1c1   :  { %1663 = vst [vmem:[%s3107_s4 + $0x30] sm:$0xff] %v1647_v17  ;;  %1664 = vst [vmem:[%s3107_s4 + $0x38] sm:$0xff] %v1648_v21 }
 0x1c2   :  { %1665 = vst [vmem:[%s3107_s4 + $0x40] sm:$0xff] %v1649_v16  ;;  %1666 = vst [vmem:[%s3107_s4 + $0x48] sm:$0xff] %v1650_v51 }
 0x1c3   :  { %1667 = vst [vmem:[%s3107_s4 + $0x50] sm:$0xff] %v1651_v63  ;;  %1668 = vst [vmem:[%s3107_s4 + $0x58] sm:$0xff] %v1652_v25 }
 0x1c4   :  { %1669 = vst [vmem:[%s3107_s4 + $0x60] sm:$0xff] %v1653_v7  ;;  %1670 = vst [vmem:[%s3107_s4 + $0x68] sm:$0xff] %v1654_v42 }
 0x1c5   :  { %1671 = vst [vmem:[%s3107_s4 + $0x70] sm:$0xff] %v1655_v29  ;;  %1672 = vst [vmem:[%s3107_s4 + $0x78] sm:$0xff] %v1656_v23 }

// kernel: _lambda_.20
= control target key start
LH: loop header
LB: loop body
LE: loop exit
PB: predicated region body
PF: predicated region fallthrough
CT: control target
= control target key end

     0   :  { %s3191_s1 = inlined_call_operand.vmem [shape: bf16[1152,128], index: 1, kind: input, shape index: {}]   ;;  %s3192_s0 = inlined_call_operand.vmem [shape: bf16[128,1152], index: 0, kind: input, shape index: {}]   ;;  %s3193_s2 = inlined_call_operand.vmem [shape: f32[1,128], index: 2, kind: input, shape index: {}, may-alias: {2,3}]   ;;  %s3194_s3 = inlined_call_operand.vmem [shape: f32[1,128], index: 3, kind: input, shape index: {}, may-alias: {2,3}]   ;;  %s3195_s4 = inlined_call_operand.vmem [shape: f32[128,128], index: 4, kind: input, shape index: {}]   ;;  %s3196_s5 = inlined_call_operand.vmem [shape: f32[128,128], index: 5, kind: output, shape index: {}]  }
   0x1   :  { %v2176_v0 = vld [vmem:[%s3191_s1 + $0x78] sm:$0xff]   ;;  %v2180_v4 = vld [vmem:[%s3191_s1 + $0x70] sm:$0xff]   ;;  %v2184_v8 = vld [vmem:[%s3191_s1 + $0x68] sm:$0xff]  }
   0x2   :  { %v2177_v1 = vld [vmem:[%s3191_s1 + $0xf8] sm:$0xff]   ;;  %1856 = vmatprep.subr.bf16.mxu0 %v2176_v0  ;;  %v2181_v5 = vld [vmem:[%s3191_s1 + $0xf0] sm:$0xff]   ;;  %v2185_v9 = vld [vmem:[%s3191_s1 + $0xe8] sm:$0xff]  }
   0x3   :  { %v2178_v2 = vld [vmem:[%s3191_s1 + $0x38] sm:$0xff]   ;;  %1920 = vmatprep.subr.bf16.mxu1 %v2177_v1  ;;  %v2182_v6 = vld [vmem:[%s3191_s1 + $0x30] sm:$0xff]   ;;  %v2186_v10 = vld [vmem:[%s3191_s1 + $0x28] sm:$0xff]  }
   0x4   :  { %v2179_v3 = vld [vmem:[%s3191_s1 + $0xb8] sm:$0xff]   ;;  %1857 = vmatpush3.bf16.msra.mxu0 %v2178_v2  ;;  %v2183_v7 = vld [vmem:[%s3191_s1 + $0xb0] sm:$0xff]   ;;  %v2187_v11 = vld [vmem:[%s3191_s1 + $0xa8] sm:$0xff]  }
   0x5   :  { %1921 = vmatpush3.bf16.msra.mxu1 %v2179_v3  ;;  %1858 = vmatprep.subr.bf16.mxu0 %v2180_v4  ;;  %v2188_v12 = vld [vmem:[%s3191_s1 + $0x60] sm:$0xff]   ;;  %v2192_v16 = vld [vmem:[%s3191_s1 + $0x58] sm:$0xff]   ;;  %v2196_v20 = vld [vmem:[%s3191_s1 + $0x50] sm:$0xff]  }
   0x6   :  { %1922 = vmatprep.subr.bf16.mxu1 %v2181_v5  ;;  %v2189_v13 = vld [vmem:[%s3191_s1 + $0xe0] sm:$0xff]   ;;  %v2193_v17 = vld [vmem:[%s3191_s1 + $0xd8] sm:$0xff]   ;;  %v2197_v21 = vld [vmem:[%s3191_s1 + $0xd0] sm:$0xff]  }
   0x7   :  { %v2190_v14 = vld [vmem:[%s3191_s1 + $0x20] sm:$0xff]   ;;  %v2194_v18 = vld [vmem:[%s3191_s1 + $0x18] sm:$0xff]   ;;  %v2198_v22 = vld [vmem:[%s3191_s1 + $0x10] sm:$0xff]  }
   0x8   :  { %1859 = vmatpush3.bf16.msra.mxu0 %v2182_v6  ;;  %v2191_v15 = vld [vmem:[%s3191_s1 + $0xa0] sm:$0xff]   ;;  %v2195_v19 = vld [vmem:[%s3191_s1 + $0x98] sm:$0xff]   ;;  %v2199_v23 = vld [vmem:[%s3191_s1 + $0x90] sm:$0xff]  }
   0x9   :  { %1923 = vmatpush3.bf16.msra.mxu1 %v2183_v7  ;;  %1860 = vmatprep.subr.bf16.mxu0 %v2184_v8  ;;  %v2200_v24 = vld [vmem:[%s3191_s1 + $0x48] sm:$0xff]   ;;  %v2204_v28 = vld [vmem:[%s3191_s1 + $0x40] sm:$0xff]   ;;  %v2214_v36 = vld [vmem:[%s3191_s1 + $0x178] sm:$0xff]  }
   0xa   :  { %1924 = vmatprep.subr.bf16.mxu1 %v2185_v9  ;;  %v2201_v25 = vld [vmem:[%s3191_s1 + $0xc8] sm:$0xff]   ;;  %v2205_v29 = vld [vmem:[%s3191_s1 + $0xc0] sm:$0xff]   ;;  %v2215_v37 = vld [vmem:[%s3191_s1 + $0x138] sm:$0xff]  }
   0xb   :  { %v2202_v26 = vld [vmem:[%s3191_s1 + $0x8] sm:$0xff]   ;;  %v2206_v30 = vld [vmem:[%s3191_s1] sm:$0xff]   ;;  %v2218_v39 = vld [vmem:[%s3192_s0 + $0x54] ss:$36 sps:$4 sm:$0xff]  }
   0xc   :  { %1861 = vmatpush3.bf16.msra.mxu0 %v2186_v10  ;;  %v2203_v27 = vld [vmem:[%s3191_s1 + $0x88] sm:$0xff]   ;;  %v2207_v31 = vld [vmem:[%s3191_s1 + $0x80] sm:$0xff]   ;;  %v2221_v41 = vld [vmem:[%s3192_s0 + $0x50] ss:$36 sps:$4 sm:$0xff]  }
   0xd   :  { %1925 = vmatpush3.bf16.msra.mxu1 %v2187_v11  ;;  %1862 = vmatprep.subr.bf16.mxu0 %v2188_v12  ;;  %v2208_v32 = vld [vmem:[%s3192_s0] ss:$36 sps:$4 sm:$0xff]   ;;  %v2211_v34 = vld [vmem:[%s3192_s0 + $0x8] ss:$36 sps:$4 sm:$0xff]   ;;  %v2222_v42 = vld [vmem:[%s3191_s1 + $0x170] sm:$0xff]  }
   0xe   :  { %1926 = vmatprep.subr.bf16.mxu1 %v2189_v13  ;;  %v2210_v33 = vld [vmem:[%s3192_s0 + $0x4] ss:$36 sps:$4 sm:$0xff]   ;;  %v2213_v35 = vld [vmem:[%s3192_s0 + $0xc] ss:$36 sps:$4 sm:$0xff]   ;;  %v2224_v44 = vld [vmem:[%s3192_s0 + $0x94] ss:$36 sps:$4 sm:$0xff]  }
   0xf   :  { %1077 = vmatprep.mubr.bf16.mxu0 %v2210_v33  ;;  %1174 = vmatprep.mubr.bf16.mxu1 %v2213_v35  ;;  %v2216_v38 = vld [vmem:[%s3192_s0 + $0x4c] ss:$36 sps:$4 sm:$0xff]   ;;  %v2226_v45 = vld [vmem:[%s3192_s0 + $0x9c] ss:$36 sps:$4 sm:$0xff]   ;;  %v2236_v53 = vld [vmem:[%s3192_s0 + $0xe4] ss:$36 sps:$4 sm:$0xff]  }
  0x10   :  { %1863 = vmatpush3.bf16.msra.mxu0 %v2190_v14  ;;  %v2220_v40 = vld [vmem:[%s3192_s0 + $0x48] ss:$36 sps:$4 sm:$0xff]   ;;  %v2223_v43 = vld [vmem:[%s3191_s1 + $0x130] sm:$0xff]   ;;  %v2231_v47 = vld [vmem:[%s3191_s1 + $0x1f8] sm:$0xff]  }
  0x11   :  { %1927 = vmatpush3.bf16.msra.mxu1 %v2191_v15  ;;  %1864 = vmatprep.subr.bf16.mxu0 %v2192_v16  ;;  %v2230_v46 = vld [vmem:[%s3191_s1 + $0x168] sm:$0xff]   ;;  %v2228_v48 = vld [vmem:[%s3192_s0 + $0x90] ss:$36 sps:$4 sm:$0xff]   ;;  %v2233_v50 = vld [vmem:[%s3191_s1 + $0x1b8] sm:$0xff]  }
  0x12   :  { %1928 = vmatprep.subr.bf16.mxu1 %v2193_v17  ;;  %v2232_v49 = vld [vmem:[%s3191_s1 + $0x128] sm:$0xff]   ;;  %v2229_v51 = vld [vmem:[%s3192_s0 + $0x98] ss:$36 sps:$4 sm:$0xff]   ;;  %v2240_v54 = vld [vmem:[%s3191_s1 + $0x160] sm:$0xff]  }
  0x13   :  { %v2234_v52 = vld [vmem:[%s3192_s0 + $0xdc] ss:$36 sps:$4 sm:$0xff]   ;;  %v2241_v55 = vld [vmem:[%s3191_s1 + $0x1f0] sm:$0xff]   ;;  %v2244_v60 = vld [vmem:[%s3192_s0 + $0x124] ss:$36 sps:$4 sm:$0xff]  }
  0x14   :  { %1865 = vmatpush3.bf16.msra.mxu0 %v2194_v18  ;;  %v2242_v56 = vld [vmem:[%s3191_s1 + $0x120] sm:$0xff]   ;;  %v2243_v57 = vld [vmem:[%s3191_s1 + $0x1b0] sm:$0xff]   ;;  %v2238_v58 = vld [vmem:[%s3192_s0 + $0xd8] ss:$36 sps:$4 sm:$0xff]  }
  0x15   :  { %1929 = vmatpush3.bf16.msra.mxu1 %v2195_v19  ;;  %1866 = vmatprep.subr.bf16.mxu0 %v2196_v20  ;;  %v2239_v59 = vld [vmem:[%s3192_s0 + $0xe0] ss:$36 sps:$4 sm:$0xff]   ;;  %v2246_v61 = vld [vmem:[%s3192_s0 + $0x12c] ss:$36 sps:$4 sm:$0xff]   ;;  %v2250_v62 = vld [vmem:[%s3191_s1 + $0x158] sm:$0xff]  }
  0x16   :  { %1930 = vmatprep.subr.bf16.mxu1 %v2197_v21  ;;  %v2251_v63 = vld [vmem:[%s3191_s1 + $0x1e8] sm:$0xff]   ;;  %v2252_v0 = vld [vmem:[%s3191_s1 + $0x118] sm:$0xff]   ;;  %v2248_v2 = vld [vmem:[%s3192_s0 + $0x120] ss:$36 sps:$4 sm:$0xff]  }
  0x17   :  { %v2253_v1 = vld [vmem:[%s3191_s1 + $0x1a8] sm:$0xff]   ;;  %v2256_v5 = vld [vmem:[%s3192_s0 + $0x174] ss:$36 sps:$4 sm:$0xff]   ;;  %v2261_v7 = vld [vmem:[%s3191_s1 + $0x1e0] sm:$0xff]  }
  0x18   :  { %1867 = vmatpush3.bf16.msra.mxu0 %v2198_v22  ;;  %v2249_v3 = vld [vmem:[%s3192_s0 + $0x128] ss:$36 sps:$4 sm:$0xff]   ;;  %v2260_v6 = vld [vmem:[%s3191_s1 + $0x150] sm:$0xff]   ;;  %v2263_v9 = vld [vmem:[%s3191_s1 + $0x1a0] sm:$0xff]  }
  0x19   :  { %1931 = vmatpush3.bf16.msra.mxu1 %v2199_v23  ;;  %1868 = vmatprep.subr.bf16.mxu0 %v2200_v24  ;;  %v2254_v4 = vld [vmem:[%s3192_s0 + $0x16c] ss:$36 sps:$4 sm:$0xff]   ;;  %v2264_v12 = vld [vmem:[%s3192_s0 + $0x1b4] ss:$36 sps:$4 sm:$0xff]   ;;  %v2266_v14 = vld [vmem:[%s3192_s0 + $0x1bc] ss:$36 sps:$4 sm:$0xff]  }
  0x1a   :  { %1932 = vmatprep.subr.bf16.mxu1 %v2201_v25  ;;  %v2262_v8 = vld [vmem:[%s3191_s1 + $0x110] sm:$0xff]   ;;  %v2258_v10 = vld [vmem:[%s3192_s0 + $0x168] ss:$36 sps:$4 sm:$0xff]   ;;  %v2271_v15 = vld [vmem:[%s3191_s1 + $0x1d8] sm:$0xff]  }
  0x1b   :  { %v2259_v11 = vld [vmem:[%s3192_s0 + $0x170] ss:$36 sps:$4 sm:$0xff]   ;;  %v2270_v13 = vld [vmem:[%s3191_s1 + $0x148] sm:$0xff]   ;;  %v2273_v17 = vld [vmem:[%s3191_s1 + $0x198] sm:$0xff]  }
  0x1c   :  { %1869 = vmatpush3.bf16.msra.mxu0 %v2202_v26  ;;  %v2272_v16 = vld [vmem:[%s3191_s1 + $0x108] sm:$0xff]   ;;  %v2274_v18 = vld [vmem:[%s3191_s1 + $0x1d0] sm:$0xff]   ;;  %v2269_v21 = vld [vmem:[%s3192_s0 + $0x1b8] ss:$36 sps:$4 sm:$0xff]  }
  0x1d   :  { %1933 = vmatpush3.bf16.msra.mxu1 %v2203_v27  ;;  %1870 = vmatprep.subr.bf16.mxu0 %v2204_v28  ;;  %v2275_v19 = vld [vmem:[%s3191_s1 + $0x190] sm:$0xff]   ;;  %v2276_v22 = vld [vmem:[%s3192_s0 + $0x1fc] ss:$36 sps:$4 sm:$0xff]   ;;  %v2278_v23 = vld [vmem:[%s3192_s0 + $0x204] ss:$36 sps:$4 sm:$0xff]  }
  0x1e   :  { %1934 = vmatprep.subr.bf16.mxu1 %v2205_v29  ;;  %v2268_v20 = vld [vmem:[%s3192_s0 + $0x1b0] ss:$36 sps:$4 sm:$0xff]   ;;  %v2282_v24 = vld [vmem:[%s3191_s1 + $0x140] sm:$0xff]   ;;  %v2283_v25 = vld [vmem:[%s3191_s1 + $0x1c8] sm:$0xff]  }
  0x1f   :  { %v2284_v26 = vld [vmem:[%s3191_s1 + $0x100] sm:$0xff]   ;;  %v2285_v27 = vld [vmem:[%s3191_s1 + $0x188] sm:$0xff]   ;;  %v2280_v29 = vld [vmem:[%s3192_s0 + $0x1f8] ss:$36 sps:$4 sm:$0xff]  }
  0x20   :  { %1871 = vmatpush3.bf16.msra.mxu0 %v2206_v30  ;;  %v2286_v28 = vld [vmem:[%s3191_s1 + $0x1c0] sm:$0xff]   ;;  %v2290_v33 = vld [vmem:[%s3192_s0 + $0x14] ss:$36 sps:$4 sm:$0xff]  }
  0x21   :  { %1935 = vmatpush3.bf16.msra.mxu1 %v2207_v31  ;;  %1984 = vmatprep.subr.bf16.mxu0 %v2214_v36  ;;  %v2281_v30 = vld [vmem:[%s3192_s0 + $0x200] ss:$36 sps:$4 sm:$0xff]   ;;  %v2288_v35 = vld [vmem:[%s3192_s0 + $0x10] ss:$36 sps:$4 sm:$0xff]   ;;  %v2291_v36 = vld [vmem:[%s3192_s0 + $0x18] ss:$36 sps:$4 sm:$0xff]  }
  0x22   :  { %2048 = vmatprep.subr.bf16.mxu1 %v2231_v47  ;;  %v2287_v31 = vld [vmem:[%s3191_s1 + $0x180] sm:$0xff]  }
  0x23   :  { %1078 = vmatmul.mubr.bf16.vlgmr.msra.gmra.mxu0 %v2208_v32  ;;  %v2294_v32 = vld [vmem:[%s3191_s1 + $0x238] sm:$0xff]   ;;  %v2306_v47 = vld [vmem:[%s3192_s0 + $0xa0] ss:$36 sps:$4 sm:$0xff]  }
  0x24   :  { %1175 = vmatmul.mubr.bf16.vlgmr.msra.gmra.mxu1 %v2211_v34  ;;  %1985 = vmatpush3.bf16.msra.mxu0 %v2215_v37  ;;  %v2293_v34 = vld [vmem:[%s3192_s0 + $0x1c] ss:$36 sps:$4 sm:$0xff]  }
  0x25   :  { %1085 = vmatprep.mubr.bf16.mxu0 %v2216_v38  ;;  %1182 = vmatprep.mubr.bf16.mxu1 %v2218_v39  ;;  %v2295_v37 = vld [vmem:[%s3192_s0 + $0x5c] ss:$36 sps:$4 sm:$0xff]   ;;  %v2297_v38 = vld [vmem:[%s3192_s0 + $0x64] ss:$36 sps:$4 sm:$0xff]   ;;  %v2301_v39 = vld [vmem:[%s3191_s1 + $0x230] sm:$0xff]  }
  0x26   :  { %1986 = vmatprep.subr.bf16.mxu0 %v2222_v42  ;;  %2049 = vmatpush3.bf16.msra.mxu1 %v2233_v50  ;;  %v2300_v42 = vld [vmem:[%s3192_s0 + $0x60] ss:$36 sps:$4 sm:$0xff]   ;;  %v2311_v50 = vld [vmem:[%s3192_s0 + $0xf4] ss:$36 sps:$4 sm:$0xff]  }
  0x27   :  { %2050 = vmatprep.subr.bf16.mxu1 %v2241_v55  ;;  %v2316_v55 = vld [vmem:[%s3192_s0 + $0x134] ss:$36 sps:$4 sm:$0xff]  }
  0x28   :  { %1987 = vmatpush3.bf16.msra.mxu0 %v2223_v43  ;;  %v2302_v43 = vld [vmem:[%s3192_s0 + $0xa4] ss:$36 sps:$4 sm:$0xff]  }
  0x29   :  { %1988 = vmatprep.subr.bf16.mxu0 %v2230_v46  ;;  %v2322_v46 = vld [vmem:[%s3191_s1 + $0x218] sm:$0xff]  }
  0x2a   :  { %2051 = vmatpush3.bf16.msra.mxu1 %v2243_v57  ;;  %v2343_v57 = vld [vmem:[%s3191_s1 + $0x200] sm:$0xff]  }
  0x2b   :  { %1086 = vmatmul.mubr.bf16.gmra.mxu0 %v2220_v40  ;;  %2052 = vmatprep.subr.bf16.mxu1 %v2251_v63  ;;  %v2308_v40 = vld [vmem:[%s3191_s1 + $0x228] sm:$0xff]   ;;  %v2328_v63 = vld [vmem:[%s3192_s0 + $0x180] ss:$36 sps:$4 sm:$0xff]  }
  0x2c   :  { %1183 = vmatmul.mubr.bf16.gmra.mxu1 %v2221_v41  ;;  %1093 = vmatprep.mubr.bf16.mxu0 %v2224_v44  ;;  %v2299_v41 = vld [vmem:[%s3192_s0 + $0x58] ss:$36 sps:$4 sm:$0xff]   ;;  %v2304_v44 = vld [vmem:[%s3192_s0 + $0xac] ss:$36 sps:$4 sm:$0xff]  }
  0x2d   :  { %1190 = vmatprep.mubr.bf16.mxu1 %v2226_v45  ;;  %1989 = vmatpush3.bf16.msra.mxu0 %v2232_v49  ;;  %v2315_v45 = vld [vmem:[%s3191_s1 + $0x220] sm:$0xff]   ;;  %v2309_v49 = vld [vmem:[%s3192_s0 + $0xec] ss:$36 sps:$4 sm:$0xff]  }
  0x2e   :  { %1990 = vmatprep.subr.bf16.mxu0 %v2240_v54  ;;  %2053 = vmatpush3.bf16.msra.mxu1 %v2253_v1  ;;  %v2314_v54 = vld [vmem:[%s3192_s0 + $0xf0] ss:$36 sps:$4 sm:$0xff]  }
  0x2f   :  { %2054 = vmatprep.subr.bf16.mxu1 %v2261_v7  ;;  %v2332_v1 = vld [vmem:[%s3192_s0 + $0x1cc] ss:$36 sps:$4 sm:$0xff]  }
  0x30   :  { %v2342_v7 = vld [vmem:[%s3192_s0 + $0x210] ss:$36 sps:$4 sm:$0xff]  }
  0x31   :  { %1991 = vmatpush3.bf16.msra.mxu0 %v2242_v56  ;;  %v2318_v56 = vld [vmem:[%s3192_s0 + $0x13c] ss:$36 sps:$4 sm:$0xff]  }
  0x32   :  { %1992 = vmatprep.subr.bf16.mxu0 %v2250_v62  ;;  %2055 = vmatpush3.bf16.msra.mxu1 %v2263_v9  ;;  %v2327_v62 = vld [vmem:[%s3192_s0 + $0x178] ss:$36 sps:$4 sm:$0xff]   ;;  %v2345_v9 = vld [vmem:[%s3192_s0 + $0x140] ss:$36 sps:$4 sm:$0xff]  }
  0x33   :  { %1094 = vmatmul.mubr.bf16.gmra.mxu0 %v2228_v48  ;;  %2056 = vmatprep.subr.bf16.mxu1 %v2271_v15  ;;  %v2307_v48 = vld [vmem:[%s3192_s0 + $0xa8] ss:$36 sps:$4 sm:$0xff]   ;;  %v2351_v15 = vld [vmem:[%s3192_s0 + $0x218] ss:$36 sps:$4 sm:$0xff]  }
  0x34   :  { %1191 = vmatmul.mubr.bf16.gmra.mxu1 %v2229_v51  ;;  %1101 = vmatprep.mubr.bf16.mxu0 %v2234_v52  ;;  %v2329_v51 = vld [vmem:[%s3191_s1 + $0x210] sm:$0xff]   ;;  %v2313_v52 = vld [vmem:[%s3192_s0 + $0xe8] ss:$36 sps:$4 sm:$0xff]  }
  0x35   :  { %1198 = vmatprep.mubr.bf16.mxu1 %v2236_v53  ;;  %1993 = vmatpush3.bf16.msra.mxu0 %v2252_v0  ;;  %v2336_v53 = vld [vmem:[%s3191_s1 + $0x208] sm:$0xff]  }
  0x36   :  { %1994 = vmatprep.subr.bf16.mxu0 %v2260_v6  ;;  %2057 = vmatpush3.bf16.msra.mxu1 %v2273_v17  ;;  %v2330_v0 = vld [vmem:[%s3192_s0 + $0x1c4] ss:$36 sps:$4 sm:$0xff]  }
  0x37   :  { %2058 = vmatprep.subr.bf16.mxu1 %v2274_v18  ;;  %v2341_v6 = vld [vmem:[%s3192_s0 + $0x208] ss:$36 sps:$4 sm:$0xff]  }
  0x39   :  { %1995 = vmatpush3.bf16.msra.mxu0 %v2262_v8  ;;  %v2344_v8 = vld [vmem:[%s3192_s0 + $0x20] ss:$36 sps:$4 sm:$0xff]  }
  0x3a   :  { %1996 = vmatprep.subr.bf16.mxu0 %v2270_v13  ;;  %2059 = vmatpush3.bf16.msra.mxu1 %v2275_v19  ;;  %v2349_v13 = vld [vmem:[%s3192_s0 + $0x1d0] ss:$36 sps:$4 sm:$0xff]  }
  0x3b   :  { %1102 = vmatmul.mubr.bf16.gmra.mxu0 %v2238_v58  ;;  %2060 = vmatprep.subr.bf16.mxu1 %v2283_v25  ;;  %v2320_v58 = vld [vmem:[%s3192_s0 + $0x130] ss:$36 sps:$4 sm:$0xff]  }
  0x3c   :  { %1199 = vmatmul.mubr.bf16.gmra.mxu1 %v2239_v59  ;;  %1109 = vmatprep.mubr.bf16.mxu0 %v2244_v60  ;;  %v2321_v59 = vld [vmem:[%s3192_s0 + $0x138] ss:$36 sps:$4 sm:$0xff]  }
  0x3d   :  { %1206 = vmatprep.mubr.bf16.mxu1 %v2246_v61  ;;  %1997 = vmatpush3.bf16.msra.mxu0 %v2272_v16  ;;  %v2323_v60 = vld [vmem:[%s3192_s0 + $0x17c] ss:$36 sps:$4 sm:$0xff]   ;;  %v2325_v61 = vld [vmem:[%s3192_s0 + $0x184] ss:$36 sps:$4 sm:$0xff]  }
  0x3e   :  { %1998 = vmatprep.subr.bf16.mxu0 %v2282_v24  ;;  %2061 = vmatpush3.bf16.msra.mxu1 %v2285_v27 }
  0x3f   :  { %2062 = vmatprep.subr.bf16.mxu1 %v2286_v28 }
  0x41   :  { %1999 = vmatpush3.bf16.msra.mxu0 %v2284_v26 }
  0x42   :  { %2128 = vmatprep.subr.bf16.mxu0 %v2294_v32  ;;  %2063 = vmatpush3.bf16.msra.mxu1 %v2287_v31 }
  0x43   :  { %1110 = vmatmul.mubr.bf16.gmra.mxu0 %v2248_v2  ;;  %2160 = vmatprep.subr.bf16.mxu1 %v2294_v32  ;;  %v2334_v2 = vld [vmem:[%s3192_s0 + $0x1c0] ss:$36 sps:$4 sm:$0xff]  }
  0x44   :  { %1207 = vmatmul.mubr.bf16.gmra.mxu1 %v2249_v3  ;;  %1117 = vmatprep.mubr.bf16.mxu0 %v2254_v4  ;;  %v2335_v3 = vld [vmem:[%s3192_s0 + $0x1c8] ss:$36 sps:$4 sm:$0xff]  }
  0x45   :  { %1214 = vmatprep.mubr.bf16.mxu1 %v2256_v5  ;;  %v2337_v4 = vld [vmem:[%s3192_s0 + $0x20c] ss:$36 sps:$4 sm:$0xff]   ;;  %v2339_v5 = vld [vmem:[%s3192_s0 + $0x214] ss:$36 sps:$4 sm:$0xff]  }
  0x4b   :  { %1118 = vmatmul.mubr.bf16.gmra.mxu0 %v2258_v10  ;;  %v2346_v10 = vld [vmem:[%s3192_s0 + $0x68] ss:$36 sps:$4 sm:$0xff]  }
  0x4c   :  { %1215 = vmatmul.mubr.bf16.gmra.mxu1 %v2259_v11  ;;  %1125 = vmatprep.mubr.bf16.mxu0 %v2264_v12  ;;  %v2347_v11 = vld [vmem:[%s3192_s0 + $0x188] ss:$36 sps:$4 sm:$0xff]   ;;  %v2348_v12 = vld [vmem:[%s3192_s0 + $0xb0] ss:$36 sps:$4 sm:$0xff]  }
  0x4d   :  { %1222 = vmatprep.mubr.bf16.mxu1 %v2266_v14  ;;  %v2350_v14 = vld [vmem:[%s3192_s0 + $0xf8] ss:$36 sps:$4 sm:$0xff]  }
  0x53   :  { %1126 = vmatmul.mubr.bf16.gmra.mxu0 %v2268_v20 }
  0x54   :  { %1223 = vmatmul.mubr.bf16.gmra.mxu1 %v2269_v21  ;;  %1133 = vmatprep.mubr.bf16.mxu0 %v2276_v22 }
  0x55   :  { %1230 = vmatprep.mubr.bf16.mxu1 %v2278_v23 }
  0x5b   :  { %1134 = vmatmul.mubr.bf16.gmra.mxu0 %v2280_v29 }
  0x5c   :  { %1231 = vmatmul.mubr.bf16.gmra.mxu1 %v2281_v30  ;;  %1271 = vmatprep.mubr.bf16.mxu0 %v2290_v33 }
  0x5d   :  { %1368 = vmatprep.mubr.bf16.mxu1 %v2293_v34 }
  0x63   :  { %1272 = vmatmul.mubr.bf16.vlgmr.msra.gmra.mxu0 %v2288_v35 }
  0x64   :  { %1369 = vmatmul.mubr.bf16.vlgmr.msra.gmra.mxu1 %v2291_v36  ;;  %2129 = vmatpush3.bf16.msra.mxu0 %v2294_v32 }
  0x65   :  { %1279 = vmatprep.mubr.bf16.mxu0 %v2295_v37  ;;  %1376 = vmatprep.mubr.bf16.mxu1 %v2297_v38 }
  0x66   :  { %2130 = vmatprep.subr.bf16.mxu0 %v2301_v39  ;;  %2168 = vmatpush3.bf16.msra.mxu1 %v2294_v32 }
  0x67   :  { %2161 = vmatprep.subr.bf16.mxu1 %v2301_v39 }
  0x68   :  { %2131 = vmatpush3.bf16.msra.mxu0 %v2301_v39 }
  0x69   :  { %2132 = vmatprep.subr.bf16.mxu0 %v2308_v40 }
  0x6a   :  { %2169 = vmatpush3.bf16.msra.mxu1 %v2301_v39 }
  0x6b   :  { %1280 = vmatmul.mubr.bf16.gmra.mxu0 %v2299_v41  ;;  %2162 = vmatprep.subr.bf16.mxu1 %v2308_v40 }
  0x6c   :  { %1377 = vmatmul.mubr.bf16.gmra.mxu1 %v2300_v42  ;;  %1287 = vmatprep.mubr.bf16.mxu0 %v2302_v43 }
  0x6d   :  { %1384 = vmatprep.mubr.bf16.mxu1 %v2304_v44  ;;  %2133 = vmatpush3.bf16.msra.mxu0 %v2308_v40 }
  0x6e   :  { %2134 = vmatprep.subr.bf16.mxu0 %v2315_v45  ;;  %2170 = vmatpush3.bf16.msra.mxu1 %v2308_v40 }
  0x6f   :  { %2163 = vmatprep.subr.bf16.mxu1 %v2315_v45 }
  0x71   :  { %2135 = vmatpush3.bf16.msra.mxu0 %v2315_v45 }
  0x72   :  { %2136 = vmatprep.subr.bf16.mxu0 %v2322_v46  ;;  %2171 = vmatpush3.bf16.msra.mxu1 %v2315_v45 }
  0x73   :  { %1288 = vmatmul.mubr.bf16.gmra.mxu0 %v2306_v47  ;;  %2164 = vmatprep.subr.bf16.mxu1 %v2322_v46 }
  0x74   :  { %1385 = vmatmul.mubr.bf16.gmra.mxu1 %v2307_v48  ;;  %1295 = vmatprep.mubr.bf16.mxu0 %v2309_v49 }
  0x75   :  { %1392 = vmatprep.mubr.bf16.mxu1 %v2311_v50  ;;  %2137 = vmatpush3.bf16.msra.mxu0 %v2322_v46 }
  0x76   :  { %2138 = vmatprep.subr.bf16.mxu0 %v2329_v51  ;;  %2172 = vmatpush3.bf16.msra.mxu1 %v2322_v46 }
  0x77   :  { %2165 = vmatprep.subr.bf16.mxu1 %v2329_v51 }
  0x79   :  { %2139 = vmatpush3.bf16.msra.mxu0 %v2329_v51 }
  0x7a   :  { %2140 = vmatprep.subr.bf16.mxu0 %v2336_v53  ;;  %2173 = vmatpush3.bf16.msra.mxu1 %v2329_v51 }
  0x7b   :  { %1296 = vmatmul.mubr.bf16.gmra.mxu0 %v2313_v52  ;;  %2166 = vmatprep.subr.bf16.mxu1 %v2336_v53 }
  0x7c   :  { %1393 = vmatmul.mubr.bf16.gmra.mxu1 %v2314_v54  ;;  %1303 = vmatprep.mubr.bf16.mxu0 %v2316_v55 }
  0x7d   :  { %1400 = vmatprep.mubr.bf16.mxu1 %v2318_v56  ;;  %2141 = vmatpush3.bf16.msra.mxu0 %v2336_v53 }
  0x7e   :  { %2142 = vmatprep.subr.bf16.mxu0 %v2343_v57  ;;  %2174 = vmatpush3.bf16.msra.mxu1 %v2336_v53 }
  0x7f   :  { %2167 = vmatprep.subr.bf16.mxu1 %v2343_v57 }
  0x81   :  { %2143 = vmatpush3.bf16.msra.mxu0 %v2343_v57 }
  0x82   :  { %2175 = vmatpush3.bf16.msra.mxu1 %v2343_v57 }
  0x83   :  { %1304 = vmatmul.mubr.bf16.gmra.mxu0 %v2320_v58 }
  0x84   :  { %1401 = vmatmul.mubr.bf16.gmra.mxu1 %v2321_v59  ;;  %1311 = vmatprep.mubr.bf16.mxu0 %v2323_v60 }
  0x85   :  { %1408 = vmatprep.mubr.bf16.mxu1 %v2325_v61 }
  0x8b   :  { %1312 = vmatmul.mubr.bf16.gmra.mxu0 %v2327_v62 }
  0x8c   :  { %1409 = vmatmul.mubr.bf16.gmra.mxu1 %v2328_v63  ;;  %1319 = vmatprep.mubr.bf16.mxu0 %v2330_v0 }
  0x8d   :  { %1416 = vmatprep.mubr.bf16.mxu1 %v2332_v1 }
  0x93   :  { %1320 = vmatmul.mubr.bf16.gmra.mxu0 %v2334_v2 }
  0x94   :  { %1417 = vmatmul.mubr.bf16.gmra.mxu1 %v2335_v3  ;;  %1327 = vmatprep.mubr.bf16.mxu0 %v2337_v4 }
  0x95   :  { %1424 = vmatprep.mubr.bf16.mxu1 %v2339_v5 }
  0x9b   :  { %1328 = vmatmul.mubr.bf16.gmra.mxu0 %v2341_v6 }
  0x9c   :  { %1425 = vmatmul.mubr.bf16.gmra.mxu1 %v2342_v7  ;;  %2144 = vmatprep.mubr.bf16.mxu0 %v2344_v8 }
  0x9d   :  { %2152 = vmatprep.mubr.bf16.mxu1 %v2345_v9 }
  0xa3   :  { %2145 = vmatmul.mubr.bf16.vlgmr.msra.gmra.mxu0 %v2346_v10 }
  0xa4   :  { %2153 = vmatmul.mubr.bf16.vlgmr.msra.gmra.mxu1 %v2347_v11  ;;  %2148 = vmatprep.mubr.bf16.mxu0 %v2348_v12 }
  0xa5   :  { %2156 = vmatprep.mubr.bf16.mxu1 %v2349_v13 }
  0xab   :  { %2149 = vmatmul.mubr.bf16.gmra.mxu0 %v2350_v14 }
  0xac   :  { %2157 = vmatmul.mubr.bf16.gmra.mxu1 %v2351_v15 }
  0xe3   :  { %v1872_v16 = vpop.f32.mrf.mxu0 }
  0xe4   :  { %v1936_v17 = vpop.f32.mrf.mxu1 }
  0xe5   :  { %v1873_v18 = vpop.f32.mrf.mxu0 }
  0xe6   :  { %v1874_v19 = vadd.f32 %v1873_v18, %v1872_v16  ;;  %v1937_v20 = vpop.f32.mrf.mxu1 }
  0xe7   :  { %v1938_v21 = vadd.f32 %v1937_v20, %v1936_v17  ;;  %v1875_v22 = vpop.f32.mrf.mxu0 }
  0xe8   :  { %v1939_v23 = vpop.f32.mrf.mxu1 }
  0xe9   :  { %v2816_v24 = vadd.f32 %v1938_v21, %v1874_v19  ;;  %v1876_v25 = vpop.f32.mrf.mxu0 }
  0xea   :  { %v1877_v26 = vadd.f32 %v1876_v25, %v1875_v22  ;;  %v1940_v27 = vpop.f32.mrf.mxu1 }
  0xeb   :  { %v1941_v28 = vadd.f32 %v1940_v27, %v1939_v23  ;;  %v1878_v29 = vpop.f32.mrf.mxu0 }
  0xec   :  { %v1942_v30 = vpop.f32.mrf.mxu1 }
  0xed   :  { %v2818_v31 = vadd.f32 %v1941_v28, %v1877_v26  ;;  %v1879_v32 = vpop.f32.mrf.mxu0 }
  0xee   :  { %v1880_v33 = vadd.f32 %v1879_v32, %v1878_v29  ;;  %v1943_v34 = vpop.f32.mrf.mxu1 }
  0xef   :  { %v1944_v35 = vadd.f32 %v1943_v34, %v1942_v30  ;;  %v1881_v36 = vpop.f32.mrf.mxu0 }
  0xf0   :  { %v1945_v37 = vpop.f32.mrf.mxu1 }
  0xf1   :  { %v2820_v38 = vadd.f32 %v1944_v35, %v1880_v33  ;;  %v1882_v39 = vpop.f32.mrf.mxu0 }
  0xf2   :  { %v1883_v40 = vadd.f32 %v1882_v39, %v1881_v36  ;;  %v1946_v41 = vpop.f32.mrf.mxu1 }
  0xf3   :  { %v1947_v42 = vadd.f32 %v1946_v41, %v1945_v37  ;;  %v1884_v43 = vpop.f32.mrf.mxu0 }
  0xf4   :  { %v1948_v44 = vpop.f32.mrf.mxu1 }
  0xf5   :  { %v2822_v45 = vadd.f32 %v1947_v42, %v1883_v40  ;;  %v1885_v46 = vpop.f32.mrf.mxu0 }
  0xf6   :  { %v1886_v47 = vadd.f32 %v1885_v46, %v1884_v43  ;;  %v1949_v48 = vpop.f32.mrf.mxu1 }
  0xf7   :  { %v1950_v49 = vadd.f32 %v1949_v48, %v1948_v44  ;;  %v1887_v50 = vpop.f32.mrf.mxu0 }
  0xf8   :  { %v1951_v51 = vpop.f32.mrf.mxu1 }
  0xf9   :  { %v2824_v52 = vadd.f32 %v1950_v49, %v1886_v47  ;;  %v1888_v53 = vpop.f32.mrf.mxu0 }
  0xfa   :  { %v1889_v54 = vadd.f32 %v1888_v53, %v1887_v50  ;;  %v1952_v55 = vpop.f32.mrf.mxu1 }
  0xfb   :  { %v1953_v56 = vadd.f32 %v1952_v55, %v1951_v51  ;;  %v1890_v57 = vpop.f32.mrf.mxu0 }
  0xfc   :  { %v1954_v58 = vpop.f32.mrf.mxu1 }
  0xfd   :  { %v2826_v59 = vadd.f32 %v1953_v56, %v1889_v54  ;;  %v1891_v60 = vpop.f32.mrf.mxu0 }
  0xfe   :  { %v1892_v61 = vadd.f32 %v1891_v60, %v1890_v57  ;;  %v1955_v62 = vpop.f32.mrf.mxu1 }
  0xff   :  { %v1956_v63 = vadd.f32 %v1955_v62, %v1954_v58  ;;  %v1893_v0 = vpop.f32.mrf.mxu0 }
 0x100   :  { %v1957_v1 = vpop.f32.mrf.mxu1 }
 0x101   :  { %v2828_v2 = vadd.f32 %v1956_v63, %v1892_v61  ;;  %v1894_v3 = vpop.f32.mrf.mxu0 }
 0x102   :  { %v1895_v4 = vadd.f32 %v1894_v3, %v1893_v0  ;;  %v1958_v5 = vpop.f32.mrf.mxu1 }
 0x103   :  { %v1959_v6 = vadd.f32 %v1958_v5, %v1957_v1  ;;  %v1896_v7 = vpop.f32.mrf.mxu0 }
 0x104   :  { %v1960_v8 = vpop.f32.mrf.mxu1 }
 0x105   :  { %v2830_v9 = vadd.f32 %v1959_v6, %v1895_v4  ;;  %v1897_v10 = vpop.f32.mrf.mxu0 }
 0x106   :  { %v1898_v11 = vadd.f32 %v1897_v10, %v1896_v7  ;;  %v1961_v12 = vpop.f32.mrf.mxu1 }
 0x107   :  { %v1962_v13 = vadd.f32 %v1961_v12, %v1960_v8  ;;  %v1899_v14 = vpop.f32.mrf.mxu0 }
 0x108   :  { %v1963_v15 = vpop.f32.mrf.mxu1 }
 0x109   :  { %v2832_v16 = vadd.f32 %v1962_v13, %v1898_v11  ;;  %v1900_v17 = vpop.f32.mrf.mxu0 }
 0x10a   :  { %v1901_v18 = vadd.f32 %v1900_v17, %v1899_v14  ;;  %v1964_v19 = vpop.f32.mrf.mxu1 }
 0x10b   :  { %v1965_v20 = vadd.f32 %v1964_v19, %v1963_v15  ;;  %v1902_v21 = vpop.f32.mrf.mxu0 }
 0x10c   :  { %v1966_v22 = vpop.f32.mrf.mxu1 }
 0x10d   :  { %v2834_v23 = vadd.f32 %v1965_v20, %v1901_v18  ;;  %v1903_v25 = vpop.f32.mrf.mxu0 }
 0x10e   :  { %v1904_v26 = vadd.f32 %v1903_v25, %v1902_v21  ;;  %v1967_v27 = vpop.f32.mrf.mxu1 }
 0x10f   :  { %v1968_v28 = vadd.f32 %v1967_v27, %v1966_v22  ;;  %v1905_v29 = vpop.f32.mrf.mxu0 }
 0x110   :  { %v1969_v30 = vpop.f32.mrf.mxu1 }
 0x111   :  { %v2836_v32 = vadd.f32 %v1968_v28, %v1904_v26  ;;  %v1906_v33 = vpop.f32.mrf.mxu0 }
 0x112   :  { %v1907_v34 = vadd.f32 %v1906_v33, %v1905_v29  ;;  %v1970_v35 = vpop.f32.mrf.mxu1 }
 0x113   :  { %3197 = vst [vmem:[#allocation2_spill] sm:$0xff] %v2836_v32  ;;  %v1971_v36 = vadd.f32 %v1970_v35, %v1969_v30  ;;  %v1908_v37 = vpop.f32.mrf.mxu0 }
 0x114   :  { %v1972_v39 = vpop.f32.mrf.mxu1 }
 0x115   :  { %v2838_v40 = vadd.f32 %v1971_v36, %v1907_v34  ;;  %v1909_v41 = vpop.f32.mrf.mxu0 }
 0x116   :  { %v1910_v42 = vadd.f32 %v1909_v41, %v1908_v37  ;;  %v1973_v43 = vpop.f32.mrf.mxu1 }
 0x117   :  { %3198 = vst [vmem:[#allocation3_spill] sm:$0xff] %v2838_v40  ;;  %v1974_v44 = vadd.f32 %v1973_v43, %v1972_v39  ;;  %v1911_v46 = vpop.f32.mrf.mxu0 }
 0x118   :  { %v1975_v47 = vpop.f32.mrf.mxu1 }
 0x119   :  { %v2840_v48 = vadd.f32 %v1974_v44, %v1910_v42  ;;  %v1912_v49 = vpop.f32.mrf.mxu0 }
 0x11a   :  { %v1913_v50 = vadd.f32 %v1912_v49, %v1911_v46  ;;  %v1976_v51 = vpop.f32.mrf.mxu1 }
 0x11b   :  { %3199 = vst [vmem:[#allocation4_spill] sm:$0xff] %v2840_v48  ;;  %v1977_v53 = vadd.f32 %v1976_v51, %v1975_v47  ;;  %v1914_v54 = vpop.f32.mrf.mxu0 }
 0x11c   :  { %v1978_v55 = vpop.f32.mrf.mxu1 }
 0x11d   :  { %v2842_v56 = vadd.f32 %v1977_v53, %v1913_v50  ;;  %v1915_v57 = vpop.f32.mrf.mxu0 }
 0x11e   :  { %v1916_v58 = vadd.f32 %v1915_v57, %v1914_v54  ;;  %v1979_v60 = vpop.f32.mrf.mxu1 }
 0x11f   :  { %3200 = vst [vmem:[#allocation5_spill] sm:$0xff] %v2842_v56  ;;  %v1980_v61 = vadd.f32 %v1979_v60, %v1978_v55  ;;  %v1917_v62 = vpop.f32.mrf.mxu0 }
 0x120   :  { %v1981_v63 = vpop.f32.mrf.mxu1 }
 0x121   :  { %v2844_v0 = vadd.f32 %v1980_v61, %v1916_v58  ;;  %v1918_v1 = vpop.f32.mrf.mxu0 }
 0x122   :  { %v1919_v3 = vadd.f32 %v1918_v1, %v1917_v62  ;;  %v1982_v4 = vpop.f32.mrf.mxu1 }
 0x123   :  { %3201 = vst [vmem:[#allocation6_spill] sm:$0xff] %v2844_v0  ;;  %v1983_v5 = vadd.f32 %v1982_v4, %v1981_v63  ;;  %v2000_v6 = vpop.f32.mrf.mxu0 }
 0x124   :  { %v2846_v7 = vpop.f32.mrf.mxu1 }
 0x125   :  { %v2848_v8 = vadd.f32 %v1983_v5, %v1919_v3  ;;  %v2001_v10 = vpop.f32.mrf.mxu0 }
 0x126   :  { %v2002_v11 = vadd.f32 %v2001_v10, %v2000_v6  ;;  %v2850_v12 = vpop.f32.mrf.mxu1 }
 0x127   :  { %3202 = vst [vmem:[#allocation7_spill] sm:$0xff] %v2848_v8  ;;  %v2003_v13 = vpop.f32.mrf.mxu0 }
 0x128   :  { %v2853_v14 = vadd.f32 %v2002_v11, %v2816_v24  ;;  %v2855_v15 = vpop.f32.mrf.mxu1 }
 0x129   :  { %v2004_v17 = vpop.f32.mrf.mxu0 }
 0x12a   :  { %v2857_v18 = vpop.f32.mrf.mxu1 }
 0x12b   :  { %v2006_v19 = vpop.f32.mrf.mxu0 }
 0x12c   :  { %v2859_v20 = vpop.f32.mrf.mxu1 }
 0x12d   :  { %v2007_v21 = vpop.f32.mrf.mxu0 }
 0x12e   :  { %v2071_v22 = vpop.f32.mrf.mxu1 }
 0x12f   :  { %v2009_v25 = vpop.f32.mrf.mxu0 }
 0x130   :  { %v2861_v26 = vpop.f32.mrf.mxu1 }
 0x131   :  { %v2010_v27 = vpop.f32.mrf.mxu0 }
 0x132   :  { %v2074_v28 = vpop.f32.mrf.mxu1 }
 0x133   :  { %v2012_v29 = vpop.f32.mrf.mxu0 }
 0x134   :  { %v2863_v30 = vpop.f32.mrf.mxu1 }
 0x135   :  { %v2013_v24 = vpop.f32.mrf.mxu0 }
 0x136   :  { %v2077_v33 = vpop.f32.mrf.mxu1 }
 0x137   :  { %v2015_v34 = vpop.f32.mrf.mxu0 }
 0x138   :  { %v2865_v35 = vpop.f32.mrf.mxu1 }
 0x139   :  { %v2016_v36 = vpop.f32.mrf.mxu0 }
 0x13a   :  { %v2867_v37 = vpop.f32.mrf.mxu1 }
 0x13b   :  { %v2018_v39 = vpop.f32.mrf.mxu0 }
 0x13c   :  { %v2869_v41 = vpop.f32.mrf.mxu1 }
 0x13d   :  { %v2019_v42 = vpop.f32.mrf.mxu0 }
 0x13e   :  { %v2871_v43 = vpop.f32.mrf.mxu1 }
 0x13f   :  { %v2021_v44 = vpop.f32.mrf.mxu0 }
 0x140   :  { %v2873_v46 = vpop.f32.mrf.mxu1 }
 0x141   :  { %v2022_v47 = vpop.f32.mrf.mxu0 }
 0x142   :  { %v2875_v49 = vpop.f32.mrf.mxu1 }
 0x143   :  { %v2877_v50 = vpop.f32.mrf.mxu0 }
 0x144   :  { %v2879_v51 = vpop.f32.mrf.mxu1 }
 0x145   :  { %v2881_v53 = vpop.f32.mrf.mxu0 }
 0x146   :  { %v2883_v54 = vpop.f32.mrf.mxu1 }
 0x147   :  { %v2885_v55 = vpop.f32.mrf.mxu0 }
 0x148   :  { %v2887_v57 = vpop.f32.mrf.mxu1 }
 0x149   :  { %v2889_v58 = vpop.f32.mrf.mxu0 }
 0x14a   :  { %v2891_v60 = vpop.f32.mrf.mxu1 }
 0x14b   :  { %v2893_v61 = vpop.f32.mrf.mxu0 }
 0x14c   :  { %v2895_v62 = vpop.f32.mrf.mxu1 }
 0x14d   :  { %3203 = vst [vmem:[#allocation8_spill] sm:$0xff] %v2895_v62  ;;  %v2897_v63 = vpop.f32.mrf.mxu0 }
 0x14e   :  { %v2899_v1 = vpop.f32.mrf.mxu1 }
 0x14f   :  { %3204 = vst [vmem:[#allocation9_spill] sm:$0xff] %v2899_v1  ;;  %v2901_v3 = vpop.f32.mrf.mxu0 }
 0x150   :  { %v2903_v4 = vpop.f32.mrf.mxu1 }
 0x151   :  { %3205 = vst [vmem:[#allocation10_spill] sm:$0xff] %v2903_v4  ;;  %v2905_v5 = vpop.f32.mrf.mxu0 }
 0x152   :  { %v2907_v6 = vpop.f32.mrf.mxu1 }
 0x153   :  { %3206 = vst [vmem:[#allocation11_spill] sm:$0xff] %v2907_v6  ;;  %v2909_v10 = vpop.f32.mrf.mxu0 }
 0x154   :  { %3207 = vst [vmem:[#allocation12_spill] sm:$0xff] %v2909_v10  ;;  %v2911_v11 = vpop.f32.mrf.mxu1 }
 0x155   :  { %3208 = vst [vmem:[#allocation13_spill] sm:$0xff] %v2911_v11  ;;  %v2913_v8 = vpop.f32.mrf.mxu0 }
 0x156   :  { %3209 = vst [vmem:[#allocation14_spill] sm:$0xff] %v2913_v8  ;;  %v2915_v0 = vpop.f32.mrf.mxu1  ;;  %v2005_v8 = vadd.f32 %v2004_v17, %v2003_v13  ;;  %v2072_v17 = vadd.f32 %v2071_v22, %v2859_v20 }
 0x157   :  { %3210 = vst [vmem:[#allocation15_spill] sm:$0xff] %v2915_v0  ;;  %v2917_v56 = vpop.f32.mrf.mxu0  ;;  %v2008_v0 = vadd.f32 %v2007_v21, %v2006_v19 }
 0x158   :  { %3211 = vst [vmem:[#allocation16_spill] sm:$0xff] %v2917_v56  ;;  %v2919_v48 = vpop.f32.mrf.mxu1  ;;  %v2011_v56 = vadd.f32 %v2010_v27, %v2009_v25  ;;  %v2075_v25 = vadd.f32 %v2074_v28, %v2861_v26 }
 0x159   :  { %3212 = vst [vmem:[#allocation17_spill] sm:$0xff] %v2919_v48  ;;  %v2921_v40 = vpop.f32.mrf.mxu0  ;;  %v1282_v13 = vadd.f32 %v2008_v0, %v2820_v38  ;;  %v2023_v38 = vadd.f32 %v2022_v47, %v2021_v44 }
 0x15a   :  { %3213 = vst [vmem:[#allocation18_spill] sm:$0xff] %v2921_v40  ;;  %v2923_v1 = vpop.f32.mrf.mxu1  ;;  %v2014_v40 = vadd.f32 %v2013_v24, %v2012_v29  ;;  %v1285_v21 = vadd.f32 %v2011_v56, %v2822_v45  ;;  %v2078_v29 = vadd.f32 %v2077_v33, %v2863_v30  ;;  %v2081_v56 = vadd.f32 %v2867_v37, %v2865_v35 }
 0x15b   :  { %3214 = vst [vmem:[#allocation19_spill] sm:$0xff] %v2923_v1  ;;  %v2925_v4 = vpop.f32.mrf.mxu0  ;;  %v2066_v1 = vadd.f32 %v2850_v12, %v2846_v7  ;;  %v2017_v7 = vadd.f32 %v2016_v36, %v2015_v34  ;;  %v1301_v34 = vadd.f32 %v2023_v38, %v2830_v9  ;;  %v2026_v35 = vadd.f32 %v2881_v53, %v2877_v50 }
 0x15c   :  { %3215 = vst [vmem:[#allocation20_spill] sm:$0xff] %v2925_v4  ;;  %v2927_v62 = vpop.f32.mrf.mxu1  ;;  %v1290_v27 = vadd.f32 %v2014_v40, %v2824_v52  ;;  %v1382_v26 = vadd.f32 %v2075_v25, %v1285_v21  ;;  %v2029_v9 = vadd.f32 %v2889_v58, %v2885_v55 }
 0x15d   :  { %3216 = vst [vmem:[#allocation21_spill] sm:$0xff] %v2927_v62  ;;  %v2929_v6 = vpop.f32.mrf.mxu0  ;;  %v1293_v45 = vadd.f32 %v2017_v7, %v2826_v59  ;;  %v2087_v59 = vadd.f32 %v2875_v49, %v2873_v46  ;;  %v1306_v53 = vadd.f32 %v2026_v35, %v2832_v16  ;;  %v2093_v16 = vadd.f32 %v2891_v60, %v2887_v57  ;;  %v3222_v60 = vld [vmem:[#allocation12_spill] sm:$0xff]  ;;  %v3223_v38 = vld [vmem:[#allocation14_spill] sm:$0xff] }
 0x15e   :  { %3217 = vst [vmem:[#allocation22_spill] sm:$0xff] %v2929_v6  ;;  %v2931_v10 = vpop.f32.mrf.mxu1  ;;  %v1277_v6 = vadd.f32 %v2005_v8, %v2818_v31  ;;  %v1371_v31 = vadd.f32 %v2066_v1, %v2853_v14  ;;  %v2084_v14 = vadd.f32 %v2871_v43, %v2869_v41  ;;  %v1387_v24 = vadd.f32 %v2078_v29, %v1290_v27  ;;  %v3219_v29 = vld [vmem:[#allocation2_spill] sm:$0xff] }
 0x15f   :  { %3218 = vst [vmem:[#allocation23_spill] sm:$0xff] %v2931_v10  ;;  %v2933_v11 = vpop.f32.mrf.mxu0  ;;  %v2069_v10 = vadd.f32 %v2857_v18, %v2855_v15  ;;  %v2020_v15 = vadd.f32 %v2019_v42, %v2018_v39  ;;  %v1379_v18 = vadd.f32 %v2072_v17, %v1282_v13  ;;  %v1390_v44 = vadd.f32 %v2081_v56, %v1293_v45  ;;  %v3224_v56 = vld [vmem:[#allocation3_spill] sm:$0xff] }
 0x160   :  { %v2935_v32 = vpop.f32.mrf.mxu1  ;;  %v2032_v1 = vadd.f32 %v2897_v63, %v2893_v61  ;;  %v1398_v17 = vadd.f32 %v2087_v59, %v1301_v34  ;;  %v1309_v21 = vadd.f32 %v2029_v9, %v2834_v23 }
 0x161   :  { %v2937_v48 = vpop.f32.mrf.mxu0  ;;  %v1374_v22 = vadd.f32 %v2069_v10, %v1277_v6  ;;  %v1298_v33 = vadd.f32 %v2020_v15, %v2828_v2  ;;  %v3221_v15 = vld [vmem:[#allocation9_spill] sm:$0xff]  ;;  %v3228_v34 = vld [vmem:[#allocation18_spill] sm:$0xff] }
 0x162   :  { %v2941_v4 = vpop.f32.mrf.mxu1  ;;  %v1314_v23 = vadd.f32 %v2032_v1, %v3219_v29  ;;  %v1406_v35 = vadd.f32 %v2093_v16, %v1309_v21  ;;  %v3235_v21 = vld [vmem:[#allocation17_spill] sm:$0xff]  ;;  %v3236_v16 = vld [vmem:[#allocation19_spill] sm:$0xff] }
 0x163   :  { %v2146_v62 = vpop.f32.mrf.mxu0  ;;  %v1395_v55 = vadd.f32 %v2084_v14, %v1298_v33  ;;  %v3226_v14 = vld [vmem:[#allocation11_spill] sm:$0xff]  ;;  %v3227_v33 = vld [vmem:[#allocation16_spill] sm:$0xff] }
 0x164   :  { %v2948_v19 = vpop.f32.mrf.mxu1  ;;  %v2966_v28 = vadd.f32 %v2146_v62, %v1379_v18  ;;  %v2090_v62 = vadd.f32 %v2883_v54, %v2879_v51  ;;  %v2035_v51 = vadd.f32 %v2905_v5, %v2901_v3  ;;  %v2038_v3 = vadd.f32 %v3223_v38, %v3222_v60 }
 0x165   :  { %v1467_v12 = vpop.f32.mrf.mxu0  ;;  %v2041_v59 = vadd.f32 %v3228_v34, %v3227_v33 }
 0x166   :  { %v2955_v8 = vpop.f32.mrf.mxu1  ;;  %v2957_v20 = vadd.f32 %v1467_v12, %v1371_v31  ;;  %v1572_v46 = vmul.f32 %v2966_v28, %v2966_v28  ;;  %v3220_v31 = vld [vmem:[#allocation8_spill] sm:$0xff]  ;;  %v1403_v5 = vadd.f32 %v2090_v62, %v1306_v53  ;;  %v3233_v62 = vld [vmem:[#allocation22_spill] sm:$0xff]  ;;  %v3239_v60 = vld [vmem:[#allocation23_spill] sm:$0xff] }
 0x167   :  { %v2147_v0 = vpop.f32.mrf.mxu0  ;;  %v2096_v57 = vadd.f32 %v3221_v15, %v3220_v31  ;;  %v3232_v53 = vld [vmem:[#allocation20_spill] sm:$0xff]  ;;  %v3237_v31 = vld [vmem:[#allocation6_spill] sm:$0xff] }
 0x168   :  { %v2962_v52 = vpop.f32.mrf.mxu1  ;;  %v1570_v37 = vmul.f32 %v2957_v20, %v2957_v20  ;;  %v2978_v39 = vadd.f32 %v2147_v0, %v1382_v26  ;;  %v1317_v26 = vadd.f32 %v2035_v51, %v3224_v56  ;;  %v2044_v1 = vadd.f32 %v3233_v62, %v3232_v53 }
 0x169   :  { %v1470_v40 = vpop.f32.mrf.mxu0  ;;  %v2105_v51 = vadd.f32 %v3236_v16, %v3235_v21 }
 0x16a   :  { %v2968_v30 = vadd.f32 %v1470_v40, %v1374_v22  ;;  %v1502_v42 = vpop.f32.mrf.mxu1  ;;  %v1573_v6 = vmul.f32 %v2978_v39, %v2978_v39  ;;  %v3225_v40 = vld [vmem:[#allocation10_spill] sm:$0xff]  ;;  %v1330_v15 = vadd.f32 %v2044_v1, %v3237_v31 }
 0x16b   :  { %v2150_v36 = vpop.f32.mrf.mxu0 }
 0x16c   :  { %v1548_v41 = vadd.f32 %v2968_v30, %v2957_v20  ;;  %v1571_v2 = vmul.f32 %v2968_v30, %v2968_v30  ;;  %v3004_v54 = vadd.f32 %v2150_v36, %v1395_v55  ;;  %v2158_v61 = vpop.f32.mrf.mxu1  ;;  %v1411_v55 = vadd.f32 %v2096_v57, %v1314_v23  ;;  %v3238_v57 = vld [vmem:[#allocation21_spill] sm:$0xff] }
 0x16d   :  { %v1483_v43 = vpop.f32.mrf.mxu0  ;;  %v2108_v38 = vadd.f32 %v3239_v60, %v3238_v57 }
 0x16e   :  { %v1549_v47 = vadd.f32 %v1548_v41, %v2966_v28  ;;  %v1586_v49 = vadd.f32 %v1571_v2, %v1570_v37  ;;  %v2989_v50 = vadd.f32 %v1483_v43, %v1387_v24  ;;  %v2099_v24 = vadd.f32 %v3226_v14, %v3225_v40  ;;  %v1515_v36 = vpop.f32.mrf.mxu1  ;;  %v3229_v43 = vld [vmem:[#allocation4_spill] sm:$0xff] }
 0x16f   :  { %v2151_v58 = vpop.f32.mrf.mxu0  ;;  %v3027_v37 = vadd.f32 %v2955_v8, %v1403_v5  ;;  %v1576_v41 = vmul.f32 %v3004_v54, %v3004_v54  ;;  %v1427_v33 = vadd.f32 %v2108_v38, %v1330_v15 }
 0x170   :  { %v1587_v10 = vadd.f32 %v1586_v49, %v1572_v46  ;;  %v1550_v13 = vadd.f32 %v1549_v47, %v2978_v39  ;;  %v1574_v7 = vmul.f32 %v2989_v50, %v2989_v50  ;;  %v3016_v18 = vadd.f32 %v2151_v58, %v1398_v17  ;;  %v3230_v46 = vld [vmem:[#allocation13_spill] sm:$0xff]  ;;  %v3231_v47 = vld [vmem:[#allocation15_spill] sm:$0xff] }
 0x171   :  { %v1486_v63 = vpop.f32.mrf.mxu0  ;;  %v2102_v49 = vadd.f32 %v3231_v47, %v3230_v46  ;;  %v3037_v58 = vadd.f32 %v1502_v42, %v1406_v35  ;;  %v1578_v42 = vmul.f32 %v3027_v37, %v3027_v37 }
 0x172   :  { %v1551_v25 = vadd.f32 %v1550_v13, %v2989_v50  ;;  %v1588_v12 = vadd.f32 %v1587_v10, %v1573_v6  ;;  %v3009_v27 = vadd.f32 %v1486_v63, %v1390_v44  ;;  %v1322_v44 = vadd.f32 %v2038_v3, %v3229_v43  ;;  %v3234_v13 = vld [vmem:[#allocation5_spill] sm:$0xff] }
 0x173   :  { %v1577_v8 = vmul.f32 %v3016_v18, %v3016_v18  ;;  %v1325_v17 = vadd.f32 %v2041_v59, %v3234_v13  ;;  %v2047_v63 = vadd.f32 %v2937_v48, %v2933_v11  ;;  %v1579_v48 = vmul.f32 %v3037_v58, %v3037_v58 }
 0x174   :  { %v1589_v0 = vadd.f32 %v1588_v12, %v1574_v7  ;;  %v1552_v22 = vadd.f32 %v1551_v25, %v3009_v27  ;;  %v1575_v45 = vmul.f32 %v3009_v27, %v3009_v27  ;;  %v1414_v25 = vadd.f32 %v2099_v24, %v1317_v26  ;;  %v2159_v7 = vpop.f32.mrf.mxu1 }
 0x175   :  { %v3048_v12 = vadd.f32 %v2948_v19, %v1411_v55  ;;  %v1419_v3 = vadd.f32 %v2102_v49, %v1322_v44  ;;  %v1422_v56 = vadd.f32 %v2105_v51, %v1325_v17 }
 0x176   :  { %v1553_v2 = vadd.f32 %v1552_v22, %v3004_v54  ;;  %v1590_v9 = vadd.f32 %v1589_v0, %v1575_v45  ;;  %v3057_v5 = vadd.f32 %v2962_v52, %v1414_v25  ;;  %v3240_v0 = vld [vmem:[#allocation7_spill] sm:$0xff]  ;;  %v2111_v45 = vadd.f32 %v2941_v4, %v2935_v32  ;;  %v1518_v26 = vpop.f32.mrf.mxu1 }
 0x177   :  { %v1333_v22 = vadd.f32 %v2047_v63, %v3240_v0  ;;  %v1580_v40 = vmul.f32 %v3048_v12, %v3048_v12  ;;  %v3067_v14 = vadd.f32 %v1515_v36, %v1419_v3  ;;  %v1519_v59 = vadd.f32 %v1518_v26, %v1422_v56 }
 0x178   :  { %v1554_v6 = vadd.f32 %v1553_v2, %v3016_v18  ;;  %v1591_v10 = vadd.f32 %v1590_v9, %v1576_v41  ;;  %v1581_v34 = vmul.f32 %v3057_v5, %v3057_v5  ;;  %v1524_v32 = vadd.f32 %v2158_v61, %v1427_v33 }
 0x179   :  { %v1430_v2 = vadd.f32 %v2111_v45, %v1333_v22  ;;  %v1582_v4 = vmul.f32 %v3067_v14, %v3067_v14  ;;  %v1583_v46 = vmul.f32 %v1519_v59, %v1519_v59  ;;  %v1617_v3 = vlaneseq  ;;  %v1531_v45 = vld [vmem:[%s3194_s3] sm:$0x1] }
 0x17a   :  { %v1555_v29 = vadd.f32 %v1554_v6, %v3027_v37  ;;  %v1592_v23 = vadd.f32 %v1591_v10, %v1577_v8  ;;  %v1584_v49 = vmul.f32 %v1524_v32, %v1524_v32 }
 0x17b   :  { %v1527_v43 = vadd.f32 %v2159_v7, %v1430_v2 }
 0x17c   :  { %v1593_v11 = vadd.f32 %v1592_v23, %v1578_v42  ;;  %v1556_v19 = vadd.f32 %v1555_v29, %v3037_v58 }
 0x17d   :  { %v1585_v1 = vmul.f32 %v1527_v43, %v1527_v43 }
 0x17e   :  { %v1557_v52 = vadd.f32 %v1556_v19, %v3048_v12  ;;  %v1594_v24 = vadd.f32 %v1593_v11, %v1579_v48  ;;  %v1618_v48 = vshrl.u32 %v1617_v3, 7  ;;  %v1530_v11 = vld [vmem:[%s3193_s2] sm:$0x1] }
 0x180   :  { %v1558_v35 = vadd.f32 %v1557_v52, %v3057_v5  ;;  %v1595_v41 = vadd.f32 %v1594_v24, %v1580_v40  ;;  %v1619_v19 = vsub.s32 0, %v1618_v48 }
 0x182   :  { %v1559_v9 = vadd.f32 %v1558_v35, %v3067_v14  ;;  %v1596_v36 = vadd.f32 %v1595_v41, %v1581_v34 }
 0x184   :  { %v1560_v44 = vadd.f32 %v1559_v9, %v1519_v59  ;;  %v1597_v47 = vadd.f32 %v1596_v36, %v1582_v4 }
 0x186   :  { %v1561_v53 = vadd.f32 %v1560_v44, %v1524_v32  ;;  %v1598_v62 = vadd.f32 %v1597_v47, %v1583_v46 }
 0x188   :  { %v1562_v55 = vadd.f32 %v1561_v53, %v1527_v43  ;;  %v1599_v8 = vadd.f32 %v1598_v62, %v1584_v49 }
 0x18a   :  { %v1563_v6 = vrot.slane %v1562_v55, 4  ;;  %v1600_v10 = vadd.f32 %v1599_v8, %v1585_v1  ;;  %v1539_v1 = vld [vmem:[%s3195_s4 + $0x38] sm:$0xff]  ;;  %v1541_v8 = vld [vmem:[%s3195_s4 + $0x48] sm:$0xff] }
 0x18c   :  { %v1564_v13 = vadd.f32 %v1563_v6, %v1562_v55  ;;  %v1601_v61 = vrot.slane %v1600_v10, 4  ;;  %v1540_v55 = vld [vmem:[%s3195_s4 + $0x40] sm:$0xff] }
 0x18e   :  { %v1565_v17 = vrot.slane %v1564_v13, 2  ;;  %v1602_v21 = vadd.f32 %v1601_v61, %v1600_v10 }
 0x190   :  { %v1566_v16 = vadd.f32 %v1565_v17, %v1564_v13  ;;  %v1603_v51 = vrot.slane %v1602_v21, 2  ;;  %v1542_v17 = vld [vmem:[%s3195_s4 + $0x50] sm:$0xff] }
 0x192   :  { %v1567_v63 = vrot.slane %v1566_v16, 1  ;;  %v1604_v25 = vadd.f32 %v1603_v51, %v1602_v21  ;;  %v1543_v21 = vld [vmem:[%s3195_s4 + $0x58] sm:$0xff] }
 0x194   :  { %v1568_v7 = vadd.f32 %v1567_v63, %v1566_v16  ;;  %v1605_v42 = vrot.slane %v1604_v25, 1  ;;  %v1544_v16 = vld [vmem:[%s3195_s4 + $0x60] sm:$0xff] }
 0x196   :  { %v1569_v29 = vmul.f32 0.0078125, %v1568_v7  ;;  %v1606_v23 = vadd.f32 %v1605_v42, %v1604_v25  ;;  %v1545_v42 = vld [vmem:[%s3195_s4 + $0x68] sm:$0xff] }
 0x198   :  { %v1607_v31 = vmul.f32 0.0078125, %v1606_v23  ;;  %v1608_v15 = vmul.f32 %v1569_v29, %v1569_v29  ;;  %v1547_v23 = vld [vmem:[%s3195_s4 + $0x78] sm:$0xff] }
 0x19a   :  { %v1609_v57 = vsub.f32 %v1607_v31, %v1608_v15 }
 0x19c   :  { %v1610_v60 = vmax.f32 %v1609_v57, 0.0 }
 0x19e   :  { %v1611_v38 = vadd.f32 1e-05, %v1610_v60 }
 0x1a0   :  { %2352 = vrsqrt.f32 %v1611_v38 }
 0x1ad   :  { %v2353_v0 = vpop.eup %2352 }
 0x1ae   :  { %v1613_v22 = vmul.f32 %v2353_v0, %v1530_v11 }
 0x1b0   :  { %v1614_v56 = vmul.f32 %v1613_v22, %v1569_v29  ;;  %v1620_v26 = vrot.slane %v1613_v22, %v1619_v19  ;;  %v1546_v29 = vld [vmem:[%s3195_s4 + $0x70] sm:$0xff] }
 0x1b2   :  { %v1615_v40 = vsub.f32 %v1531_v45, %v1614_v56  ;;  %v1622_v52 = vmul.f32 %v1620_v26, %v2957_v20  ;;  %v1623_v24 = vmul.f32 %v1620_v26, %v2968_v30  ;;  %v1627_v33 = vmul.f32 %v1620_v26, %v3009_v27 }
 0x1b3   :  { %v1628_v34 = vmul.f32 %v1620_v26, %v3004_v54  ;;  %v1629_v35 = vmul.f32 %v1620_v26, %v3016_v18  ;;  %v1630_v41 = vmul.f32 %v1620_v26, %v3027_v37  ;;  %v1631_v2 = vmul.f32 %v1620_v26, %v3037_v58  ;;  %v1532_v18 = vld [vmem:[%s3195_s4] sm:$0xff]  ;;  %v1533_v58 = vld [vmem:[%s3195_s4 + $0x8] sm:$0xff] }
 0x1b4   :  { %v1632_v4 = vmul.f32 %v1620_v26, %v3048_v12  ;;  %v1633_v9 = vmul.f32 %v1620_v26, %v3057_v5  ;;  %v1634_v36 = vmul.f32 %v1620_v26, %v3067_v14  ;;  %v1635_v44 = vmul.f32 %v1620_v26, %v1519_v59  ;;  %v1534_v12 = vld [vmem:[%s3195_s4 + $0x10] sm:$0xff] }
 0x1b5   :  { %v1636_v20 = vmul.f32 %v1620_v26, %v1524_v32  ;;  %v1624_v30 = vmul.f32 %v1620_v26, %v2966_v28  ;;  %v1625_v27 = vmul.f32 %v1620_v26, %v2978_v39  ;;  %v1637_v46 = vmul.f32 %v1620_v26, %v1527_v43  ;;  %v1535_v28 = vld [vmem:[%s3195_s4 + $0x18] sm:$0xff]  ;;  %v1537_v32 = vld [vmem:[%s3195_s4 + $0x28] sm:$0xff]  ;;  %v1538_v43 = vld [vmem:[%s3195_s4 + $0x30] sm:$0xff] }
 0x1b6   :  { %v1642_v54 = vrot.slane %v1615_v40, %v1619_v19  ;;  %v1626_v37 = vmul.f32 %v1620_v26, %v2989_v50  ;;  %v1536_v50 = vld [vmem:[%s3195_s4 + $0x20] sm:$0xff] }
 0x1b8   :  { %v1644_v39 = vadd.f32 %v1642_v54, %v1622_v52  ;;  %v1645_v5 = vadd.f32 %v1642_v54, %v1623_v24  ;;  %v1646_v14 = vadd.f32 %v1642_v54, %v1624_v30  ;;  %v1647_v59 = vadd.f32 %v1642_v54, %v1625_v27 }
 0x1b9   :  { %v1648_v47 = vadd.f32 %v1642_v54, %v1626_v37  ;;  %v1649_v49 = vadd.f32 %v1642_v54, %v1627_v33  ;;  %v1650_v53 = vadd.f32 %v1642_v54, %v1628_v34  ;;  %v1651_v62 = vadd.f32 %v1642_v54, %v1629_v35 }
 0x1ba   :  { %v1652_v6 = vadd.f32 %v1642_v54, %v1630_v41  ;;  %v1653_v10 = vadd.f32 %v1642_v54, %v1631_v2  ;;  %v1654_v13 = vadd.f32 %v1642_v54, %v1632_v4  ;;  %v1655_v61 = vadd.f32 %v1642_v54, %v1633_v9 }
 0x1bb   :  { %v1656_v51 = vadd.f32 %v1642_v54, %v1634_v36  ;;  %v1657_v63 = vadd.f32 %v1642_v54, %v1635_v44  ;;  %v1658_v25 = vadd.f32 %v1642_v54, %v1636_v20  ;;  %v1659_v7 = vadd.f32 %v1642_v54, %v1637_v46 }
 0x1bc   :  { %v1660_v31 = vadd.f32 %v1644_v39, %v1532_v18  ;;  %v1661_v15 = vadd.f32 %v1645_v5, %v1533_v58  ;;  %v1662_v57 = vadd.f32 %v1646_v14, %v1534_v12  ;;  %v1663_v60 = vadd.f32 %v1647_v59, %v1535_v28 }
 0x1bd   :  { %v1664_v38 = vadd.f32 %v1648_v47, %v1536_v50  ;;  %v1665_v3 = vadd.f32 %v1649_v49, %v1537_v32  ;;  %v1666_v48 = vadd.f32 %v1650_v53, %v1538_v43  ;;  %v1667_v11 = vadd.f32 %v1651_v62, %v1539_v1 }
 0x1be   :  { %v1668_v19 = vadd.f32 %v1652_v6, %v1540_v55  ;;  %v1669_v0 = vadd.f32 %v1653_v10, %v1541_v8  ;;  %v1670_v22 = vadd.f32 %v1654_v13, %v1542_v17  ;;  %v1671_v45 = vadd.f32 %v1655_v61, %v1543_v21 }
 0x1bf   :  { %v1672_v56 = vadd.f32 %v1656_v51, %v1544_v16  ;;  %v1673_v26 = vadd.f32 %v1657_v63, %v1545_v42  ;;  %v1674_v40 = vadd.f32 %v1658_v25, %v1546_v29  ;;  %v1675_v52 = vadd.f32 %v1659_v7, %v1547_v23 }
 0x1c0   :  { %v1676_v24 = vmax.f32 %v1660_v31, 0.0  ;;  %v1677_v33 = vmax.f32 %v1661_v15, 0.0  ;;  %v1678_v34 = vmax.f32 %v1662_v57, 0.0  ;;  %v1679_v35 = vmax.f32 %v1663_v60, 0.0 }
 0x1c1   :  { %v1680_v41 = vmax.f32 %v1664_v38, 0.0  ;;  %v1681_v2 = vmax.f32 %v1665_v3, 0.0  ;;  %v1682_v4 = vmax.f32 %v1666_v48, 0.0  ;;  %v1683_v9 = vmax.f32 %v1667_v11, 0.0 }
 0x1c2   :  { %v1684_v36 = vmax.f32 %v1668_v19, 0.0  ;;  %v1685_v44 = vmax.f32 %v1669_v0, 0.0  ;;  %v1686_v20 = vmax.f32 %v1670_v22, 0.0  ;;  %v1687_v30 = vmax.f32 %v1671_v45, 0.0  ;;  %1692 = vst [vmem:[%s3196_s5] sm:$0xff] %v1676_v24  ;;  %1693 = vst [vmem:[%s3196_s5 + $0x8] sm:$0xff] %v1677_v33 }
 0x1c3   :  { %1694 = vst [vmem:[%s3196_s5 + $0x10] sm:$0xff] %v1678_v34  ;;  %1695 = vst [vmem:[%s3196_s5 + $0x18] sm:$0xff] %v1679_v35  ;;  %v1688_v27 = vmax.f32 %v1672_v56, 0.0  ;;  %v1689_v46 = vmax.f32 %v1673_v26, 0.0  ;;  %v1690_v54 = vmax.f32 %v1674_v40, 0.0  ;;  %v1691_v18 = vmax.f32 %v1675_v52, 0.0 }
 0x1c4   :  { %1696 = vst [vmem:[%s3196_s5 + $0x20] sm:$0xff] %v1680_v41  ;;  %1697 = vst [vmem:[%s3196_s5 + $0x28] sm:$0xff] %v1681_v2 }
 0x1c5   :  { %1698 = vst [vmem:[%s3196_s5 + $0x30] sm:$0xff] %v1682_v4  ;;  %1699 = vst [vmem:[%s3196_s5 + $0x38] sm:$0xff] %v1683_v9 }
 0x1c6   :  { %1700 = vst [vmem:[%s3196_s5 + $0x40] sm:$0xff] %v1684_v36  ;;  %1701 = vst [vmem:[%s3196_s5 + $0x48] sm:$0xff] %v1685_v44 }
 0x1c7   :  { %1702 = vst [vmem:[%s3196_s5 + $0x50] sm:$0xff] %v1686_v20  ;;  %1703 = vst [vmem:[%s3196_s5 + $0x58] sm:$0xff] %v1687_v30 }
 0x1c8   :  { %1704 = vst [vmem:[%s3196_s5 + $0x60] sm:$0xff] %v1688_v27  ;;  %1705 = vst [vmem:[%s3196_s5 + $0x68] sm:$0xff] %v1689_v46 }
 0x1c9   :  { %1706 = vst [vmem:[%s3196_s5 + $0x70] sm:$0xff] %v1690_v54  ;;  %1707 = vst [vmem:[%s3196_s5 + $0x78] sm:$0xff] %v1691_v18 }

// kernel: _lambda_.23
= control target key start
LH: loop header
LB: loop body
LE: loop exit
PB: predicated region body
PF: predicated region fallthrough
CT: control target
= control target key end

     0   :  { %s1662_s1 = inlined_call_operand.vmem [shape: bf16[1152,128], index: 1, kind: input, shape index: {}]   ;;  %s1663_s0 = inlined_call_operand.vmem [shape: bf16[32,1152], index: 0, kind: input, shape index: {}]   ;;  %s1664_s2 = inlined_call_operand.vmem [shape: f32[1,128], index: 2, kind: input, shape index: {}]   ;;  %s1665_s3 = inlined_call_operand.vmem [shape: f32[1,128], index: 3, kind: input, shape index: {}]   ;;  %s1666_s4 = inlined_call_operand.vmem [shape: f32[32,128], index: 4, kind: output, shape index: {}]  }
   0x1   :  { %v1249_v0 = vld [vmem:[%s1662_s1 + $0x78] sm:$0xff]   ;;  %v1253_v4 = vld [vmem:[%s1662_s1 + $0x70] sm:$0xff]   ;;  %v1257_v8 = vld [vmem:[%s1662_s1 + $0x68] sm:$0xff]  }
   0x2   :  { %v1250_v1 = vld [vmem:[%s1662_s1 + $0xf8] sm:$0xff]   ;;  %1107 = vmatprep.subr.bf16.mxu0 %v1249_v0  ;;  %v1254_v5 = vld [vmem:[%s1662_s1 + $0xf0] sm:$0xff]   ;;  %v1258_v9 = vld [vmem:[%s1662_s1 + $0xe8] sm:$0xff]  }
   0x3   :  { %v1251_v2 = vld [vmem:[%s1662_s1 + $0x38] sm:$0xff]   ;;  %1135 = vmatprep.subr.bf16.mxu1 %v1250_v1  ;;  %v1255_v6 = vld [vmem:[%s1662_s1 + $0x30] sm:$0xff]   ;;  %v1259_v10 = vld [vmem:[%s1662_s1 + $0x28] sm:$0xff]  }
   0x4   :  { %v1252_v3 = vld [vmem:[%s1662_s1 + $0xb8] sm:$0xff]   ;;  %1108 = vmatpush3.bf16.msra.mxu0 %v1251_v2  ;;  %v1256_v7 = vld [vmem:[%s1662_s1 + $0xb0] sm:$0xff]   ;;  %v1260_v11 = vld [vmem:[%s1662_s1 + $0xa8] sm:$0xff]  }
   0x5   :  { %1136 = vmatpush3.bf16.msra.mxu1 %v1252_v3  ;;  %1109 = vmatprep.subr.bf16.mxu0 %v1253_v4  ;;  %v1261_v12 = vld [vmem:[%s1662_s1 + $0x60] sm:$0xff]   ;;  %v1265_v16 = vld [vmem:[%s1662_s1 + $0x58] sm:$0xff]   ;;  %v1269_v20 = vld [vmem:[%s1662_s1 + $0x50] sm:$0xff]  }
   0x6   :  { %1137 = vmatprep.subr.bf16.mxu1 %v1254_v5  ;;  %v1262_v13 = vld [vmem:[%s1662_s1 + $0xe0] sm:$0xff]   ;;  %v1266_v17 = vld [vmem:[%s1662_s1 + $0xd8] sm:$0xff]   ;;  %v1270_v21 = vld [vmem:[%s1662_s1 + $0xd0] sm:$0xff]  }
   0x7   :  { %v1263_v14 = vld [vmem:[%s1662_s1 + $0x20] sm:$0xff]   ;;  %v1267_v18 = vld [vmem:[%s1662_s1 + $0x18] sm:$0xff]   ;;  %v1271_v22 = vld [vmem:[%s1662_s1 + $0x10] sm:$0xff]  }
   0x8   :  { %1110 = vmatpush3.bf16.msra.mxu0 %v1255_v6  ;;  %v1264_v15 = vld [vmem:[%s1662_s1 + $0xa0] sm:$0xff]   ;;  %v1268_v19 = vld [vmem:[%s1662_s1 + $0x98] sm:$0xff]   ;;  %v1272_v23 = vld [vmem:[%s1662_s1 + $0x90] sm:$0xff]  }
   0x9   :  { %1138 = vmatpush3.bf16.msra.mxu1 %v1256_v7  ;;  %1111 = vmatprep.subr.bf16.mxu0 %v1257_v8  ;;  %v1273_v24 = vld [vmem:[%s1662_s1 + $0x48] sm:$0xff]   ;;  %v1277_v28 = vld [vmem:[%s1662_s1 + $0x40] sm:$0xff]   ;;  %v1287_v36 = vld [vmem:[%s1662_s1 + $0x178] sm:$0xff]  }
   0xa   :  { %1139 = vmatprep.subr.bf16.mxu1 %v1258_v9  ;;  %v1274_v25 = vld [vmem:[%s1662_s1 + $0xc8] sm:$0xff]   ;;  %v1278_v29 = vld [vmem:[%s1662_s1 + $0xc0] sm:$0xff]   ;;  %v1288_v37 = vld [vmem:[%s1662_s1 + $0x138] sm:$0xff]  }
   0xb   :  { %v1275_v26 = vld [vmem:[%s1662_s1 + $0x8] sm:$0xff]   ;;  %v1279_v30 = vld [vmem:[%s1662_s1] sm:$0xff]   ;;  %v1289_v38 = vld [vmem:[%s1662_s1 + $0x1f8] sm:$0xff]  }
   0xc   :  { %1112 = vmatpush3.bf16.msra.mxu0 %v1259_v10  ;;  %v1276_v27 = vld [vmem:[%s1662_s1 + $0x88] sm:$0xff]   ;;  %v1280_v31 = vld [vmem:[%s1662_s1 + $0x80] sm:$0xff]   ;;  %v1290_v39 = vld [vmem:[%s1662_s1 + $0x1b8] sm:$0xff]  }
   0xd   :  { %1140 = vmatpush3.bf16.msra.mxu1 %v1260_v11  ;;  %1113 = vmatprep.subr.bf16.mxu0 %v1261_v12  ;;  %v1281_v32 = vld [vmem:[%s1663_s0] ss:$36 sps:$4 sm:$0xff]   ;;  %v1284_v34 = vld [vmem:[%s1663_s0 + $0x8] ss:$36 sps:$4 sm:$0xff]   ;;  %v1291_v40 = vld [vmem:[%s1662_s1 + $0x170] sm:$0xff]  }
   0xe   :  { %1141 = vmatprep.subr.bf16.mxu1 %v1262_v13  ;;  %v1283_v33 = vld [vmem:[%s1663_s0 + $0x4] ss:$36 sps:$4 sm:$0xff]   ;;  %v1286_v35 = vld [vmem:[%s1663_s0 + $0xc] ss:$36 sps:$4 sm:$0xff]   ;;  %v1303_v52 = vld [vmem:[%s1662_s1 + $0x158] sm:$0xff]  }
   0xf   :  { %738 = vmatprep.mubr.bf16.mxu0 %v1283_v33  ;;  %787 = vmatprep.mubr.bf16.mxu1 %v1286_v35  ;;  %v1292_v41 = vld [vmem:[%s1662_s1 + $0x130] sm:$0xff]   ;;  %v1295_v44 = vld [vmem:[%s1662_s1 + $0x168] sm:$0xff]   ;;  %v1299_v48 = vld [vmem:[%s1662_s1 + $0x160] sm:$0xff]  }
  0x10   :  { %1114 = vmatpush3.bf16.msra.mxu0 %v1263_v14  ;;  %v1293_v42 = vld [vmem:[%s1662_s1 + $0x1f0] sm:$0xff]   ;;  %v1296_v45 = vld [vmem:[%s1662_s1 + $0x128] sm:$0xff]   ;;  %v1300_v49 = vld [vmem:[%s1662_s1 + $0x120] sm:$0xff]  }
  0x11   :  { %1142 = vmatpush3.bf16.msra.mxu1 %v1264_v15  ;;  %1115 = vmatprep.subr.bf16.mxu0 %v1265_v16  ;;  %v1294_v43 = vld [vmem:[%s1662_s1 + $0x1b0] sm:$0xff]   ;;  %v1297_v46 = vld [vmem:[%s1662_s1 + $0x1e8] sm:$0xff]   ;;  %v1301_v50 = vld [vmem:[%s1662_s1 + $0x1e0] sm:$0xff]  }
  0x12   :  { %1143 = vmatprep.subr.bf16.mxu1 %v1266_v17  ;;  %v1298_v47 = vld [vmem:[%s1662_s1 + $0x1a8] sm:$0xff]   ;;  %v1302_v51 = vld [vmem:[%s1662_s1 + $0x1a0] sm:$0xff]   ;;  %v1304_v53 = vld [vmem:[%s1662_s1 + $0x118] sm:$0xff]  }
  0x13   :  { %v1305_v54 = vld [vmem:[%s1663_s0 + $0x4c] ss:$36 sps:$4 sm:$0xff]   ;;  %v1307_v55 = vld [vmem:[%s1663_s0 + $0x54] ss:$36 sps:$4 sm:$0xff]   ;;  %v1321_v4 = vld [vmem:[%s1662_s1 + $0x140] sm:$0xff]  }
  0x14   :  { %1116 = vmatpush3.bf16.msra.mxu0 %v1267_v18  ;;  %v1309_v56 = vld [vmem:[%s1662_s1 + $0x1d8] sm:$0xff]   ;;  %v1310_v57 = vld [vmem:[%s1663_s0 + $0x48] ss:$36 sps:$4 sm:$0xff]   ;;  %v1311_v58 = vld [vmem:[%s1663_s0 + $0x50] ss:$36 sps:$4 sm:$0xff]  }
  0x15   :  { %1144 = vmatpush3.bf16.msra.mxu1 %v1268_v19  ;;  %1117 = vmatprep.subr.bf16.mxu0 %v1269_v20  ;;  %v1312_v59 = vld [vmem:[%s1662_s1 + $0x198] sm:$0xff]   ;;  %v1313_v60 = vld [vmem:[%s1662_s1 + $0x150] sm:$0xff]   ;;  %v1317_v0 = vld [vmem:[%s1662_s1 + $0x148] sm:$0xff]  }
  0x16   :  { %1145 = vmatprep.subr.bf16.mxu1 %v1270_v21  ;;  %v1314_v61 = vld [vmem:[%s1662_s1 + $0x110] sm:$0xff]   ;;  %v1318_v1 = vld [vmem:[%s1662_s1 + $0x108] sm:$0xff]   ;;  %v1322_v5 = vld [vmem:[%s1662_s1 + $0x100] sm:$0xff]  }
  0x17   :  { %v1315_v62 = vld [vmem:[%s1662_s1 + $0x1d0] sm:$0xff]   ;;  %v1319_v2 = vld [vmem:[%s1662_s1 + $0x1c8] sm:$0xff]   ;;  %v1323_v6 = vld [vmem:[%s1662_s1 + $0x1c0] sm:$0xff]  }
  0x18   :  { %1118 = vmatpush3.bf16.msra.mxu0 %v1271_v22  ;;  %v1316_v63 = vld [vmem:[%s1662_s1 + $0x190] sm:$0xff]   ;;  %v1320_v3 = vld [vmem:[%s1662_s1 + $0x188] sm:$0xff]   ;;  %v1327_v9 = vld [vmem:[%s1662_s1 + $0x180] sm:$0xff]  }
  0x19   :  { %1146 = vmatpush3.bf16.msra.mxu1 %v1272_v23  ;;  %1119 = vmatprep.subr.bf16.mxu0 %v1273_v24  ;;  %v1324_v7 = vld [vmem:[%s1663_s0 + $0x10] ss:$36 sps:$4 sm:$0xff]   ;;  %v1328_v10 = vld [vmem:[%s1662_s1 + $0x238] sm:$0xff]   ;;  %v1336_v16 = vld [vmem:[%s1662_s1 + $0x228] sm:$0xff]  }
  0x1a   :  { %1147 = vmatprep.subr.bf16.mxu1 %v1274_v25  ;;  %v1326_v8 = vld [vmem:[%s1663_s0 + $0x14] ss:$36 sps:$4 sm:$0xff]   ;;  %v1331_v12 = vld [vmem:[%s1663_s0 + $0x1c] ss:$36 sps:$4 sm:$0xff]   ;;  %v1337_v17 = vld [vmem:[%s1663_s0 + $0x64] ss:$36 sps:$4 sm:$0xff]  }
  0x1b   :  { %v1329_v11 = vld [vmem:[%s1663_s0 + $0x18] ss:$36 sps:$4 sm:$0xff]   ;;  %v1332_v13 = vld [vmem:[%s1662_s1 + $0x230] sm:$0xff]   ;;  %v1339_v18 = vld [vmem:[%s1663_s0 + $0x60] ss:$36 sps:$4 sm:$0xff]  }
  0x1c   :  { %1120 = vmatpush3.bf16.msra.mxu0 %v1275_v26  ;;  %v1333_v14 = vld [vmem:[%s1663_s0 + $0x5c] ss:$36 sps:$4 sm:$0xff]   ;;  %v1342_v22 = vld [vmem:[%s1662_s1 + $0x210] sm:$0xff]   ;;  %v1343_v23 = vld [vmem:[%s1662_s1 + $0x208] sm:$0xff]  }
  0x1d   :  { %1148 = vmatpush3.bf16.msra.mxu1 %v1276_v27  ;;  %1121 = vmatprep.subr.bf16.mxu0 %v1277_v28  ;;  %v1335_v15 = vld [vmem:[%s1663_s0 + $0x58] ss:$36 sps:$4 sm:$0xff]   ;;  %v1340_v19 = vld [vmem:[%s1662_s1 + $0x220] sm:$0xff]   ;;  %v1346_v25 = vld [vmem:[%s1663_s0 + $0x68] ss:$36 sps:$4 sm:$0xff]  }
  0x1e   :  { %1149 = vmatprep.subr.bf16.mxu1 %v1278_v29  ;;  %v1341_v20 = vld [vmem:[%s1662_s1 + $0x218] sm:$0xff]   ;;  %v1345_v21 = vld [vmem:[%s1663_s0 + $0x20] ss:$36 sps:$4 sm:$0xff]  }
  0x1f   :  { %v1344_v24 = vld [vmem:[%s1662_s1 + $0x200] sm:$0xff]  }
  0x20   :  { %1122 = vmatpush3.bf16.msra.mxu0 %v1279_v30 }
  0x21   :  { %1150 = vmatpush3.bf16.msra.mxu1 %v1280_v31  ;;  %1163 = vmatprep.subr.bf16.mxu0 %v1287_v36 }
  0x22   :  { %1191 = vmatprep.subr.bf16.mxu1 %v1289_v38 }
  0x23   :  { %739 = vmatmul.mubr.bf16.vlgmr.msra.gmra.mxu0 %v1281_v32 }
  0x24   :  { %788 = vmatmul.mubr.bf16.vlgmr.msra.gmra.mxu1 %v1284_v34  ;;  %1164 = vmatpush3.bf16.msra.mxu0 %v1288_v37 }
  0x25   :  { %1192 = vmatpush3.bf16.msra.mxu1 %v1290_v39  ;;  %1165 = vmatprep.subr.bf16.mxu0 %v1291_v40 }
  0x26   :  { %1193 = vmatprep.subr.bf16.mxu1 %v1293_v42  ;;  %746 = vmatprep.mubr.bf16.mxu0 %v1305_v54 }
  0x27   :  { %795 = vmatprep.mubr.bf16.mxu1 %v1307_v55 }
  0x28   :  { %1166 = vmatpush3.bf16.msra.mxu0 %v1292_v41 }
  0x29   :  { %1194 = vmatpush3.bf16.msra.mxu1 %v1294_v43  ;;  %1167 = vmatprep.subr.bf16.mxu0 %v1295_v44 }
  0x2a   :  { %1195 = vmatprep.subr.bf16.mxu1 %v1297_v46 }
  0x2b   :  { %747 = vmatmul.mubr.bf16.gmra.mxu0 %v1310_v57 }
  0x2c   :  { %1168 = vmatpush3.bf16.msra.mxu0 %v1296_v45  ;;  %796 = vmatmul.mubr.bf16.gmra.mxu1 %v1311_v58 }
  0x2d   :  { %1196 = vmatpush3.bf16.msra.mxu1 %v1298_v47  ;;  %1169 = vmatprep.subr.bf16.mxu0 %v1299_v48 }
  0x2e   :  { %1197 = vmatprep.subr.bf16.mxu1 %v1301_v50  ;;  %836 = vmatprep.mubr.bf16.mxu0 %v1326_v8 }
  0x2f   :  { %885 = vmatprep.mubr.bf16.mxu1 %v1331_v12 }
  0x30   :  { %1170 = vmatpush3.bf16.msra.mxu0 %v1300_v49 }
  0x31   :  { %1198 = vmatpush3.bf16.msra.mxu1 %v1302_v51  ;;  %1171 = vmatprep.subr.bf16.mxu0 %v1303_v52 }
  0x32   :  { %1199 = vmatprep.subr.bf16.mxu1 %v1309_v56 }
  0x34   :  { %1172 = vmatpush3.bf16.msra.mxu0 %v1304_v53 }
  0x35   :  { %1200 = vmatpush3.bf16.msra.mxu1 %v1312_v59  ;;  %1173 = vmatprep.subr.bf16.mxu0 %v1313_v60 }
  0x36   :  { %1201 = vmatprep.subr.bf16.mxu1 %v1315_v62 }
  0x38   :  { %1174 = vmatpush3.bf16.msra.mxu0 %v1314_v61 }
  0x39   :  { %1202 = vmatpush3.bf16.msra.mxu1 %v1316_v63  ;;  %1175 = vmatprep.subr.bf16.mxu0 %v1317_v0 }
  0x3a   :  { %1203 = vmatprep.subr.bf16.mxu1 %v1319_v2 }
  0x3c   :  { %1176 = vmatpush3.bf16.msra.mxu0 %v1318_v1 }
  0x3d   :  { %1204 = vmatpush3.bf16.msra.mxu1 %v1320_v3  ;;  %1177 = vmatprep.subr.bf16.mxu0 %v1321_v4 }
  0x3e   :  { %1205 = vmatprep.subr.bf16.mxu1 %v1323_v6 }
  0x40   :  { %1178 = vmatpush3.bf16.msra.mxu0 %v1322_v5 }
  0x41   :  { %1206 = vmatpush3.bf16.msra.mxu1 %v1327_v9  ;;  %1229 = vmatprep.subr.bf16.mxu0 %v1328_v10 }
  0x43   :  { %837 = vmatmul.mubr.bf16.vlgmr.msra.gmra.mxu0 %v1324_v7 }
  0x44   :  { %1230 = vmatpush3.bf16.msra.mxu0 %v1328_v10  ;;  %886 = vmatmul.mubr.bf16.vlgmr.msra.gmra.mxu1 %v1329_v11 }
  0x45   :  { %1231 = vmatprep.subr.bf16.mxu0 %v1332_v13  ;;  %844 = vmatprep.mubr.bf16.mxu0 %v1333_v14 }
  0x46   :  { %893 = vmatprep.mubr.bf16.mxu1 %v1337_v17 }
  0x48   :  { %1232 = vmatpush3.bf16.msra.mxu0 %v1332_v13 }
  0x49   :  { %1233 = vmatprep.subr.bf16.mxu0 %v1336_v16 }
  0x4b   :  { %845 = vmatmul.mubr.bf16.gmra.mxu0 %v1335_v15 }
  0x4c   :  { %1234 = vmatpush3.bf16.msra.mxu0 %v1336_v16  ;;  %894 = vmatmul.mubr.bf16.gmra.mxu1 %v1339_v18 }
  0x4d   :  { %1235 = vmatprep.subr.bf16.mxu0 %v1340_v19  ;;  %1245 = vmatprep.mubr.bf16.mxu0 %v1345_v21 }
  0x50   :  { %1236 = vmatpush3.bf16.msra.mxu0 %v1340_v19 }
  0x51   :  { %1237 = vmatprep.subr.bf16.mxu0 %v1341_v20 }
  0x54   :  { %1238 = vmatpush3.bf16.msra.mxu0 %v1341_v20 }
  0x55   :  { %1239 = vmatprep.subr.bf16.mxu0 %v1342_v22 }
  0x58   :  { %1240 = vmatpush3.bf16.msra.mxu0 %v1342_v22 }
  0x59   :  { %1241 = vmatprep.subr.bf16.mxu0 %v1343_v23 }
  0x5c   :  { %1242 = vmatpush3.bf16.msra.mxu0 %v1343_v23 }
  0x5d   :  { %1243 = vmatprep.subr.bf16.mxu0 %v1344_v24 }
  0x60   :  { %1244 = vmatpush3.bf16.msra.mxu0 %v1344_v24 }
  0x63   :  { %1246 = vmatmul.mubr.bf16.vlgmr.msra.gmra.mxu0 %v1346_v25 }
  0xe3   :  { %v1123_v26 = vpop.f32.mrf.mxu0 }
  0xe4   :  { %v1151_v27 = vpop.f32.mrf.mxu1 }
  0xe5   :  { %v1124_v28 = vpop.f32.mrf.mxu0 }
  0xe6   :  { %v1152_v29 = vpop.f32.mrf.mxu1  ;;  %v1125_v55 = vadd.f32 %v1124_v28, %v1123_v26 }
  0xe7   :  { %v1126_v30 = vpop.f32.mrf.mxu0  ;;  %v1153_v56 = vadd.f32 %v1152_v29, %v1151_v27 }
  0xe8   :  { %v1154_v31 = vpop.f32.mrf.mxu1 }
  0xe9   :  { %v1127_v32 = vpop.f32.mrf.mxu0  ;;  %v790_v2 = vadd.f32 %v1153_v56, %v1125_v55 }
  0xea   :  { %v1155_v34 = vpop.f32.mrf.mxu1  ;;  %v1128_v57 = vadd.f32 %v1127_v32, %v1126_v30 }
  0xeb   :  { %v1129_v33 = vpop.f32.mrf.mxu0  ;;  %v1156_v58 = vadd.f32 %v1155_v34, %v1154_v31 }
  0xec   :  { %v1157_v35 = vpop.f32.mrf.mxu1 }
  0xed   :  { %v1130_v36 = vpop.f32.mrf.mxu0  ;;  %v793_v5 = vadd.f32 %v1156_v58, %v1128_v57  ;;  %v986_v58 = vlaneseq }
  0xee   :  { %v1158_v37 = vpop.f32.mrf.mxu1  ;;  %v1131_v59 = vadd.f32 %v1130_v36, %v1129_v33 }
  0xef   :  { %v1132_v38 = vpop.f32.mrf.mxu0  ;;  %v1159_v60 = vadd.f32 %v1158_v37, %v1157_v35 }
  0xf0   :  { %v1160_v39 = vpop.f32.mrf.mxu1 }
  0xf1   :  { %v1133_v40 = vpop.f32.mrf.mxu0  ;;  %v798_v6 = vadd.f32 %v1159_v60, %v1131_v59  ;;  %v987_v59 = vshrl.u32 %v986_v58, 7  ;;  %v951_v60 = vld [vmem:[%s1664_s2] sm:$0x1] }
  0xf2   :  { %v1161_v42 = vpop.f32.mrf.mxu1  ;;  %v1134_v62 = vadd.f32 %v1133_v40, %v1132_v38 }
  0xf3   :  { %v1162_v63 = vadd.f32 %v1161_v42, %v1160_v39 }
  0xf5   :  { %v801_v10 = vadd.f32 %v1162_v63, %v1134_v62 }
 0x103   :  { %v1179_v41 = vpop.f32.mrf.mxu0 }
 0x104   :  { %v1207_v44 = vpop.f32.mrf.mxu1 }
 0x105   :  { %v1180_v43 = vpop.f32.mrf.mxu0 }
 0x106   :  { %v1208_v46 = vpop.f32.mrf.mxu1  ;;  %v1181_v61 = vadd.f32 %v1180_v43, %v1179_v41 }
 0x107   :  { %v1182_v45 = vpop.f32.mrf.mxu0  ;;  %v1209_v8 = vadd.f32 %v1208_v46, %v1207_v44 }
 0x108   :  { %v1210_v48 = vpop.f32.mrf.mxu1  ;;  %v839_v7 = vadd.f32 %v1181_v61, %v790_v2  ;;  %v988_v61 = vsub.s32 0, %v987_v59 }
 0x109   :  { %v1183_v47 = vpop.f32.mrf.mxu0 }
 0x10a   :  { %v1211_v50 = vpop.f32.mrf.mxu1  ;;  %v1184_v3 = vadd.f32 %v1183_v47, %v1182_v45  ;;  %v888_v20 = vadd.f32 %v1209_v8, %v839_v7 }
 0x10b   :  { %v1185_v49 = vpop.f32.mrf.mxu0  ;;  %v1212_v14 = vadd.f32 %v1211_v50, %v1210_v48 }
 0x10c   :  { %v1213_v52 = vpop.f32.mrf.mxu1  ;;  %v842_v13 = vadd.f32 %v1184_v3, %v793_v5 }
 0x10d   :  { %v1186_v51 = vpop.f32.mrf.mxu0 }
 0x10e   :  { %v1214_v54 = vpop.f32.mrf.mxu1  ;;  %v1187_v4 = vadd.f32 %v1186_v51, %v1185_v49  ;;  %v891_v24 = vadd.f32 %v1212_v14, %v842_v13 }
 0x10f   :  { %v1188_v53 = vpop.f32.mrf.mxu0  ;;  %v1215_v16 = vadd.f32 %v1214_v54, %v1213_v52 }
 0x110   :  { %v1216_v1 = vpop.f32.mrf.mxu1  ;;  %v847_v15 = vadd.f32 %v1187_v4, %v798_v6 }
 0x111   :  { %v1189_v0 = vpop.f32.mrf.mxu0 }
 0x112   :  { %v1190_v9 = vadd.f32 %v1189_v0, %v1188_v53  ;;  %v1217_v11 = vpop.f32.mrf.mxu1  ;;  %v896_v22 = vadd.f32 %v1215_v16, %v847_v15  ;;  %v952_v0 = vld [vmem:[%s1665_s3] sm:$0x1] }
 0x113   :  { %v1218_v19 = vadd.f32 %v1217_v11, %v1216_v1 }
 0x114   :  { %v850_v18 = vadd.f32 %v1190_v9, %v801_v10 }
 0x116   :  { %v899_v27 = vadd.f32 %v1218_v19, %v850_v18 }
 0x123   :  { %v1247_v12 = vpop.f32.mrf.mxu0 }
 0x124   :  { %v945_v26 = vadd.f32 %v1247_v12, %v896_v22 }
 0x125   :  { %v936_v17 = vpop.f32.mrf.mxu0 }
 0x126   :  { %v937_v23 = vadd.f32 %v936_v17, %v888_v20  ;;  %v965_v33 = vmul.f32 %v945_v26, %v945_v26 }
 0x127   :  { %v1248_v21 = vpop.f32.mrf.mxu0 }
 0x128   :  { %v963_v29 = vmul.f32 %v937_v23, %v937_v23  ;;  %v948_v30 = vadd.f32 %v1248_v21, %v899_v27 }
 0x129   :  { %v939_v25 = vpop.f32.mrf.mxu0 }
 0x12a   :  { %v940_v28 = vadd.f32 %v939_v25, %v891_v24  ;;  %v966_v36 = vmul.f32 %v948_v30, %v948_v30 }
 0x12c   :  { %v953_v31 = vadd.f32 %v940_v28, %v937_v23  ;;  %v964_v32 = vmul.f32 %v940_v28, %v940_v28 }
 0x12e   :  { %v954_v34 = vadd.f32 %v953_v31, %v945_v26  ;;  %v967_v35 = vadd.f32 %v964_v32, %v963_v29 }
 0x130   :  { %v955_v37 = vadd.f32 %v954_v34, %v948_v30  ;;  %v968_v38 = vadd.f32 %v967_v35, %v965_v33 }
 0x132   :  { %v956_v39 = vrot.slane %v955_v37, 4  ;;  %v969_v40 = vadd.f32 %v968_v38, %v966_v36 }
 0x134   :  { %v957_v41 = vadd.f32 %v956_v39, %v955_v37  ;;  %v970_v42 = vrot.slane %v969_v40, 4 }
 0x136   :  { %v958_v43 = vrot.slane %v957_v41, 2  ;;  %v971_v44 = vadd.f32 %v970_v42, %v969_v40 }
 0x138   :  { %v959_v45 = vadd.f32 %v958_v43, %v957_v41  ;;  %v972_v46 = vrot.slane %v971_v44, 2 }
 0x13a   :  { %v960_v47 = vrot.slane %v959_v45, 1  ;;  %v973_v48 = vadd.f32 %v972_v46, %v971_v44 }
 0x13c   :  { %v961_v49 = vadd.f32 %v960_v47, %v959_v45  ;;  %v974_v50 = vrot.slane %v973_v48, 1 }
 0x13e   :  { %v962_v51 = vmul.f32 0.03125, %v961_v49  ;;  %v975_v52 = vadd.f32 %v974_v50, %v973_v48 }
 0x140   :  { %v976_v53 = vmul.f32 0.03125, %v975_v52  ;;  %v977_v54 = vmul.f32 %v962_v51, %v962_v51 }
 0x142   :  { %v978_v55 = vsub.f32 %v976_v53, %v977_v54 }
 0x144   :  { %v979_v56 = vmax.f32 %v978_v55, 0.0 }
 0x146   :  { %v980_v57 = vadd.f32 1e-05, %v979_v56 }
 0x148   :  { %1347 = vrsqrt.f32 %v980_v57 }
 0x155   :  { %v1348_v62 = vpop.eup %1347 }
 0x156   :  { %v982_v63 = vmul.f32 %v1348_v62, %v951_v60 }
 0x158   :  { %v983_v1 = vmul.f32 %v982_v63, %v962_v51  ;;  %v989_v2 = vrot.slane %v982_v63, %v988_v61 }
 0x15a   :  { %v984_v3 = vsub.f32 %v952_v0, %v983_v1  ;;  %v991_v4 = vmul.f32 %v989_v2, %v937_v23  ;;  %v992_v5 = vmul.f32 %v989_v2, %v940_v28  ;;  %v993_v6 = vmul.f32 %v989_v2, %v945_v26 }
 0x15b   :  { %v994_v7 = vmul.f32 %v989_v2, %v948_v30 }
 0x15c   :  { %v999_v8 = vrot.slane %v984_v3, %v988_v61 }
 0x15e   :  { %v1001_v9 = vadd.f32 %v999_v8, %v991_v4  ;;  %v1002_v10 = vadd.f32 %v999_v8, %v992_v5  ;;  %v1003_v11 = vadd.f32 %v999_v8, %v993_v6  ;;  %v1004_v12 = vadd.f32 %v999_v8, %v994_v7 }
 0x160   :  { %v1005_v13 = vmax.f32 %v1001_v9, 0.0  ;;  %v1006_v14 = vmax.f32 %v1002_v10, 0.0  ;;  %v1007_v15 = vmax.f32 %v1003_v11, 0.0  ;;  %v1008_v16 = vmax.f32 %v1004_v12, 0.0 }
 0x162   :  { %1009 = vst [vmem:[%s1666_s4] sm:$0xff] %v1005_v13  ;;  %1010 = vst [vmem:[%s1666_s4 + $0x8] sm:$0xff] %v1006_v14 }
 0x163   :  { %1011 = vst [vmem:[%s1666_s4 + $0x10] sm:$0xff] %v1007_v15  ;;  %1012 = vst [vmem:[%s1666_s4 + $0x18] sm:$0xff] %v1008_v16 }

// kernel: _lambda_.24
= control target key start
LH: loop header
LB: loop body
LE: loop exit
PB: predicated region body
PF: predicated region fallthrough
CT: control target
= control target key end

     0   :  { %v182_v42 = vlaneseq  ;;  %s334_s1 = inlined_call_operand.vmem [shape: bf16[128,128], index: 1, kind: input, shape index: {}]   ;;  %s335_s0 = inlined_call_operand.vmem [shape: bf16[32,128], index: 0, kind: input, shape index: {}]   ;;  %s336_s2 = inlined_call_operand.vmem [shape: f32[1,128], index: 2, kind: input, shape index: {}]   ;;  %s337_s3 = inlined_call_operand.vmem [shape: f32[1,128], index: 3, kind: input, shape index: {}]   ;;  %s338_s4 = inlined_call_operand.vmem [shape: f32[32,128], index: 4, kind: output, shape index: {}]  }
   0x1   :  { %v249_v0 = vld [vmem:[%s334_s1 + $0x38] sm:$0xff]   ;;  %v250_v1 = vld [vmem:[%s334_s1 + $0x30] sm:$0xff]   ;;  %v251_v2 = vld [vmem:[%s334_s1 + $0x28] sm:$0xff]  }
   0x2   :  { %229 = vmatprep.subr.bf16.mxu0 %v249_v0  ;;  %v252_v3 = vld [vmem:[%s334_s1 + $0x20] sm:$0xff]   ;;  %v253_v5 = vld [vmem:[%s334_s1 + $0x18] sm:$0xff]   ;;  %v254_v6 = vld [vmem:[%s334_s1 + $0x10] sm:$0xff]   ;;  %v183_v43 = vshrl.u32 %v182_v42, 7 }
   0x3   :  { %230 = vmatpush3.bf16.msra.mxu0 %v249_v0  ;;  %v257_v4 = vld [vmem:[%s335_s0] sm:$0xff]   ;;  %v255_v7 = vld [vmem:[%s334_s1 + $0x8] sm:$0xff]  }
   0x4   :  { %231 = vmatprep.subr.bf16.mxu0 %v250_v1  ;;  %245 = vmatprep.mubr.bf16.mxu0 %v257_v4  ;;  %v256_v8 = vld [vmem:[%s334_s1] sm:$0xff]   ;;  %v258_v9 = vld [vmem:[%s335_s0 + $0x8] sm:$0xff]   ;;  %v184_v45 = vsub.s32 0, %v183_v43 }
   0x5   :  { %v147_v44 = vld [vmem:[%s336_s2] sm:$0x1] }
   0x6   :  { %v148_v48 = vld [vmem:[%s337_s3] sm:$0x1] }
   0x7   :  { %232 = vmatpush3.bf16.msra.mxu0 %v250_v1 }
   0x8   :  { %233 = vmatprep.subr.bf16.mxu0 %v251_v2 }
   0xb   :  { %234 = vmatpush3.bf16.msra.mxu0 %v251_v2 }
   0xc   :  { %235 = vmatprep.subr.bf16.mxu0 %v252_v3 }
   0xf   :  { %236 = vmatpush3.bf16.msra.mxu0 %v252_v3 }
  0x10   :  { %237 = vmatprep.subr.bf16.mxu0 %v253_v5 }
  0x13   :  { %238 = vmatpush3.bf16.msra.mxu0 %v253_v5 }
  0x14   :  { %239 = vmatprep.subr.bf16.mxu0 %v254_v6 }
  0x17   :  { %240 = vmatpush3.bf16.msra.mxu0 %v254_v6 }
  0x18   :  { %241 = vmatprep.subr.bf16.mxu0 %v255_v7 }
  0x1b   :  { %242 = vmatpush3.bf16.msra.mxu0 %v255_v7 }
  0x1c   :  { %243 = vmatprep.subr.bf16.mxu0 %v256_v8 }
  0x1f   :  { %244 = vmatpush3.bf16.msra.mxu0 %v256_v8 }
  0x22   :  { %246 = vmatmul.mubr.bf16.vlgmr.msra.gmra.mxu0 %v258_v9 }
  0xe2   :  { %v247_v10 = vpop.f32.mrf.mxu0 }
  0xe3   :  { %v161_v17 = vmul.f32 %v247_v10, %v247_v10 }
  0xe4   :  { %v132_v11 = vpop.f32.mrf.mxu0 }
  0xe5   :  { %v159_v14 = vmul.f32 %v132_v11, %v132_v11 }
  0xe6   :  { %v248_v12 = vpop.f32.mrf.mxu0 }
  0xe7   :  { %v162_v20 = vmul.f32 %v248_v12, %v248_v12 }
  0xe8   :  { %v135_v13 = vpop.f32.mrf.mxu0 }
  0xe9   :  { %v149_v15 = vadd.f32 %v135_v13, %v132_v11  ;;  %v160_v16 = vmul.f32 %v135_v13, %v135_v13 }
  0xeb   :  { %v150_v18 = vadd.f32 %v247_v10, %v149_v15  ;;  %v163_v19 = vadd.f32 %v160_v16, %v159_v14 }
  0xed   :  { %v151_v21 = vadd.f32 %v248_v12, %v150_v18  ;;  %v164_v22 = vadd.f32 %v163_v19, %v161_v17 }
  0xef   :  { %v152_v23 = vrot.slane %v151_v21, 4  ;;  %v165_v24 = vadd.f32 %v164_v22, %v162_v20 }
  0xf1   :  { %v153_v25 = vadd.f32 %v152_v23, %v151_v21  ;;  %v166_v26 = vrot.slane %v165_v24, 4 }
  0xf3   :  { %v154_v27 = vrot.slane %v153_v25, 2  ;;  %v167_v28 = vadd.f32 %v166_v26, %v165_v24 }
  0xf5   :  { %v155_v29 = vadd.f32 %v154_v27, %v153_v25  ;;  %v168_v30 = vrot.slane %v167_v28, 2 }
  0xf7   :  { %v156_v31 = vrot.slane %v155_v29, 1  ;;  %v169_v32 = vadd.f32 %v168_v30, %v167_v28 }
  0xf9   :  { %v157_v33 = vadd.f32 %v156_v31, %v155_v29  ;;  %v170_v34 = vrot.slane %v169_v32, 1 }
  0xfb   :  { %v158_v35 = vmul.f32 0.03125, %v157_v33  ;;  %v171_v36 = vadd.f32 %v170_v34, %v169_v32 }
  0xfd   :  { %v172_v37 = vmul.f32 0.03125, %v171_v36  ;;  %v173_v38 = vmul.f32 %v158_v35, %v158_v35 }
  0xff   :  { %v174_v39 = vsub.f32 %v172_v37, %v173_v38 }
 0x101   :  { %v175_v40 = vmax.f32 %v174_v39, 0.0 }
 0x103   :  { %v176_v41 = vadd.f32 1e-05, %v175_v40 }
 0x105   :  { %259 = vrsqrt.f32 %v176_v41 }
 0x112   :  { %v260_v46 = vpop.eup %259 }
 0x113   :  { %v178_v47 = vmul.f32 %v260_v46, %v147_v44 }
 0x115   :  { %v179_v49 = vmul.f32 %v178_v47, %v158_v35  ;;  %v185_v50 = vrot.slane %v178_v47, %v184_v45 }
 0x117   :  { %v180_v51 = vsub.f32 %v148_v48, %v179_v49  ;;  %v187_v52 = vmul.f32 %v185_v50, %v132_v11  ;;  %v188_v53 = vmul.f32 %v185_v50, %v135_v13  ;;  %v189_v54 = vmul.f32 %v247_v10, %v185_v50 }
 0x118   :  { %v190_v55 = vmul.f32 %v248_v12, %v185_v50 }
 0x119   :  { %v195_v56 = vrot.slane %v180_v51, %v184_v45 }
 0x11b   :  { %v197_v57 = vadd.f32 %v195_v56, %v187_v52  ;;  %v198_v58 = vadd.f32 %v195_v56, %v188_v53  ;;  %v199_v59 = vadd.f32 %v195_v56, %v189_v54  ;;  %v200_v60 = vadd.f32 %v195_v56, %v190_v55 }
 0x11d   :  { %201 = vst [vmem:[%s338_s4] sm:$0xff] %v197_v57  ;;  %202 = vst [vmem:[%s338_s4 + $0x8] sm:$0xff] %v198_v58 }
 0x11e   :  { %203 = vst [vmem:[%s338_s4 + $0x10] sm:$0xff] %v199_v59  ;;  %204 = vst [vmem:[%s338_s4 + $0x18] sm:$0xff] %v200_v60 }

// kernel: _lambda_.25
= control target key start
LH: loop header
LB: loop body
LE: loop exit
PB: predicated region body
PF: predicated region fallthrough
CT: control target
= control target key end

     0   :  { %s1690_s1 = inlined_call_operand.vmem [shape: bf16[1152,128], index: 1, kind: input, shape index: {}]   ;;  %s1691_s0 = inlined_call_operand.vmem [shape: bf16[32,1152], index: 0, kind: input, shape index: {}]   ;;  %s1692_s2 = inlined_call_operand.vmem [shape: f32[1,128], index: 2, kind: input, shape index: {}, may-alias: {2,3}]   ;;  %s1693_s3 = inlined_call_operand.vmem [shape: f32[1,128], index: 3, kind: input, shape index: {}, may-alias: {2,3}]   ;;  %s1694_s4 = inlined_call_operand.vmem [shape: f32[32,128], index: 4, kind: input, shape index: {}]   ;;  %s1695_s5 = inlined_call_operand.vmem [shape: f32[32,128], index: 5, kind: output, shape index: {}]  }
   0x1   :  { %v1260_v0 = vld [vmem:[%s1690_s1 + $0x78] sm:$0xff]   ;;  %v1264_v4 = vld [vmem:[%s1690_s1 + $0x70] sm:$0xff]   ;;  %v1268_v8 = vld [vmem:[%s1690_s1 + $0x68] sm:$0xff]  }
   0x2   :  { %v1261_v1 = vld [vmem:[%s1690_s1 + $0xf8] sm:$0xff]   ;;  %1118 = vmatprep.subr.bf16.mxu0 %v1260_v0  ;;  %v1265_v5 = vld [vmem:[%s1690_s1 + $0xf0] sm:$0xff]   ;;  %v1269_v9 = vld [vmem:[%s1690_s1 + $0xe8] sm:$0xff]  }
   0x3   :  { %v1262_v2 = vld [vmem:[%s1690_s1 + $0x38] sm:$0xff]   ;;  %1146 = vmatprep.subr.bf16.mxu1 %v1261_v1  ;;  %v1266_v6 = vld [vmem:[%s1690_s1 + $0x30] sm:$0xff]   ;;  %v1270_v10 = vld [vmem:[%s1690_s1 + $0x28] sm:$0xff]  }
   0x4   :  { %v1263_v3 = vld [vmem:[%s1690_s1 + $0xb8] sm:$0xff]   ;;  %1119 = vmatpush3.bf16.msra.mxu0 %v1262_v2  ;;  %v1267_v7 = vld [vmem:[%s1690_s1 + $0xb0] sm:$0xff]   ;;  %v1271_v11 = vld [vmem:[%s1690_s1 + $0xa8] sm:$0xff]  }
   0x5   :  { %1147 = vmatpush3.bf16.msra.mxu1 %v1263_v3  ;;  %1120 = vmatprep.subr.bf16.mxu0 %v1264_v4  ;;  %v1272_v12 = vld [vmem:[%s1690_s1 + $0x60] sm:$0xff]   ;;  %v1276_v16 = vld [vmem:[%s1690_s1 + $0x58] sm:$0xff]   ;;  %v1280_v20 = vld [vmem:[%s1690_s1 + $0x50] sm:$0xff]  }
   0x6   :  { %1148 = vmatprep.subr.bf16.mxu1 %v1265_v5  ;;  %v1273_v13 = vld [vmem:[%s1690_s1 + $0xe0] sm:$0xff]   ;;  %v1277_v17 = vld [vmem:[%s1690_s1 + $0xd8] sm:$0xff]   ;;  %v1281_v21 = vld [vmem:[%s1690_s1 + $0xd0] sm:$0xff]  }
   0x7   :  { %v1274_v14 = vld [vmem:[%s1690_s1 + $0x20] sm:$0xff]   ;;  %v1278_v18 = vld [vmem:[%s1690_s1 + $0x18] sm:$0xff]   ;;  %v1282_v22 = vld [vmem:[%s1690_s1 + $0x10] sm:$0xff]  }
   0x8   :  { %1121 = vmatpush3.bf16.msra.mxu0 %v1266_v6  ;;  %v1275_v15 = vld [vmem:[%s1690_s1 + $0xa0] sm:$0xff]   ;;  %v1279_v19 = vld [vmem:[%s1690_s1 + $0x98] sm:$0xff]   ;;  %v1283_v23 = vld [vmem:[%s1690_s1 + $0x90] sm:$0xff]  }
   0x9   :  { %1149 = vmatpush3.bf16.msra.mxu1 %v1267_v7  ;;  %1122 = vmatprep.subr.bf16.mxu0 %v1268_v8  ;;  %v1284_v24 = vld [vmem:[%s1690_s1 + $0x48] sm:$0xff]   ;;  %v1288_v28 = vld [vmem:[%s1690_s1 + $0x40] sm:$0xff]   ;;  %v1298_v36 = vld [vmem:[%s1690_s1 + $0x178] sm:$0xff]  }
   0xa   :  { %1150 = vmatprep.subr.bf16.mxu1 %v1269_v9  ;;  %v1285_v25 = vld [vmem:[%s1690_s1 + $0xc8] sm:$0xff]   ;;  %v1289_v29 = vld [vmem:[%s1690_s1 + $0xc0] sm:$0xff]   ;;  %v1299_v37 = vld [vmem:[%s1690_s1 + $0x138] sm:$0xff]  }
   0xb   :  { %v1286_v26 = vld [vmem:[%s1690_s1 + $0x8] sm:$0xff]   ;;  %v1290_v30 = vld [vmem:[%s1690_s1] sm:$0xff]   ;;  %v1300_v38 = vld [vmem:[%s1690_s1 + $0x1f8] sm:$0xff]  }
   0xc   :  { %1123 = vmatpush3.bf16.msra.mxu0 %v1270_v10  ;;  %v1287_v27 = vld [vmem:[%s1690_s1 + $0x88] sm:$0xff]   ;;  %v1291_v31 = vld [vmem:[%s1690_s1 + $0x80] sm:$0xff]   ;;  %v1301_v39 = vld [vmem:[%s1690_s1 + $0x1b8] sm:$0xff]  }
   0xd   :  { %1151 = vmatpush3.bf16.msra.mxu1 %v1271_v11  ;;  %1124 = vmatprep.subr.bf16.mxu0 %v1272_v12  ;;  %v1292_v32 = vld [vmem:[%s1691_s0] ss:$36 sps:$4 sm:$0xff]   ;;  %v1295_v34 = vld [vmem:[%s1691_s0 + $0x8] ss:$36 sps:$4 sm:$0xff]   ;;  %v1302_v40 = vld [vmem:[%s1690_s1 + $0x170] sm:$0xff]  }
   0xe   :  { %1152 = vmatprep.subr.bf16.mxu1 %v1273_v13  ;;  %v1294_v33 = vld [vmem:[%s1691_s0 + $0x4] ss:$36 sps:$4 sm:$0xff]   ;;  %v1297_v35 = vld [vmem:[%s1691_s0 + $0xc] ss:$36 sps:$4 sm:$0xff]   ;;  %v1314_v52 = vld [vmem:[%s1690_s1 + $0x158] sm:$0xff]  }
   0xf   :  { %741 = vmatprep.mubr.bf16.mxu0 %v1294_v33  ;;  %790 = vmatprep.mubr.bf16.mxu1 %v1297_v35  ;;  %v1303_v41 = vld [vmem:[%s1690_s1 + $0x130] sm:$0xff]   ;;  %v1306_v44 = vld [vmem:[%s1690_s1 + $0x168] sm:$0xff]   ;;  %v1310_v48 = vld [vmem:[%s1690_s1 + $0x160] sm:$0xff]  }
  0x10   :  { %1125 = vmatpush3.bf16.msra.mxu0 %v1274_v14  ;;  %v1304_v42 = vld [vmem:[%s1690_s1 + $0x1f0] sm:$0xff]   ;;  %v1307_v45 = vld [vmem:[%s1690_s1 + $0x128] sm:$0xff]   ;;  %v1311_v49 = vld [vmem:[%s1690_s1 + $0x120] sm:$0xff]  }
  0x11   :  { %1153 = vmatpush3.bf16.msra.mxu1 %v1275_v15  ;;  %1126 = vmatprep.subr.bf16.mxu0 %v1276_v16  ;;  %v1305_v43 = vld [vmem:[%s1690_s1 + $0x1b0] sm:$0xff]   ;;  %v1308_v46 = vld [vmem:[%s1690_s1 + $0x1e8] sm:$0xff]   ;;  %v1312_v50 = vld [vmem:[%s1690_s1 + $0x1e0] sm:$0xff]  }
  0x12   :  { %1154 = vmatprep.subr.bf16.mxu1 %v1277_v17  ;;  %v1309_v47 = vld [vmem:[%s1690_s1 + $0x1a8] sm:$0xff]   ;;  %v1313_v51 = vld [vmem:[%s1690_s1 + $0x1a0] sm:$0xff]   ;;  %v1315_v53 = vld [vmem:[%s1690_s1 + $0x118] sm:$0xff]  }
  0x13   :  { %v1316_v54 = vld [vmem:[%s1691_s0 + $0x4c] ss:$36 sps:$4 sm:$0xff]   ;;  %v1318_v55 = vld [vmem:[%s1691_s0 + $0x54] ss:$36 sps:$4 sm:$0xff]   ;;  %v1332_v4 = vld [vmem:[%s1690_s1 + $0x140] sm:$0xff]  }
  0x14   :  { %1127 = vmatpush3.bf16.msra.mxu0 %v1278_v18  ;;  %v1320_v56 = vld [vmem:[%s1690_s1 + $0x1d8] sm:$0xff]   ;;  %v1321_v57 = vld [vmem:[%s1691_s0 + $0x48] ss:$36 sps:$4 sm:$0xff]   ;;  %v1322_v58 = vld [vmem:[%s1691_s0 + $0x50] ss:$36 sps:$4 sm:$0xff]  }
  0x15   :  { %1155 = vmatpush3.bf16.msra.mxu1 %v1279_v19  ;;  %1128 = vmatprep.subr.bf16.mxu0 %v1280_v20  ;;  %v1323_v59 = vld [vmem:[%s1690_s1 + $0x198] sm:$0xff]   ;;  %v1324_v60 = vld [vmem:[%s1690_s1 + $0x150] sm:$0xff]   ;;  %v1328_v0 = vld [vmem:[%s1690_s1 + $0x148] sm:$0xff]  }
  0x16   :  { %1156 = vmatprep.subr.bf16.mxu1 %v1281_v21  ;;  %v1325_v61 = vld [vmem:[%s1690_s1 + $0x110] sm:$0xff]   ;;  %v1329_v1 = vld [vmem:[%s1690_s1 + $0x108] sm:$0xff]   ;;  %v1333_v5 = vld [vmem:[%s1690_s1 + $0x100] sm:$0xff]  }
  0x17   :  { %v1326_v62 = vld [vmem:[%s1690_s1 + $0x1d0] sm:$0xff]   ;;  %v1330_v2 = vld [vmem:[%s1690_s1 + $0x1c8] sm:$0xff]   ;;  %v1334_v6 = vld [vmem:[%s1690_s1 + $0x1c0] sm:$0xff]  }
  0x18   :  { %1129 = vmatpush3.bf16.msra.mxu0 %v1282_v22  ;;  %v1327_v63 = vld [vmem:[%s1690_s1 + $0x190] sm:$0xff]   ;;  %v1331_v3 = vld [vmem:[%s1690_s1 + $0x188] sm:$0xff]   ;;  %v1338_v9 = vld [vmem:[%s1690_s1 + $0x180] sm:$0xff]  }
  0x19   :  { %1157 = vmatpush3.bf16.msra.mxu1 %v1283_v23  ;;  %1130 = vmatprep.subr.bf16.mxu0 %v1284_v24  ;;  %v1335_v7 = vld [vmem:[%s1691_s0 + $0x10] ss:$36 sps:$4 sm:$0xff]   ;;  %v1339_v10 = vld [vmem:[%s1690_s1 + $0x238] sm:$0xff]   ;;  %v1347_v16 = vld [vmem:[%s1690_s1 + $0x228] sm:$0xff]  }
  0x1a   :  { %1158 = vmatprep.subr.bf16.mxu1 %v1285_v25  ;;  %v1337_v8 = vld [vmem:[%s1691_s0 + $0x14] ss:$36 sps:$4 sm:$0xff]   ;;  %v1342_v12 = vld [vmem:[%s1691_s0 + $0x1c] ss:$36 sps:$4 sm:$0xff]   ;;  %v1348_v17 = vld [vmem:[%s1691_s0 + $0x64] ss:$36 sps:$4 sm:$0xff]  }
  0x1b   :  { %v1340_v11 = vld [vmem:[%s1691_s0 + $0x18] ss:$36 sps:$4 sm:$0xff]   ;;  %v1343_v13 = vld [vmem:[%s1690_s1 + $0x230] sm:$0xff]   ;;  %v1350_v18 = vld [vmem:[%s1691_s0 + $0x60] ss:$36 sps:$4 sm:$0xff]  }
  0x1c   :  { %1131 = vmatpush3.bf16.msra.mxu0 %v1286_v26  ;;  %v1344_v14 = vld [vmem:[%s1691_s0 + $0x5c] ss:$36 sps:$4 sm:$0xff]   ;;  %v1353_v22 = vld [vmem:[%s1690_s1 + $0x210] sm:$0xff]   ;;  %v1354_v23 = vld [vmem:[%s1690_s1 + $0x208] sm:$0xff]  }
  0x1d   :  { %1159 = vmatpush3.bf16.msra.mxu1 %v1287_v27  ;;  %1132 = vmatprep.subr.bf16.mxu0 %v1288_v28  ;;  %v1346_v15 = vld [vmem:[%s1691_s0 + $0x58] ss:$36 sps:$4 sm:$0xff]   ;;  %v1351_v19 = vld [vmem:[%s1690_s1 + $0x220] sm:$0xff]   ;;  %v1357_v25 = vld [vmem:[%s1691_s0 + $0x68] ss:$36 sps:$4 sm:$0xff]  }
  0x1e   :  { %1160 = vmatprep.subr.bf16.mxu1 %v1289_v29  ;;  %v1352_v20 = vld [vmem:[%s1690_s1 + $0x218] sm:$0xff]   ;;  %v1356_v21 = vld [vmem:[%s1691_s0 + $0x20] ss:$36 sps:$4 sm:$0xff]  }
  0x1f   :  { %v1355_v24 = vld [vmem:[%s1690_s1 + $0x200] sm:$0xff]  }
  0x20   :  { %1133 = vmatpush3.bf16.msra.mxu0 %v1290_v30 }
  0x21   :  { %1161 = vmatpush3.bf16.msra.mxu1 %v1291_v31  ;;  %1174 = vmatprep.subr.bf16.mxu0 %v1298_v36 }
  0x22   :  { %1202 = vmatprep.subr.bf16.mxu1 %v1300_v38 }
  0x23   :  { %742 = vmatmul.mubr.bf16.vlgmr.msra.gmra.mxu0 %v1292_v32 }
  0x24   :  { %791 = vmatmul.mubr.bf16.vlgmr.msra.gmra.mxu1 %v1295_v34  ;;  %1175 = vmatpush3.bf16.msra.mxu0 %v1299_v37 }
  0x25   :  { %1203 = vmatpush3.bf16.msra.mxu1 %v1301_v39  ;;  %1176 = vmatprep.subr.bf16.mxu0 %v1302_v40 }
  0x26   :  { %1204 = vmatprep.subr.bf16.mxu1 %v1304_v42  ;;  %749 = vmatprep.mubr.bf16.mxu0 %v1316_v54 }
  0x27   :  { %798 = vmatprep.mubr.bf16.mxu1 %v1318_v55 }
  0x28   :  { %1177 = vmatpush3.bf16.msra.mxu0 %v1303_v41 }
  0x29   :  { %1205 = vmatpush3.bf16.msra.mxu1 %v1305_v43  ;;  %1178 = vmatprep.subr.bf16.mxu0 %v1306_v44 }
  0x2a   :  { %1206 = vmatprep.subr.bf16.mxu1 %v1308_v46 }
  0x2b   :  { %750 = vmatmul.mubr.bf16.gmra.mxu0 %v1321_v57 }
  0x2c   :  { %1179 = vmatpush3.bf16.msra.mxu0 %v1307_v45  ;;  %799 = vmatmul.mubr.bf16.gmra.mxu1 %v1322_v58 }
  0x2d   :  { %1207 = vmatpush3.bf16.msra.mxu1 %v1309_v47  ;;  %1180 = vmatprep.subr.bf16.mxu0 %v1310_v48 }
  0x2e   :  { %1208 = vmatprep.subr.bf16.mxu1 %v1312_v50  ;;  %839 = vmatprep.mubr.bf16.mxu0 %v1337_v8 }
  0x2f   :  { %888 = vmatprep.mubr.bf16.mxu1 %v1342_v12 }
  0x30   :  { %1181 = vmatpush3.bf16.msra.mxu0 %v1311_v49 }
  0x31   :  { %1209 = vmatpush3.bf16.msra.mxu1 %v1313_v51  ;;  %1182 = vmatprep.subr.bf16.mxu0 %v1314_v52 }
  0x32   :  { %1210 = vmatprep.subr.bf16.mxu1 %v1320_v56 }
  0x34   :  { %1183 = vmatpush3.bf16.msra.mxu0 %v1315_v53 }
  0x35   :  { %1211 = vmatpush3.bf16.msra.mxu1 %v1323_v59  ;;  %1184 = vmatprep.subr.bf16.mxu0 %v1324_v60 }
  0x36   :  { %1212 = vmatprep.subr.bf16.mxu1 %v1326_v62 }
  0x38   :  { %1185 = vmatpush3.bf16.msra.mxu0 %v1325_v61 }
  0x39   :  { %1213 = vmatpush3.bf16.msra.mxu1 %v1327_v63  ;;  %1186 = vmatprep.subr.bf16.mxu0 %v1328_v0 }
  0x3a   :  { %1214 = vmatprep.subr.bf16.mxu1 %v1330_v2 }
  0x3c   :  { %1187 = vmatpush3.bf16.msra.mxu0 %v1329_v1 }
  0x3d   :  { %1215 = vmatpush3.bf16.msra.mxu1 %v1331_v3  ;;  %1188 = vmatprep.subr.bf16.mxu0 %v1332_v4 }
  0x3e   :  { %1216 = vmatprep.subr.bf16.mxu1 %v1334_v6 }
  0x40   :  { %1189 = vmatpush3.bf16.msra.mxu0 %v1333_v5 }
  0x41   :  { %1217 = vmatpush3.bf16.msra.mxu1 %v1338_v9  ;;  %1240 = vmatprep.subr.bf16.mxu0 %v1339_v10 }
  0x43   :  { %840 = vmatmul.mubr.bf16.vlgmr.msra.gmra.mxu0 %v1335_v7 }
  0x44   :  { %1241 = vmatpush3.bf16.msra.mxu0 %v1339_v10  ;;  %889 = vmatmul.mubr.bf16.vlgmr.msra.gmra.mxu1 %v1340_v11 }
  0x45   :  { %1242 = vmatprep.subr.bf16.mxu0 %v1343_v13  ;;  %847 = vmatprep.mubr.bf16.mxu0 %v1344_v14 }
  0x46   :  { %896 = vmatprep.mubr.bf16.mxu1 %v1348_v17 }
  0x48   :  { %1243 = vmatpush3.bf16.msra.mxu0 %v1343_v13 }
  0x49   :  { %1244 = vmatprep.subr.bf16.mxu0 %v1347_v16 }
  0x4b   :  { %848 = vmatmul.mubr.bf16.gmra.mxu0 %v1346_v15 }
  0x4c   :  { %1245 = vmatpush3.bf16.msra.mxu0 %v1347_v16  ;;  %897 = vmatmul.mubr.bf16.gmra.mxu1 %v1350_v18 }
  0x4d   :  { %1246 = vmatprep.subr.bf16.mxu0 %v1351_v19  ;;  %1256 = vmatprep.mubr.bf16.mxu0 %v1356_v21 }
  0x50   :  { %1247 = vmatpush3.bf16.msra.mxu0 %v1351_v19 }
  0x51   :  { %1248 = vmatprep.subr.bf16.mxu0 %v1352_v20 }
  0x54   :  { %1249 = vmatpush3.bf16.msra.mxu0 %v1352_v20 }
  0x55   :  { %1250 = vmatprep.subr.bf16.mxu0 %v1353_v22 }
  0x58   :  { %1251 = vmatpush3.bf16.msra.mxu0 %v1353_v22 }
  0x59   :  { %1252 = vmatprep.subr.bf16.mxu0 %v1354_v23 }
  0x5c   :  { %1253 = vmatpush3.bf16.msra.mxu0 %v1354_v23 }
  0x5d   :  { %1254 = vmatprep.subr.bf16.mxu0 %v1355_v24 }
  0x60   :  { %1255 = vmatpush3.bf16.msra.mxu0 %v1355_v24 }
  0x63   :  { %1257 = vmatmul.mubr.bf16.vlgmr.msra.gmra.mxu0 %v1357_v25 }
  0xe3   :  { %v1134_v26 = vpop.f32.mrf.mxu0 }
  0xe4   :  { %v1162_v27 = vpop.f32.mrf.mxu1 }
  0xe5   :  { %v1135_v28 = vpop.f32.mrf.mxu0 }
  0xe6   :  { %v1163_v29 = vpop.f32.mrf.mxu1  ;;  %v1136_v55 = vadd.f32 %v1135_v28, %v1134_v26 }
  0xe7   :  { %v1137_v30 = vpop.f32.mrf.mxu0  ;;  %v1164_v56 = vadd.f32 %v1163_v29, %v1162_v27 }
  0xe8   :  { %v1165_v31 = vpop.f32.mrf.mxu1 }
  0xe9   :  { %v1138_v32 = vpop.f32.mrf.mxu0  ;;  %v793_v2 = vadd.f32 %v1164_v56, %v1136_v55 }
  0xea   :  { %v1166_v34 = vpop.f32.mrf.mxu1  ;;  %v1139_v57 = vadd.f32 %v1138_v32, %v1137_v30 }
  0xeb   :  { %v1140_v33 = vpop.f32.mrf.mxu0  ;;  %v1167_v58 = vadd.f32 %v1166_v34, %v1165_v31 }
  0xec   :  { %v1168_v35 = vpop.f32.mrf.mxu1 }
  0xed   :  { %v1141_v36 = vpop.f32.mrf.mxu0  ;;  %v796_v5 = vadd.f32 %v1167_v58, %v1139_v57  ;;  %v993_v58 = vlaneseq }
  0xee   :  { %v1169_v37 = vpop.f32.mrf.mxu1  ;;  %v1142_v59 = vadd.f32 %v1141_v36, %v1140_v33 }
  0xef   :  { %v1143_v38 = vpop.f32.mrf.mxu0  ;;  %v1170_v60 = vadd.f32 %v1169_v37, %v1168_v35 }
  0xf0   :  { %v1171_v39 = vpop.f32.mrf.mxu1 }
  0xf1   :  { %v1144_v40 = vpop.f32.mrf.mxu0  ;;  %v801_v6 = vadd.f32 %v1170_v60, %v1142_v59  ;;  %v994_v59 = vshrl.u32 %v993_v58, 7  ;;  %v954_v60 = vld [vmem:[%s1692_s2] sm:$0x1] }
  0xf2   :  { %v1172_v42 = vpop.f32.mrf.mxu1  ;;  %v1145_v62 = vadd.f32 %v1144_v40, %v1143_v38 }
  0xf3   :  { %v1173_v63 = vadd.f32 %v1172_v42, %v1171_v39 }
  0xf5   :  { %v804_v10 = vadd.f32 %v1173_v63, %v1145_v62 }
 0x103   :  { %v1190_v41 = vpop.f32.mrf.mxu0 }
 0x104   :  { %v1218_v44 = vpop.f32.mrf.mxu1 }
 0x105   :  { %v1191_v43 = vpop.f32.mrf.mxu0 }
 0x106   :  { %v1219_v46 = vpop.f32.mrf.mxu1  ;;  %v1192_v61 = vadd.f32 %v1191_v43, %v1190_v41 }
 0x107   :  { %v1193_v45 = vpop.f32.mrf.mxu0  ;;  %v1220_v8 = vadd.f32 %v1219_v46, %v1218_v44 }
 0x108   :  { %v1221_v48 = vpop.f32.mrf.mxu1  ;;  %v842_v7 = vadd.f32 %v1192_v61, %v793_v2  ;;  %v995_v61 = vsub.s32 0, %v994_v59 }
 0x109   :  { %v1194_v47 = vpop.f32.mrf.mxu0 }
 0x10a   :  { %v1222_v50 = vpop.f32.mrf.mxu1  ;;  %v1195_v3 = vadd.f32 %v1194_v47, %v1193_v45  ;;  %v891_v20 = vadd.f32 %v1220_v8, %v842_v7 }
 0x10b   :  { %v1196_v49 = vpop.f32.mrf.mxu0  ;;  %v1223_v14 = vadd.f32 %v1222_v50, %v1221_v48 }
 0x10c   :  { %v1224_v52 = vpop.f32.mrf.mxu1  ;;  %v845_v13 = vadd.f32 %v1195_v3, %v796_v5  ;;  %v956_v5 = vld [vmem:[%s1694_s4] sm:$0xff] }
 0x10d   :  { %v1197_v51 = vpop.f32.mrf.mxu0 }
 0x10e   :  { %v1225_v54 = vpop.f32.mrf.mxu1  ;;  %v1198_v4 = vadd.f32 %v1197_v51, %v1196_v49  ;;  %v894_v24 = vadd.f32 %v1223_v14, %v845_v13 }
 0x10f   :  { %v1199_v53 = vpop.f32.mrf.mxu0  ;;  %v1226_v16 = vadd.f32 %v1225_v54, %v1224_v52 }
 0x110   :  { %v1227_v1 = vpop.f32.mrf.mxu1  ;;  %v850_v15 = vadd.f32 %v1198_v4, %v801_v6 }
 0x111   :  { %v1200_v0 = vpop.f32.mrf.mxu0 }
 0x112   :  { %v1201_v9 = vadd.f32 %v1200_v0, %v1199_v53  ;;  %v1228_v11 = vpop.f32.mrf.mxu1  ;;  %v899_v22 = vadd.f32 %v1226_v16, %v850_v15  ;;  %v955_v0 = vld [vmem:[%s1693_s3] sm:$0x1] }
 0x113   :  { %v1229_v19 = vadd.f32 %v1228_v11, %v1227_v1  ;;  %v958_v11 = vld [vmem:[%s1694_s4 + $0x10] sm:$0xff] }
 0x114   :  { %v853_v18 = vadd.f32 %v1201_v9, %v804_v10  ;;  %v957_v10 = vld [vmem:[%s1694_s4 + $0x8] sm:$0xff] }
 0x116   :  { %v902_v27 = vadd.f32 %v1229_v19, %v853_v18 }
 0x123   :  { %v1258_v12 = vpop.f32.mrf.mxu0 }
 0x124   :  { %v948_v26 = vadd.f32 %v1258_v12, %v899_v22  ;;  %v959_v12 = vld [vmem:[%s1694_s4 + $0x18] sm:$0xff] }
 0x125   :  { %v939_v17 = vpop.f32.mrf.mxu0 }
 0x126   :  { %v940_v23 = vadd.f32 %v939_v17, %v891_v20  ;;  %v972_v33 = vmul.f32 %v948_v26, %v948_v26 }
 0x127   :  { %v1259_v21 = vpop.f32.mrf.mxu0 }
 0x128   :  { %v970_v29 = vmul.f32 %v940_v23, %v940_v23  ;;  %v951_v30 = vadd.f32 %v1259_v21, %v902_v27 }
 0x129   :  { %v942_v25 = vpop.f32.mrf.mxu0 }
 0x12a   :  { %v943_v28 = vadd.f32 %v942_v25, %v894_v24  ;;  %v973_v36 = vmul.f32 %v951_v30, %v951_v30 }
 0x12c   :  { %v960_v31 = vadd.f32 %v943_v28, %v940_v23  ;;  %v971_v32 = vmul.f32 %v943_v28, %v943_v28 }
 0x12e   :  { %v961_v34 = vadd.f32 %v960_v31, %v948_v26  ;;  %v974_v35 = vadd.f32 %v971_v32, %v970_v29 }
 0x130   :  { %v962_v37 = vadd.f32 %v961_v34, %v951_v30  ;;  %v975_v38 = vadd.f32 %v974_v35, %v972_v33 }
 0x132   :  { %v963_v39 = vrot.slane %v962_v37, 4  ;;  %v976_v40 = vadd.f32 %v975_v38, %v973_v36 }
 0x134   :  { %v964_v41 = vadd.f32 %v963_v39, %v962_v37  ;;  %v977_v42 = vrot.slane %v976_v40, 4 }
 0x136   :  { %v965_v43 = vrot.slane %v964_v41, 2  ;;  %v978_v44 = vadd.f32 %v977_v42, %v976_v40 }
 0x138   :  { %v966_v45 = vadd.f32 %v965_v43, %v964_v41  ;;  %v979_v46 = vrot.slane %v978_v44, 2 }
 0x13a   :  { %v967_v47 = vrot.slane %v966_v45, 1  ;;  %v980_v48 = vadd.f32 %v979_v46, %v978_v44 }
 0x13c   :  { %v968_v49 = vadd.f32 %v967_v47, %v966_v45  ;;  %v981_v50 = vrot.slane %v980_v48, 1 }
 0x13e   :  { %v969_v51 = vmul.f32 0.03125, %v968_v49  ;;  %v982_v52 = vadd.f32 %v981_v50, %v980_v48 }
 0x140   :  { %v983_v53 = vmul.f32 0.03125, %v982_v52  ;;  %v984_v54 = vmul.f32 %v969_v51, %v969_v51 }
 0x142   :  { %v985_v55 = vsub.f32 %v983_v53, %v984_v54 }
 0x144   :  { %v986_v56 = vmax.f32 %v985_v55, 0.0 }
 0x146   :  { %v987_v57 = vadd.f32 1e-05, %v986_v56 }
 0x148   :  { %1358 = vrsqrt.f32 %v987_v57 }
 0x155   :  { %v1359_v62 = vpop.eup %1358 }
 0x156   :  { %v989_v63 = vmul.f32 %v1359_v62, %v954_v60 }
 0x158   :  { %v990_v1 = vmul.f32 %v989_v63, %v969_v51  ;;  %v996_v2 = vrot.slane %v989_v63, %v995_v61 }
 0x15a   :  { %v991_v3 = vsub.f32 %v955_v0, %v990_v1  ;;  %v998_v4 = vmul.f32 %v996_v2, %v940_v23  ;;  %v999_v6 = vmul.f32 %v996_v2, %v943_v28  ;;  %v1000_v7 = vmul.f32 %v996_v2, %v948_v26 }
 0x15b   :  { %v1001_v8 = vmul.f32 %v996_v2, %v951_v30 }
 0x15c   :  { %v1006_v9 = vrot.slane %v991_v3, %v995_v61 }
 0x15e   :  { %v1008_v13 = vadd.f32 %v1006_v9, %v998_v4  ;;  %v1009_v14 = vadd.f32 %v1006_v9, %v999_v6  ;;  %v1010_v15 = vadd.f32 %v1006_v9, %v1000_v7  ;;  %v1011_v16 = vadd.f32 %v1006_v9, %v1001_v8 }
 0x160   :  { %v1012_v17 = vadd.f32 %v1008_v13, %v956_v5  ;;  %v1013_v18 = vadd.f32 %v1009_v14, %v957_v10  ;;  %v1014_v19 = vadd.f32 %v1010_v15, %v958_v11  ;;  %v1015_v20 = vadd.f32 %v1011_v16, %v959_v12 }
 0x162   :  { %v1016_v21 = vmax.f32 %v1012_v17, 0.0  ;;  %v1017_v22 = vmax.f32 %v1013_v18, 0.0  ;;  %v1018_v23 = vmax.f32 %v1014_v19, 0.0  ;;  %v1019_v24 = vmax.f32 %v1015_v20, 0.0 }
 0x164   :  { %1020 = vst [vmem:[%s1695_s5] sm:$0xff] %v1016_v21  ;;  %1021 = vst [vmem:[%s1695_s5 + $0x8] sm:$0xff] %v1017_v22 }
 0x165   :  { %1022 = vst [vmem:[%s1695_s5 + $0x10] sm:$0xff] %v1018_v23  ;;  %1023 = vst [vmem:[%s1695_s5 + $0x18] sm:$0xff] %v1019_v24 }

// kernel: _lambda_.29
= control target key start
LH: loop header
LB: loop body
LE: loop exit
PB: predicated region body
PF: predicated region fallthrough
CT: control target
= control target key end

     0   :  { %s685_s15 = smov 0   ;;  %s687_s16 = smov 0   ;;  %s766_s0 = inlined_call_operand.vmem [shape: bf16[8,128], index: 0, kind: input, shape index: {}]   ;;  %s767_s1 = inlined_call_operand.vmem [shape: bf16[128,256], index: 1, kind: input, shape index: {}]   ;;  %s768_s2 = inlined_call_operand.vmem [shape: f32[1,256], index: 2, kind: input, shape index: {}]   ;;  %s769_s3 = inlined_call_operand.vmem [shape: f32[1,256], index: 3, kind: input, shape index: {}]   ;;  %s770_s4 = inlined_call_operand.vmem [shape: f32[8,256], index: 4, kind: output, shape index: {}]  }
   0x1   :  { %s689_s17 = smov 0  }
   0x2 LB: > { %s550_s18 = sadd.s32 4294967295, %s656_s17   ;;  %s702_s19 = sadd.s32 1, %s656_s17   ;;  %s656_s17 = sphi %s689_s17, %s773_s17   ;;  %s652_s16 = sphi %s687_s16, %s772_s16   ;;  %s648_s15 = sphi %s685_s15, %s771_s15  }
   0x3   : > { %s39_s20 = ssub.s32 %s656_s17, %s702_s19  ;;  %s42_s21 = sadd.s32 1, %s652_s16 }
   0x4   : > { %p40_p0 = scmp.eq.s32.totalorder %s39_s20, 0  ;;  %p49_p1 = scmp.ne.s32.totalorder %s652_s16, %s648_s15 }
   0x5   : > { %p50_p2 = scmp.eq.s32.totalorder %s656_s17, 0  ;;  %p553_p4 = scmp.ge.s32.totalorder %s656_s17, 2 }
   0x6   : > { %s711_s22 = scalar_select %p40_p0, %s652_s16, %s42_s21  }
   0x7   : > { %p51_p3 = por %p50_p2, %p49_p1  ;;  %156 = sbr.rel (%p553_p4) target bundleno = 26 (0x1a), region = 20 }
   0xc   : > { %159 = sbr.rel (!%p51_p3) target bundleno = 26 (0x1a), region = 24  ;;  %s161_s23 = sand.u32 (%p51_p3), 1, %s652_s16  }
   0xd   : > { %s555_s24 = sshll.u32 (%p51_p3), %s656_s17, 2  ;;  %s554_s25 = sshll.u32 (%p51_p3), %s161_s23, 6 }
   0xe   : > { %s719_s28 = scalar_lea.vmem (%p51_p3), %s767_s1, %s555_s24  ;;  %s163_s29 = scalar_lea.vmem (%p51_p3), [#allocation2], %s554_s25 }
   0xf   : > { %v182_v0 = vld [vmem:[%s719_s28] sm:$0xf] (%p51_p3)  ;;  %v184_v1 = vld [vmem:[%s719_s28 + $0x8] sm:$0xf] (%p51_p3)  ;;  %v186_v2 = vld [vmem:[%s719_s28 + $0x10] sm:$0xf] (%p51_p3) }
  0x10   : > { %183 = vst [vmem:[%s163_s29] sm:$0xf] (%p51_p3), %v182_v0  ;;  %185 = vst [vmem:[%s163_s29 + $0x4] sm:$0xf] (%p51_p3), %v184_v1  ;;  %v188_v3 = vld [vmem:[%s719_s28 + $0x18] sm:$0xf] (%p51_p3) }
  0x11   : > { %v190_v4 = vld [vmem:[%s719_s28 + $0x20] sm:$0xf]  ;;  %187 = vst [vmem:[%s163_s29 + $0x8] sm:$0xf] %v186_v2  ;;  %189 = vst [vmem:[%s163_s29 + $0xc] sm:$0xf] %v188_v3 }
  0x12   : > { %191 = vst [vmem:[%s163_s29 + $0x10] sm:$0xf] %v190_v4  ;;  %v192_v5 = vld [vmem:[%s719_s28 + $0x28] sm:$0xf]  ;;  %v194_v6 = vld [vmem:[%s719_s28 + $0x30] sm:$0xf] }
  0x13   : > { %v196_v7 = vld [vmem:[%s719_s28 + $0x38] sm:$0xf]  ;;  %193 = vst [vmem:[%s163_s29 + $0x14] sm:$0xf] %v192_v5  ;;  %195 = vst [vmem:[%s163_s29 + $0x18] sm:$0xf] %v194_v6 }
  0x14   : > { %197 = vst [vmem:[%s163_s29 + $0x1c] sm:$0xf] %v196_v7  ;;  %v198_v8 = vld [vmem:[%s719_s28 + $0x40] sm:$0xf]  ;;  %v200_v9 = vld [vmem:[%s719_s28 + $0x48] sm:$0xf] }
  0x15   : > { %v202_v10 = vld [vmem:[%s719_s28 + $0x50] sm:$0xf]  ;;  %199 = vst [vmem:[%s163_s29 + $0x20] sm:$0xf] %v198_v8  ;;  %201 = vst [vmem:[%s163_s29 + $0x24] sm:$0xf] %v200_v9 }
  0x16   : > { %203 = vst [vmem:[%s163_s29 + $0x28] sm:$0xf] %v202_v10  ;;  %v204_v11 = vld [vmem:[%s719_s28 + $0x58] sm:$0xf]  ;;  %v206_v12 = vld [vmem:[%s719_s28 + $0x60] sm:$0xf] }
  0x17   : > { %v208_v13 = vld [vmem:[%s719_s28 + $0x68] sm:$0xf]  ;;  %205 = vst [vmem:[%s163_s29 + $0x2c] sm:$0xf] %v204_v11  ;;  %207 = vst [vmem:[%s163_s29 + $0x30] sm:$0xf] %v206_v12 }
  0x18   : > { %209 = vst [vmem:[%s163_s29 + $0x34] sm:$0xf] %v208_v13  ;;  %v210_v14 = vld [vmem:[%s719_s28 + $0x70] sm:$0xf]  ;;  %v212_v15 = vld [vmem:[%s719_s28 + $0x78] sm:$0xf] }
  0x19   : > { %211 = vst [vmem:[%s163_s29 + $0x38] sm:$0xf] %v210_v14  ;;  %213 = vst [vmem:[%s163_s29 + $0x3c] sm:$0xf] %v212_v15 }
  0x1a PF: > { %p556_p5 = scmp.ge.s32.totalorder %s656_s17, 1  ;;  %p280_p6 = scmp.lt.s32.totalorder %s656_s17, 3 }
  0x1c   : > { %p281_p7 = pnand %p556_p5, %p280_p6 }
  0x1d   : > { %s287_s30 = sand.u32 (!%p281_p7), 1, %s648_s15   ;;  %p317_p8 = scmp.lt.s32.totalorder (!%p281_p7), %s550_s18, 1 }
  0x1e   : > { %284 = sbr.rel (%p281_p7) target bundleno = 308 (0x134), region = 73  ;;  %s557_s5 = sshll.u32 (!%p281_p7), %s287_s30, 6 }
  0x1f   : > { %s289_s6 = scalar_lea.vmem (!%p281_p7), [#allocation2], %s557_s5 }
  0x23   : > { %v658_v16 = vmov 0.0   ;;  %vm659_vm0 = vmmov 0   ;;  %v624_v17 = vld [vmem:[%s289_s6 + $0x38] sm:$0xff]   ;;  %v625_v18 = vld [vmem:[%s289_s6 + $0x30] sm:$0xff]   ;;  %v626_v19 = vld [vmem:[%s289_s6 + $0x28] sm:$0xff]   ;;  %s775_s18 = smov (!%p317_p8, %s550_s18), 1  ;;  %v459_v49 = vlaneseq }
  0x24   : > { %578 = vmatprep.subr.bf16.mxu0 %v658_v16  ;;  %594 = vmatprep.mubr.msk.bf16.mxu0 %vm659_vm0, %v658_v16  ;;  %v627_v20 = vld [vmem:[%s289_s6 + $0x20] sm:$0xff]   ;;  %v628_v21 = vld [vmem:[%s289_s6 + $0x18] sm:$0xff]   ;;  %v629_v22 = vld [vmem:[%s289_s6 + $0x10] sm:$0xff]   ;;  %s319_s11 = scalar_lea.vmem %s768_s2, %s775_s18  ;;  %s322_s14 = scalar_lea.vmem %s769_s3, %s775_s18 }
  0x25   : > { %579 = vmatpush3.bf16.msra.mxu0 %v624_v17  ;;  %v630_v23 = vld [vmem:[%s289_s6 + $0x8] sm:$0xff]   ;;  %v631_v24 = vld [vmem:[%s289_s6] sm:$0xff]   ;;  %v460_v50 = vshrl.u32 %v459_v49, 7  ;;  %s558_s15 = sshll.u32 %s775_s18, 3 }
  0x26   : > { %580 = vmatprep.subr.bf16.mxu0 %v658_v16  ;;  %v328_v25 = vld [vmem:[%s766_s0] sm:$0xf]  ;;  %s326_s21 = scalar_lea.vmem %s770_s4, %s558_s15 }
  0x27   : > { %v433_v51 = vld [vmem:[%s319_s11] sm:$0x1]  ;;  %v461_v52 = vsub.s32 0, %v460_v50 }
  0x28   : > { %v434_v55 = vld [vmem:[%s322_s14] sm:$0x1] }
  0x29   : > { %581 = vmatpush3.bf16.msra.mxu0 %v625_v18 }
  0x2a   : > { %582 = vmatprep.subr.bf16.mxu0 %v658_v16 }
  0x2d   : > { %583 = vmatpush3.bf16.msra.mxu0 %v626_v19 }
  0x2e   : > { %584 = vmatprep.subr.bf16.mxu0 %v658_v16 }
  0x31   : > { %585 = vmatpush3.bf16.msra.mxu0 %v627_v20 }
  0x32   : > { %586 = vmatprep.subr.bf16.mxu0 %v658_v16 }
  0x35   : > { %587 = vmatpush3.bf16.msra.mxu0 %v628_v21 }
  0x36   : > { %588 = vmatprep.subr.bf16.mxu0 %v658_v16 }
  0x39   : > { %589 = vmatpush3.bf16.msra.mxu0 %v629_v22 }
  0x3a   : > { %590 = vmatprep.subr.bf16.mxu0 %v658_v16 }
  0x3d   : > { %591 = vmatpush3.bf16.msra.mxu0 %v630_v23 }
  0x3e   : > { %592 = vmatprep.subr.bf16.mxu0 %v658_v16 }
  0x41   : > { %593 = vmatpush3.bf16.msra.mxu0 %v631_v24 }
  0x44   : > { %595 = vmatmul.mubr.bf16.vlgmr.msra.gmra.mxu0 %v328_v25 }
 0x104   : > { %v427_v26 = vpop.f32.mrf.mxu0 }
 0x105   : > { %v435_v27 = vrot.slane %v427_v26, 4  ;;  %v442_v28 = vmul.f32 %v427_v26, %v427_v26 }
 0x106   : > { %v596_v29 = vpop.f32.mrf.mxu0 }
 0x107   : > { %v436_v30 = vadd.f32 %v435_v27, %v427_v26  ;;  %v443_v31 = vrot.slane %v442_v28, 4 }
 0x108   : > { %v430_v32 = vpop.f32.mrf.mxu0 }
 0x109   : > { %v437_v33 = vrot.slane %v436_v30, 2  ;;  %v444_v34 = vadd.f32 %v443_v31, %v442_v28 }
 0x10a   : > { %v597_v35 = vpop.f32.mrf.mxu0 }
 0x10b   : > { %v438_v36 = vadd.f32 %v437_v33, %v436_v30  ;;  %v445_v37 = vrot.slane %v444_v34, 2 }
 0x10d   : > { %v439_v38 = vrot.slane %v438_v36, 1  ;;  %v446_v39 = vadd.f32 %v445_v37, %v444_v34 }
 0x10f   : > { %v440_v40 = vadd.f32 %v439_v38, %v438_v36  ;;  %v447_v41 = vrot.slane %v446_v39, 1 }
 0x111   : > { %v441_v42 = vmul.f32 0.125, %v440_v40  ;;  %v448_v43 = vadd.f32 %v447_v41, %v446_v39 }
 0x113   : > { %v449_v44 = vmul.f32 0.125, %v448_v43  ;;  %v450_v45 = vmul.f32 %v441_v42, %v441_v42 }
 0x115   : > { %v451_v46 = vsub.f32 %v449_v44, %v450_v45 }
 0x117   : > { %v452_v47 = vmax.f32 %v451_v46, 0.0 }
 0x119   : > { %v453_v48 = vadd.f32 1e-05, %v452_v47 }
 0x11b   : > { %632 = vrsqrt.f32 %v453_v48 }
 0x128   : > { %v633_v53 = vpop.eup %632 }
 0x129   : > { %v455_v54 = vmul.f32 %v633_v53, %v433_v51 }
 0x12b   : > { %v456_v56 = vmul.f32 %v455_v54, %v441_v42  ;;  %v462_v57 = vrot.slane %v455_v54, %v461_v52 }
 0x12d   : > { %v457_v58 = vsub.f32 %v434_v55, %v456_v56  ;;  %v464_v59 = vmul.f32 %v462_v57, %v427_v26 }
 0x12f   : > { %v469_v60 = vrot.slane %v457_v58, %v461_v52 }
 0x131   : > { %v471_v61 = vadd.f32 %v469_v60, %v464_v59 }
 0x133   : > { %472 = vst [vmem:[%s326_s21] sm:$0xff] %v471_v61 }
 0x134 PF: > { %p11_p9 = scmp.ge.s32.totalorder %s702_s19, 4   ;;  %s771_s15 = smov %s652_s16 }
 0x135   : > { %s772_s16 = smov %s711_s22  ;;  %s773_s17 = smov %s702_s19 }
 0x136   :  { %13 = sbr.rel (!%p11_p9) target bundleno = 2 (0x2), region = 118 }

// kernel: _lambda_.28
= control target key start
LH: loop header
LB: loop body
LE: loop exit
PB: predicated region body
PF: predicated region fallthrough
CT: control target
= control target key end

     0   :  { %s2140_s15 = smov 0   ;;  %s2142_s16 = smov 0   ;;  %s2605_s0 = inlined_call_operand.vmem [shape: bf16[8,1152], index: 0, kind: input, shape index: {}]   ;;  %s2606_s1 = inlined_call_operand.vmem [shape: bf16[1152,256], index: 1, kind: input, shape index: {}]   ;;  %s2607_s2 = inlined_call_operand.vmem [shape: f32[1,256], index: 2, kind: input, shape index: {}]   ;;  %s2608_s3 = inlined_call_operand.vmem [shape: f32[1,256], index: 3, kind: input, shape index: {}]   ;;  %s2609_s4 = inlined_call_operand.vmem [shape: f32[8,256], index: 4, kind: output, shape index: {}]  }
   0x1   :  { %s2144_s17 = smov 0  }
   0x2 LB: > { %s1771_s18 = sadd.s32 4294967295, %s2111_s17   ;;  %s2157_s19 = sadd.s32 1, %s2111_s17   ;;  %s2111_s17 = sphi %s2144_s17, %s2612_s17   ;;  %s2107_s16 = sphi %s2142_s16, %s2611_s16   ;;  %s2103_s15 = sphi %s2140_s15, %s2610_s15  }
   0x3   : > { %s39_s20 = ssub.s32 %s2111_s17, %s2157_s19  ;;  %s42_s21 = sadd.s32 1, %s2107_s16 }
   0x4   : > { %p40_p0 = scmp.eq.s32.totalorder %s39_s20, 0  ;;  %p49_p1 = scmp.ne.s32.totalorder %s2107_s16, %s2103_s15 }
   0x5   : > { %p50_p2 = scmp.eq.s32.totalorder %s2111_s17, 0  ;;  %p1774_p4 = scmp.ge.s32.totalorder %s2111_s17, 2 }
   0x6   : > { %s2166_s22 = scalar_select %p40_p0, %s2107_s16, %s42_s21  }
   0x7   : > { %p51_p3 = por %p50_p2, %p49_p1  ;;  %156 = sbr.rel (%p1774_p4) target bundleno = 112 (0x70), region = 20 }
   0xc   : > { %159 = sbr.rel (!%p51_p3) target bundleno = 112 (0x70), region = 24  ;;  %s161_s23 = sand.u32 (%p51_p3), 1, %s2107_s16  }
   0xd   : > { %s1775_s24 = sshll.u32 (%p51_p3), %s2111_s17, 2  ;;  %s1978_s25 = smul.u32 (%p51_p3), 576, %s161_s23 }
   0xe   : > { %s2174_s28 = scalar_lea.vmem (%p51_p3), %s2606_s1, %s1775_s24 }
   0xf   : > { %v182_v0 = vld [vmem:[%s2174_s28] sm:$0xf] (%p51_p3)  ;;  %v184_v1 = vld [vmem:[%s2174_s28 + $0x8] sm:$0xf] (%p51_p3)  ;;  %v186_v2 = vld [vmem:[%s2174_s28 + $0x10] sm:$0xf] (%p51_p3) }
  0x10   : > { %v188_v3 = vld [vmem:[%s2174_s28 + $0x18] sm:$0xf] (%p51_p3)  ;;  %v190_v4 = vld [vmem:[%s2174_s28 + $0x20] sm:$0xf] (%p51_p3)  ;;  %s2181_s29 = scalar_lea.vmem (%p51_p3), [#allocation2], %s1978_s25 }
  0x11   : > { %183 = vst [vmem:[%s2181_s29] sm:$0xf] %v182_v0  ;;  %185 = vst [vmem:[%s2181_s29 + $0x4] sm:$0xf] %v184_v1  ;;  %v192_v5 = vld [vmem:[%s2174_s28 + $0x28] sm:$0xf] }
  0x12   : > { %187 = vst [vmem:[%s2181_s29 + $0x8] sm:$0xf] %v186_v2  ;;  %189 = vst [vmem:[%s2181_s29 + $0xc] sm:$0xf] %v188_v3  ;;  %v194_v6 = vld [vmem:[%s2174_s28 + $0x30] sm:$0xf] }
  0x13   : > { %191 = vst [vmem:[%s2181_s29 + $0x10] sm:$0xf] %v190_v4  ;;  %v196_v7 = vld [vmem:[%s2174_s28 + $0x38] sm:$0xf]  ;;  %193 = vst [vmem:[%s2181_s29 + $0x14] sm:$0xf] %v192_v5 }
  0x14   : > { %195 = vst [vmem:[%s2181_s29 + $0x18] sm:$0xf] %v194_v6  ;;  %197 = vst [vmem:[%s2181_s29 + $0x1c] sm:$0xf] %v196_v7  ;;  %v198_v8 = vld [vmem:[%s2174_s28 + $0x40] sm:$0xf] }
  0x15   : > { %v200_v9 = vld [vmem:[%s2174_s28 + $0x48] sm:$0xf]  ;;  %v202_v10 = vld [vmem:[%s2174_s28 + $0x50] sm:$0xf]  ;;  %199 = vst [vmem:[%s2181_s29 + $0x20] sm:$0xf] %v198_v8 }
  0x16   : > { %201 = vst [vmem:[%s2181_s29 + $0x24] sm:$0xf] %v200_v9  ;;  %203 = vst [vmem:[%s2181_s29 + $0x28] sm:$0xf] %v202_v10  ;;  %v204_v11 = vld [vmem:[%s2174_s28 + $0x58] sm:$0xf] }
  0x17   : > { %v206_v12 = vld [vmem:[%s2174_s28 + $0x60] sm:$0xf]  ;;  %v208_v13 = vld [vmem:[%s2174_s28 + $0x68] sm:$0xf]  ;;  %205 = vst [vmem:[%s2181_s29 + $0x2c] sm:$0xf] %v204_v11 }
  0x18   : > { %207 = vst [vmem:[%s2181_s29 + $0x30] sm:$0xf] %v206_v12  ;;  %209 = vst [vmem:[%s2181_s29 + $0x34] sm:$0xf] %v208_v13  ;;  %v210_v14 = vld [vmem:[%s2174_s28 + $0x70] sm:$0xf] }
  0x19   : > { %v212_v15 = vld [vmem:[%s2174_s28 + $0x78] sm:$0xf]  ;;  %v214_v16 = vld [vmem:[%s2174_s28 + $0x80] sm:$0xf]  ;;  %211 = vst [vmem:[%s2181_s29 + $0x38] sm:$0xf] %v210_v14 }
  0x1a   : > { %213 = vst [vmem:[%s2181_s29 + $0x3c] sm:$0xf] %v212_v15  ;;  %215 = vst [vmem:[%s2181_s29 + $0x40] sm:$0xf] %v214_v16  ;;  %v216_v17 = vld [vmem:[%s2174_s28 + $0x88] sm:$0xf] }
  0x1b   : > { %v218_v18 = vld [vmem:[%s2174_s28 + $0x90] sm:$0xf]  ;;  %v220_v19 = vld [vmem:[%s2174_s28 + $0x98] sm:$0xf]  ;;  %217 = vst [vmem:[%s2181_s29 + $0x44] sm:$0xf] %v216_v17 }
  0x1c   : > { %219 = vst [vmem:[%s2181_s29 + $0x48] sm:$0xf] %v218_v18  ;;  %221 = vst [vmem:[%s2181_s29 + $0x4c] sm:$0xf] %v220_v19  ;;  %v222_v20 = vld [vmem:[%s2174_s28 + $0xa0] sm:$0xf] }
  0x1d   : > { %v224_v21 = vld [vmem:[%s2174_s28 + $0xa8] sm:$0xf]  ;;  %v226_v22 = vld [vmem:[%s2174_s28 + $0xb0] sm:$0xf]  ;;  %223 = vst [vmem:[%s2181_s29 + $0x50] sm:$0xf] %v222_v20 }
  0x1e   : > { %225 = vst [vmem:[%s2181_s29 + $0x54] sm:$0xf] %v224_v21  ;;  %227 = vst [vmem:[%s2181_s29 + $0x58] sm:$0xf] %v226_v22  ;;  %v228_v23 = vld [vmem:[%s2174_s28 + $0xb8] sm:$0xf] }
  0x1f   : > { %v230_v24 = vld [vmem:[%s2174_s28 + $0xc0] sm:$0xf]  ;;  %v232_v25 = vld [vmem:[%s2174_s28 + $0xc8] sm:$0xf]  ;;  %229 = vst [vmem:[%s2181_s29 + $0x5c] sm:$0xf] %v228_v23 }
  0x20   : > { %231 = vst [vmem:[%s2181_s29 + $0x60] sm:$0xf] %v230_v24  ;;  %233 = vst [vmem:[%s2181_s29 + $0x64] sm:$0xf] %v232_v25  ;;  %v234_v26 = vld [vmem:[%s2174_s28 + $0xd0] sm:$0xf] }
  0x21   : > { %v236_v27 = vld [vmem:[%s2174_s28 + $0xd8] sm:$0xf]  ;;  %v238_v28 = vld [vmem:[%s2174_s28 + $0xe0] sm:$0xf]  ;;  %235 = vst [vmem:[%s2181_s29 + $0x68] sm:$0xf] %v234_v26 }
  0x22   : > { %237 = vst [vmem:[%s2181_s29 + $0x6c] sm:$0xf] %v236_v27  ;;  %239 = vst [vmem:[%s2181_s29 + $0x70] sm:$0xf] %v238_v28  ;;  %v240_v29 = vld [vmem:[%s2174_s28 + $0xe8] sm:$0xf] }
  0x23   : > { %v242_v30 = vld [vmem:[%s2174_s28 + $0xf0] sm:$0xf]  ;;  %v244_v31 = vld [vmem:[%s2174_s28 + $0xf8] sm:$0xf]  ;;  %241 = vst [vmem:[%s2181_s29 + $0x74] sm:$0xf] %v240_v29 }
  0x24   : > { %243 = vst [vmem:[%s2181_s29 + $0x78] sm:$0xf] %v242_v30  ;;  %245 = vst [vmem:[%s2181_s29 + $0x7c] sm:$0xf] %v244_v31  ;;  %v246_v32 = vld [vmem:[%s2174_s28 + $0x100] sm:$0xf] }
  0x25   : > { %v248_v33 = vld [vmem:[%s2174_s28 + $0x108] sm:$0xf]  ;;  %v250_v34 = vld [vmem:[%s2174_s28 + $0x110] sm:$0xf]  ;;  %247 = vst [vmem:[%s2181_s29 + $0x80] sm:$0xf] %v246_v32 }
  0x26   : > { %249 = vst [vmem:[%s2181_s29 + $0x84] sm:$0xf] %v248_v33  ;;  %251 = vst [vmem:[%s2181_s29 + $0x88] sm:$0xf] %v250_v34  ;;  %v252_v35 = vld [vmem:[%s2174_s28 + $0x118] sm:$0xf] }
  0x27   : > { %v254_v36 = vld [vmem:[%s2174_s28 + $0x120] sm:$0xf]  ;;  %v256_v37 = vld [vmem:[%s2174_s28 + $0x128] sm:$0xf]  ;;  %253 = vst [vmem:[%s2181_s29 + $0x8c] sm:$0xf] %v252_v35 }
  0x28   : > { %255 = vst [vmem:[%s2181_s29 + $0x90] sm:$0xf] %v254_v36  ;;  %257 = vst [vmem:[%s2181_s29 + $0x94] sm:$0xf] %v256_v37  ;;  %v258_v38 = vld [vmem:[%s2174_s28 + $0x130] sm:$0xf] }
  0x29   : > { %v260_v39 = vld [vmem:[%s2174_s28 + $0x138] sm:$0xf]  ;;  %v262_v40 = vld [vmem:[%s2174_s28 + $0x140] sm:$0xf]  ;;  %259 = vst [vmem:[%s2181_s29 + $0x98] sm:$0xf] %v258_v38 }
  0x2a   : > { %261 = vst [vmem:[%s2181_s29 + $0x9c] sm:$0xf] %v260_v39  ;;  %263 = vst [vmem:[%s2181_s29 + $0xa0] sm:$0xf] %v262_v40  ;;  %v264_v41 = vld [vmem:[%s2174_s28 + $0x148] sm:$0xf] }
  0x2b   : > { %v266_v42 = vld [vmem:[%s2174_s28 + $0x150] sm:$0xf]  ;;  %v268_v43 = vld [vmem:[%s2174_s28 + $0x158] sm:$0xf]  ;;  %265 = vst [vmem:[%s2181_s29 + $0xa4] sm:$0xf] %v264_v41 }
  0x2c   : > { %267 = vst [vmem:[%s2181_s29 + $0xa8] sm:$0xf] %v266_v42  ;;  %269 = vst [vmem:[%s2181_s29 + $0xac] sm:$0xf] %v268_v43  ;;  %v270_v44 = vld [vmem:[%s2174_s28 + $0x160] sm:$0xf] }
  0x2d   : > { %v272_v45 = vld [vmem:[%s2174_s28 + $0x168] sm:$0xf]  ;;  %v274_v46 = vld [vmem:[%s2174_s28 + $0x170] sm:$0xf]  ;;  %271 = vst [vmem:[%s2181_s29 + $0xb0] sm:$0xf] %v270_v44 }
  0x2e   : > { %273 = vst [vmem:[%s2181_s29 + $0xb4] sm:$0xf] %v272_v45  ;;  %275 = vst [vmem:[%s2181_s29 + $0xb8] sm:$0xf] %v274_v46  ;;  %v276_v47 = vld [vmem:[%s2174_s28 + $0x178] sm:$0xf] }
  0x2f   : > { %v278_v48 = vld [vmem:[%s2174_s28 + $0x180] sm:$0xf]  ;;  %v280_v49 = vld [vmem:[%s2174_s28 + $0x188] sm:$0xf]  ;;  %277 = vst [vmem:[%s2181_s29 + $0xbc] sm:$0xf] %v276_v47 }
  0x30   : > { %279 = vst [vmem:[%s2181_s29 + $0xc0] sm:$0xf] %v278_v48  ;;  %281 = vst [vmem:[%s2181_s29 + $0xc4] sm:$0xf] %v280_v49  ;;  %v282_v50 = vld [vmem:[%s2174_s28 + $0x190] sm:$0xf] }
  0x31   : > { %v284_v51 = vld [vmem:[%s2174_s28 + $0x198] sm:$0xf]  ;;  %v286_v52 = vld [vmem:[%s2174_s28 + $0x1a0] sm:$0xf]  ;;  %283 = vst [vmem:[%s2181_s29 + $0xc8] sm:$0xf] %v282_v50 }
  0x32   : > { %285 = vst [vmem:[%s2181_s29 + $0xcc] sm:$0xf] %v284_v51  ;;  %287 = vst [vmem:[%s2181_s29 + $0xd0] sm:$0xf] %v286_v52  ;;  %v288_v53 = vld [vmem:[%s2174_s28 + $0x1a8] sm:$0xf] }
  0x33   : > { %v290_v54 = vld [vmem:[%s2174_s28 + $0x1b0] sm:$0xf]  ;;  %v292_v55 = vld [vmem:[%s2174_s28 + $0x1b8] sm:$0xf]  ;;  %289 = vst [vmem:[%s2181_s29 + $0xd4] sm:$0xf] %v288_v53 }
  0x34   : > { %291 = vst [vmem:[%s2181_s29 + $0xd8] sm:$0xf] %v290_v54  ;;  %293 = vst [vmem:[%s2181_s29 + $0xdc] sm:$0xf] %v292_v55  ;;  %v294_v56 = vld [vmem:[%s2174_s28 + $0x1c0] sm:$0xf] }
  0x35   : > { %v296_v57 = vld [vmem:[%s2174_s28 + $0x1c8] sm:$0xf]  ;;  %v298_v58 = vld [vmem:[%s2174_s28 + $0x1d0] sm:$0xf]  ;;  %295 = vst [vmem:[%s2181_s29 + $0xe0] sm:$0xf] %v294_v56 }
  0x36   : > { %297 = vst [vmem:[%s2181_s29 + $0xe4] sm:$0xf] %v296_v57  ;;  %299 = vst [vmem:[%s2181_s29 + $0xe8] sm:$0xf] %v298_v58  ;;  %v300_v59 = vld [vmem:[%s2174_s28 + $0x1d8] sm:$0xf] }
  0x37   : > { %v302_v60 = vld [vmem:[%s2174_s28 + $0x1e0] sm:$0xf]  ;;  %v304_v61 = vld [vmem:[%s2174_s28 + $0x1e8] sm:$0xf]  ;;  %301 = vst [vmem:[%s2181_s29 + $0xec] sm:$0xf] %v300_v59 }
  0x38   : > { %303 = vst [vmem:[%s2181_s29 + $0xf0] sm:$0xf] %v302_v60  ;;  %305 = vst [vmem:[%s2181_s29 + $0xf4] sm:$0xf] %v304_v61  ;;  %v306_v62 = vld [vmem:[%s2174_s28 + $0x1f0] sm:$0xf] }
  0x39   : > { %v308_v63 = vld [vmem:[%s2174_s28 + $0x1f8] sm:$0xf]  ;;  %v310_v0 = vld [vmem:[%s2174_s28 + $0x200] sm:$0xf]  ;;  %307 = vst [vmem:[%s2181_s29 + $0xf8] sm:$0xf] %v306_v62 }
  0x3a   : > { %309 = vst [vmem:[%s2181_s29 + $0xfc] sm:$0xf] %v308_v63  ;;  %311 = vst [vmem:[%s2181_s29 + $0x100] sm:$0xf] %v310_v0  ;;  %v312_v1 = vld [vmem:[%s2174_s28 + $0x208] sm:$0xf] }
  0x3b   : > { %v314_v2 = vld [vmem:[%s2174_s28 + $0x210] sm:$0xf]  ;;  %v316_v3 = vld [vmem:[%s2174_s28 + $0x218] sm:$0xf]  ;;  %313 = vst [vmem:[%s2181_s29 + $0x104] sm:$0xf] %v312_v1 }
  0x3c   : > { %315 = vst [vmem:[%s2181_s29 + $0x108] sm:$0xf] %v314_v2  ;;  %317 = vst [vmem:[%s2181_s29 + $0x10c] sm:$0xf] %v316_v3  ;;  %v318_v4 = vld [vmem:[%s2174_s28 + $0x220] sm:$0xf] }
  0x3d   : > { %v320_v5 = vld [vmem:[%s2174_s28 + $0x228] sm:$0xf]  ;;  %v322_v6 = vld [vmem:[%s2174_s28 + $0x230] sm:$0xf]  ;;  %319 = vst [vmem:[%s2181_s29 + $0x110] sm:$0xf] %v318_v4 }
  0x3e   : > { %321 = vst [vmem:[%s2181_s29 + $0x114] sm:$0xf] %v320_v5  ;;  %323 = vst [vmem:[%s2181_s29 + $0x118] sm:$0xf] %v322_v6  ;;  %v324_v7 = vld [vmem:[%s2174_s28 + $0x238] sm:$0xf] }
  0x3f   : > { %v326_v8 = vld [vmem:[%s2174_s28 + $0x240] sm:$0xf]  ;;  %v328_v9 = vld [vmem:[%s2174_s28 + $0x248] sm:$0xf]  ;;  %325 = vst [vmem:[%s2181_s29 + $0x11c] sm:$0xf] %v324_v7 }
  0x40   : > { %327 = vst [vmem:[%s2181_s29 + $0x120] sm:$0xf] %v326_v8  ;;  %329 = vst [vmem:[%s2181_s29 + $0x124] sm:$0xf] %v328_v9  ;;  %v330_v10 = vld [vmem:[%s2174_s28 + $0x250] sm:$0xf] }
  0x41   : > { %v332_v11 = vld [vmem:[%s2174_s28 + $0x258] sm:$0xf]  ;;  %v334_v12 = vld [vmem:[%s2174_s28 + $0x260] sm:$0xf]  ;;  %331 = vst [vmem:[%s2181_s29 + $0x128] sm:$0xf] %v330_v10 }
  0x42   : > { %333 = vst [vmem:[%s2181_s29 + $0x12c] sm:$0xf] %v332_v11  ;;  %335 = vst [vmem:[%s2181_s29 + $0x130] sm:$0xf] %v334_v12  ;;  %v336_v13 = vld [vmem:[%s2174_s28 + $0x268] sm:$0xf] }
  0x43   : > { %v338_v14 = vld [vmem:[%s2174_s28 + $0x270] sm:$0xf]  ;;  %v340_v15 = vld [vmem:[%s2174_s28 + $0x278] sm:$0xf]  ;;  %337 = vst [vmem:[%s2181_s29 + $0x134] sm:$0xf] %v336_v13 }
  0x44   : > { %339 = vst [vmem:[%s2181_s29 + $0x138] sm:$0xf] %v338_v14  ;;  %341 = vst [vmem:[%s2181_s29 + $0x13c] sm:$0xf] %v340_v15  ;;  %v342_v16 = vld [vmem:[%s2174_s28 + $0x280] sm:$0xf] }
  0x45   : > { %v344_v17 = vld [vmem:[%s2174_s28 + $0x288] sm:$0xf]  ;;  %v346_v18 = vld [vmem:[%s2174_s28 + $0x290] sm:$0xf]  ;;  %343 = vst [vmem:[%s2181_s29 + $0x140] sm:$0xf] %v342_v16 }
  0x46   : > { %345 = vst [vmem:[%s2181_s29 + $0x144] sm:$0xf] %v344_v17  ;;  %347 = vst [vmem:[%s2181_s29 + $0x148] sm:$0xf] %v346_v18  ;;  %v348_v19 = vld [vmem:[%s2174_s28 + $0x298] sm:$0xf] }
  0x47   : > { %v350_v20 = vld [vmem:[%s2174_s28 + $0x2a0] sm:$0xf]  ;;  %v352_v21 = vld [vmem:[%s2174_s28 + $0x2a8] sm:$0xf]  ;;  %349 = vst [vmem:[%s2181_s29 + $0x14c] sm:$0xf] %v348_v19 }
  0x48   : > { %351 = vst [vmem:[%s2181_s29 + $0x150] sm:$0xf] %v350_v20  ;;  %353 = vst [vmem:[%s2181_s29 + $0x154] sm:$0xf] %v352_v21  ;;  %v354_v22 = vld [vmem:[%s2174_s28 + $0x2b0] sm:$0xf] }
  0x49   : > { %v356_v23 = vld [vmem:[%s2174_s28 + $0x2b8] sm:$0xf]  ;;  %v358_v24 = vld [vmem:[%s2174_s28 + $0x2c0] sm:$0xf]  ;;  %355 = vst [vmem:[%s2181_s29 + $0x158] sm:$0xf] %v354_v22 }
  0x4a   : > { %357 = vst [vmem:[%s2181_s29 + $0x15c] sm:$0xf] %v356_v23  ;;  %359 = vst [vmem:[%s2181_s29 + $0x160] sm:$0xf] %v358_v24  ;;  %v360_v25 = vld [vmem:[%s2174_s28 + $0x2c8] sm:$0xf] }
  0x4b   : > { %v362_v26 = vld [vmem:[%s2174_s28 + $0x2d0] sm:$0xf]  ;;  %v364_v27 = vld [vmem:[%s2174_s28 + $0x2d8] sm:$0xf]  ;;  %361 = vst [vmem:[%s2181_s29 + $0x164] sm:$0xf] %v360_v25 }
  0x4c   : > { %363 = vst [vmem:[%s2181_s29 + $0x168] sm:$0xf] %v362_v26  ;;  %365 = vst [vmem:[%s2181_s29 + $0x16c] sm:$0xf] %v364_v27  ;;  %v366_v28 = vld [vmem:[%s2174_s28 + $0x2e0] sm:$0xf] }
  0x4d   : > { %v368_v29 = vld [vmem:[%s2174_s28 + $0x2e8] sm:$0xf]  ;;  %v370_v30 = vld [vmem:[%s2174_s28 + $0x2f0] sm:$0xf]  ;;  %367 = vst [vmem:[%s2181_s29 + $0x170] sm:$0xf] %v366_v28 }
  0x4e   : > { %369 = vst [vmem:[%s2181_s29 + $0x174] sm:$0xf] %v368_v29  ;;  %371 = vst [vmem:[%s2181_s29 + $0x178] sm:$0xf] %v370_v30  ;;  %v372_v31 = vld [vmem:[%s2174_s28 + $0x2f8] sm:$0xf] }
  0x4f   : > { %v374_v32 = vld [vmem:[%s2174_s28 + $0x300] sm:$0xf]  ;;  %v376_v33 = vld [vmem:[%s2174_s28 + $0x308] sm:$0xf]  ;;  %373 = vst [vmem:[%s2181_s29 + $0x17c] sm:$0xf] %v372_v31 }
  0x50   : > { %375 = vst [vmem:[%s2181_s29 + $0x180] sm:$0xf] %v374_v32  ;;  %377 = vst [vmem:[%s2181_s29 + $0x184] sm:$0xf] %v376_v33  ;;  %v378_v34 = vld [vmem:[%s2174_s28 + $0x310] sm:$0xf] }
  0x51   : > { %v380_v35 = vld [vmem:[%s2174_s28 + $0x318] sm:$0xf]  ;;  %v382_v36 = vld [vmem:[%s2174_s28 + $0x320] sm:$0xf]  ;;  %379 = vst [vmem:[%s2181_s29 + $0x188] sm:$0xf] %v378_v34 }
  0x52   : > { %381 = vst [vmem:[%s2181_s29 + $0x18c] sm:$0xf] %v380_v35  ;;  %383 = vst [vmem:[%s2181_s29 + $0x190] sm:$0xf] %v382_v36  ;;  %v384_v37 = vld [vmem:[%s2174_s28 + $0x328] sm:$0xf] }
  0x53   : > { %v386_v38 = vld [vmem:[%s2174_s28 + $0x330] sm:$0xf]  ;;  %v388_v39 = vld [vmem:[%s2174_s28 + $0x338] sm:$0xf]  ;;  %385 = vst [vmem:[%s2181_s29 + $0x194] sm:$0xf] %v384_v37 }
  0x54   : > { %387 = vst [vmem:[%s2181_s29 + $0x198] sm:$0xf] %v386_v38  ;;  %389 = vst [vmem:[%s2181_s29 + $0x19c] sm:$0xf] %v388_v39  ;;  %v390_v40 = vld [vmem:[%s2174_s28 + $0x340] sm:$0xf] }
  0x55   : > { %v392_v41 = vld [vmem:[%s2174_s28 + $0x348] sm:$0xf]  ;;  %v394_v42 = vld [vmem:[%s2174_s28 + $0x350] sm:$0xf]  ;;  %391 = vst [vmem:[%s2181_s29 + $0x1a0] sm:$0xf] %v390_v40 }
  0x56   : > { %393 = vst [vmem:[%s2181_s29 + $0x1a4] sm:$0xf] %v392_v41  ;;  %395 = vst [vmem:[%s2181_s29 + $0x1a8] sm:$0xf] %v394_v42  ;;  %v396_v43 = vld [vmem:[%s2174_s28 + $0x358] sm:$0xf] }
  0x57   : > { %v398_v44 = vld [vmem:[%s2174_s28 + $0x360] sm:$0xf]  ;;  %v400_v45 = vld [vmem:[%s2174_s28 + $0x368] sm:$0xf]  ;;  %397 = vst [vmem:[%s2181_s29 + $0x1ac] sm:$0xf] %v396_v43 }
  0x58   : > { %399 = vst [vmem:[%s2181_s29 + $0x1b0] sm:$0xf] %v398_v44  ;;  %401 = vst [vmem:[%s2181_s29 + $0x1b4] sm:$0xf] %v400_v45  ;;  %v402_v46 = vld [vmem:[%s2174_s28 + $0x370] sm:$0xf] }
  0x59   : > { %v404_v47 = vld [vmem:[%s2174_s28 + $0x378] sm:$0xf]  ;;  %v406_v48 = vld [vmem:[%s2174_s28 + $0x380] sm:$0xf]  ;;  %403 = vst [vmem:[%s2181_s29 + $0x1b8] sm:$0xf] %v402_v46 }
  0x5a   : > { %405 = vst [vmem:[%s2181_s29 + $0x1bc] sm:$0xf] %v404_v47  ;;  %407 = vst [vmem:[%s2181_s29 + $0x1c0] sm:$0xf] %v406_v48  ;;  %v408_v49 = vld [vmem:[%s2174_s28 + $0x388] sm:$0xf] }
  0x5b   : > { %v410_v50 = vld [vmem:[%s2174_s28 + $0x390] sm:$0xf]  ;;  %v412_v51 = vld [vmem:[%s2174_s28 + $0x398] sm:$0xf]  ;;  %409 = vst [vmem:[%s2181_s29 + $0x1c4] sm:$0xf] %v408_v49 }
  0x5c   : > { %411 = vst [vmem:[%s2181_s29 + $0x1c8] sm:$0xf] %v410_v50  ;;  %413 = vst [vmem:[%s2181_s29 + $0x1cc] sm:$0xf] %v412_v51  ;;  %v414_v52 = vld [vmem:[%s2174_s28 + $0x3a0] sm:$0xf] }
  0x5d   : > { %v416_v53 = vld [vmem:[%s2174_s28 + $0x3a8] sm:$0xf]  ;;  %v418_v54 = vld [vmem:[%s2174_s28 + $0x3b0] sm:$0xf]  ;;  %415 = vst [vmem:[%s2181_s29 + $0x1d0] sm:$0xf] %v414_v52 }
  0x5e   : > { %417 = vst [vmem:[%s2181_s29 + $0x1d4] sm:$0xf] %v416_v53  ;;  %419 = vst [vmem:[%s2181_s29 + $0x1d8] sm:$0xf] %v418_v54  ;;  %v420_v55 = vld [vmem:[%s2174_s28 + $0x3b8] sm:$0xf] }
  0x5f   : > { %v422_v56 = vld [vmem:[%s2174_s28 + $0x3c0] sm:$0xf]  ;;  %v424_v57 = vld [vmem:[%s2174_s28 + $0x3c8] sm:$0xf]  ;;  %421 = vst [vmem:[%s2181_s29 + $0x1dc] sm:$0xf] %v420_v55 }
  0x60   : > { %423 = vst [vmem:[%s2181_s29 + $0x1e0] sm:$0xf] %v422_v56  ;;  %425 = vst [vmem:[%s2181_s29 + $0x1e4] sm:$0xf] %v424_v57  ;;  %v426_v58 = vld [vmem:[%s2174_s28 + $0x3d0] sm:$0xf] }
  0x61   : > { %v428_v59 = vld [vmem:[%s2174_s28 + $0x3d8] sm:$0xf]  ;;  %v430_v60 = vld [vmem:[%s2174_s28 + $0x3e0] sm:$0xf]  ;;  %427 = vst [vmem:[%s2181_s29 + $0x1e8] sm:$0xf] %v426_v58 }
  0x62   : > { %429 = vst [vmem:[%s2181_s29 + $0x1ec] sm:$0xf] %v428_v59  ;;  %431 = vst [vmem:[%s2181_s29 + $0x1f0] sm:$0xf] %v430_v60  ;;  %v432_v61 = vld [vmem:[%s2174_s28 + $0x3e8] sm:$0xf] }
  0x63   : > { %v434_v62 = vld [vmem:[%s2174_s28 + $0x3f0] sm:$0xf]  ;;  %v436_v63 = vld [vmem:[%s2174_s28 + $0x3f8] sm:$0xf]  ;;  %433 = vst [vmem:[%s2181_s29 + $0x1f4] sm:$0xf] %v432_v61 }
  0x64   : > { %435 = vst [vmem:[%s2181_s29 + $0x1f8] sm:$0xf] %v434_v62  ;;  %437 = vst [vmem:[%s2181_s29 + $0x1fc] sm:$0xf] %v436_v63  ;;  %v438_v0 = vld [vmem:[%s2174_s28 + $0x400] sm:$0xf] }
  0x65   : > { %v440_v1 = vld [vmem:[%s2174_s28 + $0x408] sm:$0xf]  ;;  %v442_v2 = vld [vmem:[%s2174_s28 + $0x410] sm:$0xf]  ;;  %439 = vst [vmem:[%s2181_s29 + $0x200] sm:$0xf] %v438_v0 }
  0x66   : > { %441 = vst [vmem:[%s2181_s29 + $0x204] sm:$0xf] %v440_v1  ;;  %443 = vst [vmem:[%s2181_s29 + $0x208] sm:$0xf] %v442_v2  ;;  %v444_v3 = vld [vmem:[%s2174_s28 + $0x418] sm:$0xf] }
  0x67   : > { %v446_v4 = vld [vmem:[%s2174_s28 + $0x420] sm:$0xf]  ;;  %v448_v5 = vld [vmem:[%s2174_s28 + $0x428] sm:$0xf]  ;;  %445 = vst [vmem:[%s2181_s29 + $0x20c] sm:$0xf] %v444_v3 }
  0x68   : > { %447 = vst [vmem:[%s2181_s29 + $0x210] sm:$0xf] %v446_v4  ;;  %449 = vst [vmem:[%s2181_s29 + $0x214] sm:$0xf] %v448_v5  ;;  %v450_v6 = vld [vmem:[%s2174_s28 + $0x430] sm:$0xf] }
  0x69   : > { %v452_v7 = vld [vmem:[%s2174_s28 + $0x438] sm:$0xf]  ;;  %v454_v8 = vld [vmem:[%s2174_s28 + $0x440] sm:$0xf]  ;;  %451 = vst [vmem:[%s2181_s29 + $0x218] sm:$0xf] %v450_v6 }
  0x6a   : > { %453 = vst [vmem:[%s2181_s29 + $0x21c] sm:$0xf] %v452_v7  ;;  %455 = vst [vmem:[%s2181_s29 + $0x220] sm:$0xf] %v454_v8  ;;  %v456_v9 = vld [vmem:[%s2174_s28 + $0x448] sm:$0xf] }
  0x6b   : > { %v458_v10 = vld [vmem:[%s2174_s28 + $0x450] sm:$0xf]  ;;  %v460_v11 = vld [vmem:[%s2174_s28 + $0x458] sm:$0xf]  ;;  %457 = vst [vmem:[%s2181_s29 + $0x224] sm:$0xf] %v456_v9 }
  0x6c   : > { %459 = vst [vmem:[%s2181_s29 + $0x228] sm:$0xf] %v458_v10  ;;  %461 = vst [vmem:[%s2181_s29 + $0x22c] sm:$0xf] %v460_v11  ;;  %v462_v12 = vld [vmem:[%s2174_s28 + $0x460] sm:$0xf] }
  0x6d   : > { %v464_v13 = vld [vmem:[%s2174_s28 + $0x468] sm:$0xf]  ;;  %v466_v14 = vld [vmem:[%s2174_s28 + $0x470] sm:$0xf]  ;;  %463 = vst [vmem:[%s2181_s29 + $0x230] sm:$0xf] %v462_v12 }
  0x6e   : > { %465 = vst [vmem:[%s2181_s29 + $0x234] sm:$0xf] %v464_v13  ;;  %467 = vst [vmem:[%s2181_s29 + $0x238] sm:$0xf] %v466_v14  ;;  %v468_v15 = vld [vmem:[%s2174_s28 + $0x478] sm:$0xf] }
  0x6f   : > { %469 = vst [vmem:[%s2181_s29 + $0x23c] sm:$0xf] %v468_v15 }
  0x70 PF: > { %p1776_p5 = scmp.ge.s32.totalorder %s2111_s17, 1  ;;  %p792_p6 = scmp.lt.s32.totalorder %s2111_s17, 3 }
  0x72   : > { %p793_p7 = pnand %p1776_p5, %p792_p6 }
  0x73   : > { %s799_s30 = sand.u32 (!%p793_p7), 1, %s2103_s15   ;;  %p829_p8 = scmp.lt.s32.totalorder (!%p793_p7), %s1771_s18, 1 }
  0x74   : > { %796 = sbr.rel (%p793_p7) target bundleno = 464 (0x1d0), region = 73 }
  0x75   : > { %s1979_s9 = smul.u32 (!%p793_p7), 576, %s799_s30 }
  0x77   : > { %s2483_s10 = scalar_lea.vmem (!%p793_p7), [#allocation2], %s1979_s9 }
  0x79   : > { %v2472_v16 = vld [vmem:[%s2605_s0] sm:$0xff]  ;;  %v2477_v17 = vld [vmem:[%s2605_s0 + $0x8] sm:$0xff]  ;;  %v2006_v20 = vld [vmem:[%s2483_s10 + $0x78] sm:$0xff]   ;;  %vm2114_vm0 = vmmov 0   ;;  %s2614_s18 = smov (!%p829_p8, %s1771_s18), 1 }
  0x7a   : > { %v1779_v18 = vcombine.high %v2472_v16, %v2472_v16  ;;  %v1781_v19 = vcombine.high %v2477_v17, %v2477_v17  ;;  %v2007_v21 = vld [vmem:[%s2483_s10 + $0xf8] sm:$0xff]   ;;  %1861 = vmatprep.subr.bf16.mxu0 %v2006_v20  ;;  %v2010_v24 = vld [vmem:[%s2483_s10 + $0x70] sm:$0xff]   ;;  %v2014_v28 = vld [vmem:[%s2483_s10 + $0x68] sm:$0xff]   ;;  %v1778_v54 = vcombine.low %v2472_v16, %v2472_v16  ;;  %v1780_v55 = vcombine.low %v2477_v17, %v2477_v17  ;;  %s831_s24 = scalar_lea.vmem %s2607_s2, %s2614_s18  ;;  %s834_s27 = scalar_lea.vmem %s2608_s3, %s2614_s18 }
  0x7b   : > { %v2008_v22 = vld [vmem:[%s2483_s10 + $0x38] sm:$0xff]   ;;  %1883 = vmatprep.subr.bf16.mxu1 %v2007_v21  ;;  %v2011_v25 = vld [vmem:[%s2483_s10 + $0xf0] sm:$0xff]   ;;  %v2015_v29 = vld [vmem:[%s2483_s10 + $0xe8] sm:$0xff]   ;;  %s1777_s17 = sshll.u32 %s2614_s18, 3 }
  0x7c   : > { %1485 = vmatprep.mubr.bf16.mxu0 %v1779_v18  ;;  %1525 = vmatprep.mubr.bf16.mxu1 %v1781_v19  ;;  %v2009_v23 = vld [vmem:[%s2483_s10 + $0xb8] sm:$0xff]   ;;  %v2012_v26 = vld [vmem:[%s2483_s10 + $0x30] sm:$0xff]   ;;  %v2016_v30 = vld [vmem:[%s2483_s10 + $0x28] sm:$0xff]   ;;  %s838_s30 = scalar_lea.vmem %s2609_s4, %s1777_s17 }
  0x7d   : > { %1862 = vmatpush3.bf16.msra.mxu0 %v2008_v22  ;;  %1884 = vmatpush3.bf16.msra.mxu1 %v2009_v23  ;;  %v2013_v27 = vld [vmem:[%s2483_s10 + $0xb0] sm:$0xff]   ;;  %v2017_v31 = vld [vmem:[%s2483_s10 + $0xa8] sm:$0xff]   ;;  %v2018_v32 = vld [vmem:[%s2483_s10 + $0x60] sm:$0xff]  }
  0x7e   : > { %1863 = vmatprep.subr.bf16.mxu0 %v2010_v24  ;;  %1885 = vmatprep.subr.bf16.mxu1 %v2011_v25  ;;  %v2019_v33 = vld [vmem:[%s2483_s10 + $0xe0] sm:$0xff]   ;;  %v2022_v36 = vld [vmem:[%s2483_s10 + $0x58] sm:$0xff]   ;;  %v2026_v40 = vld [vmem:[%s2483_s10 + $0x50] sm:$0xff]  }
  0x7f   : > { %v2020_v34 = vld [vmem:[%s2483_s10 + $0x20] sm:$0xff]   ;;  %v2023_v37 = vld [vmem:[%s2483_s10 + $0xd8] sm:$0xff]   ;;  %v2027_v41 = vld [vmem:[%s2483_s10 + $0xd0] sm:$0xff]  }
  0x80   : > { %v2021_v35 = vld [vmem:[%s2483_s10 + $0xa0] sm:$0xff]   ;;  %v2024_v38 = vld [vmem:[%s2483_s10 + $0x18] sm:$0xff]   ;;  %v2028_v42 = vld [vmem:[%s2483_s10 + $0x10] sm:$0xff]  }
  0x81   : > { %1864 = vmatpush3.bf16.msra.mxu0 %v2012_v26  ;;  %1886 = vmatpush3.bf16.msra.mxu1 %v2013_v27  ;;  %v2025_v39 = vld [vmem:[%s2483_s10 + $0x98] sm:$0xff]   ;;  %v2029_v43 = vld [vmem:[%s2483_s10 + $0x90] sm:$0xff]   ;;  %v2030_v44 = vld [vmem:[%s2483_s10 + $0x48] sm:$0xff]  }
  0x82   : > { %1865 = vmatprep.subr.bf16.mxu0 %v2014_v28  ;;  %1887 = vmatprep.subr.bf16.mxu1 %v2015_v29  ;;  %v2031_v45 = vld [vmem:[%s2483_s10 + $0xc8] sm:$0xff]   ;;  %v2034_v48 = vld [vmem:[%s2483_s10 + $0x40] sm:$0xff]   ;;  %v2517_v49 = vld [vmem:[%s2605_s0 + $0x10] sm:$0xff]  ;;  %v2113_v28 = vmov 0.0  }
  0x83   : > { %v2032_v46 = vld [vmem:[%s2483_s10 + $0x8] sm:$0xff]   ;;  %v2035_v50 = vld [vmem:[%s2483_s10 + $0xc0] sm:$0xff]   ;;  %v2524_v52 = vld [vmem:[%s2605_s0 + $0x18] sm:$0xff]  ;;  %v1783_v58 = vcombine.high %v2517_v49, %v2517_v49  ;;  %v1782_v25 = vcombine.low %v2517_v49, %v2517_v49 }
  0x84   : > { %v2033_v47 = vld [vmem:[%s2483_s10 + $0x88] sm:$0xff]   ;;  %v2036_v51 = vld [vmem:[%s2483_s10] sm:$0xff]   ;;  %v2042_v56 = vld [vmem:[%s2483_s10 + $0x178] sm:$0xff]   ;;  %v1785_v61 = vcombine.high %v2524_v52, %v2524_v52  ;;  %v1784_v29 = vcombine.low %v2524_v52, %v2524_v52 }
  0x85   : > { %1866 = vmatpush3.bf16.msra.mxu0 %v2016_v30  ;;  %1888 = vmatpush3.bf16.msra.mxu1 %v2017_v31  ;;  %v2037_v53 = vld [vmem:[%s2483_s10 + $0x80] sm:$0xff]   ;;  %v2043_v57 = vld [vmem:[%s2483_s10 + $0x138] sm:$0xff]   ;;  %v2046_v62 = vld [vmem:[%s2483_s10 + $0x170] sm:$0xff]  }
  0x86   : > { %1867 = vmatprep.subr.bf16.mxu0 %v2018_v32  ;;  %1889 = vmatprep.subr.bf16.mxu1 %v2019_v33  ;;  %v2044_v59 = vld [vmem:[%s2483_s10 + $0x1f8] sm:$0xff]   ;;  %v2047_v63 = vld [vmem:[%s2483_s10 + $0x130] sm:$0xff]   ;;  %v2050_v2 = vld [vmem:[%s2483_s10 + $0x168] sm:$0xff]  }
  0x87   : > { %v2045_v60 = vld [vmem:[%s2483_s10 + $0x1b8] sm:$0xff]   ;;  %v2048_v0 = vld [vmem:[%s2483_s10 + $0x1f0] sm:$0xff]   ;;  %v2051_v3 = vld [vmem:[%s2483_s10 + $0x128] sm:$0xff]  }
  0x88   : > { %v2049_v1 = vld [vmem:[%s2483_s10 + $0x1b0] sm:$0xff]   ;;  %v2052_v4 = vld [vmem:[%s2483_s10 + $0x1e8] sm:$0xff]   ;;  %v2054_v6 = vld [vmem:[%s2483_s10 + $0x160] sm:$0xff]  }
  0x89   : > { %1868 = vmatpush3.bf16.msra.mxu0 %v2020_v34  ;;  %1890 = vmatpush3.bf16.msra.mxu1 %v2021_v35  ;;  %v2053_v5 = vld [vmem:[%s2483_s10 + $0x1a8] sm:$0xff]   ;;  %v2055_v7 = vld [vmem:[%s2483_s10 + $0x120] sm:$0xff]   ;;  %v2058_v10 = vld [vmem:[%s2483_s10 + $0x158] sm:$0xff]  }
  0x8a   : > { %1869 = vmatprep.subr.bf16.mxu0 %v2022_v36  ;;  %1891 = vmatprep.subr.bf16.mxu1 %v2023_v37  ;;  %v2056_v8 = vld [vmem:[%s2483_s10 + $0x1e0] sm:$0xff]   ;;  %v2059_v11 = vld [vmem:[%s2483_s10 + $0x118] sm:$0xff]   ;;  %v2062_v14 = vld [vmem:[%s2483_s10 + $0x150] sm:$0xff]  }
  0x8b   : > { %v2057_v9 = vld [vmem:[%s2483_s10 + $0x1a0] sm:$0xff]   ;;  %v2060_v12 = vld [vmem:[%s2483_s10 + $0x1d8] sm:$0xff]   ;;  %v2063_v15 = vld [vmem:[%s2483_s10 + $0x110] sm:$0xff]  }
  0x8c   : > { %v2061_v13 = vld [vmem:[%s2483_s10 + $0x198] sm:$0xff]   ;;  %v2064_v16 = vld [vmem:[%s2483_s10 + $0x1d0] sm:$0xff]   ;;  %v2066_v18 = vld [vmem:[%s2483_s10 + $0x148] sm:$0xff]  }
  0x8d   : > { %1870 = vmatpush3.bf16.msra.mxu0 %v2024_v38  ;;  %1892 = vmatpush3.bf16.msra.mxu1 %v2025_v39  ;;  %v2065_v17 = vld [vmem:[%s2483_s10 + $0x190] sm:$0xff]   ;;  %v2067_v19 = vld [vmem:[%s2483_s10 + $0x108] sm:$0xff]   ;;  %v2070_v22 = vld [vmem:[%s2483_s10 + $0x140] sm:$0xff]  }
  0x8e   : > { %1871 = vmatprep.subr.bf16.mxu0 %v2026_v40  ;;  %1893 = vmatprep.subr.bf16.mxu1 %v2027_v41  ;;  %v2068_v20 = vld [vmem:[%s2483_s10 + $0x1c8] sm:$0xff]   ;;  %v2071_v23 = vld [vmem:[%s2483_s10 + $0x100] sm:$0xff]   ;;  %v2078_v27 = vld [vmem:[%s2483_s10 + $0x238] sm:$0xff]  }
  0x8f   : > { %v2069_v21 = vld [vmem:[%s2483_s10 + $0x188] sm:$0xff]   ;;  %v2072_v24 = vld [vmem:[%s2483_s10 + $0x1c0] sm:$0xff]   ;;  %v2079_v30 = vld [vmem:[%s2483_s10 + $0x230] sm:$0xff]  }
  0x90   : > { %v2075_v26 = vld [vmem:[%s2483_s10 + $0x180] sm:$0xff]   ;;  %v2080_v31 = vld [vmem:[%s2483_s10 + $0x228] sm:$0xff]   ;;  %v2082_v33 = vld [vmem:[%s2483_s10 + $0x218] sm:$0xff]  }
  0x91   : > { %1872 = vmatpush3.bf16.msra.mxu0 %v2028_v42  ;;  %1894 = vmatpush3.bf16.msra.mxu1 %v2029_v43  ;;  %v2081_v32 = vld [vmem:[%s2483_s10 + $0x220] sm:$0xff]   ;;  %v2083_v34 = vld [vmem:[%s2483_s10 + $0x210] sm:$0xff]   ;;  %v2084_v35 = vld [vmem:[%s2483_s10 + $0x208] sm:$0xff]  }
  0x92   : > { %1873 = vmatprep.subr.bf16.mxu0 %v2030_v44  ;;  %1895 = vmatprep.subr.bf16.mxu1 %v2031_v45  ;;  %v2085_v36 = vld [vmem:[%s2483_s10 + $0x200] sm:$0xff]  }
  0x93   : > { %v2086_v37 = vld [vmem:[%s2605_s0 + $0x20] ss:$0 sps:$4 sm:$0xff]  }
  0x95   : > { %1874 = vmatpush3.bf16.msra.mxu0 %v2032_v46  ;;  %1896 = vmatpush3.bf16.msra.mxu1 %v2033_v47 }
  0x96   : > { %1875 = vmatprep.subr.bf16.mxu0 %v2034_v48  ;;  %1897 = vmatprep.subr.bf16.mxu1 %v2035_v50 }
  0x99   : > { %1876 = vmatpush3.bf16.msra.mxu0 %v2036_v51  ;;  %1898 = vmatpush3.bf16.msra.mxu1 %v2037_v53 }
  0x9a   : > { %1905 = vmatprep.subr.bf16.mxu0 %v2042_v56  ;;  %1927 = vmatprep.subr.bf16.mxu1 %v2044_v59 }
  0x9c   : > { %1486 = vmatmul.mubr.bf16.vlgmr.msra.gmra.mxu0 %v1778_v54  ;;  %1526 = vmatmul.mubr.bf16.vlgmr.msra.gmra.mxu1 %v1780_v55 }
  0x9d   : > { %1906 = vmatpush3.bf16.msra.mxu0 %v2043_v57  ;;  %1565 = vmatprep.mubr.bf16.mxu0 %v1783_v58 }
  0x9e   : > { %1928 = vmatpush3.bf16.msra.mxu1 %v2045_v60  ;;  %1907 = vmatprep.subr.bf16.mxu0 %v2046_v62 }
  0x9f   : > { %1605 = vmatprep.mubr.bf16.mxu1 %v1785_v61  ;;  %1929 = vmatprep.subr.bf16.mxu1 %v2048_v0 }
  0xa1   : > { %1908 = vmatpush3.bf16.msra.mxu0 %v2047_v63 }
  0xa2   : > { %1930 = vmatpush3.bf16.msra.mxu1 %v2049_v1  ;;  %1909 = vmatprep.subr.bf16.mxu0 %v2050_v2 }
  0xa3   : > { %1931 = vmatprep.subr.bf16.mxu1 %v2052_v4 }
  0xa5   : > { %1910 = vmatpush3.bf16.msra.mxu0 %v2051_v3 }
  0xa6   : > { %1932 = vmatpush3.bf16.msra.mxu1 %v2053_v5  ;;  %1911 = vmatprep.subr.bf16.mxu0 %v2054_v6 }
  0xa7   : > { %1933 = vmatprep.subr.bf16.mxu1 %v2056_v8 }
  0xa9   : > { %1912 = vmatpush3.bf16.msra.mxu0 %v2055_v7 }
  0xaa   : > { %1934 = vmatpush3.bf16.msra.mxu1 %v2057_v9  ;;  %1913 = vmatprep.subr.bf16.mxu0 %v2058_v10 }
  0xab   : > { %1935 = vmatprep.subr.bf16.mxu1 %v2060_v12 }
  0xad   : > { %1914 = vmatpush3.bf16.msra.mxu0 %v2059_v11 }
  0xae   : > { %1936 = vmatpush3.bf16.msra.mxu1 %v2061_v13  ;;  %1915 = vmatprep.subr.bf16.mxu0 %v2062_v14 }
  0xaf   : > { %1937 = vmatprep.subr.bf16.mxu1 %v2064_v16 }
  0xb1   : > { %1916 = vmatpush3.bf16.msra.mxu0 %v2063_v15 }
  0xb2   : > { %1938 = vmatpush3.bf16.msra.mxu1 %v2065_v17  ;;  %1917 = vmatprep.subr.bf16.mxu0 %v2066_v18 }
  0xb3   : > { %1939 = vmatprep.subr.bf16.mxu1 %v2068_v20 }
  0xb5   : > { %1918 = vmatpush3.bf16.msra.mxu0 %v2067_v19 }
  0xb6   : > { %1940 = vmatpush3.bf16.msra.mxu1 %v2069_v21  ;;  %1919 = vmatprep.subr.bf16.mxu0 %v2070_v22  ;;  %v1679_v21 = vlaneseq }
  0xb7   : > { %1941 = vmatprep.subr.bf16.mxu1 %v2072_v24 }
  0xb8   : > { %v1680_v22 = vshrl.u32 %v1679_v21, 7 }
  0xb9   : > { %1920 = vmatpush3.bf16.msra.mxu0 %v2071_v23  ;;  %v1653_v23 = vld [vmem:[%s831_s24] sm:$0x1] }
  0xba   : > { %1958 = vmatprep.subr.bf16.mxu0 %v2113_v28  ;;  %1942 = vmatpush3.bf16.msra.mxu1 %v2075_v26  ;;  %v1681_v24 = vsub.s32 0, %v1680_v22 }
  0xbc   : > { %1566 = vmatmul.mubr.bf16.vlgmr.msra.gmra.mxu0 %v1782_v25 }
  0xbd   : > { %1959 = vmatpush3.bf16.msra.mxu0 %v2078_v27  ;;  %1974 = vmatprep.mubr.msk.bf16.mxu0 %vm2114_vm0, %v2113_v28  ;;  %v1654_v27 = vld [vmem:[%s834_s27] sm:$0x1] }
  0xbe   : > { %1606 = vmatmul.mubr.bf16.vlgmr.msra.gmra.mxu1 %v1784_v29  ;;  %1960 = vmatprep.subr.bf16.mxu0 %v2113_v28 }
  0xc1   : > { %1961 = vmatpush3.bf16.msra.mxu0 %v2079_v30 }
  0xc2   : > { %1962 = vmatprep.subr.bf16.mxu0 %v2113_v28 }
  0xc5   : > { %1963 = vmatpush3.bf16.msra.mxu0 %v2080_v31 }
  0xc6   : > { %1964 = vmatprep.subr.bf16.mxu0 %v2113_v28 }
  0xc9   : > { %1965 = vmatpush3.bf16.msra.mxu0 %v2081_v32 }
  0xca   : > { %1966 = vmatprep.subr.bf16.mxu0 %v2113_v28 }
  0xcd   : > { %1967 = vmatpush3.bf16.msra.mxu0 %v2082_v33 }
  0xce   : > { %1968 = vmatprep.subr.bf16.mxu0 %v2113_v28 }
  0xd1   : > { %1969 = vmatpush3.bf16.msra.mxu0 %v2083_v34 }
  0xd2   : > { %1970 = vmatprep.subr.bf16.mxu0 %v2113_v28 }
  0xd5   : > { %1971 = vmatpush3.bf16.msra.mxu0 %v2084_v35 }
  0xd6   : > { %1972 = vmatprep.subr.bf16.mxu0 %v2113_v28 }
  0xd9   : > { %1973 = vmatpush3.bf16.msra.mxu0 %v2085_v36 }
  0xdc   : > { %1975 = vmatmul.mubr.bf16.vlgmr.msra.gmra.mxu0 %v2086_v37 }
 0x15c   : > { %v1877_v38 = vpop.f32.mrf.mxu0  ;;  %v1899_v39 = vpop.f32.mrf.mxu1 }
 0x15e   : > { %v1878_v40 = vpop.f32.mrf.mxu0  ;;  %v1900_v41 = vpop.f32.mrf.mxu1 }
 0x15f   : > { %v1879_v54 = vadd.f32 %v1878_v40, %v1877_v38  ;;  %v1901_v55 = vadd.f32 %v1900_v41, %v1899_v39 }
 0x160   : > { %v1880_v42 = vpop.f32.mrf.mxu0  ;;  %v1902_v43 = vpop.f32.mrf.mxu1 }
 0x161   : > { %v1528_v57 = vadd.f32 %v1901_v55, %v1879_v54 }
 0x162   : > { %v1881_v44 = vpop.f32.mrf.mxu0  ;;  %v1903_v45 = vpop.f32.mrf.mxu1 }
 0x17c   : > { %v1921_v46 = vpop.f32.mrf.mxu0 }
 0x17e   : > { %v1922_v47 = vpop.f32.mrf.mxu0  ;;  %v1943_v48 = vpop.f32.mrf.mxu1 }
 0x17f   : > { %v1923_v56 = vadd.f32 %v1922_v47, %v1921_v46 }
 0x180   : > { %v1924_v49 = vpop.f32.mrf.mxu0  ;;  %v1944_v50 = vpop.f32.mrf.mxu1 }
 0x181   : > { %v1568_v58 = vadd.f32 %v1923_v56, %v1528_v57  ;;  %v1945_v59 = vadd.f32 %v1944_v50, %v1943_v48 }
 0x182   : > { %v1925_v51 = vpop.f32.mrf.mxu0  ;;  %v1946_v52 = vpop.f32.mrf.mxu1 }
 0x183   : > { %v1608_v60 = vadd.f32 %v1945_v59, %v1568_v58 }
 0x184   : > { %v1947_v53 = vpop.f32.mrf.mxu1 }
 0x19c   : > { %v1647_v61 = vpop.f32.mrf.mxu0 }
 0x19d   : > { %v1648_v62 = vadd.f32 %v1647_v61, %v1608_v60 }
 0x19e   : > { %v1976_v63 = vpop.f32.mrf.mxu0 }
 0x19f   : > { %v1655_v0 = vrot.slane %v1648_v62, 4  ;;  %v1662_v1 = vmul.f32 %v1648_v62, %v1648_v62 }
 0x1a0   : > { %v1650_v2 = vpop.f32.mrf.mxu0 }
 0x1a1   : > { %v1656_v3 = vadd.f32 %v1655_v0, %v1648_v62  ;;  %v1663_v4 = vrot.slane %v1662_v1, 4 }
 0x1a2   : > { %v1977_v5 = vpop.f32.mrf.mxu0 }
 0x1a3   : > { %v1657_v6 = vrot.slane %v1656_v3, 2  ;;  %v1664_v7 = vadd.f32 %v1663_v4, %v1662_v1 }
 0x1a5   : > { %v1658_v8 = vadd.f32 %v1657_v6, %v1656_v3  ;;  %v1665_v9 = vrot.slane %v1664_v7, 2 }
 0x1a7   : > { %v1659_v10 = vrot.slane %v1658_v8, 1  ;;  %v1666_v11 = vadd.f32 %v1665_v9, %v1664_v7 }
 0x1a9   : > { %v1660_v12 = vadd.f32 %v1659_v10, %v1658_v8  ;;  %v1667_v13 = vrot.slane %v1666_v11, 1 }
 0x1ab   : > { %v1661_v14 = vmul.f32 0.125, %v1660_v12  ;;  %v1668_v15 = vadd.f32 %v1667_v13, %v1666_v11 }
 0x1ad   : > { %v1669_v16 = vmul.f32 0.125, %v1668_v15  ;;  %v1670_v17 = vmul.f32 %v1661_v14, %v1661_v14 }
 0x1af   : > { %v1671_v18 = vsub.f32 %v1669_v16, %v1670_v17 }
 0x1b1   : > { %v1672_v19 = vmax.f32 %v1671_v18, 0.0 }
 0x1b3   : > { %v1673_v20 = vadd.f32 1e-05, %v1672_v19 }
 0x1b5   : > { %2087 = vrsqrt.f32 %v1673_v20 }
 0x1c2   : > { %v2088_v25 = vpop.eup %2087 }
 0x1c3   : > { %v1675_v26 = vmul.f32 %v2088_v25, %v1653_v23 }
 0x1c5   : > { %v1676_v28 = vmul.f32 %v1675_v26, %v1661_v14  ;;  %v1682_v29 = vrot.slane %v1675_v26, %v1681_v24 }
 0x1c7   : > { %v1677_v30 = vsub.f32 %v1654_v27, %v1676_v28  ;;  %v1684_v31 = vmul.f32 %v1682_v29, %v1648_v62 }
 0x1c9   : > { %v1689_v32 = vrot.slane %v1677_v30, %v1681_v24 }
 0x1cb   : > { %v1691_v33 = vadd.f32 %v1689_v32, %v1684_v31 }
 0x1cd   : > { %v1692_v34 = vmax.f32 %v1691_v33, 0.0 }
 0x1cf   : > { %1693 = vst [vmem:[%s838_s30] sm:$0xff] %v1692_v34 }
 0x1d0 PF: > { %p11_p9 = scmp.ge.s32.totalorder %s2157_s19, 4   ;;  %s2610_s15 = smov %s2107_s16 }
 0x1d1   : > { %s2611_s16 = smov %s2166_s22  ;;  %s2612_s17 = smov %s2157_s19 }
 0x1d2   :  { %13 = sbr.rel (!%p11_p9) target bundleno = 2 (0x2), region = 118 }

// kernel: _lambda_.30
= control target key start
LH: loop header
LB: loop body
LE: loop exit
PB: predicated region body
PF: predicated region fallthrough
CT: control target
= control target key end

     0   :  { %s3790_s18 = smov 0   ;;  %s3792_s19 = smov 0   ;;  %s4642_s0 = inlined_call_operand.vmem [shape: bf16[8,2304], index: 0, kind: input, shape index: {}]   ;;  %s4643_s1 = inlined_call_operand.vmem [shape: bf16[2304,256], index: 1, kind: input, shape index: {}]   ;;  %s4644_s2 = inlined_call_operand.vmem [shape: f32[1,256], index: 2, kind: input, shape index: {}, may-alias: {2,3}]   ;;  %s4645_s3 = inlined_call_operand.vmem [shape: f32[1,256], index: 3, kind: input, shape index: {}, may-alias: {2,3}]   ;;  %s4646_s4 = inlined_call_operand.vmem [shape: f32[8,256], index: 4, kind: input, shape index: {}]   ;;  %s4647_s5 = inlined_call_operand.vmem [shape: f32[8,256], index: 5, kind: output, shape index: {}]  }
   0x1   :  { %s3794_s20 = smov 0  }
   0x2 LB: > { %s3176_s21 = sadd.s32 4294967295, %s3758_s20   ;;  %s3807_s22 = sadd.s32 1, %s3758_s20   ;;  %s3758_s20 = sphi %s3794_s20, %s4650_s20   ;;  %s3754_s19 = sphi %s3792_s19, %s4649_s19   ;;  %s3750_s18 = sphi %s3790_s18, %s4648_s18  }
   0x3   : > { %s40_s23 = ssub.s32 %s3758_s20, %s3807_s22  ;;  %s43_s24 = sadd.s32 1, %s3754_s19 }
   0x4   : > { %p41_p0 = scmp.eq.s32.totalorder %s40_s23, 0  ;;  %p50_p1 = scmp.ne.s32.totalorder %s3754_s19, %s3750_s18 }
   0x5   : > { %p51_p2 = scmp.eq.s32.totalorder %s3758_s20, 0  ;;  %p3179_p4 = scmp.ge.s32.totalorder %s3758_s20, 2 }
   0x6   : > { %s3816_s25 = scalar_select %p41_p0, %s3754_s19, %s43_s24  }
   0x7   : > { %p52_p3 = por %p51_p2, %p50_p1  ;;  %183 = sbr.rel (%p3179_p4) target bundleno = 208 (0xd0), region = 20 }
   0xc   : > { %186 = sbr.rel (!%p52_p3) target bundleno = 208 (0xd0), region = 24  ;;  %s188_s26 = sand.u32 (%p52_p3), 1, %s3754_s19  }
   0xd   : > { %s3180_s27 = sshll.u32 (%p52_p3), %s3758_s20, 2  ;;  %s3546_s28 = smul.u32 (%p52_p3), 1152, %s188_s26 }
   0xe   : > { %s3824_s6 = scalar_lea.vmem (%p52_p3), %s4643_s1, %s3180_s27 }
   0xf   : > { %v209_v0 = vld [vmem:[%s3824_s6] sm:$0xf] (%p52_p3)  ;;  %v211_v1 = vld [vmem:[%s3824_s6 + $0x8] sm:$0xf] (%p52_p3)  ;;  %v213_v2 = vld [vmem:[%s3824_s6 + $0x10] sm:$0xf] (%p52_p3) }
  0x10   : > { %v215_v3 = vld [vmem:[%s3824_s6 + $0x18] sm:$0xf] (%p52_p3)  ;;  %v217_v4 = vld [vmem:[%s3824_s6 + $0x20] sm:$0xf] (%p52_p3)  ;;  %s3831_s7 = scalar_lea.vmem (%p52_p3), [#allocation2], %s3546_s28 }
  0x11   : > { %210 = vst [vmem:[%s3831_s7] sm:$0xf] %v209_v0  ;;  %212 = vst [vmem:[%s3831_s7 + $0x4] sm:$0xf] %v211_v1  ;;  %v219_v5 = vld [vmem:[%s3824_s6 + $0x28] sm:$0xf] }
  0x12   : > { %214 = vst [vmem:[%s3831_s7 + $0x8] sm:$0xf] %v213_v2  ;;  %216 = vst [vmem:[%s3831_s7 + $0xc] sm:$0xf] %v215_v3  ;;  %v221_v6 = vld [vmem:[%s3824_s6 + $0x30] sm:$0xf] }
  0x13   : > { %218 = vst [vmem:[%s3831_s7 + $0x10] sm:$0xf] %v217_v4  ;;  %v223_v7 = vld [vmem:[%s3824_s6 + $0x38] sm:$0xf]  ;;  %220 = vst [vmem:[%s3831_s7 + $0x14] sm:$0xf] %v219_v5 }
  0x14   : > { %222 = vst [vmem:[%s3831_s7 + $0x18] sm:$0xf] %v221_v6  ;;  %224 = vst [vmem:[%s3831_s7 + $0x1c] sm:$0xf] %v223_v7  ;;  %v225_v8 = vld [vmem:[%s3824_s6 + $0x40] sm:$0xf] }
  0x15   : > { %v227_v9 = vld [vmem:[%s3824_s6 + $0x48] sm:$0xf]  ;;  %v229_v10 = vld [vmem:[%s3824_s6 + $0x50] sm:$0xf]  ;;  %226 = vst [vmem:[%s3831_s7 + $0x20] sm:$0xf] %v225_v8 }
  0x16   : > { %228 = vst [vmem:[%s3831_s7 + $0x24] sm:$0xf] %v227_v9  ;;  %230 = vst [vmem:[%s3831_s7 + $0x28] sm:$0xf] %v229_v10  ;;  %v231_v11 = vld [vmem:[%s3824_s6 + $0x58] sm:$0xf] }
  0x17   : > { %v233_v12 = vld [vmem:[%s3824_s6 + $0x60] sm:$0xf]  ;;  %v235_v13 = vld [vmem:[%s3824_s6 + $0x68] sm:$0xf]  ;;  %232 = vst [vmem:[%s3831_s7 + $0x2c] sm:$0xf] %v231_v11 }
  0x18   : > { %234 = vst [vmem:[%s3831_s7 + $0x30] sm:$0xf] %v233_v12  ;;  %236 = vst [vmem:[%s3831_s7 + $0x34] sm:$0xf] %v235_v13  ;;  %v237_v14 = vld [vmem:[%s3824_s6 + $0x70] sm:$0xf] }
  0x19   : > { %v239_v15 = vld [vmem:[%s3824_s6 + $0x78] sm:$0xf]  ;;  %v241_v16 = vld [vmem:[%s3824_s6 + $0x80] sm:$0xf]  ;;  %238 = vst [vmem:[%s3831_s7 + $0x38] sm:$0xf] %v237_v14 }
  0x1a   : > { %240 = vst [vmem:[%s3831_s7 + $0x3c] sm:$0xf] %v239_v15  ;;  %242 = vst [vmem:[%s3831_s7 + $0x40] sm:$0xf] %v241_v16  ;;  %v243_v17 = vld [vmem:[%s3824_s6 + $0x88] sm:$0xf] }
  0x1b   : > { %v245_v18 = vld [vmem:[%s3824_s6 + $0x90] sm:$0xf]  ;;  %v247_v19 = vld [vmem:[%s3824_s6 + $0x98] sm:$0xf]  ;;  %244 = vst [vmem:[%s3831_s7 + $0x44] sm:$0xf] %v243_v17 }
  0x1c   : > { %246 = vst [vmem:[%s3831_s7 + $0x48] sm:$0xf] %v245_v18  ;;  %248 = vst [vmem:[%s3831_s7 + $0x4c] sm:$0xf] %v247_v19  ;;  %v249_v20 = vld [vmem:[%s3824_s6 + $0xa0] sm:$0xf] }
  0x1d   : > { %v251_v21 = vld [vmem:[%s3824_s6 + $0xa8] sm:$0xf]  ;;  %v253_v22 = vld [vmem:[%s3824_s6 + $0xb0] sm:$0xf]  ;;  %250 = vst [vmem:[%s3831_s7 + $0x50] sm:$0xf] %v249_v20 }
  0x1e   : > { %252 = vst [vmem:[%s3831_s7 + $0x54] sm:$0xf] %v251_v21  ;;  %254 = vst [vmem:[%s3831_s7 + $0x58] sm:$0xf] %v253_v22  ;;  %v255_v23 = vld [vmem:[%s3824_s6 + $0xb8] sm:$0xf] }
  0x1f   : > { %v257_v24 = vld [vmem:[%s3824_s6 + $0xc0] sm:$0xf]  ;;  %v259_v25 = vld [vmem:[%s3824_s6 + $0xc8] sm:$0xf]  ;;  %256 = vst [vmem:[%s3831_s7 + $0x5c] sm:$0xf] %v255_v23 }
  0x20   : > { %258 = vst [vmem:[%s3831_s7 + $0x60] sm:$0xf] %v257_v24  ;;  %260 = vst [vmem:[%s3831_s7 + $0x64] sm:$0xf] %v259_v25  ;;  %v261_v26 = vld [vmem:[%s3824_s6 + $0xd0] sm:$0xf] }
  0x21   : > { %v263_v27 = vld [vmem:[%s3824_s6 + $0xd8] sm:$0xf]  ;;  %v265_v28 = vld [vmem:[%s3824_s6 + $0xe0] sm:$0xf]  ;;  %262 = vst [vmem:[%s3831_s7 + $0x68] sm:$0xf] %v261_v26 }
  0x22   : > { %264 = vst [vmem:[%s3831_s7 + $0x6c] sm:$0xf] %v263_v27  ;;  %266 = vst [vmem:[%s3831_s7 + $0x70] sm:$0xf] %v265_v28  ;;  %v267_v29 = vld [vmem:[%s3824_s6 + $0xe8] sm:$0xf] }
  0x23   : > { %v269_v30 = vld [vmem:[%s3824_s6 + $0xf0] sm:$0xf]  ;;  %v271_v31 = vld [vmem:[%s3824_s6 + $0xf8] sm:$0xf]  ;;  %268 = vst [vmem:[%s3831_s7 + $0x74] sm:$0xf] %v267_v29 }
  0x24   : > { %270 = vst [vmem:[%s3831_s7 + $0x78] sm:$0xf] %v269_v30  ;;  %272 = vst [vmem:[%s3831_s7 + $0x7c] sm:$0xf] %v271_v31  ;;  %v273_v32 = vld [vmem:[%s3824_s6 + $0x100] sm:$0xf] }
  0x25   : > { %v275_v33 = vld [vmem:[%s3824_s6 + $0x108] sm:$0xf]  ;;  %v277_v34 = vld [vmem:[%s3824_s6 + $0x110] sm:$0xf]  ;;  %274 = vst [vmem:[%s3831_s7 + $0x80] sm:$0xf] %v273_v32 }
  0x26   : > { %276 = vst [vmem:[%s3831_s7 + $0x84] sm:$0xf] %v275_v33  ;;  %278 = vst [vmem:[%s3831_s7 + $0x88] sm:$0xf] %v277_v34  ;;  %v279_v35 = vld [vmem:[%s3824_s6 + $0x118] sm:$0xf] }
  0x27   : > { %v281_v36 = vld [vmem:[%s3824_s6 + $0x120] sm:$0xf]  ;;  %v283_v37 = vld [vmem:[%s3824_s6 + $0x128] sm:$0xf]  ;;  %280 = vst [vmem:[%s3831_s7 + $0x8c] sm:$0xf] %v279_v35 }
  0x28   : > { %282 = vst [vmem:[%s3831_s7 + $0x90] sm:$0xf] %v281_v36  ;;  %284 = vst [vmem:[%s3831_s7 + $0x94] sm:$0xf] %v283_v37  ;;  %v285_v38 = vld [vmem:[%s3824_s6 + $0x130] sm:$0xf] }
  0x29   : > { %v287_v39 = vld [vmem:[%s3824_s6 + $0x138] sm:$0xf]  ;;  %v289_v40 = vld [vmem:[%s3824_s6 + $0x140] sm:$0xf]  ;;  %286 = vst [vmem:[%s3831_s7 + $0x98] sm:$0xf] %v285_v38 }
  0x2a   : > { %288 = vst [vmem:[%s3831_s7 + $0x9c] sm:$0xf] %v287_v39  ;;  %290 = vst [vmem:[%s3831_s7 + $0xa0] sm:$0xf] %v289_v40  ;;  %v291_v41 = vld [vmem:[%s3824_s6 + $0x148] sm:$0xf] }
  0x2b   : > { %v293_v42 = vld [vmem:[%s3824_s6 + $0x150] sm:$0xf]  ;;  %v295_v43 = vld [vmem:[%s3824_s6 + $0x158] sm:$0xf]  ;;  %292 = vst [vmem:[%s3831_s7 + $0xa4] sm:$0xf] %v291_v41 }
  0x2c   : > { %294 = vst [vmem:[%s3831_s7 + $0xa8] sm:$0xf] %v293_v42  ;;  %296 = vst [vmem:[%s3831_s7 + $0xac] sm:$0xf] %v295_v43  ;;  %v297_v44 = vld [vmem:[%s3824_s6 + $0x160] sm:$0xf] }
  0x2d   : > { %v299_v45 = vld [vmem:[%s3824_s6 + $0x168] sm:$0xf]  ;;  %v301_v46 = vld [vmem:[%s3824_s6 + $0x170] sm:$0xf]  ;;  %298 = vst [vmem:[%s3831_s7 + $0xb0] sm:$0xf] %v297_v44 }
  0x2e   : > { %300 = vst [vmem:[%s3831_s7 + $0xb4] sm:$0xf] %v299_v45  ;;  %302 = vst [vmem:[%s3831_s7 + $0xb8] sm:$0xf] %v301_v46  ;;  %v303_v47 = vld [vmem:[%s3824_s6 + $0x178] sm:$0xf] }
  0x2f   : > { %v305_v48 = vld [vmem:[%s3824_s6 + $0x180] sm:$0xf]  ;;  %v307_v49 = vld [vmem:[%s3824_s6 + $0x188] sm:$0xf]  ;;  %304 = vst [vmem:[%s3831_s7 + $0xbc] sm:$0xf] %v303_v47 }
  0x30   : > { %306 = vst [vmem:[%s3831_s7 + $0xc0] sm:$0xf] %v305_v48  ;;  %308 = vst [vmem:[%s3831_s7 + $0xc4] sm:$0xf] %v307_v49  ;;  %v309_v50 = vld [vmem:[%s3824_s6 + $0x190] sm:$0xf] }
  0x31   : > { %v311_v51 = vld [vmem:[%s3824_s6 + $0x198] sm:$0xf]  ;;  %v313_v52 = vld [vmem:[%s3824_s6 + $0x1a0] sm:$0xf]  ;;  %310 = vst [vmem:[%s3831_s7 + $0xc8] sm:$0xf] %v309_v50 }
  0x32   : > { %312 = vst [vmem:[%s3831_s7 + $0xcc] sm:$0xf] %v311_v51  ;;  %314 = vst [vmem:[%s3831_s7 + $0xd0] sm:$0xf] %v313_v52  ;;  %v315_v53 = vld [vmem:[%s3824_s6 + $0x1a8] sm:$0xf] }
  0x33   : > { %v317_v54 = vld [vmem:[%s3824_s6 + $0x1b0] sm:$0xf]  ;;  %v319_v55 = vld [vmem:[%s3824_s6 + $0x1b8] sm:$0xf]  ;;  %316 = vst [vmem:[%s3831_s7 + $0xd4] sm:$0xf] %v315_v53 }
  0x34   : > { %318 = vst [vmem:[%s3831_s7 + $0xd8] sm:$0xf] %v317_v54  ;;  %320 = vst [vmem:[%s3831_s7 + $0xdc] sm:$0xf] %v319_v55  ;;  %v321_v56 = vld [vmem:[%s3824_s6 + $0x1c0] sm:$0xf] }
  0x35   : > { %v323_v57 = vld [vmem:[%s3824_s6 + $0x1c8] sm:$0xf]  ;;  %v325_v58 = vld [vmem:[%s3824_s6 + $0x1d0] sm:$0xf]  ;;  %322 = vst [vmem:[%s3831_s7 + $0xe0] sm:$0xf] %v321_v56 }
  0x36   : > { %324 = vst [vmem:[%s3831_s7 + $0xe4] sm:$0xf] %v323_v57  ;;  %326 = vst [vmem:[%s3831_s7 + $0xe8] sm:$0xf] %v325_v58  ;;  %v327_v59 = vld [vmem:[%s3824_s6 + $0x1d8] sm:$0xf] }
  0x37   : > { %v329_v60 = vld [vmem:[%s3824_s6 + $0x1e0] sm:$0xf]  ;;  %v331_v61 = vld [vmem:[%s3824_s6 + $0x1e8] sm:$0xf]  ;;  %328 = vst [vmem:[%s3831_s7 + $0xec] sm:$0xf] %v327_v59 }
  0x38   : > { %330 = vst [vmem:[%s3831_s7 + $0xf0] sm:$0xf] %v329_v60  ;;  %332 = vst [vmem:[%s3831_s7 + $0xf4] sm:$0xf] %v331_v61  ;;  %v333_v62 = vld [vmem:[%s3824_s6 + $0x1f0] sm:$0xf] }
  0x39   : > { %v335_v63 = vld [vmem:[%s3824_s6 + $0x1f8] sm:$0xf]  ;;  %v337_v0 = vld [vmem:[%s3824_s6 + $0x200] sm:$0xf]  ;;  %334 = vst [vmem:[%s3831_s7 + $0xf8] sm:$0xf] %v333_v62 }
  0x3a   : > { %336 = vst [vmem:[%s3831_s7 + $0xfc] sm:$0xf] %v335_v63  ;;  %338 = vst [vmem:[%s3831_s7 + $0x100] sm:$0xf] %v337_v0  ;;  %v339_v1 = vld [vmem:[%s3824_s6 + $0x208] sm:$0xf] }
  0x3b   : > { %v341_v2 = vld [vmem:[%s3824_s6 + $0x210] sm:$0xf]  ;;  %v343_v3 = vld [vmem:[%s3824_s6 + $0x218] sm:$0xf]  ;;  %340 = vst [vmem:[%s3831_s7 + $0x104] sm:$0xf] %v339_v1 }
  0x3c   : > { %342 = vst [vmem:[%s3831_s7 + $0x108] sm:$0xf] %v341_v2  ;;  %344 = vst [vmem:[%s3831_s7 + $0x10c] sm:$0xf] %v343_v3  ;;  %v345_v4 = vld [vmem:[%s3824_s6 + $0x220] sm:$0xf] }
  0x3d   : > { %v347_v5 = vld [vmem:[%s3824_s6 + $0x228] sm:$0xf]  ;;  %v349_v6 = vld [vmem:[%s3824_s6 + $0x230] sm:$0xf]  ;;  %346 = vst [vmem:[%s3831_s7 + $0x110] sm:$0xf] %v345_v4 }
  0x3e   : > { %348 = vst [vmem:[%s3831_s7 + $0x114] sm:$0xf] %v347_v5  ;;  %350 = vst [vmem:[%s3831_s7 + $0x118] sm:$0xf] %v349_v6  ;;  %v351_v7 = vld [vmem:[%s3824_s6 + $0x238] sm:$0xf] }
  0x3f   : > { %v353_v8 = vld [vmem:[%s3824_s6 + $0x240] sm:$0xf]  ;;  %v355_v9 = vld [vmem:[%s3824_s6 + $0x248] sm:$0xf]  ;;  %352 = vst [vmem:[%s3831_s7 + $0x11c] sm:$0xf] %v351_v7 }
  0x40   : > { %354 = vst [vmem:[%s3831_s7 + $0x120] sm:$0xf] %v353_v8  ;;  %356 = vst [vmem:[%s3831_s7 + $0x124] sm:$0xf] %v355_v9  ;;  %v357_v10 = vld [vmem:[%s3824_s6 + $0x250] sm:$0xf] }
  0x41   : > { %v359_v11 = vld [vmem:[%s3824_s6 + $0x258] sm:$0xf]  ;;  %v361_v12 = vld [vmem:[%s3824_s6 + $0x260] sm:$0xf]  ;;  %358 = vst [vmem:[%s3831_s7 + $0x128] sm:$0xf] %v357_v10 }
  0x42   : > { %360 = vst [vmem:[%s3831_s7 + $0x12c] sm:$0xf] %v359_v11  ;;  %362 = vst [vmem:[%s3831_s7 + $0x130] sm:$0xf] %v361_v12  ;;  %v363_v13 = vld [vmem:[%s3824_s6 + $0x268] sm:$0xf] }
  0x43   : > { %v365_v14 = vld [vmem:[%s3824_s6 + $0x270] sm:$0xf]  ;;  %v367_v15 = vld [vmem:[%s3824_s6 + $0x278] sm:$0xf]  ;;  %364 = vst [vmem:[%s3831_s7 + $0x134] sm:$0xf] %v363_v13 }
  0x44   : > { %366 = vst [vmem:[%s3831_s7 + $0x138] sm:$0xf] %v365_v14  ;;  %368 = vst [vmem:[%s3831_s7 + $0x13c] sm:$0xf] %v367_v15  ;;  %v369_v16 = vld [vmem:[%s3824_s6 + $0x280] sm:$0xf] }
  0x45   : > { %v371_v17 = vld [vmem:[%s3824_s6 + $0x288] sm:$0xf]  ;;  %v373_v18 = vld [vmem:[%s3824_s6 + $0x290] sm:$0xf]  ;;  %370 = vst [vmem:[%s3831_s7 + $0x140] sm:$0xf] %v369_v16 }
  0x46   : > { %372 = vst [vmem:[%s3831_s7 + $0x144] sm:$0xf] %v371_v17  ;;  %374 = vst [vmem:[%s3831_s7 + $0x148] sm:$0xf] %v373_v18  ;;  %v375_v19 = vld [vmem:[%s3824_s6 + $0x298] sm:$0xf] }
  0x47   : > { %v377_v20 = vld [vmem:[%s3824_s6 + $0x2a0] sm:$0xf]  ;;  %v379_v21 = vld [vmem:[%s3824_s6 + $0x2a8] sm:$0xf]  ;;  %376 = vst [vmem:[%s3831_s7 + $0x14c] sm:$0xf] %v375_v19 }
  0x48   : > { %378 = vst [vmem:[%s3831_s7 + $0x150] sm:$0xf] %v377_v20  ;;  %380 = vst [vmem:[%s3831_s7 + $0x154] sm:$0xf] %v379_v21  ;;  %v381_v22 = vld [vmem:[%s3824_s6 + $0x2b0] sm:$0xf] }
  0x49   : > { %v383_v23 = vld [vmem:[%s3824_s6 + $0x2b8] sm:$0xf]  ;;  %v385_v24 = vld [vmem:[%s3824_s6 + $0x2c0] sm:$0xf]  ;;  %382 = vst [vmem:[%s3831_s7 + $0x158] sm:$0xf] %v381_v22 }
  0x4a   : > { %384 = vst [vmem:[%s3831_s7 + $0x15c] sm:$0xf] %v383_v23  ;;  %386 = vst [vmem:[%s3831_s7 + $0x160] sm:$0xf] %v385_v24  ;;  %v387_v25 = vld [vmem:[%s3824_s6 + $0x2c8] sm:$0xf] }
  0x4b   : > { %v389_v26 = vld [vmem:[%s3824_s6 + $0x2d0] sm:$0xf]  ;;  %v391_v27 = vld [vmem:[%s3824_s6 + $0x2d8] sm:$0xf]  ;;  %388 = vst [vmem:[%s3831_s7 + $0x164] sm:$0xf] %v387_v25 }
  0x4c   : > { %390 = vst [vmem:[%s3831_s7 + $0x168] sm:$0xf] %v389_v26  ;;  %392 = vst [vmem:[%s3831_s7 + $0x16c] sm:$0xf] %v391_v27  ;;  %v393_v28 = vld [vmem:[%s3824_s6 + $0x2e0] sm:$0xf] }
  0x4d   : > { %v395_v29 = vld [vmem:[%s3824_s6 + $0x2e8] sm:$0xf]  ;;  %v397_v30 = vld [vmem:[%s3824_s6 + $0x2f0] sm:$0xf]  ;;  %394 = vst [vmem:[%s3831_s7 + $0x170] sm:$0xf] %v393_v28 }
  0x4e   : > { %396 = vst [vmem:[%s3831_s7 + $0x174] sm:$0xf] %v395_v29  ;;  %398 = vst [vmem:[%s3831_s7 + $0x178] sm:$0xf] %v397_v30  ;;  %v399_v31 = vld [vmem:[%s3824_s6 + $0x2f8] sm:$0xf] }
  0x4f   : > { %v401_v32 = vld [vmem:[%s3824_s6 + $0x300] sm:$0xf]  ;;  %v403_v33 = vld [vmem:[%s3824_s6 + $0x308] sm:$0xf]  ;;  %400 = vst [vmem:[%s3831_s7 + $0x17c] sm:$0xf] %v399_v31 }
  0x50   : > { %402 = vst [vmem:[%s3831_s7 + $0x180] sm:$0xf] %v401_v32  ;;  %404 = vst [vmem:[%s3831_s7 + $0x184] sm:$0xf] %v403_v33  ;;  %v405_v34 = vld [vmem:[%s3824_s6 + $0x310] sm:$0xf] }
  0x51   : > { %v407_v35 = vld [vmem:[%s3824_s6 + $0x318] sm:$0xf]  ;;  %v409_v36 = vld [vmem:[%s3824_s6 + $0x320] sm:$0xf]  ;;  %406 = vst [vmem:[%s3831_s7 + $0x188] sm:$0xf] %v405_v34 }
  0x52   : > { %408 = vst [vmem:[%s3831_s7 + $0x18c] sm:$0xf] %v407_v35  ;;  %410 = vst [vmem:[%s3831_s7 + $0x190] sm:$0xf] %v409_v36  ;;  %v411_v37 = vld [vmem:[%s3824_s6 + $0x328] sm:$0xf] }
  0x53   : > { %v413_v38 = vld [vmem:[%s3824_s6 + $0x330] sm:$0xf]  ;;  %v415_v39 = vld [vmem:[%s3824_s6 + $0x338] sm:$0xf]  ;;  %412 = vst [vmem:[%s3831_s7 + $0x194] sm:$0xf] %v411_v37 }
  0x54   : > { %414 = vst [vmem:[%s3831_s7 + $0x198] sm:$0xf] %v413_v38  ;;  %416 = vst [vmem:[%s3831_s7 + $0x19c] sm:$0xf] %v415_v39  ;;  %v417_v40 = vld [vmem:[%s3824_s6 + $0x340] sm:$0xf] }
  0x55   : > { %v419_v41 = vld [vmem:[%s3824_s6 + $0x348] sm:$0xf]  ;;  %v421_v42 = vld [vmem:[%s3824_s6 + $0x350] sm:$0xf]  ;;  %418 = vst [vmem:[%s3831_s7 + $0x1a0] sm:$0xf] %v417_v40 }
  0x56   : > { %420 = vst [vmem:[%s3831_s7 + $0x1a4] sm:$0xf] %v419_v41  ;;  %422 = vst [vmem:[%s3831_s7 + $0x1a8] sm:$0xf] %v421_v42  ;;  %v423_v43 = vld [vmem:[%s3824_s6 + $0x358] sm:$0xf] }
  0x57   : > { %v425_v44 = vld [vmem:[%s3824_s6 + $0x360] sm:$0xf]  ;;  %v427_v45 = vld [vmem:[%s3824_s6 + $0x368] sm:$0xf]  ;;  %424 = vst [vmem:[%s3831_s7 + $0x1ac] sm:$0xf] %v423_v43 }
  0x58   : > { %426 = vst [vmem:[%s3831_s7 + $0x1b0] sm:$0xf] %v425_v44  ;;  %428 = vst [vmem:[%s3831_s7 + $0x1b4] sm:$0xf] %v427_v45  ;;  %v429_v46 = vld [vmem:[%s3824_s6 + $0x370] sm:$0xf] }
  0x59   : > { %v431_v47 = vld [vmem:[%s3824_s6 + $0x378] sm:$0xf]  ;;  %v433_v48 = vld [vmem:[%s3824_s6 + $0x380] sm:$0xf]  ;;  %430 = vst [vmem:[%s3831_s7 + $0x1b8] sm:$0xf] %v429_v46 }
  0x5a   : > { %432 = vst [vmem:[%s3831_s7 + $0x1bc] sm:$0xf] %v431_v47  ;;  %434 = vst [vmem:[%s3831_s7 + $0x1c0] sm:$0xf] %v433_v48  ;;  %v435_v49 = vld [vmem:[%s3824_s6 + $0x388] sm:$0xf] }
  0x5b   : > { %v437_v50 = vld [vmem:[%s3824_s6 + $0x390] sm:$0xf]  ;;  %v439_v51 = vld [vmem:[%s3824_s6 + $0x398] sm:$0xf]  ;;  %436 = vst [vmem:[%s3831_s7 + $0x1c4] sm:$0xf] %v435_v49 }
  0x5c   : > { %438 = vst [vmem:[%s3831_s7 + $0x1c8] sm:$0xf] %v437_v50  ;;  %440 = vst [vmem:[%s3831_s7 + $0x1cc] sm:$0xf] %v439_v51  ;;  %v441_v52 = vld [vmem:[%s3824_s6 + $0x3a0] sm:$0xf] }
  0x5d   : > { %v443_v53 = vld [vmem:[%s3824_s6 + $0x3a8] sm:$0xf]  ;;  %v445_v54 = vld [vmem:[%s3824_s6 + $0x3b0] sm:$0xf]  ;;  %442 = vst [vmem:[%s3831_s7 + $0x1d0] sm:$0xf] %v441_v52 }
  0x5e   : > { %444 = vst [vmem:[%s3831_s7 + $0x1d4] sm:$0xf] %v443_v53  ;;  %446 = vst [vmem:[%s3831_s7 + $0x1d8] sm:$0xf] %v445_v54  ;;  %v447_v55 = vld [vmem:[%s3824_s6 + $0x3b8] sm:$0xf] }
  0x5f   : > { %v449_v56 = vld [vmem:[%s3824_s6 + $0x3c0] sm:$0xf]  ;;  %v451_v57 = vld [vmem:[%s3824_s6 + $0x3c8] sm:$0xf]  ;;  %448 = vst [vmem:[%s3831_s7 + $0x1dc] sm:$0xf] %v447_v55 }
  0x60   : > { %450 = vst [vmem:[%s3831_s7 + $0x1e0] sm:$0xf] %v449_v56  ;;  %452 = vst [vmem:[%s3831_s7 + $0x1e4] sm:$0xf] %v451_v57  ;;  %v453_v58 = vld [vmem:[%s3824_s6 + $0x3d0] sm:$0xf] }
  0x61   : > { %v455_v59 = vld [vmem:[%s3824_s6 + $0x3d8] sm:$0xf]  ;;  %v457_v60 = vld [vmem:[%s3824_s6 + $0x3e0] sm:$0xf]  ;;  %454 = vst [vmem:[%s3831_s7 + $0x1e8] sm:$0xf] %v453_v58 }
  0x62   : > { %456 = vst [vmem:[%s3831_s7 + $0x1ec] sm:$0xf] %v455_v59  ;;  %458 = vst [vmem:[%s3831_s7 + $0x1f0] sm:$0xf] %v457_v60  ;;  %v459_v61 = vld [vmem:[%s3824_s6 + $0x3e8] sm:$0xf] }
  0x63   : > { %v461_v62 = vld [vmem:[%s3824_s6 + $0x3f0] sm:$0xf]  ;;  %v463_v63 = vld [vmem:[%s3824_s6 + $0x3f8] sm:$0xf]  ;;  %460 = vst [vmem:[%s3831_s7 + $0x1f4] sm:$0xf] %v459_v61 }
  0x64   : > { %462 = vst [vmem:[%s3831_s7 + $0x1f8] sm:$0xf] %v461_v62  ;;  %464 = vst [vmem:[%s3831_s7 + $0x1fc] sm:$0xf] %v463_v63  ;;  %v465_v0 = vld [vmem:[%s3824_s6 + $0x400] sm:$0xf] }
  0x65   : > { %v467_v1 = vld [vmem:[%s3824_s6 + $0x408] sm:$0xf]  ;;  %v469_v2 = vld [vmem:[%s3824_s6 + $0x410] sm:$0xf]  ;;  %466 = vst [vmem:[%s3831_s7 + $0x200] sm:$0xf] %v465_v0 }
  0x66   : > { %468 = vst [vmem:[%s3831_s7 + $0x204] sm:$0xf] %v467_v1  ;;  %470 = vst [vmem:[%s3831_s7 + $0x208] sm:$0xf] %v469_v2  ;;  %v471_v3 = vld [vmem:[%s3824_s6 + $0x418] sm:$0xf] }
  0x67   : > { %v473_v4 = vld [vmem:[%s3824_s6 + $0x420] sm:$0xf]  ;;  %v475_v5 = vld [vmem:[%s3824_s6 + $0x428] sm:$0xf]  ;;  %472 = vst [vmem:[%s3831_s7 + $0x20c] sm:$0xf] %v471_v3 }
  0x68   : > { %474 = vst [vmem:[%s3831_s7 + $0x210] sm:$0xf] %v473_v4  ;;  %476 = vst [vmem:[%s3831_s7 + $0x214] sm:$0xf] %v475_v5  ;;  %v477_v6 = vld [vmem:[%s3824_s6 + $0x430] sm:$0xf] }
  0x69   : > { %v479_v7 = vld [vmem:[%s3824_s6 + $0x438] sm:$0xf]  ;;  %v481_v8 = vld [vmem:[%s3824_s6 + $0x440] sm:$0xf]  ;;  %478 = vst [vmem:[%s3831_s7 + $0x218] sm:$0xf] %v477_v6 }
  0x6a   : > { %480 = vst [vmem:[%s3831_s7 + $0x21c] sm:$0xf] %v479_v7  ;;  %482 = vst [vmem:[%s3831_s7 + $0x220] sm:$0xf] %v481_v8  ;;  %v483_v9 = vld [vmem:[%s3824_s6 + $0x448] sm:$0xf] }
  0x6b   : > { %v485_v10 = vld [vmem:[%s3824_s6 + $0x450] sm:$0xf]  ;;  %v487_v11 = vld [vmem:[%s3824_s6 + $0x458] sm:$0xf]  ;;  %484 = vst [vmem:[%s3831_s7 + $0x224] sm:$0xf] %v483_v9 }
  0x6c   : > { %486 = vst [vmem:[%s3831_s7 + $0x228] sm:$0xf] %v485_v10  ;;  %488 = vst [vmem:[%s3831_s7 + $0x22c] sm:$0xf] %v487_v11  ;;  %v489_v12 = vld [vmem:[%s3824_s6 + $0x460] sm:$0xf] }
  0x6d   : > { %v491_v13 = vld [vmem:[%s3824_s6 + $0x468] sm:$0xf]  ;;  %v493_v14 = vld [vmem:[%s3824_s6 + $0x470] sm:$0xf]  ;;  %490 = vst [vmem:[%s3831_s7 + $0x230] sm:$0xf] %v489_v12 }
  0x6e   : > { %492 = vst [vmem:[%s3831_s7 + $0x234] sm:$0xf] %v491_v13  ;;  %494 = vst [vmem:[%s3831_s7 + $0x238] sm:$0xf] %v493_v14  ;;  %v495_v15 = vld [vmem:[%s3824_s6 + $0x478] sm:$0xf] }
  0x6f   : > { %v497_v16 = vld [vmem:[%s3824_s6 + $0x480] sm:$0xf]  ;;  %v499_v17 = vld [vmem:[%s3824_s6 + $0x488] sm:$0xf]  ;;  %496 = vst [vmem:[%s3831_s7 + $0x23c] sm:$0xf] %v495_v15 }
  0x70   : > { %498 = vst [vmem:[%s3831_s7 + $0x240] sm:$0xf] %v497_v16  ;;  %500 = vst [vmem:[%s3831_s7 + $0x244] sm:$0xf] %v499_v17  ;;  %v501_v18 = vld [vmem:[%s3824_s6 + $0x490] sm:$0xf] }
  0x71   : > { %v503_v19 = vld [vmem:[%s3824_s6 + $0x498] sm:$0xf]  ;;  %v505_v20 = vld [vmem:[%s3824_s6 + $0x4a0] sm:$0xf]  ;;  %502 = vst [vmem:[%s3831_s7 + $0x248] sm:$0xf] %v501_v18 }
  0x72   : > { %504 = vst [vmem:[%s3831_s7 + $0x24c] sm:$0xf] %v503_v19  ;;  %506 = vst [vmem:[%s3831_s7 + $0x250] sm:$0xf] %v505_v20  ;;  %v507_v21 = vld [vmem:[%s3824_s6 + $0x4a8] sm:$0xf] }
  0x73   : > { %v509_v22 = vld [vmem:[%s3824_s6 + $0x4b0] sm:$0xf]  ;;  %v511_v23 = vld [vmem:[%s3824_s6 + $0x4b8] sm:$0xf]  ;;  %508 = vst [vmem:[%s3831_s7 + $0x254] sm:$0xf] %v507_v21 }
  0x74   : > { %510 = vst [vmem:[%s3831_s7 + $0x258] sm:$0xf] %v509_v22  ;;  %512 = vst [vmem:[%s3831_s7 + $0x25c] sm:$0xf] %v511_v23  ;;  %v513_v24 = vld [vmem:[%s3824_s6 + $0x4c0] sm:$0xf] }
  0x75   : > { %v515_v25 = vld [vmem:[%s3824_s6 + $0x4c8] sm:$0xf]  ;;  %v517_v26 = vld [vmem:[%s3824_s6 + $0x4d0] sm:$0xf]  ;;  %514 = vst [vmem:[%s3831_s7 + $0x260] sm:$0xf] %v513_v24 }
  0x76   : > { %516 = vst [vmem:[%s3831_s7 + $0x264] sm:$0xf] %v515_v25  ;;  %518 = vst [vmem:[%s3831_s7 + $0x268] sm:$0xf] %v517_v26  ;;  %v519_v27 = vld [vmem:[%s3824_s6 + $0x4d8] sm:$0xf] }
  0x77   : > { %v521_v28 = vld [vmem:[%s3824_s6 + $0x4e0] sm:$0xf]  ;;  %v523_v29 = vld [vmem:[%s3824_s6 + $0x4e8] sm:$0xf]  ;;  %520 = vst [vmem:[%s3831_s7 + $0x26c] sm:$0xf] %v519_v27 }
  0x78   : > { %522 = vst [vmem:[%s3831_s7 + $0x270] sm:$0xf] %v521_v28  ;;  %524 = vst [vmem:[%s3831_s7 + $0x274] sm:$0xf] %v523_v29  ;;  %v525_v30 = vld [vmem:[%s3824_s6 + $0x4f0] sm:$0xf] }
  0x79   : > { %v527_v31 = vld [vmem:[%s3824_s6 + $0x4f8] sm:$0xf]  ;;  %v529_v32 = vld [vmem:[%s3824_s6 + $0x500] sm:$0xf]  ;;  %526 = vst [vmem:[%s3831_s7 + $0x278] sm:$0xf] %v525_v30 }
  0x7a   : > { %528 = vst [vmem:[%s3831_s7 + $0x27c] sm:$0xf] %v527_v31  ;;  %530 = vst [vmem:[%s3831_s7 + $0x280] sm:$0xf] %v529_v32  ;;  %v531_v33 = vld [vmem:[%s3824_s6 + $0x508] sm:$0xf] }
  0x7b   : > { %v533_v34 = vld [vmem:[%s3824_s6 + $0x510] sm:$0xf]  ;;  %v535_v35 = vld [vmem:[%s3824_s6 + $0x518] sm:$0xf]  ;;  %532 = vst [vmem:[%s3831_s7 + $0x284] sm:$0xf] %v531_v33 }
  0x7c   : > { %534 = vst [vmem:[%s3831_s7 + $0x288] sm:$0xf] %v533_v34  ;;  %536 = vst [vmem:[%s3831_s7 + $0x28c] sm:$0xf] %v535_v35  ;;  %v537_v36 = vld [vmem:[%s3824_s6 + $0x520] sm:$0xf] }
  0x7d   : > { %v539_v37 = vld [vmem:[%s3824_s6 + $0x528] sm:$0xf]  ;;  %v541_v38 = vld [vmem:[%s3824_s6 + $0x530] sm:$0xf]  ;;  %538 = vst [vmem:[%s3831_s7 + $0x290] sm:$0xf] %v537_v36 }
  0x7e   : > { %540 = vst [vmem:[%s3831_s7 + $0x294] sm:$0xf] %v539_v37  ;;  %542 = vst [vmem:[%s3831_s7 + $0x298] sm:$0xf] %v541_v38  ;;  %v543_v39 = vld [vmem:[%s3824_s6 + $0x538] sm:$0xf] }
  0x7f   : > { %v545_v40 = vld [vmem:[%s3824_s6 + $0x540] sm:$0xf]  ;;  %v547_v41 = vld [vmem:[%s3824_s6 + $0x548] sm:$0xf]  ;;  %544 = vst [vmem:[%s3831_s7 + $0x29c] sm:$0xf] %v543_v39 }
  0x80   : > { %546 = vst [vmem:[%s3831_s7 + $0x2a0] sm:$0xf] %v545_v40  ;;  %548 = vst [vmem:[%s3831_s7 + $0x2a4] sm:$0xf] %v547_v41  ;;  %v549_v42 = vld [vmem:[%s3824_s6 + $0x550] sm:$0xf] }
  0x81   : > { %v551_v43 = vld [vmem:[%s3824_s6 + $0x558] sm:$0xf]  ;;  %v553_v44 = vld [vmem:[%s3824_s6 + $0x560] sm:$0xf]  ;;  %550 = vst [vmem:[%s3831_s7 + $0x2a8] sm:$0xf] %v549_v42 }
  0x82   : > { %552 = vst [vmem:[%s3831_s7 + $0x2ac] sm:$0xf] %v551_v43  ;;  %554 = vst [vmem:[%s3831_s7 + $0x2b0] sm:$0xf] %v553_v44  ;;  %v555_v45 = vld [vmem:[%s3824_s6 + $0x568] sm:$0xf] }
  0x83   : > { %v557_v46 = vld [vmem:[%s3824_s6 + $0x570] sm:$0xf]  ;;  %v559_v47 = vld [vmem:[%s3824_s6 + $0x578] sm:$0xf]  ;;  %556 = vst [vmem:[%s3831_s7 + $0x2b4] sm:$0xf] %v555_v45 }
  0x84   : > { %558 = vst [vmem:[%s3831_s7 + $0x2b8] sm:$0xf] %v557_v46  ;;  %560 = vst [vmem:[%s3831_s7 + $0x2bc] sm:$0xf] %v559_v47  ;;  %v561_v48 = vld [vmem:[%s3824_s6 + $0x580] sm:$0xf] }
  0x85   : > { %v563_v49 = vld [vmem:[%s3824_s6 + $0x588] sm:$0xf]  ;;  %v565_v50 = vld [vmem:[%s3824_s6 + $0x590] sm:$0xf]  ;;  %562 = vst [vmem:[%s3831_s7 + $0x2c0] sm:$0xf] %v561_v48 }
  0x86   : > { %564 = vst [vmem:[%s3831_s7 + $0x2c4] sm:$0xf] %v563_v49  ;;  %566 = vst [vmem:[%s3831_s7 + $0x2c8] sm:$0xf] %v565_v50  ;;  %v567_v51 = vld [vmem:[%s3824_s6 + $0x598] sm:$0xf] }
  0x87   : > { %v569_v52 = vld [vmem:[%s3824_s6 + $0x5a0] sm:$0xf]  ;;  %v571_v53 = vld [vmem:[%s3824_s6 + $0x5a8] sm:$0xf]  ;;  %568 = vst [vmem:[%s3831_s7 + $0x2cc] sm:$0xf] %v567_v51 }
  0x88   : > { %570 = vst [vmem:[%s3831_s7 + $0x2d0] sm:$0xf] %v569_v52  ;;  %572 = vst [vmem:[%s3831_s7 + $0x2d4] sm:$0xf] %v571_v53  ;;  %v573_v54 = vld [vmem:[%s3824_s6 + $0x5b0] sm:$0xf] }
  0x89   : > { %v575_v55 = vld [vmem:[%s3824_s6 + $0x5b8] sm:$0xf]  ;;  %v577_v56 = vld [vmem:[%s3824_s6 + $0x5c0] sm:$0xf]  ;;  %574 = vst [vmem:[%s3831_s7 + $0x2d8] sm:$0xf] %v573_v54 }
  0x8a   : > { %576 = vst [vmem:[%s3831_s7 + $0x2dc] sm:$0xf] %v575_v55  ;;  %578 = vst [vmem:[%s3831_s7 + $0x2e0] sm:$0xf] %v577_v56  ;;  %v579_v57 = vld [vmem:[%s3824_s6 + $0x5c8] sm:$0xf] }
  0x8b   : > { %v581_v58 = vld [vmem:[%s3824_s6 + $0x5d0] sm:$0xf]  ;;  %v583_v59 = vld [vmem:[%s3824_s6 + $0x5d8] sm:$0xf]  ;;  %580 = vst [vmem:[%s3831_s7 + $0x2e4] sm:$0xf] %v579_v57 }
  0x8c   : > { %582 = vst [vmem:[%s3831_s7 + $0x2e8] sm:$0xf] %v581_v58  ;;  %584 = vst [vmem:[%s3831_s7 + $0x2ec] sm:$0xf] %v583_v59  ;;  %v585_v60 = vld [vmem:[%s3824_s6 + $0x5e0] sm:$0xf] }
  0x8d   : > { %v587_v61 = vld [vmem:[%s3824_s6 + $0x5e8] sm:$0xf]  ;;  %v589_v62 = vld [vmem:[%s3824_s6 + $0x5f0] sm:$0xf]  ;;  %586 = vst [vmem:[%s3831_s7 + $0x2f0] sm:$0xf] %v585_v60 }
  0x8e   : > { %588 = vst [vmem:[%s3831_s7 + $0x2f4] sm:$0xf] %v587_v61  ;;  %590 = vst [vmem:[%s3831_s7 + $0x2f8] sm:$0xf] %v589_v62  ;;  %v591_v63 = vld [vmem:[%s3824_s6 + $0x5f8] sm:$0xf] }
  0x8f   : > { %v593_v0 = vld [vmem:[%s3824_s6 + $0x600] sm:$0xf]  ;;  %v595_v1 = vld [vmem:[%s3824_s6 + $0x608] sm:$0xf]  ;;  %592 = vst [vmem:[%s3831_s7 + $0x2fc] sm:$0xf] %v591_v63 }
  0x90   : > { %594 = vst [vmem:[%s3831_s7 + $0x300] sm:$0xf] %v593_v0  ;;  %596 = vst [vmem:[%s3831_s7 + $0x304] sm:$0xf] %v595_v1  ;;  %v597_v2 = vld [vmem:[%s3824_s6 + $0x610] sm:$0xf] }
  0x91   : > { %v599_v3 = vld [vmem:[%s3824_s6 + $0x618] sm:$0xf]  ;;  %v601_v4 = vld [vmem:[%s3824_s6 + $0x620] sm:$0xf]  ;;  %598 = vst [vmem:[%s3831_s7 + $0x308] sm:$0xf] %v597_v2 }
  0x92   : > { %600 = vst [vmem:[%s3831_s7 + $0x30c] sm:$0xf] %v599_v3  ;;  %602 = vst [vmem:[%s3831_s7 + $0x310] sm:$0xf] %v601_v4  ;;  %v603_v5 = vld [vmem:[%s3824_s6 + $0x628] sm:$0xf] }
  0x93   : > { %v605_v6 = vld [vmem:[%s3824_s6 + $0x630] sm:$0xf]  ;;  %v607_v7 = vld [vmem:[%s3824_s6 + $0x638] sm:$0xf]  ;;  %604 = vst [vmem:[%s3831_s7 + $0x314] sm:$0xf] %v603_v5 }
  0x94   : > { %606 = vst [vmem:[%s3831_s7 + $0x318] sm:$0xf] %v605_v6  ;;  %608 = vst [vmem:[%s3831_s7 + $0x31c] sm:$0xf] %v607_v7  ;;  %v609_v8 = vld [vmem:[%s3824_s6 + $0x640] sm:$0xf] }
  0x95   : > { %v611_v9 = vld [vmem:[%s3824_s6 + $0x648] sm:$0xf]  ;;  %v613_v10 = vld [vmem:[%s3824_s6 + $0x650] sm:$0xf]  ;;  %610 = vst [vmem:[%s3831_s7 + $0x320] sm:$0xf] %v609_v8 }
  0x96   : > { %612 = vst [vmem:[%s3831_s7 + $0x324] sm:$0xf] %v611_v9  ;;  %614 = vst [vmem:[%s3831_s7 + $0x328] sm:$0xf] %v613_v10  ;;  %v615_v11 = vld [vmem:[%s3824_s6 + $0x658] sm:$0xf] }
  0x97   : > { %v617_v12 = vld [vmem:[%s3824_s6 + $0x660] sm:$0xf]  ;;  %v619_v13 = vld [vmem:[%s3824_s6 + $0x668] sm:$0xf]  ;;  %616 = vst [vmem:[%s3831_s7 + $0x32c] sm:$0xf] %v615_v11 }
  0x98   : > { %618 = vst [vmem:[%s3831_s7 + $0x330] sm:$0xf] %v617_v12  ;;  %620 = vst [vmem:[%s3831_s7 + $0x334] sm:$0xf] %v619_v13  ;;  %v621_v14 = vld [vmem:[%s3824_s6 + $0x670] sm:$0xf] }
  0x99   : > { %v623_v15 = vld [vmem:[%s3824_s6 + $0x678] sm:$0xf]  ;;  %v625_v16 = vld [vmem:[%s3824_s6 + $0x680] sm:$0xf]  ;;  %622 = vst [vmem:[%s3831_s7 + $0x338] sm:$0xf] %v621_v14 }
  0x9a   : > { %624 = vst [vmem:[%s3831_s7 + $0x33c] sm:$0xf] %v623_v15  ;;  %626 = vst [vmem:[%s3831_s7 + $0x340] sm:$0xf] %v625_v16  ;;  %v627_v17 = vld [vmem:[%s3824_s6 + $0x688] sm:$0xf] }
  0x9b   : > { %v629_v18 = vld [vmem:[%s3824_s6 + $0x690] sm:$0xf]  ;;  %v631_v19 = vld [vmem:[%s3824_s6 + $0x698] sm:$0xf]  ;;  %628 = vst [vmem:[%s3831_s7 + $0x344] sm:$0xf] %v627_v17 }
  0x9c   : > { %630 = vst [vmem:[%s3831_s7 + $0x348] sm:$0xf] %v629_v18  ;;  %632 = vst [vmem:[%s3831_s7 + $0x34c] sm:$0xf] %v631_v19  ;;  %v633_v20 = vld [vmem:[%s3824_s6 + $0x6a0] sm:$0xf] }
  0x9d   : > { %v635_v21 = vld [vmem:[%s3824_s6 + $0x6a8] sm:$0xf]  ;;  %v637_v22 = vld [vmem:[%s3824_s6 + $0x6b0] sm:$0xf]  ;;  %634 = vst [vmem:[%s3831_s7 + $0x350] sm:$0xf] %v633_v20 }
  0x9e   : > { %636 = vst [vmem:[%s3831_s7 + $0x354] sm:$0xf] %v635_v21  ;;  %638 = vst [vmem:[%s3831_s7 + $0x358] sm:$0xf] %v637_v22  ;;  %v639_v23 = vld [vmem:[%s3824_s6 + $0x6b8] sm:$0xf] }
  0x9f   : > { %v641_v24 = vld [vmem:[%s3824_s6 + $0x6c0] sm:$0xf]  ;;  %v643_v25 = vld [vmem:[%s3824_s6 + $0x6c8] sm:$0xf]  ;;  %640 = vst [vmem:[%s3831_s7 + $0x35c] sm:$0xf] %v639_v23 }
  0xa0   : > { %642 = vst [vmem:[%s3831_s7 + $0x360] sm:$0xf] %v641_v24  ;;  %644 = vst [vmem:[%s3831_s7 + $0x364] sm:$0xf] %v643_v25  ;;  %v645_v26 = vld [vmem:[%s3824_s6 + $0x6d0] sm:$0xf] }
  0xa1   : > { %v647_v27 = vld [vmem:[%s3824_s6 + $0x6d8] sm:$0xf]  ;;  %v649_v28 = vld [vmem:[%s3824_s6 + $0x6e0] sm:$0xf]  ;;  %646 = vst [vmem:[%s3831_s7 + $0x368] sm:$0xf] %v645_v26 }
  0xa2   : > { %648 = vst [vmem:[%s3831_s7 + $0x36c] sm:$0xf] %v647_v27  ;;  %650 = vst [vmem:[%s3831_s7 + $0x370] sm:$0xf] %v649_v28  ;;  %v651_v29 = vld [vmem:[%s3824_s6 + $0x6e8] sm:$0xf] }
  0xa3   : > { %v653_v30 = vld [vmem:[%s3824_s6 + $0x6f0] sm:$0xf]  ;;  %v655_v31 = vld [vmem:[%s3824_s6 + $0x6f8] sm:$0xf]  ;;  %652 = vst [vmem:[%s3831_s7 + $0x374] sm:$0xf] %v651_v29 }
  0xa4   : > { %654 = vst [vmem:[%s3831_s7 + $0x378] sm:$0xf] %v653_v30  ;;  %656 = vst [vmem:[%s3831_s7 + $0x37c] sm:$0xf] %v655_v31  ;;  %v657_v32 = vld [vmem:[%s3824_s6 + $0x700] sm:$0xf] }
  0xa5   : > { %v659_v33 = vld [vmem:[%s3824_s6 + $0x708] sm:$0xf]  ;;  %v661_v34 = vld [vmem:[%s3824_s6 + $0x710] sm:$0xf]  ;;  %658 = vst [vmem:[%s3831_s7 + $0x380] sm:$0xf] %v657_v32 }
  0xa6   : > { %660 = vst [vmem:[%s3831_s7 + $0x384] sm:$0xf] %v659_v33  ;;  %662 = vst [vmem:[%s3831_s7 + $0x388] sm:$0xf] %v661_v34  ;;  %v663_v35 = vld [vmem:[%s3824_s6 + $0x718] sm:$0xf] }
  0xa7   : > { %v665_v36 = vld [vmem:[%s3824_s6 + $0x720] sm:$0xf]  ;;  %v667_v37 = vld [vmem:[%s3824_s6 + $0x728] sm:$0xf]  ;;  %664 = vst [vmem:[%s3831_s7 + $0x38c] sm:$0xf] %v663_v35 }
  0xa8   : > { %666 = vst [vmem:[%s3831_s7 + $0x390] sm:$0xf] %v665_v36  ;;  %668 = vst [vmem:[%s3831_s7 + $0x394] sm:$0xf] %v667_v37  ;;  %v669_v38 = vld [vmem:[%s3824_s6 + $0x730] sm:$0xf] }
  0xa9   : > { %v671_v39 = vld [vmem:[%s3824_s6 + $0x738] sm:$0xf]  ;;  %v673_v40 = vld [vmem:[%s3824_s6 + $0x740] sm:$0xf]  ;;  %670 = vst [vmem:[%s3831_s7 + $0x398] sm:$0xf] %v669_v38 }
  0xaa   : > { %672 = vst [vmem:[%s3831_s7 + $0x39c] sm:$0xf] %v671_v39  ;;  %674 = vst [vmem:[%s3831_s7 + $0x3a0] sm:$0xf] %v673_v40  ;;  %v675_v41 = vld [vmem:[%s3824_s6 + $0x748] sm:$0xf] }
  0xab   : > { %v677_v42 = vld [vmem:[%s3824_s6 + $0x750] sm:$0xf]  ;;  %v679_v43 = vld [vmem:[%s3824_s6 + $0x758] sm:$0xf]  ;;  %676 = vst [vmem:[%s3831_s7 + $0x3a4] sm:$0xf] %v675_v41 }
  0xac   : > { %678 = vst [vmem:[%s3831_s7 + $0x3a8] sm:$0xf] %v677_v42  ;;  %680 = vst [vmem:[%s3831_s7 + $0x3ac] sm:$0xf] %v679_v43  ;;  %v681_v44 = vld [vmem:[%s3824_s6 + $0x760] sm:$0xf] }
  0xad   : > { %v683_v45 = vld [vmem:[%s3824_s6 + $0x768] sm:$0xf]  ;;  %v685_v46 = vld [vmem:[%s3824_s6 + $0x770] sm:$0xf]  ;;  %682 = vst [vmem:[%s3831_s7 + $0x3b0] sm:$0xf] %v681_v44 }
  0xae   : > { %684 = vst [vmem:[%s3831_s7 + $0x3b4] sm:$0xf] %v683_v45  ;;  %686 = vst [vmem:[%s3831_s7 + $0x3b8] sm:$0xf] %v685_v46  ;;  %v687_v47 = vld [vmem:[%s3824_s6 + $0x778] sm:$0xf] }
  0xaf   : > { %v689_v48 = vld [vmem:[%s3824_s6 + $0x780] sm:$0xf]  ;;  %v691_v49 = vld [vmem:[%s3824_s6 + $0x788] sm:$0xf]  ;;  %688 = vst [vmem:[%s3831_s7 + $0x3bc] sm:$0xf] %v687_v47 }
  0xb0   : > { %690 = vst [vmem:[%s3831_s7 + $0x3c0] sm:$0xf] %v689_v48  ;;  %692 = vst [vmem:[%s3831_s7 + $0x3c4] sm:$0xf] %v691_v49  ;;  %v693_v50 = vld [vmem:[%s3824_s6 + $0x790] sm:$0xf] }
  0xb1   : > { %v695_v51 = vld [vmem:[%s3824_s6 + $0x798] sm:$0xf]  ;;  %v697_v52 = vld [vmem:[%s3824_s6 + $0x7a0] sm:$0xf]  ;;  %694 = vst [vmem:[%s3831_s7 + $0x3c8] sm:$0xf] %v693_v50 }
  0xb2   : > { %696 = vst [vmem:[%s3831_s7 + $0x3cc] sm:$0xf] %v695_v51  ;;  %698 = vst [vmem:[%s3831_s7 + $0x3d0] sm:$0xf] %v697_v52  ;;  %v699_v53 = vld [vmem:[%s3824_s6 + $0x7a8] sm:$0xf] }
  0xb3   : > { %v701_v54 = vld [vmem:[%s3824_s6 + $0x7b0] sm:$0xf]  ;;  %v703_v55 = vld [vmem:[%s3824_s6 + $0x7b8] sm:$0xf]  ;;  %700 = vst [vmem:[%s3831_s7 + $0x3d4] sm:$0xf] %v699_v53 }
  0xb4   : > { %702 = vst [vmem:[%s3831_s7 + $0x3d8] sm:$0xf] %v701_v54  ;;  %704 = vst [vmem:[%s3831_s7 + $0x3dc] sm:$0xf] %v703_v55  ;;  %v705_v56 = vld [vmem:[%s3824_s6 + $0x7c0] sm:$0xf] }
  0xb5   : > { %v707_v57 = vld [vmem:[%s3824_s6 + $0x7c8] sm:$0xf]  ;;  %v709_v58 = vld [vmem:[%s3824_s6 + $0x7d0] sm:$0xf]  ;;  %706 = vst [vmem:[%s3831_s7 + $0x3e0] sm:$0xf] %v705_v56 }
  0xb6   : > { %708 = vst [vmem:[%s3831_s7 + $0x3e4] sm:$0xf] %v707_v57  ;;  %710 = vst [vmem:[%s3831_s7 + $0x3e8] sm:$0xf] %v709_v58  ;;  %v711_v59 = vld [vmem:[%s3824_s6 + $0x7d8] sm:$0xf] }
  0xb7   : > { %v713_v60 = vld [vmem:[%s3824_s6 + $0x7e0] sm:$0xf]  ;;  %v715_v61 = vld [vmem:[%s3824_s6 + $0x7e8] sm:$0xf]  ;;  %712 = vst [vmem:[%s3831_s7 + $0x3ec] sm:$0xf] %v711_v59 }
  0xb8   : > { %714 = vst [vmem:[%s3831_s7 + $0x3f0] sm:$0xf] %v713_v60  ;;  %716 = vst [vmem:[%s3831_s7 + $0x3f4] sm:$0xf] %v715_v61  ;;  %v717_v62 = vld [vmem:[%s3824_s6 + $0x7f0] sm:$0xf] }
  0xb9   : > { %v719_v63 = vld [vmem:[%s3824_s6 + $0x7f8] sm:$0xf]  ;;  %v721_v0 = vld [vmem:[%s3824_s6 + $0x800] sm:$0xf]  ;;  %718 = vst [vmem:[%s3831_s7 + $0x3f8] sm:$0xf] %v717_v62 }
  0xba   : > { %720 = vst [vmem:[%s3831_s7 + $0x3fc] sm:$0xf] %v719_v63  ;;  %722 = vst [vmem:[%s3831_s7 + $0x400] sm:$0xf] %v721_v0  ;;  %v723_v1 = vld [vmem:[%s3824_s6 + $0x808] sm:$0xf] }
  0xbb   : > { %v725_v2 = vld [vmem:[%s3824_s6 + $0x810] sm:$0xf]  ;;  %v727_v3 = vld [vmem:[%s3824_s6 + $0x818] sm:$0xf]  ;;  %724 = vst [vmem:[%s3831_s7 + $0x404] sm:$0xf] %v723_v1 }
  0xbc   : > { %726 = vst [vmem:[%s3831_s7 + $0x408] sm:$0xf] %v725_v2  ;;  %728 = vst [vmem:[%s3831_s7 + $0x40c] sm:$0xf] %v727_v3  ;;  %v729_v4 = vld [vmem:[%s3824_s6 + $0x820] sm:$0xf] }
  0xbd   : > { %v731_v5 = vld [vmem:[%s3824_s6 + $0x828] sm:$0xf]  ;;  %v733_v6 = vld [vmem:[%s3824_s6 + $0x830] sm:$0xf]  ;;  %730 = vst [vmem:[%s3831_s7 + $0x410] sm:$0xf] %v729_v4 }
  0xbe   : > { %732 = vst [vmem:[%s3831_s7 + $0x414] sm:$0xf] %v731_v5  ;;  %734 = vst [vmem:[%s3831_s7 + $0x418] sm:$0xf] %v733_v6  ;;  %v735_v7 = vld [vmem:[%s3824_s6 + $0x838] sm:$0xf] }
  0xbf   : > { %v737_v8 = vld [vmem:[%s3824_s6 + $0x840] sm:$0xf]  ;;  %v739_v9 = vld [vmem:[%s3824_s6 + $0x848] sm:$0xf]  ;;  %736 = vst [vmem:[%s3831_s7 + $0x41c] sm:$0xf] %v735_v7 }
  0xc0   : > { %738 = vst [vmem:[%s3831_s7 + $0x420] sm:$0xf] %v737_v8  ;;  %740 = vst [vmem:[%s3831_s7 + $0x424] sm:$0xf] %v739_v9  ;;  %v741_v10 = vld [vmem:[%s3824_s6 + $0x850] sm:$0xf] }
  0xc1   : > { %v743_v11 = vld [vmem:[%s3824_s6 + $0x858] sm:$0xf]  ;;  %v745_v12 = vld [vmem:[%s3824_s6 + $0x860] sm:$0xf]  ;;  %742 = vst [vmem:[%s3831_s7 + $0x428] sm:$0xf] %v741_v10 }
  0xc2   : > { %744 = vst [vmem:[%s3831_s7 + $0x42c] sm:$0xf] %v743_v11  ;;  %746 = vst [vmem:[%s3831_s7 + $0x430] sm:$0xf] %v745_v12  ;;  %v747_v13 = vld [vmem:[%s3824_s6 + $0x868] sm:$0xf] }
  0xc3   : > { %v749_v14 = vld [vmem:[%s3824_s6 + $0x870] sm:$0xf]  ;;  %v751_v15 = vld [vmem:[%s3824_s6 + $0x878] sm:$0xf]  ;;  %748 = vst [vmem:[%s3831_s7 + $0x434] sm:$0xf] %v747_v13 }
  0xc4   : > { %750 = vst [vmem:[%s3831_s7 + $0x438] sm:$0xf] %v749_v14  ;;  %752 = vst [vmem:[%s3831_s7 + $0x43c] sm:$0xf] %v751_v15  ;;  %v753_v16 = vld [vmem:[%s3824_s6 + $0x880] sm:$0xf] }
  0xc5   : > { %v755_v17 = vld [vmem:[%s3824_s6 + $0x888] sm:$0xf]  ;;  %v757_v18 = vld [vmem:[%s3824_s6 + $0x890] sm:$0xf]  ;;  %754 = vst [vmem:[%s3831_s7 + $0x440] sm:$0xf] %v753_v16 }
  0xc6   : > { %756 = vst [vmem:[%s3831_s7 + $0x444] sm:$0xf] %v755_v17  ;;  %758 = vst [vmem:[%s3831_s7 + $0x448] sm:$0xf] %v757_v18  ;;  %v759_v19 = vld [vmem:[%s3824_s6 + $0x898] sm:$0xf] }
  0xc7   : > { %v761_v20 = vld [vmem:[%s3824_s6 + $0x8a0] sm:$0xf]  ;;  %v763_v21 = vld [vmem:[%s3824_s6 + $0x8a8] sm:$0xf]  ;;  %760 = vst [vmem:[%s3831_s7 + $0x44c] sm:$0xf] %v759_v19 }
  0xc8   : > { %762 = vst [vmem:[%s3831_s7 + $0x450] sm:$0xf] %v761_v20  ;;  %764 = vst [vmem:[%s3831_s7 + $0x454] sm:$0xf] %v763_v21  ;;  %v765_v22 = vld [vmem:[%s3824_s6 + $0x8b0] sm:$0xf] }
  0xc9   : > { %v767_v23 = vld [vmem:[%s3824_s6 + $0x8b8] sm:$0xf]  ;;  %v769_v24 = vld [vmem:[%s3824_s6 + $0x8c0] sm:$0xf]  ;;  %766 = vst [vmem:[%s3831_s7 + $0x458] sm:$0xf] %v765_v22 }
  0xca   : > { %768 = vst [vmem:[%s3831_s7 + $0x45c] sm:$0xf] %v767_v23  ;;  %770 = vst [vmem:[%s3831_s7 + $0x460] sm:$0xf] %v769_v24  ;;  %v771_v25 = vld [vmem:[%s3824_s6 + $0x8c8] sm:$0xf] }
  0xcb   : > { %v773_v26 = vld [vmem:[%s3824_s6 + $0x8d0] sm:$0xf]  ;;  %v775_v27 = vld [vmem:[%s3824_s6 + $0x8d8] sm:$0xf]  ;;  %772 = vst [vmem:[%s3831_s7 + $0x464] sm:$0xf] %v771_v25 }
  0xcc   : > { %774 = vst [vmem:[%s3831_s7 + $0x468] sm:$0xf] %v773_v26  ;;  %776 = vst [vmem:[%s3831_s7 + $0x46c] sm:$0xf] %v775_v27  ;;  %v777_v28 = vld [vmem:[%s3824_s6 + $0x8e0] sm:$0xf] }
  0xcd   : > { %v779_v29 = vld [vmem:[%s3824_s6 + $0x8e8] sm:$0xf]  ;;  %v781_v30 = vld [vmem:[%s3824_s6 + $0x8f0] sm:$0xf]  ;;  %778 = vst [vmem:[%s3831_s7 + $0x470] sm:$0xf] %v777_v28 }
  0xce   : > { %780 = vst [vmem:[%s3831_s7 + $0x474] sm:$0xf] %v779_v29  ;;  %782 = vst [vmem:[%s3831_s7 + $0x478] sm:$0xf] %v781_v30  ;;  %v783_v31 = vld [vmem:[%s3824_s6 + $0x8f8] sm:$0xf] }
  0xcf   : > { %784 = vst [vmem:[%s3831_s7 + $0x47c] sm:$0xf] %v783_v31 }
  0xd0 PF: > { %p3181_p5 = scmp.ge.s32.totalorder %s3758_s20, 1  ;;  %p1402_p6 = scmp.lt.s32.totalorder %s3758_s20, 3 }
  0xd2   : > { %p1403_p7 = pnand %p3181_p5, %p1402_p6 }
  0xd3   : > { %s1409_s8 = sand.u32 (!%p1403_p7), 1, %s3750_s18   ;;  %p1445_p8 = scmp.lt.s32.totalorder (!%p1403_p7), %s3176_s21, 1 }
  0xd4   : > { %1406 = sbr.rel (%p1403_p7) target bundleno = 630 (0x276), region = 77 }
  0xd5   : > { %s3547_s13 = smul.u32 (!%p1403_p7), 1152, %s1409_s8 }
  0xd7   : > { %s4421_s14 = scalar_lea.vmem (!%p1403_p7), [#allocation2], %s3547_s13 }
  0xd9   : > { %v4410_v32 = vld [vmem:[%s4642_s0] sm:$0xff]  ;;  %v4415_v33 = vld [vmem:[%s4642_s0 + $0x8] sm:$0xff]  ;;  %v3572_v36 = vld [vmem:[%s4421_s14 + $0x78] sm:$0xff]   ;;  %s4652_s21 = smov (!%p1445_p8, %s3176_s21), 1 }
  0xda   : > { %v3185_v34 = vcombine.high %v4410_v32, %v4410_v32  ;;  %v3187_v35 = vcombine.high %v4415_v33, %v4415_v33  ;;  %v3573_v37 = vld [vmem:[%s4421_s14 + $0xf8] sm:$0xff]   ;;  %3348 = vmatprep.subr.bf16.mxu0 %v3572_v36  ;;  %v3576_v40 = vld [vmem:[%s4421_s14 + $0x70] sm:$0xff]   ;;  %v3580_v44 = vld [vmem:[%s4421_s14 + $0x68] sm:$0xff]   ;;  %v3184_v6 = vcombine.low %v4410_v32, %v4410_v32  ;;  %v3186_v7 = vcombine.low %v4415_v33, %v4415_v33  ;;  %s1447_s11 = scalar_lea.vmem %s4644_s2, %s4652_s21  ;;  %s3182_s15 = sshll.u32 %s4652_s21, 3 }
  0xdb   : > { %v3574_v38 = vld [vmem:[%s4421_s14 + $0x38] sm:$0xff]   ;;  %3370 = vmatprep.subr.bf16.mxu1 %v3573_v37  ;;  %v3577_v41 = vld [vmem:[%s4421_s14 + $0xf0] sm:$0xff]   ;;  %v3581_v45 = vld [vmem:[%s4421_s14 + $0xe8] sm:$0xff]   ;;  %s1454_s17 = scalar_lea.vmem %s4646_s4, %s3182_s15  ;;  %s1458_s24 = scalar_lea.vmem %s4647_s5, %s3182_s15 }
  0xdc   : > { %2716 = vmatprep.mubr.bf16.mxu0 %v3185_v34  ;;  %2756 = vmatprep.mubr.bf16.mxu1 %v3187_v35  ;;  %v3575_v39 = vld [vmem:[%s4421_s14 + $0xb8] sm:$0xff]   ;;  %v3578_v42 = vld [vmem:[%s4421_s14 + $0x30] sm:$0xff]   ;;  %v3582_v46 = vld [vmem:[%s4421_s14 + $0x28] sm:$0xff]  }
  0xdd   : > { %3349 = vmatpush3.bf16.msra.mxu0 %v3574_v38  ;;  %3371 = vmatpush3.bf16.msra.mxu1 %v3575_v39  ;;  %v3579_v43 = vld [vmem:[%s4421_s14 + $0xb0] sm:$0xff]   ;;  %v3583_v47 = vld [vmem:[%s4421_s14 + $0xa8] sm:$0xff]   ;;  %v3584_v48 = vld [vmem:[%s4421_s14 + $0x60] sm:$0xff]  }
  0xde   : > { %3350 = vmatprep.subr.bf16.mxu0 %v3576_v40  ;;  %3372 = vmatprep.subr.bf16.mxu1 %v3577_v41  ;;  %v3585_v49 = vld [vmem:[%s4421_s14 + $0xe0] sm:$0xff]   ;;  %v3588_v52 = vld [vmem:[%s4421_s14 + $0x58] sm:$0xff]   ;;  %v3592_v56 = vld [vmem:[%s4421_s14 + $0x50] sm:$0xff]  }
  0xdf   : > { %v3586_v50 = vld [vmem:[%s4421_s14 + $0x20] sm:$0xff]   ;;  %v3589_v53 = vld [vmem:[%s4421_s14 + $0xd8] sm:$0xff]   ;;  %v3593_v57 = vld [vmem:[%s4421_s14 + $0xd0] sm:$0xff]  }
  0xe0   : > { %v3587_v51 = vld [vmem:[%s4421_s14 + $0xa0] sm:$0xff]   ;;  %v3590_v54 = vld [vmem:[%s4421_s14 + $0x18] sm:$0xff]   ;;  %v3594_v58 = vld [vmem:[%s4421_s14 + $0x10] sm:$0xff]  }
  0xe1   : > { %3351 = vmatpush3.bf16.msra.mxu0 %v3578_v42  ;;  %3373 = vmatpush3.bf16.msra.mxu1 %v3579_v43  ;;  %v3591_v55 = vld [vmem:[%s4421_s14 + $0x98] sm:$0xff]   ;;  %v3595_v59 = vld [vmem:[%s4421_s14 + $0x90] sm:$0xff]   ;;  %v3596_v60 = vld [vmem:[%s4421_s14 + $0x48] sm:$0xff]  }
  0xe2   : > { %3352 = vmatprep.subr.bf16.mxu0 %v3580_v44  ;;  %3374 = vmatprep.subr.bf16.mxu1 %v3581_v45  ;;  %v3597_v61 = vld [vmem:[%s4421_s14 + $0xc8] sm:$0xff]   ;;  %v3600_v0 = vld [vmem:[%s4421_s14 + $0x40] sm:$0xff]   ;;  %v4455_v1 = vld [vmem:[%s4642_s0 + $0x10] sm:$0xff] }
  0xe3   : > { %v3598_v62 = vld [vmem:[%s4421_s14 + $0x8] sm:$0xff]   ;;  %v3601_v2 = vld [vmem:[%s4421_s14 + $0xc0] sm:$0xff]   ;;  %v4462_v4 = vld [vmem:[%s4642_s0 + $0x18] sm:$0xff]  ;;  %v3189_v10 = vcombine.high %v4455_v1, %v4455_v1  ;;  %v3188_v43 = vcombine.low %v4455_v1, %v4455_v1 }
  0xe4   : > { %v3599_v63 = vld [vmem:[%s4421_s14 + $0x88] sm:$0xff]   ;;  %v3602_v3 = vld [vmem:[%s4421_s14] sm:$0xff]   ;;  %v3608_v8 = vld [vmem:[%s4421_s14 + $0x178] sm:$0xff]   ;;  %v3191_v13 = vcombine.high %v4462_v4, %v4462_v4 }
  0xe5   : > { %3353 = vmatpush3.bf16.msra.mxu0 %v3582_v46  ;;  %3375 = vmatpush3.bf16.msra.mxu1 %v3583_v47  ;;  %v3603_v5 = vld [vmem:[%s4421_s14 + $0x80] sm:$0xff]   ;;  %v3609_v9 = vld [vmem:[%s4421_s14 + $0x138] sm:$0xff]   ;;  %v3612_v14 = vld [vmem:[%s4421_s14 + $0x170] sm:$0xff]   ;;  %v3190_v46 = vcombine.low %v4462_v4, %v4462_v4 }
  0xe6   : > { %3354 = vmatprep.subr.bf16.mxu0 %v3584_v48  ;;  %3376 = vmatprep.subr.bf16.mxu1 %v3585_v49  ;;  %v3610_v11 = vld [vmem:[%s4421_s14 + $0x1f8] sm:$0xff]   ;;  %v3613_v15 = vld [vmem:[%s4421_s14 + $0x130] sm:$0xff]   ;;  %v3616_v18 = vld [vmem:[%s4421_s14 + $0x168] sm:$0xff]  }
  0xe7   : > { %v3611_v12 = vld [vmem:[%s4421_s14 + $0x1b8] sm:$0xff]   ;;  %v3614_v16 = vld [vmem:[%s4421_s14 + $0x1f0] sm:$0xff]   ;;  %v3617_v19 = vld [vmem:[%s4421_s14 + $0x128] sm:$0xff]  }
  0xe8   : > { %v3615_v17 = vld [vmem:[%s4421_s14 + $0x1b0] sm:$0xff]   ;;  %v3618_v20 = vld [vmem:[%s4421_s14 + $0x1e8] sm:$0xff]   ;;  %v3620_v22 = vld [vmem:[%s4421_s14 + $0x160] sm:$0xff]  }
  0xe9   : > { %3355 = vmatpush3.bf16.msra.mxu0 %v3586_v50  ;;  %3377 = vmatpush3.bf16.msra.mxu1 %v3587_v51  ;;  %v3619_v21 = vld [vmem:[%s4421_s14 + $0x1a8] sm:$0xff]   ;;  %v3621_v23 = vld [vmem:[%s4421_s14 + $0x120] sm:$0xff]   ;;  %v3624_v26 = vld [vmem:[%s4421_s14 + $0x158] sm:$0xff]  }
  0xea   : > { %3356 = vmatprep.subr.bf16.mxu0 %v3588_v52  ;;  %3378 = vmatprep.subr.bf16.mxu1 %v3589_v53  ;;  %v3622_v24 = vld [vmem:[%s4421_s14 + $0x1e0] sm:$0xff]   ;;  %v3625_v27 = vld [vmem:[%s4421_s14 + $0x118] sm:$0xff]   ;;  %v3628_v30 = vld [vmem:[%s4421_s14 + $0x150] sm:$0xff]  }
  0xeb   : > { %v3623_v25 = vld [vmem:[%s4421_s14 + $0x1a0] sm:$0xff]   ;;  %v3626_v28 = vld [vmem:[%s4421_s14 + $0x1d8] sm:$0xff]   ;;  %v3629_v31 = vld [vmem:[%s4421_s14 + $0x110] sm:$0xff]  }
  0xec   : > { %v3627_v29 = vld [vmem:[%s4421_s14 + $0x198] sm:$0xff]   ;;  %v3630_v32 = vld [vmem:[%s4421_s14 + $0x1d0] sm:$0xff]   ;;  %v3632_v34 = vld [vmem:[%s4421_s14 + $0x148] sm:$0xff]  }
  0xed   : > { %3357 = vmatpush3.bf16.msra.mxu0 %v3590_v54  ;;  %3379 = vmatpush3.bf16.msra.mxu1 %v3591_v55  ;;  %v3631_v33 = vld [vmem:[%s4421_s14 + $0x190] sm:$0xff]   ;;  %v3633_v35 = vld [vmem:[%s4421_s14 + $0x108] sm:$0xff]   ;;  %v3636_v38 = vld [vmem:[%s4421_s14 + $0x140] sm:$0xff]  }
  0xee   : > { %3358 = vmatprep.subr.bf16.mxu0 %v3592_v56  ;;  %3380 = vmatprep.subr.bf16.mxu1 %v3593_v57  ;;  %v3634_v36 = vld [vmem:[%s4421_s14 + $0x1c8] sm:$0xff]   ;;  %v4505_v39 = vld [vmem:[%s4642_s0 + $0x20] sm:$0xff]  ;;  %v3642_v45 = vld [vmem:[%s4421_s14 + $0x278] sm:$0xff]  }
  0xef   : > { %v3635_v37 = vld [vmem:[%s4421_s14 + $0x188] sm:$0xff]   ;;  %v3637_v40 = vld [vmem:[%s4421_s14 + $0x100] sm:$0xff]   ;;  %v3645_v47 = vld [vmem:[%s4421_s14 + $0x238] sm:$0xff]   ;;  %v3193_v48 = vcombine.high %v4505_v39, %v4505_v39 }
  0xf0   : > { %v3638_v41 = vld [vmem:[%s4421_s14 + $0x1c0] sm:$0xff]   ;;  %v4512_v42 = vld [vmem:[%s4642_s0 + $0x28] sm:$0xff]  ;;  %v3646_v49 = vld [vmem:[%s4421_s14 + $0x2f8] sm:$0xff]  }
  0xf1   : > { %3359 = vmatpush3.bf16.msra.mxu0 %v3594_v58  ;;  %3381 = vmatpush3.bf16.msra.mxu1 %v3595_v59  ;;  %v3641_v44 = vld [vmem:[%s4421_s14 + $0x180] sm:$0xff]   ;;  %v3647_v50 = vld [vmem:[%s4421_s14 + $0x2b8] sm:$0xff]   ;;  %v3195_v51 = vcombine.high %v4512_v42, %v4512_v42  ;;  %v3648_v52 = vld [vmem:[%s4421_s14 + $0x270] sm:$0xff]  }
  0xf2   : > { %3360 = vmatprep.subr.bf16.mxu0 %v3596_v60  ;;  %3382 = vmatprep.subr.bf16.mxu1 %v3597_v61  ;;  %v3649_v53 = vld [vmem:[%s4421_s14 + $0x230] sm:$0xff]   ;;  %v3652_v56 = vld [vmem:[%s4421_s14 + $0x268] sm:$0xff]   ;;  %v3656_v60 = vld [vmem:[%s4421_s14 + $0x260] sm:$0xff]  }
  0xf3   : > { %v3650_v54 = vld [vmem:[%s4421_s14 + $0x2f0] sm:$0xff]   ;;  %v3653_v57 = vld [vmem:[%s4421_s14 + $0x228] sm:$0xff]   ;;  %v3657_v61 = vld [vmem:[%s4421_s14 + $0x220] sm:$0xff]  }
  0xf4   : > { %v3651_v55 = vld [vmem:[%s4421_s14 + $0x2b0] sm:$0xff]   ;;  %v3654_v58 = vld [vmem:[%s4421_s14 + $0x2e8] sm:$0xff]   ;;  %v3661_v1 = vld [vmem:[%s4421_s14 + $0x218] sm:$0xff]  }
  0xf5   : > { %3361 = vmatpush3.bf16.msra.mxu0 %v3598_v62  ;;  %3383 = vmatpush3.bf16.msra.mxu1 %v3599_v63  ;;  %v3655_v59 = vld [vmem:[%s4421_s14 + $0x2a8] sm:$0xff]   ;;  %v3658_v62 = vld [vmem:[%s4421_s14 + $0x2e0] sm:$0xff]   ;;  %v3664_v4 = vld [vmem:[%s4421_s14 + $0x250] sm:$0xff]  }
  0xf6   : > { %3362 = vmatprep.subr.bf16.mxu0 %v3600_v0  ;;  %3384 = vmatprep.subr.bf16.mxu1 %v3601_v2  ;;  %v3659_v63 = vld [vmem:[%s4421_s14 + $0x2a0] sm:$0xff]   ;;  %v3660_v0 = vld [vmem:[%s4421_s14 + $0x258] sm:$0xff]  }
  0xf7   : > { %v3662_v2 = vld [vmem:[%s4421_s14 + $0x2d8] sm:$0xff]  }
  0xf9   : > { %3363 = vmatpush3.bf16.msra.mxu0 %v3602_v3  ;;  %3385 = vmatpush3.bf16.msra.mxu1 %v3603_v5  ;;  %v3663_v3 = vld [vmem:[%s4421_s14 + $0x298] sm:$0xff]   ;;  %v3665_v5 = vld [vmem:[%s4421_s14 + $0x210] sm:$0xff]  }
  0xfa   : > { %3392 = vmatprep.subr.bf16.mxu0 %v3608_v8  ;;  %3414 = vmatprep.subr.bf16.mxu1 %v3610_v11  ;;  %v3668_v8 = vld [vmem:[%s4421_s14 + $0x248] sm:$0xff]  }
  0xfb   : > { %v3671_v11 = vld [vmem:[%s4421_s14 + $0x288] sm:$0xff]  }
  0xfc   : > { %2717 = vmatmul.mubr.bf16.vlgmr.msra.gmra.mxu0 %v3184_v6  ;;  %2757 = vmatmul.mubr.bf16.vlgmr.msra.gmra.mxu1 %v3186_v7  ;;  %v3666_v6 = vld [vmem:[%s4421_s14 + $0x2d0] sm:$0xff]  }
  0xfd   : > { %3393 = vmatpush3.bf16.msra.mxu0 %v3609_v9  ;;  %2796 = vmatprep.mubr.bf16.mxu0 %v3189_v10  ;;  %v3667_v7 = vld [vmem:[%s4421_s14 + $0x290] sm:$0xff]   ;;  %v3669_v9 = vld [vmem:[%s4421_s14 + $0x208] sm:$0xff]  }
  0xfe   : > { %3415 = vmatpush3.bf16.msra.mxu1 %v3611_v12  ;;  %3394 = vmatprep.subr.bf16.mxu0 %v3612_v14  ;;  %v3670_v10 = vld [vmem:[%s4421_s14 + $0x2c8] sm:$0xff]   ;;  %v3672_v12 = vld [vmem:[%s4421_s14 + $0x240] sm:$0xff]  }
  0xff   : > { %2836 = vmatprep.mubr.bf16.mxu1 %v3191_v13  ;;  %3416 = vmatprep.subr.bf16.mxu1 %v3614_v16  ;;  %v3673_v13 = vld [vmem:[%s4421_s14 + $0x200] sm:$0xff]  }
 0x100   : > { %v3674_v14 = vld [vmem:[%s4421_s14 + $0x2c0] sm:$0xff]  }
 0x101   : > { %3395 = vmatpush3.bf16.msra.mxu0 %v3613_v15  ;;  %v3192_v15 = vcombine.low %v4505_v39, %v4505_v39  ;;  %v3677_v16 = vld [vmem:[%s4421_s14 + $0x280] sm:$0xff]   ;;  %v3701_v39 = vld [vmem:[%s4421_s14 + $0x310] sm:$0xff]  }
 0x102   : > { %3417 = vmatpush3.bf16.msra.mxu1 %v3615_v17  ;;  %3396 = vmatprep.subr.bf16.mxu0 %v3616_v18  ;;  %v3678_v17 = vld [vmem:[%s4421_s14 + $0x378] sm:$0xff]   ;;  %v3194_v18 = vcombine.low %v4512_v42, %v4512_v42  ;;  %v3704_v42 = vld [vmem:[%s4421_s14 + $0x348] sm:$0xff]  }
 0x103   : > { %3418 = vmatprep.subr.bf16.mxu1 %v3618_v20  ;;  %v3682_v20 = vld [vmem:[%s4421_s14 + $0x3f8] sm:$0xff]  }
 0x105   : > { %3397 = vmatpush3.bf16.msra.mxu0 %v3617_v19  ;;  %v3681_v19 = vld [vmem:[%s4421_s14 + $0x338] sm:$0xff]  }
 0x106   : > { %3419 = vmatpush3.bf16.msra.mxu1 %v3619_v21  ;;  %3398 = vmatprep.subr.bf16.mxu0 %v3620_v22  ;;  %v3683_v21 = vld [vmem:[%s4421_s14 + $0x3b8] sm:$0xff]   ;;  %v3684_v22 = vld [vmem:[%s4421_s14 + $0x370] sm:$0xff]  }
 0x107   : > { %3420 = vmatprep.subr.bf16.mxu1 %v3622_v24  ;;  %v3686_v24 = vld [vmem:[%s4421_s14 + $0x3f0] sm:$0xff]  }
 0x109   : > { %3399 = vmatpush3.bf16.msra.mxu0 %v3621_v23  ;;  %v3685_v23 = vld [vmem:[%s4421_s14 + $0x330] sm:$0xff]  }
 0x10a   : > { %3421 = vmatpush3.bf16.msra.mxu1 %v3623_v25  ;;  %3400 = vmatprep.subr.bf16.mxu0 %v3624_v26  ;;  %v3687_v25 = vld [vmem:[%s4421_s14 + $0x3b0] sm:$0xff]   ;;  %v3688_v26 = vld [vmem:[%s4421_s14 + $0x368] sm:$0xff]  }
 0x10b   : > { %3422 = vmatprep.subr.bf16.mxu1 %v3626_v28  ;;  %v3690_v28 = vld [vmem:[%s4421_s14 + $0x3e8] sm:$0xff]  }
 0x10d   : > { %3401 = vmatpush3.bf16.msra.mxu0 %v3625_v27  ;;  %v3689_v27 = vld [vmem:[%s4421_s14 + $0x328] sm:$0xff]  }
 0x10e   : > { %3423 = vmatpush3.bf16.msra.mxu1 %v3627_v29  ;;  %3402 = vmatprep.subr.bf16.mxu0 %v3628_v30  ;;  %v3691_v29 = vld [vmem:[%s4421_s14 + $0x3a8] sm:$0xff]   ;;  %v3692_v30 = vld [vmem:[%s4421_s14 + $0x360] sm:$0xff]  }
 0x10f   : > { %3424 = vmatprep.subr.bf16.mxu1 %v3630_v32  ;;  %v3694_v32 = vld [vmem:[%s4421_s14 + $0x3e0] sm:$0xff]  }
 0x111   : > { %3403 = vmatpush3.bf16.msra.mxu0 %v3629_v31  ;;  %v3693_v31 = vld [vmem:[%s4421_s14 + $0x320] sm:$0xff]  }
 0x112   : > { %3425 = vmatpush3.bf16.msra.mxu1 %v3631_v33  ;;  %3404 = vmatprep.subr.bf16.mxu0 %v3632_v34  ;;  %v3695_v33 = vld [vmem:[%s4421_s14 + $0x3a0] sm:$0xff]   ;;  %v3696_v34 = vld [vmem:[%s4421_s14 + $0x358] sm:$0xff]  }
 0x113   : > { %3426 = vmatprep.subr.bf16.mxu1 %v3634_v36  ;;  %v3698_v36 = vld [vmem:[%s4421_s14 + $0x3d8] sm:$0xff]  }
 0x115   : > { %3405 = vmatpush3.bf16.msra.mxu0 %v3633_v35  ;;  %v3697_v35 = vld [vmem:[%s4421_s14 + $0x318] sm:$0xff]  }
 0x116   : > { %3427 = vmatpush3.bf16.msra.mxu1 %v3635_v37  ;;  %3406 = vmatprep.subr.bf16.mxu0 %v3636_v38  ;;  %v3699_v37 = vld [vmem:[%s4421_s14 + $0x398] sm:$0xff]   ;;  %v3700_v38 = vld [vmem:[%s4421_s14 + $0x350] sm:$0xff]  }
 0x117   : > { %3428 = vmatprep.subr.bf16.mxu1 %v3638_v41  ;;  %v3703_v41 = vld [vmem:[%s4421_s14 + $0x390] sm:$0xff]  }
 0x119   : > { %3407 = vmatpush3.bf16.msra.mxu0 %v3637_v40  ;;  %v3702_v40 = vld [vmem:[%s4421_s14 + $0x3d0] sm:$0xff]  }
 0x11a   : > { %3429 = vmatpush3.bf16.msra.mxu1 %v3641_v44  ;;  %3436 = vmatprep.subr.bf16.mxu0 %v3642_v45  ;;  %v3706_v44 = vld [vmem:[%s4421_s14 + $0x3c8] sm:$0xff]  }
 0x11b   : > { %3458 = vmatprep.subr.bf16.mxu1 %v3646_v49  ;;  %v3707_v45 = vld [vmem:[%s4421_s14 + $0x388] sm:$0xff]   ;;  %v1466_v49 = vld [vmem:[%s4642_s0 + $0x30] sm:$0xff] }
 0x11c   : > { %2797 = vmatmul.mubr.bf16.vlgmr.msra.gmra.mxu0 %v3188_v43  ;;  %v3705_v43 = vld [vmem:[%s4421_s14 + $0x308] sm:$0xff]  }
 0x11d   : > { %3437 = vmatpush3.bf16.msra.mxu0 %v3645_v47  ;;  %2837 = vmatmul.mubr.bf16.vlgmr.msra.gmra.mxu1 %v3190_v46  ;;  %v3708_v46 = vld [vmem:[%s4421_s14 + $0x340] sm:$0xff]  }
 0x11e   : > { %2876 = vmatprep.mubr.bf16.mxu0 %v3193_v48  ;;  %3459 = vmatpush3.bf16.msra.mxu1 %v3647_v50  ;;  %v3709_v47 = vld [vmem:[%s4421_s14 + $0x300] sm:$0xff]   ;;  %v3196_v50 = vcombine.low %v1466_v49, %v1466_v49 }
 0x11f   : > { %3438 = vmatprep.subr.bf16.mxu0 %v3648_v52  ;;  %2916 = vmatprep.mubr.bf16.mxu1 %v3195_v51  ;;  %v3710_v48 = vld [vmem:[%s4421_s14 + $0x3c0] sm:$0xff]   ;;  %v3197_v51 = vcombine.high %v1466_v49, %v1466_v49 }
 0x120   : > { %3460 = vmatprep.subr.bf16.mxu1 %v3650_v54  ;;  %v3713_v52 = vld [vmem:[%s4421_s14 + $0x380] sm:$0xff]   ;;  %v1467_v54 = vld [vmem:[%s4642_s0 + $0x38] sm:$0xff] }
 0x121   : > { %3439 = vmatpush3.bf16.msra.mxu0 %v3649_v53  ;;  %v3714_v53 = vld [vmem:[%s4421_s14 + $0x478] sm:$0xff]  }
 0x122   : > { %3461 = vmatpush3.bf16.msra.mxu1 %v3651_v55  ;;  %3440 = vmatprep.subr.bf16.mxu0 %v3652_v56  ;;  %v3198_v55 = vcombine.low %v1467_v54, %v1467_v54  ;;  %v3199_v56 = vcombine.high %v1467_v54, %v1467_v54 }
 0x123   : > { %3462 = vmatprep.subr.bf16.mxu1 %v3654_v58  ;;  %v3718_v58 = vld [vmem:[%s4421_s14 + $0x470] sm:$0xff]  }
 0x125   : > { %3441 = vmatpush3.bf16.msra.mxu0 %v3653_v57  ;;  %v3717_v57 = vld [vmem:[%s4421_s14 + $0x438] sm:$0xff]  }
 0x126   : > { %3463 = vmatpush3.bf16.msra.mxu1 %v3655_v59  ;;  %3442 = vmatprep.subr.bf16.mxu0 %v3656_v60  ;;  %v3719_v59 = vld [vmem:[%s4421_s14 + $0x430] sm:$0xff]   ;;  %v3720_v60 = vld [vmem:[%s4421_s14 + $0x468] sm:$0xff]  }
 0x127   : > { %3464 = vmatprep.subr.bf16.mxu1 %v3658_v62  ;;  %v3722_v62 = vld [vmem:[%s4421_s14 + $0x460] sm:$0xff]  }
 0x129   : > { %3443 = vmatpush3.bf16.msra.mxu0 %v3657_v61  ;;  %v3721_v61 = vld [vmem:[%s4421_s14 + $0x428] sm:$0xff]  }
 0x12a   : > { %3465 = vmatpush3.bf16.msra.mxu1 %v3659_v63  ;;  %3444 = vmatprep.subr.bf16.mxu0 %v3660_v0  ;;  %v3723_v63 = vld [vmem:[%s4421_s14 + $0x420] sm:$0xff]   ;;  %v3724_v0 = vld [vmem:[%s4421_s14 + $0x458] sm:$0xff]  }
 0x12b   : > { %3466 = vmatprep.subr.bf16.mxu1 %v3662_v2  ;;  %v1468_v2 = vld [vmem:[%s4642_s0 + $0x40] sm:$0xff] }
 0x12d   : > { %3445 = vmatpush3.bf16.msra.mxu0 %v3661_v1  ;;  %v3725_v1 = vld [vmem:[%s4421_s14 + $0x418] sm:$0xff]  }
 0x12e   : > { %3467 = vmatpush3.bf16.msra.mxu1 %v3663_v3  ;;  %3446 = vmatprep.subr.bf16.mxu0 %v3664_v4  ;;  %v3726_v3 = vld [vmem:[%s4421_s14 + $0x450] sm:$0xff]   ;;  %v3201_v4 = vcombine.high %v1468_v2, %v1468_v2 }
 0x12f   : > { %3468 = vmatprep.subr.bf16.mxu1 %v3666_v6  ;;  %v3728_v6 = vld [vmem:[%s4421_s14 + $0x448] sm:$0xff]  }
 0x131   : > { %3447 = vmatpush3.bf16.msra.mxu0 %v3665_v5  ;;  %v3727_v5 = vld [vmem:[%s4421_s14 + $0x410] sm:$0xff]  }
 0x132   : > { %3469 = vmatpush3.bf16.msra.mxu1 %v3667_v7  ;;  %3448 = vmatprep.subr.bf16.mxu0 %v3668_v8  ;;  %v3729_v7 = vld [vmem:[%s4421_s14 + $0x408] sm:$0xff]   ;;  %v3730_v8 = vld [vmem:[%s4421_s14 + $0x440] sm:$0xff]  }
 0x133   : > { %3470 = vmatprep.subr.bf16.mxu1 %v3670_v10  ;;  %v3200_v10 = vcombine.low %v1468_v2, %v1468_v2 }
 0x135   : > { %3449 = vmatpush3.bf16.msra.mxu0 %v3669_v9  ;;  %v3731_v9 = vld [vmem:[%s4421_s14 + $0x400] sm:$0xff]   ;;  %s1450_s14 = scalar_lea.vmem %s4645_s3, %s4652_s21 }
 0x136   : > { %3471 = vmatpush3.bf16.msra.mxu1 %v3671_v11  ;;  %3450 = vmatprep.subr.bf16.mxu0 %v3672_v12 }
 0x137   : > { %3472 = vmatprep.subr.bf16.mxu1 %v3674_v14 }
 0x139   : > { %3451 = vmatpush3.bf16.msra.mxu0 %v3673_v13 }
 0x13a   : > { %3473 = vmatpush3.bf16.msra.mxu1 %v3677_v16  ;;  %3480 = vmatprep.subr.bf16.mxu0 %v3678_v17 }
 0x13b   : > { %3502 = vmatprep.subr.bf16.mxu1 %v3682_v20 }
 0x13c   : > { %2877 = vmatmul.mubr.bf16.vlgmr.msra.gmra.mxu0 %v3192_v15 }
 0x13d   : > { %3481 = vmatpush3.bf16.msra.mxu0 %v3681_v19  ;;  %2917 = vmatmul.mubr.bf16.vlgmr.msra.gmra.mxu1 %v3194_v18 }
 0x13e   : > { %3503 = vmatpush3.bf16.msra.mxu1 %v3683_v21  ;;  %3482 = vmatprep.subr.bf16.mxu0 %v3684_v22 }
 0x13f   : > { %3504 = vmatprep.subr.bf16.mxu1 %v3686_v24  ;;  %2956 = vmatprep.mubr.bf16.mxu0 %v3197_v51 }
 0x140   : > { %2996 = vmatprep.mubr.bf16.mxu1 %v3199_v56 }
 0x141   : > { %3483 = vmatpush3.bf16.msra.mxu0 %v3685_v23 }
 0x142   : > { %3505 = vmatpush3.bf16.msra.mxu1 %v3687_v25  ;;  %3484 = vmatprep.subr.bf16.mxu0 %v3688_v26 }
 0x143   : > { %3506 = vmatprep.subr.bf16.mxu1 %v3690_v28 }
 0x145   : > { %3485 = vmatpush3.bf16.msra.mxu0 %v3689_v27 }
 0x146   : > { %3507 = vmatpush3.bf16.msra.mxu1 %v3691_v29  ;;  %3486 = vmatprep.subr.bf16.mxu0 %v3692_v30 }
 0x147   : > { %3508 = vmatprep.subr.bf16.mxu1 %v3694_v32 }
 0x149   : > { %3487 = vmatpush3.bf16.msra.mxu0 %v3693_v31 }
 0x14a   : > { %3509 = vmatpush3.bf16.msra.mxu1 %v3695_v33  ;;  %3488 = vmatprep.subr.bf16.mxu0 %v3696_v34 }
 0x14b   : > { %3510 = vmatprep.subr.bf16.mxu1 %v3698_v36 }
 0x14d   : > { %3489 = vmatpush3.bf16.msra.mxu0 %v3697_v35 }
 0x14e   : > { %3511 = vmatpush3.bf16.msra.mxu1 %v3699_v37  ;;  %3490 = vmatprep.subr.bf16.mxu0 %v3700_v38 }
 0x14f   : > { %3512 = vmatprep.subr.bf16.mxu1 %v3702_v40 }
 0x151   : > { %3491 = vmatpush3.bf16.msra.mxu0 %v3701_v39 }
 0x152   : > { %3513 = vmatpush3.bf16.msra.mxu1 %v3703_v41  ;;  %3492 = vmatprep.subr.bf16.mxu0 %v3704_v42 }
 0x153   : > { %3514 = vmatprep.subr.bf16.mxu1 %v3706_v44 }
 0x155   : > { %3493 = vmatpush3.bf16.msra.mxu0 %v3705_v43 }
 0x156   : > { %3515 = vmatpush3.bf16.msra.mxu1 %v3707_v45  ;;  %3494 = vmatprep.subr.bf16.mxu0 %v3708_v46 }
 0x157   : > { %3516 = vmatprep.subr.bf16.mxu1 %v3710_v48 }
 0x159   : > { %3495 = vmatpush3.bf16.msra.mxu0 %v3709_v47 }
 0x15a   : > { %3517 = vmatpush3.bf16.msra.mxu1 %v3713_v52  ;;  %3524 = vmatprep.subr.bf16.mxu0 %v3714_v53 }
 0x15c   : > { %2957 = vmatmul.mubr.bf16.vlgmr.msra.gmra.mxu0 %v3196_v50 }
 0x15d   : > { %3525 = vmatpush3.bf16.msra.mxu0 %v3717_v57  ;;  %2997 = vmatmul.mubr.bf16.vlgmr.msra.gmra.mxu1 %v3198_v55 }
 0x15e   : > { %3526 = vmatprep.subr.bf16.mxu0 %v3718_v58  ;;  %3036 = vmatprep.mubr.bf16.mxu0 %v3201_v4 }
 0x161   : > { %3527 = vmatpush3.bf16.msra.mxu0 %v3719_v59 }
 0x162   : > { %3528 = vmatprep.subr.bf16.mxu0 %v3720_v60 }
 0x165   : > { %3529 = vmatpush3.bf16.msra.mxu0 %v3721_v61 }
 0x166   : > { %3530 = vmatprep.subr.bf16.mxu0 %v3722_v62 }
 0x169   : > { %3531 = vmatpush3.bf16.msra.mxu0 %v3723_v63 }
 0x16a   : > { %3532 = vmatprep.subr.bf16.mxu0 %v3724_v0 }
 0x16d   : > { %3533 = vmatpush3.bf16.msra.mxu0 %v3725_v1 }
 0x16e   : > { %3534 = vmatprep.subr.bf16.mxu0 %v3726_v3 }
 0x171   : > { %3535 = vmatpush3.bf16.msra.mxu0 %v3727_v5 }
 0x172   : > { %3536 = vmatprep.subr.bf16.mxu0 %v3728_v6 }
 0x175   : > { %3537 = vmatpush3.bf16.msra.mxu0 %v3729_v7 }
 0x176   : > { %3538 = vmatprep.subr.bf16.mxu0 %v3730_v8 }
 0x179   : > { %3539 = vmatpush3.bf16.msra.mxu0 %v3731_v9 }
 0x17c   : > { %3037 = vmatmul.mubr.bf16.vlgmr.msra.gmra.mxu0 %v3200_v10 }
 0x1bc   : > { %v3364_v11 = vpop.f32.mrf.mxu0  ;;  %v3386_v12 = vpop.f32.mrf.mxu1 }
 0x1be   : > { %v3365_v13 = vpop.f32.mrf.mxu0  ;;  %v3387_v15 = vpop.f32.mrf.mxu1 }
 0x1bf   : > { %v3366_v14 = vadd.f32 %v3365_v13, %v3364_v11  ;;  %v3388_v16 = vadd.f32 %v3387_v15, %v3386_v12 }
 0x1c0   : > { %v3367_v17 = vpop.f32.mrf.mxu0  ;;  %v3389_v18 = vpop.f32.mrf.mxu1 }
 0x1c1   : > { %v2759_v19 = vadd.f32 %v3388_v16, %v3366_v14 }
 0x1c2   : > { %v3368_v20 = vpop.f32.mrf.mxu0  ;;  %v3390_v21 = vpop.f32.mrf.mxu1 }
 0x1c3   : > { %v3044_v21 = vld [vmem:[%s1447_s11] sm:$0x1] }
 0x1dc   : > { %v3408_v22 = vpop.f32.mrf.mxu0 }
 0x1dd   : > { %v3430_v24 = vpop.f32.mrf.mxu1 }
 0x1de   : > { %v3409_v23 = vpop.f32.mrf.mxu0 }
 0x1df   : > { %v3410_v25 = vadd.f32 %v3409_v23, %v3408_v22  ;;  %v3431_v27 = vpop.f32.mrf.mxu1 }
 0x1e0   : > { %v3411_v26 = vpop.f32.mrf.mxu0  ;;  %v3432_v29 = vadd.f32 %v3431_v27, %v3430_v24 }
 0x1e1   : > { %v2799_v28 = vadd.f32 %v3410_v25, %v2759_v19  ;;  %v3433_v31 = vpop.f32.mrf.mxu1  ;;  %v3071_v19 = vlaneseq  ;;  %v3045_v25 = vld [vmem:[%s1450_s14] sm:$0x1] }
 0x1e2   : > { %v3412_v30 = vpop.f32.mrf.mxu0  ;;  %v3046_v31 = vld [vmem:[%s1454_s17] sm:$0xff] }
 0x1e3   : > { %v2839_v32 = vadd.f32 %v3432_v29, %v2799_v28  ;;  %v3434_v33 = vpop.f32.mrf.mxu1  ;;  %v3072_v20 = vshrl.u32 %v3071_v19, 7 }
 0x1e5   : > { %v3073_v22 = vsub.s32 0, %v3072_v20 }
 0x1fc   : > { %v3452_v34 = vpop.f32.mrf.mxu0 }
 0x1fd   : > { %v3474_v36 = vpop.f32.mrf.mxu1 }
 0x1fe   : > { %v3453_v35 = vpop.f32.mrf.mxu0 }
 0x1ff   : > { %v3475_v38 = vpop.f32.mrf.mxu1  ;;  %v3454_v50 = vadd.f32 %v3453_v35, %v3452_v34 }
 0x200   : > { %v3455_v37 = vpop.f32.mrf.mxu0  ;;  %v3476_v52 = vadd.f32 %v3475_v38, %v3474_v36 }
 0x201   : > { %v3477_v40 = vpop.f32.mrf.mxu1  ;;  %v2879_v51 = vadd.f32 %v3454_v50, %v2839_v32 }
 0x202   : > { %v3456_v39 = vpop.f32.mrf.mxu0 }
 0x203   : > { %v3478_v41 = vpop.f32.mrf.mxu1  ;;  %v2919_v54 = vadd.f32 %v3476_v52, %v2879_v51 }
 0x21c   : > { %v3496_v42 = vpop.f32.mrf.mxu0 }
 0x21d   : > { %v3518_v44 = vpop.f32.mrf.mxu1 }
 0x21e   : > { %v3497_v43 = vpop.f32.mrf.mxu0 }
 0x21f   : > { %v3519_v46 = vpop.f32.mrf.mxu1  ;;  %v3498_v53 = vadd.f32 %v3497_v43, %v3496_v42 }
 0x220   : > { %v3499_v45 = vpop.f32.mrf.mxu0  ;;  %v3520_v56 = vadd.f32 %v3519_v46, %v3518_v44 }
 0x221   : > { %v3521_v48 = vpop.f32.mrf.mxu1  ;;  %v2959_v55 = vadd.f32 %v3498_v53, %v2919_v54 }
 0x222   : > { %v3500_v47 = vpop.f32.mrf.mxu0 }
 0x223   : > { %v3522_v49 = vpop.f32.mrf.mxu1  ;;  %v2999_v59 = vadd.f32 %v3520_v56, %v2959_v55 }
 0x23c   : > { %v3540_v57 = vpop.f32.mrf.mxu0 }
 0x23e   : > { %v3541_v58 = vpop.f32.mrf.mxu0 }
 0x23f   : > { %v3542_v60 = vadd.f32 %v3541_v58, %v3540_v57 }
 0x240   : > { %v3543_v61 = vpop.f32.mrf.mxu0 }
 0x241   : > { %v3039_v62 = vadd.f32 %v3542_v60, %v2999_v59 }
 0x242   : > { %v3544_v63 = vpop.f32.mrf.mxu0 }
 0x243   : > { %v3047_v0 = vrot.slane %v3039_v62, 4  ;;  %v3054_v1 = vmul.f32 %v3039_v62, %v3039_v62 }
 0x245   : > { %v3048_v2 = vadd.f32 %v3047_v0, %v3039_v62  ;;  %v3055_v3 = vrot.slane %v3054_v1, 4 }
 0x247   : > { %v3049_v4 = vrot.slane %v3048_v2, 2  ;;  %v3056_v5 = vadd.f32 %v3055_v3, %v3054_v1 }
 0x249   : > { %v3050_v6 = vadd.f32 %v3049_v4, %v3048_v2  ;;  %v3057_v7 = vrot.slane %v3056_v5, 2 }
 0x24b   : > { %v3051_v8 = vrot.slane %v3050_v6, 1  ;;  %v3058_v9 = vadd.f32 %v3057_v7, %v3056_v5 }
 0x24d   : > { %v3052_v10 = vadd.f32 %v3051_v8, %v3050_v6  ;;  %v3059_v11 = vrot.slane %v3058_v9, 1 }
 0x24f   : > { %v3053_v12 = vmul.f32 0.125, %v3052_v10  ;;  %v3060_v13 = vadd.f32 %v3059_v11, %v3058_v9 }
 0x251   : > { %v3061_v14 = vmul.f32 0.125, %v3060_v13  ;;  %v3062_v15 = vmul.f32 %v3053_v12, %v3053_v12 }
 0x253   : > { %v3063_v16 = vsub.f32 %v3061_v14, %v3062_v15 }
 0x255   : > { %v3064_v17 = vmax.f32 %v3063_v16, 0.0 }
 0x257   : > { %v3065_v18 = vadd.f32 1e-05, %v3064_v17 }
 0x259   : > { %3734 = vrsqrt.f32 %v3065_v18 }
 0x266   : > { %v3735_v23 = vpop.eup %3734 }
 0x267   : > { %v3067_v24 = vmul.f32 %v3735_v23, %v3044_v21 }
 0x269   : > { %v3068_v26 = vmul.f32 %v3067_v24, %v3053_v12  ;;  %v3074_v27 = vrot.slane %v3067_v24, %v3073_v22 }
 0x26b   : > { %v3069_v28 = vsub.f32 %v3045_v25, %v3068_v26  ;;  %v3076_v29 = vmul.f32 %v3074_v27, %v3039_v62 }
 0x26d   : > { %v3081_v30 = vrot.slane %v3069_v28, %v3073_v22 }
 0x26f   : > { %v3083_v32 = vadd.f32 %v3081_v30, %v3076_v29 }
 0x271   : > { %v3084_v33 = vadd.f32 %v3083_v32, %v3046_v31 }
 0x273   : > { %v3085_v34 = vmax.f32 %v3084_v33, 0.0 }
 0x275   : > { %3086 = vst [vmem:[%s1458_s24] sm:$0xff] %v3085_v34 }
 0x276 PF: > { %p12_p9 = scmp.ge.s32.totalorder %s3807_s22, 4   ;;  %s4648_s18 = smov %s3754_s19 }
 0x277   : > { %s4649_s19 = smov %s3816_s25  ;;  %s4650_s20 = smov %s3807_s22 }
 0x278   :  { %14 = sbr.rel (!%p12_p9) target bundleno = 2 (0x2), region = 125 }

// kernel: _lambda_.33
= control target key start
LH: loop header
LB: loop body
LE: loop exit
PB: predicated region body
PF: predicated region fallthrough
CT: control target
= control target key end

     0   :  { %vm23_vm0 = vcmask 1043456   ;;  %s383_s0 = inlined_call_operand.vmem [shape: f32[2,4,256], index: 0, kind: input, shape index: {}]   ;;  %s384_s1 = inlined_call_operand.vmem [shape: f32[256,128], index: 1, kind: input, shape index: {}]   ;;  %s385_s2 = inlined_call_operand.vmem [shape: f32[1,128], index: 2, kind: input, shape index: {}]   ;;  %s386_s3 = inlined_call_operand.hbm [shape: f32[2,128], index: 3, kind: output, shape index: {}]  }
   0x1   :  { %v87_v0 = vld [vmem:[%s384_s1 + $0xf8] sm:$0xff]  ;;  %v86_v2 = vld [vmem:[%s384_s1 + $0xf0] sm:$0xff]  ;;  %v85_v4 = vld [vmem:[%s384_s1 + $0xe8] sm:$0xff] }
   0x2   :  { %v71_v1 = vld [vmem:[%s384_s1 + $0x78] sm:$0xff]  ;;  %190 = vmatprep.subr.mxu0 %v87_v0  ;;  %v70_v3 = vld [vmem:[%s384_s1 + $0x70] sm:$0xff]  ;;  %v69_v5 = vld [vmem:[%s384_s1 + $0x68] sm:$0xff] }
   0x3   :  { %191 = vmatpush3.msra.mxu0 %v71_v1  ;;  %v84_v6 = vld [vmem:[%s384_s1 + $0xe0] sm:$0xff]  ;;  %v83_v8 = vld [vmem:[%s384_s1 + $0xd8] sm:$0xff]  ;;  %v82_v10 = vld [vmem:[%s384_s1 + $0xd0] sm:$0xff] }
   0x4   :  { %192 = vmatprep.subr.mxu0 %v86_v2  ;;  %v68_v7 = vld [vmem:[%s384_s1 + $0x60] sm:$0xff]  ;;  %v67_v9 = vld [vmem:[%s384_s1 + $0x58] sm:$0xff]  ;;  %v66_v11 = vld [vmem:[%s384_s1 + $0x50] sm:$0xff] }
   0x5   :  { %193 = vmatpush3.msra.mxu0 %v70_v3  ;;  %v81_v12 = vld [vmem:[%s384_s1 + $0xc8] sm:$0xff]  ;;  %v15_v13 = vld [vmem:[%s383_s0] sm:$0xff] }
   0x6   :  { %194 = vmatprep.subr.mxu0 %v85_v4  ;;  %v65_v14 = vld [vmem:[%s384_s1 + $0x48] sm:$0xff]  ;;  %v19_v16 = vcombine.high %v15_v13, %v15_v13  ;;  %v24_v17 = vsel %vm23_vm0, %v15_v13, 0.0 }
   0x7   :  { %195 = vmatpush3.msra.mxu0 %v69_v5  ;;  %v16_v15 = vld [vmem:[%s383_s0 + $0x8] sm:$0xff] }
   0x8   :  { %196 = vmatprep.subr.mxu0 %v84_v6 }
   0x9   :  { %197 = vmatpush3.msra.mxu0 %v68_v7 }
   0xa   :  { %198 = vmatprep.subr.mxu0 %v83_v8 }
   0xb   :  { %199 = vmatpush3.msra.mxu0 %v67_v9 }
   0xc   :  { %200 = vmatprep.subr.mxu0 %v82_v10 }
   0xd   :  { %8 = vsyncpa [#allocation3], 0  ;;  %201 = vmatpush3.msra.mxu0 %v66_v11  ;;  %v80_v18 = vld [vmem:[%s384_s1 + $0xc0] sm:$0xff]  ;;  %v20_v19 = vcombine.high %v16_v15, %v16_v15  ;;  %v25_v20 = vrot.slane %v24_v17, 4  ;;  %v38_v21 = vsel %vm23_vm0, %v16_v15, 0.0  ;;  %v31_v23 = vsel %vm23_vm0, %v19_v16, 0.0 }
   0xe   :  { %202 = vmatprep.subr.mxu0 %v81_v12  ;;  %v64_v22 = vld [vmem:[%s384_s1 + $0x40] sm:$0xff]  ;;  %v39_v24 = vrot.slane %v38_v21, 4  ;;  %v79_v25 = vld [vmem:[%s384_s1 + $0xb8] sm:$0xff]  ;;  %v32_v26 = vrot.slane %v31_v23, 4  ;;  %v78_v32 = vld [vmem:[%s384_s1 + $0xb0] sm:$0xff]  ;;  %vm99_vm1 = vcmask 1041409  }
   0xf   :  { %203 = vmatpush3.msra.mxu0 %v65_v14  ;;  %v45_v27 = vsel %vm23_vm0, %v20_v19, 0.0  ;;  %v26_v28 = vadd.f32 %v25_v20, %v24_v17  ;;  %v63_v29 = vld [vmem:[%s384_s1 + $0x38] sm:$0xff]  ;;  %v62_v35 = vld [vmem:[%s384_s1 + $0x30] sm:$0xff]  ;;  %v77_v38 = vld [vmem:[%s384_s1 + $0xa8] sm:$0xff]  ;;  %s250_s26 = smov [#allocation2]  }
  0x10   :  { %204 = vmatprep.subr.mxu0 %v80_v18  ;;  %v46_v30 = vrot.slane %v45_v27, 4  ;;  %v40_v31 = vadd.f32 %v39_v24, %v38_v21  ;;  %v33_v33 = vadd.f32 %v32_v26, %v31_v23  ;;  %v61_v41 = vld [vmem:[%s384_s1 + $0x28] sm:$0xff]  ;;  %v76_v44 = vld [vmem:[%s384_s1 + $0xa0] sm:$0xff]  ;;  %v75_v50 = vld [vmem:[%s384_s1 + $0x98] sm:$0xff]  ;;  %s181_s27 = sshll.u32 %s250_s26, 4  ;;  %s182_s27 = int_to_ptr.vmem [resolvable:$true] %s181_s27 }
  0x11   :  { %205 = vmatpush3.msra.mxu0 %v64_v22  ;;  %v27_v34 = vrot.slane %v26_v28, 2  ;;  %v60_v47 = vld [vmem:[%s384_s1 + $0x20] sm:$0xff]  ;;  %v59_v53 = vld [vmem:[%s384_s1 + $0x18] sm:$0xff]  ;;  %v74_v56 = vld [vmem:[%s384_s1 + $0x90] sm:$0xff]  ;;  %p233_p1 = scmp.lt.s32.totalorder %s182_s27, %s182_s27 }
  0x12   :  { %206 = vmatprep.subr.mxu0 %v79_v25  ;;  %v47_v36 = vadd.f32 %v46_v30, %v45_v27  ;;  %v41_v37 = vrot.slane %v40_v31, 2  ;;  %v34_v39 = vrot.slane %v33_v33, 2  ;;  %v58_v58 = vld [vmem:[%s384_s1 + $0x10] sm:$0xff]  ;;  %v73_v60 = vld [vmem:[%s384_s1 + $0x88] sm:$0xff]  ;;  %v72_v2 = vld [vmem:[%s384_s1 + $0x80] sm:$0xff] }
  0x13   :  { %207 = vmatpush3.msra.mxu0 %v63_v29  ;;  %v28_v40 = vadd.f32 %v27_v34, %v26_v28  ;;  %v57_v0 = vld [vmem:[%s384_s1 + $0x8] sm:$0xff]  ;;  %v56_v3 = vld [vmem:[%s384_s1] sm:$0xff]  ;;  %s228_s1 = scalar_lea.vmem %s182_s27, 32 }
  0x14   :  { %208 = vmatprep.subr.mxu0 %v78_v32  ;;  %v48_v42 = vrot.slane %v47_v36, 2  ;;  %v42_v43 = vadd.f32 %v41_v37, %v40_v31  ;;  %v35_v45 = vadd.f32 %v34_v39, %v33_v33  ;;  %v189_v8 = vld [vmem:[%s385_s2] ss:$0 sm:$0xff]  ;;  %p229_p0 = scmp.ne.s32.totalorder %s182_s27, %s228_s1  ;;  %p234_p2 = scmp.lt.s32.totalorder %s228_s1, %s228_s1 }
  0x15   :  { %209 = vmatpush3.msra.mxu0 %v62_v35  ;;  %v29_v46 = vrot.slane %v28_v40, 1 }
  0x16   :  { %210 = vmatprep.subr.mxu0 %v77_v38  ;;  %v49_v48 = vadd.f32 %v48_v42, %v47_v36  ;;  %v43_v49 = vrot.slane %v42_v43, 1  ;;  %v36_v51 = vrot.slane %v35_v45, 1  ;;  %p235_p3 = por %p234_p2, %p233_p1 }
  0x17   :  { %211 = vmatpush3.msra.mxu0 %v61_v41  ;;  %v30_v52 = vadd.f32 %v29_v46, %v28_v40 }
  0x18   :  { %212 = vmatprep.subr.mxu0 %v76_v44  ;;  %v50_v54 = vrot.slane %v49_v48, 1  ;;  %v44_v55 = vadd.f32 %v43_v49, %v42_v43  ;;  %v37_v57 = vadd.f32 %v36_v51, %v35_v45  ;;  %p236_p4 = pnand %p235_p3, %p229_p0 }
  0x19   :  { %213 = vmatpush3.msra.mxu0 %v60_v47  ;;  %v52_v62 = vmul.f32 0.25, %v30_v52 }
  0x1a   :  { %214 = vmatprep.subr.mxu0 %v75_v50  ;;  %v51_v59 = vadd.f32 %v50_v54, %v49_v48  ;;  %v53_v61 = vmul.f32 0.25, %v37_v57  ;;  %v54_v63 = vmul.f32 0.25, %v44_v55 }
  0x1b   :  { %215 = vmatpush3.msra.mxu0 %v59_v53 }
  0x1c   :  { %216 = vmatprep.subr.mxu0 %v74_v56  ;;  %v55_v1 = vmul.f32 0.25, %v51_v59  ;;  %v100_v5 = vsel %vm99_vm1, %v54_v63, %v52_v62 }
  0x1d   :  { %217 = vmatpush3.msra.mxu0 %v58_v58 }
  0x1e   :  { %218 = vmatprep.subr.mxu0 %v73_v60  ;;  %v101_v4 = vsel %vm99_vm1, %v55_v1, %v53_v61 }
  0x1f   :  { %219 = vmatpush3.msra.mxu0 %v57_v0  ;;  %168 = vmatprep.mubr.f32.mxu0 %v101_v4 }
  0x20   :  { %220 = vmatprep.subr.mxu0 %v72_v2 }
  0x21   :  { %221 = vmatpush3.msra.mxu0 %v56_v3 }
  0x22   :  { %169 = vmatmul.mubr.f32.vlgmr.msra.gmra.mxu0 %v100_v5 }
  0xe2   :  { %v222_v6 = vpop.f32.mrf.mxu0 }
  0xe4   :  { %v223_v7 = vpop.f32.mrf.mxu0 }
  0xe5   :  { %v224_v9 = vadd.f32 %v223_v7, %v222_v6 }
  0xe7   :  { %v171_v10 = vadd.f32 %v224_v9, %v189_v8 }
  0xe9   :  { %174 = vst [vmem:[#allocation2] sm:$0x3] %v171_v10 }
  0xea   :  { %239 = shalt.err (!%p236_p4)
}
  0xeb   :  { %184 = dma.vmem_to_hbm [thread:$0]  %s182_s27, 32, %s386_s3, [#allocation3]  }
  0xec   :  { %248 = dma.done.wait [#allocation3], 32  }
  0xed   :  { %249 = vsyncadd [#allocation3], 4294967264 }
  0xee   :  { %188 = vsyncpa [#allocation3], 1 }

// kernel: _lambda_.31
= control target key start
LH: loop header
LB: loop body
LE: loop exit
PB: predicated region body
PF: predicated region fallthrough
CT: control target
= control target key end

     0   :  { %s3726_s15 = smov 0   ;;  %s3728_s16 = smov 0   ;;  %s4575_s0 = inlined_call_operand.vmem [shape: bf16[8,2304], index: 0, kind: input, shape index: {}]   ;;  %s4576_s1 = inlined_call_operand.vmem [shape: bf16[2304,256], index: 1, kind: input, shape index: {}]   ;;  %s4577_s2 = inlined_call_operand.vmem [shape: f32[1,256], index: 2, kind: input, shape index: {}]   ;;  %s4578_s3 = inlined_call_operand.vmem [shape: f32[1,256], index: 3, kind: input, shape index: {}]   ;;  %s4579_s4 = inlined_call_operand.vmem [shape: f32[8,256], index: 4, kind: output, shape index: {}]  }
   0x1   :  { %s3730_s17 = smov 0  }
   0x2 LB: > { %s3118_s18 = sadd.s32 4294967295, %s3699_s17   ;;  %s3743_s19 = sadd.s32 1, %s3699_s17   ;;  %s3699_s17 = sphi %s3730_s17, %s4582_s17   ;;  %s3695_s16 = sphi %s3728_s16, %s4581_s16   ;;  %s3691_s15 = sphi %s3726_s15, %s4580_s15  }
   0x3   : > { %s39_s20 = ssub.s32 %s3699_s17, %s3743_s19  ;;  %s42_s21 = sadd.s32 1, %s3695_s16 }
   0x4   : > { %p40_p0 = scmp.eq.s32.totalorder %s39_s20, 0  ;;  %p49_p1 = scmp.ne.s32.totalorder %s3695_s16, %s3691_s15 }
   0x5   : > { %p50_p2 = scmp.eq.s32.totalorder %s3699_s17, 0  ;;  %p3121_p4 = scmp.ge.s32.totalorder %s3699_s17, 2 }
   0x6   : > { %s3752_s22 = scalar_select %p40_p0, %s3695_s16, %s42_s21  }
   0x7   : > { %p51_p3 = por %p50_p2, %p49_p1  ;;  %156 = sbr.rel (%p3121_p4) target bundleno = 208 (0xd0), region = 20 }
   0xc   : > { %159 = sbr.rel (!%p51_p3) target bundleno = 208 (0xd0), region = 24  ;;  %s161_s23 = sand.u32 (%p51_p3), 1, %s3695_s16  }
   0xd   : > { %s3122_s24 = sshll.u32 (%p51_p3), %s3699_s17, 2  ;;  %s3487_s25 = smul.u32 (%p51_p3), 1152, %s161_s23 }
   0xe   : > { %s3760_s28 = scalar_lea.vmem (%p51_p3), %s4576_s1, %s3122_s24 }
   0xf   : > { %v182_v0 = vld [vmem:[%s3760_s28] sm:$0xf] (%p51_p3)  ;;  %v184_v1 = vld [vmem:[%s3760_s28 + $0x8] sm:$0xf] (%p51_p3)  ;;  %v186_v2 = vld [vmem:[%s3760_s28 + $0x10] sm:$0xf] (%p51_p3) }
  0x10   : > { %v188_v3 = vld [vmem:[%s3760_s28 + $0x18] sm:$0xf] (%p51_p3)  ;;  %v190_v4 = vld [vmem:[%s3760_s28 + $0x20] sm:$0xf] (%p51_p3)  ;;  %s3767_s29 = scalar_lea.vmem (%p51_p3), [#allocation2], %s3487_s25 }
  0x11   : > { %183 = vst [vmem:[%s3767_s29] sm:$0xf] %v182_v0  ;;  %185 = vst [vmem:[%s3767_s29 + $0x4] sm:$0xf] %v184_v1  ;;  %v192_v5 = vld [vmem:[%s3760_s28 + $0x28] sm:$0xf] }
  0x12   : > { %187 = vst [vmem:[%s3767_s29 + $0x8] sm:$0xf] %v186_v2  ;;  %189 = vst [vmem:[%s3767_s29 + $0xc] sm:$0xf] %v188_v3  ;;  %v194_v6 = vld [vmem:[%s3760_s28 + $0x30] sm:$0xf] }
  0x13   : > { %191 = vst [vmem:[%s3767_s29 + $0x10] sm:$0xf] %v190_v4  ;;  %v196_v7 = vld [vmem:[%s3760_s28 + $0x38] sm:$0xf]  ;;  %193 = vst [vmem:[%s3767_s29 + $0x14] sm:$0xf] %v192_v5 }
  0x14   : > { %195 = vst [vmem:[%s3767_s29 + $0x18] sm:$0xf] %v194_v6  ;;  %197 = vst [vmem:[%s3767_s29 + $0x1c] sm:$0xf] %v196_v7  ;;  %v198_v8 = vld [vmem:[%s3760_s28 + $0x40] sm:$0xf] }
  0x15   : > { %v200_v9 = vld [vmem:[%s3760_s28 + $0x48] sm:$0xf]  ;;  %v202_v10 = vld [vmem:[%s3760_s28 + $0x50] sm:$0xf]  ;;  %199 = vst [vmem:[%s3767_s29 + $0x20] sm:$0xf] %v198_v8 }
  0x16   : > { %201 = vst [vmem:[%s3767_s29 + $0x24] sm:$0xf] %v200_v9  ;;  %203 = vst [vmem:[%s3767_s29 + $0x28] sm:$0xf] %v202_v10  ;;  %v204_v11 = vld [vmem:[%s3760_s28 + $0x58] sm:$0xf] }
  0x17   : > { %v206_v12 = vld [vmem:[%s3760_s28 + $0x60] sm:$0xf]  ;;  %v208_v13 = vld [vmem:[%s3760_s28 + $0x68] sm:$0xf]  ;;  %205 = vst [vmem:[%s3767_s29 + $0x2c] sm:$0xf] %v204_v11 }
  0x18   : > { %207 = vst [vmem:[%s3767_s29 + $0x30] sm:$0xf] %v206_v12  ;;  %209 = vst [vmem:[%s3767_s29 + $0x34] sm:$0xf] %v208_v13  ;;  %v210_v14 = vld [vmem:[%s3760_s28 + $0x70] sm:$0xf] }
  0x19   : > { %v212_v15 = vld [vmem:[%s3760_s28 + $0x78] sm:$0xf]  ;;  %v214_v16 = vld [vmem:[%s3760_s28 + $0x80] sm:$0xf]  ;;  %211 = vst [vmem:[%s3767_s29 + $0x38] sm:$0xf] %v210_v14 }
  0x1a   : > { %213 = vst [vmem:[%s3767_s29 + $0x3c] sm:$0xf] %v212_v15  ;;  %215 = vst [vmem:[%s3767_s29 + $0x40] sm:$0xf] %v214_v16  ;;  %v216_v17 = vld [vmem:[%s3760_s28 + $0x88] sm:$0xf] }
  0x1b   : > { %v218_v18 = vld [vmem:[%s3760_s28 + $0x90] sm:$0xf]  ;;  %v220_v19 = vld [vmem:[%s3760_s28 + $0x98] sm:$0xf]  ;;  %217 = vst [vmem:[%s3767_s29 + $0x44] sm:$0xf] %v216_v17 }
  0x1c   : > { %219 = vst [vmem:[%s3767_s29 + $0x48] sm:$0xf] %v218_v18  ;;  %221 = vst [vmem:[%s3767_s29 + $0x4c] sm:$0xf] %v220_v19  ;;  %v222_v20 = vld [vmem:[%s3760_s28 + $0xa0] sm:$0xf] }
  0x1d   : > { %v224_v21 = vld [vmem:[%s3760_s28 + $0xa8] sm:$0xf]  ;;  %v226_v22 = vld [vmem:[%s3760_s28 + $0xb0] sm:$0xf]  ;;  %223 = vst [vmem:[%s3767_s29 + $0x50] sm:$0xf] %v222_v20 }
  0x1e   : > { %225 = vst [vmem:[%s3767_s29 + $0x54] sm:$0xf] %v224_v21  ;;  %227 = vst [vmem:[%s3767_s29 + $0x58] sm:$0xf] %v226_v22  ;;  %v228_v23 = vld [vmem:[%s3760_s28 + $0xb8] sm:$0xf] }
  0x1f   : > { %v230_v24 = vld [vmem:[%s3760_s28 + $0xc0] sm:$0xf]  ;;  %v232_v25 = vld [vmem:[%s3760_s28 + $0xc8] sm:$0xf]  ;;  %229 = vst [vmem:[%s3767_s29 + $0x5c] sm:$0xf] %v228_v23 }
  0x20   : > { %231 = vst [vmem:[%s3767_s29 + $0x60] sm:$0xf] %v230_v24  ;;  %233 = vst [vmem:[%s3767_s29 + $0x64] sm:$0xf] %v232_v25  ;;  %v234_v26 = vld [vmem:[%s3760_s28 + $0xd0] sm:$0xf] }
  0x21   : > { %v236_v27 = vld [vmem:[%s3760_s28 + $0xd8] sm:$0xf]  ;;  %v238_v28 = vld [vmem:[%s3760_s28 + $0xe0] sm:$0xf]  ;;  %235 = vst [vmem:[%s3767_s29 + $0x68] sm:$0xf] %v234_v26 }
  0x22   : > { %237 = vst [vmem:[%s3767_s29 + $0x6c] sm:$0xf] %v236_v27  ;;  %239 = vst [vmem:[%s3767_s29 + $0x70] sm:$0xf] %v238_v28  ;;  %v240_v29 = vld [vmem:[%s3760_s28 + $0xe8] sm:$0xf] }
  0x23   : > { %v242_v30 = vld [vmem:[%s3760_s28 + $0xf0] sm:$0xf]  ;;  %v244_v31 = vld [vmem:[%s3760_s28 + $0xf8] sm:$0xf]  ;;  %241 = vst [vmem:[%s3767_s29 + $0x74] sm:$0xf] %v240_v29 }
  0x24   : > { %243 = vst [vmem:[%s3767_s29 + $0x78] sm:$0xf] %v242_v30  ;;  %245 = vst [vmem:[%s3767_s29 + $0x7c] sm:$0xf] %v244_v31  ;;  %v246_v32 = vld [vmem:[%s3760_s28 + $0x100] sm:$0xf] }
  0x25   : > { %v248_v33 = vld [vmem:[%s3760_s28 + $0x108] sm:$0xf]  ;;  %v250_v34 = vld [vmem:[%s3760_s28 + $0x110] sm:$0xf]  ;;  %247 = vst [vmem:[%s3767_s29 + $0x80] sm:$0xf] %v246_v32 }
  0x26   : > { %249 = vst [vmem:[%s3767_s29 + $0x84] sm:$0xf] %v248_v33  ;;  %251 = vst [vmem:[%s3767_s29 + $0x88] sm:$0xf] %v250_v34  ;;  %v252_v35 = vld [vmem:[%s3760_s28 + $0x118] sm:$0xf] }
  0x27   : > { %v254_v36 = vld [vmem:[%s3760_s28 + $0x120] sm:$0xf]  ;;  %v256_v37 = vld [vmem:[%s3760_s28 + $0x128] sm:$0xf]  ;;  %253 = vst [vmem:[%s3767_s29 + $0x8c] sm:$0xf] %v252_v35 }
  0x28   : > { %255 = vst [vmem:[%s3767_s29 + $0x90] sm:$0xf] %v254_v36  ;;  %257 = vst [vmem:[%s3767_s29 + $0x94] sm:$0xf] %v256_v37  ;;  %v258_v38 = vld [vmem:[%s3760_s28 + $0x130] sm:$0xf] }
  0x29   : > { %v260_v39 = vld [vmem:[%s3760_s28 + $0x138] sm:$0xf]  ;;  %v262_v40 = vld [vmem:[%s3760_s28 + $0x140] sm:$0xf]  ;;  %259 = vst [vmem:[%s3767_s29 + $0x98] sm:$0xf] %v258_v38 }
  0x2a   : > { %261 = vst [vmem:[%s3767_s29 + $0x9c] sm:$0xf] %v260_v39  ;;  %263 = vst [vmem:[%s3767_s29 + $0xa0] sm:$0xf] %v262_v40  ;;  %v264_v41 = vld [vmem:[%s3760_s28 + $0x148] sm:$0xf] }
  0x2b   : > { %v266_v42 = vld [vmem:[%s3760_s28 + $0x150] sm:$0xf]  ;;  %v268_v43 = vld [vmem:[%s3760_s28 + $0x158] sm:$0xf]  ;;  %265 = vst [vmem:[%s3767_s29 + $0xa4] sm:$0xf] %v264_v41 }
  0x2c   : > { %267 = vst [vmem:[%s3767_s29 + $0xa8] sm:$0xf] %v266_v42  ;;  %269 = vst [vmem:[%s3767_s29 + $0xac] sm:$0xf] %v268_v43  ;;  %v270_v44 = vld [vmem:[%s3760_s28 + $0x160] sm:$0xf] }
  0x2d   : > { %v272_v45 = vld [vmem:[%s3760_s28 + $0x168] sm:$0xf]  ;;  %v274_v46 = vld [vmem:[%s3760_s28 + $0x170] sm:$0xf]  ;;  %271 = vst [vmem:[%s3767_s29 + $0xb0] sm:$0xf] %v270_v44 }
  0x2e   : > { %273 = vst [vmem:[%s3767_s29 + $0xb4] sm:$0xf] %v272_v45  ;;  %275 = vst [vmem:[%s3767_s29 + $0xb8] sm:$0xf] %v274_v46  ;;  %v276_v47 = vld [vmem:[%s3760_s28 + $0x178] sm:$0xf] }
  0x2f   : > { %v278_v48 = vld [vmem:[%s3760_s28 + $0x180] sm:$0xf]  ;;  %v280_v49 = vld [vmem:[%s3760_s28 + $0x188] sm:$0xf]  ;;  %277 = vst [vmem:[%s3767_s29 + $0xbc] sm:$0xf] %v276_v47 }
  0x30   : > { %279 = vst [vmem:[%s3767_s29 + $0xc0] sm:$0xf] %v278_v48  ;;  %281 = vst [vmem:[%s3767_s29 + $0xc4] sm:$0xf] %v280_v49  ;;  %v282_v50 = vld [vmem:[%s3760_s28 + $0x190] sm:$0xf] }
  0x31   : > { %v284_v51 = vld [vmem:[%s3760_s28 + $0x198] sm:$0xf]  ;;  %v286_v52 = vld [vmem:[%s3760_s28 + $0x1a0] sm:$0xf]  ;;  %283 = vst [vmem:[%s3767_s29 + $0xc8] sm:$0xf] %v282_v50 }
  0x32   : > { %285 = vst [vmem:[%s3767_s29 + $0xcc] sm:$0xf] %v284_v51  ;;  %287 = vst [vmem:[%s3767_s29 + $0xd0] sm:$0xf] %v286_v52  ;;  %v288_v53 = vld [vmem:[%s3760_s28 + $0x1a8] sm:$0xf] }
  0x33   : > { %v290_v54 = vld [vmem:[%s3760_s28 + $0x1b0] sm:$0xf]  ;;  %v292_v55 = vld [vmem:[%s3760_s28 + $0x1b8] sm:$0xf]  ;;  %289 = vst [vmem:[%s3767_s29 + $0xd4] sm:$0xf] %v288_v53 }
  0x34   : > { %291 = vst [vmem:[%s3767_s29 + $0xd8] sm:$0xf] %v290_v54  ;;  %293 = vst [vmem:[%s3767_s29 + $0xdc] sm:$0xf] %v292_v55  ;;  %v294_v56 = vld [vmem:[%s3760_s28 + $0x1c0] sm:$0xf] }
  0x35   : > { %v296_v57 = vld [vmem:[%s3760_s28 + $0x1c8] sm:$0xf]  ;;  %v298_v58 = vld [vmem:[%s3760_s28 + $0x1d0] sm:$0xf]  ;;  %295 = vst [vmem:[%s3767_s29 + $0xe0] sm:$0xf] %v294_v56 }
  0x36   : > { %297 = vst [vmem:[%s3767_s29 + $0xe4] sm:$0xf] %v296_v57  ;;  %299 = vst [vmem:[%s3767_s29 + $0xe8] sm:$0xf] %v298_v58  ;;  %v300_v59 = vld [vmem:[%s3760_s28 + $0x1d8] sm:$0xf] }
  0x37   : > { %v302_v60 = vld [vmem:[%s3760_s28 + $0x1e0] sm:$0xf]  ;;  %v304_v61 = vld [vmem:[%s3760_s28 + $0x1e8] sm:$0xf]  ;;  %301 = vst [vmem:[%s3767_s29 + $0xec] sm:$0xf] %v300_v59 }
  0x38   : > { %303 = vst [vmem:[%s3767_s29 + $0xf0] sm:$0xf] %v302_v60  ;;  %305 = vst [vmem:[%s3767_s29 + $0xf4] sm:$0xf] %v304_v61  ;;  %v306_v62 = vld [vmem:[%s3760_s28 + $0x1f0] sm:$0xf] }
  0x39   : > { %v308_v63 = vld [vmem:[%s3760_s28 + $0x1f8] sm:$0xf]  ;;  %v310_v0 = vld [vmem:[%s3760_s28 + $0x200] sm:$0xf]  ;;  %307 = vst [vmem:[%s3767_s29 + $0xf8] sm:$0xf] %v306_v62 }
  0x3a   : > { %309 = vst [vmem:[%s3767_s29 + $0xfc] sm:$0xf] %v308_v63  ;;  %311 = vst [vmem:[%s3767_s29 + $0x100] sm:$0xf] %v310_v0  ;;  %v312_v1 = vld [vmem:[%s3760_s28 + $0x208] sm:$0xf] }
  0x3b   : > { %v314_v2 = vld [vmem:[%s3760_s28 + $0x210] sm:$0xf]  ;;  %v316_v3 = vld [vmem:[%s3760_s28 + $0x218] sm:$0xf]  ;;  %313 = vst [vmem:[%s3767_s29 + $0x104] sm:$0xf] %v312_v1 }
  0x3c   : > { %315 = vst [vmem:[%s3767_s29 + $0x108] sm:$0xf] %v314_v2  ;;  %317 = vst [vmem:[%s3767_s29 + $0x10c] sm:$0xf] %v316_v3  ;;  %v318_v4 = vld [vmem:[%s3760_s28 + $0x220] sm:$0xf] }
  0x3d   : > { %v320_v5 = vld [vmem:[%s3760_s28 + $0x228] sm:$0xf]  ;;  %v322_v6 = vld [vmem:[%s3760_s28 + $0x230] sm:$0xf]  ;;  %319 = vst [vmem:[%s3767_s29 + $0x110] sm:$0xf] %v318_v4 }
  0x3e   : > { %321 = vst [vmem:[%s3767_s29 + $0x114] sm:$0xf] %v320_v5  ;;  %323 = vst [vmem:[%s3767_s29 + $0x118] sm:$0xf] %v322_v6  ;;  %v324_v7 = vld [vmem:[%s3760_s28 + $0x238] sm:$0xf] }
  0x3f   : > { %v326_v8 = vld [vmem:[%s3760_s28 + $0x240] sm:$0xf]  ;;  %v328_v9 = vld [vmem:[%s3760_s28 + $0x248] sm:$0xf]  ;;  %325 = vst [vmem:[%s3767_s29 + $0x11c] sm:$0xf] %v324_v7 }
  0x40   : > { %327 = vst [vmem:[%s3767_s29 + $0x120] sm:$0xf] %v326_v8  ;;  %329 = vst [vmem:[%s3767_s29 + $0x124] sm:$0xf] %v328_v9  ;;  %v330_v10 = vld [vmem:[%s3760_s28 + $0x250] sm:$0xf] }
  0x41   : > { %v332_v11 = vld [vmem:[%s3760_s28 + $0x258] sm:$0xf]  ;;  %v334_v12 = vld [vmem:[%s3760_s28 + $0x260] sm:$0xf]  ;;  %331 = vst [vmem:[%s3767_s29 + $0x128] sm:$0xf] %v330_v10 }
  0x42   : > { %333 = vst [vmem:[%s3767_s29 + $0x12c] sm:$0xf] %v332_v11  ;;  %335 = vst [vmem:[%s3767_s29 + $0x130] sm:$0xf] %v334_v12  ;;  %v336_v13 = vld [vmem:[%s3760_s28 + $0x268] sm:$0xf] }
  0x43   : > { %v338_v14 = vld [vmem:[%s3760_s28 + $0x270] sm:$0xf]  ;;  %v340_v15 = vld [vmem:[%s3760_s28 + $0x278] sm:$0xf]  ;;  %337 = vst [vmem:[%s3767_s29 + $0x134] sm:$0xf] %v336_v13 }
  0x44   : > { %339 = vst [vmem:[%s3767_s29 + $0x138] sm:$0xf] %v338_v14  ;;  %341 = vst [vmem:[%s3767_s29 + $0x13c] sm:$0xf] %v340_v15  ;;  %v342_v16 = vld [vmem:[%s3760_s28 + $0x280] sm:$0xf] }
  0x45   : > { %v344_v17 = vld [vmem:[%s3760_s28 + $0x288] sm:$0xf]  ;;  %v346_v18 = vld [vmem:[%s3760_s28 + $0x290] sm:$0xf]  ;;  %343 = vst [vmem:[%s3767_s29 + $0x140] sm:$0xf] %v342_v16 }
  0x46   : > { %345 = vst [vmem:[%s3767_s29 + $0x144] sm:$0xf] %v344_v17  ;;  %347 = vst [vmem:[%s3767_s29 + $0x148] sm:$0xf] %v346_v18  ;;  %v348_v19 = vld [vmem:[%s3760_s28 + $0x298] sm:$0xf] }
  0x47   : > { %v350_v20 = vld [vmem:[%s3760_s28 + $0x2a0] sm:$0xf]  ;;  %v352_v21 = vld [vmem:[%s3760_s28 + $0x2a8] sm:$0xf]  ;;  %349 = vst [vmem:[%s3767_s29 + $0x14c] sm:$0xf] %v348_v19 }
  0x48   : > { %351 = vst [vmem:[%s3767_s29 + $0x150] sm:$0xf] %v350_v20  ;;  %353 = vst [vmem:[%s3767_s29 + $0x154] sm:$0xf] %v352_v21  ;;  %v354_v22 = vld [vmem:[%s3760_s28 + $0x2b0] sm:$0xf] }
  0x49   : > { %v356_v23 = vld [vmem:[%s3760_s28 + $0x2b8] sm:$0xf]  ;;  %v358_v24 = vld [vmem:[%s3760_s28 + $0x2c0] sm:$0xf]  ;;  %355 = vst [vmem:[%s3767_s29 + $0x158] sm:$0xf] %v354_v22 }
  0x4a   : > { %357 = vst [vmem:[%s3767_s29 + $0x15c] sm:$0xf] %v356_v23  ;;  %359 = vst [vmem:[%s3767_s29 + $0x160] sm:$0xf] %v358_v24  ;;  %v360_v25 = vld [vmem:[%s3760_s28 + $0x2c8] sm:$0xf] }
  0x4b   : > { %v362_v26 = vld [vmem:[%s3760_s28 + $0x2d0] sm:$0xf]  ;;  %v364_v27 = vld [vmem:[%s3760_s28 + $0x2d8] sm:$0xf]  ;;  %361 = vst [vmem:[%s3767_s29 + $0x164] sm:$0xf] %v360_v25 }
  0x4c   : > { %363 = vst [vmem:[%s3767_s29 + $0x168] sm:$0xf] %v362_v26  ;;  %365 = vst [vmem:[%s3767_s29 + $0x16c] sm:$0xf] %v364_v27  ;;  %v366_v28 = vld [vmem:[%s3760_s28 + $0x2e0] sm:$0xf] }
  0x4d   : > { %v368_v29 = vld [vmem:[%s3760_s28 + $0x2e8] sm:$0xf]  ;;  %v370_v30 = vld [vmem:[%s3760_s28 + $0x2f0] sm:$0xf]  ;;  %367 = vst [vmem:[%s3767_s29 + $0x170] sm:$0xf] %v366_v28 }
  0x4e   : > { %369 = vst [vmem:[%s3767_s29 + $0x174] sm:$0xf] %v368_v29  ;;  %371 = vst [vmem:[%s3767_s29 + $0x178] sm:$0xf] %v370_v30  ;;  %v372_v31 = vld [vmem:[%s3760_s28 + $0x2f8] sm:$0xf] }
  0x4f   : > { %v374_v32 = vld [vmem:[%s3760_s28 + $0x300] sm:$0xf]  ;;  %v376_v33 = vld [vmem:[%s3760_s28 + $0x308] sm:$0xf]  ;;  %373 = vst [vmem:[%s3767_s29 + $0x17c] sm:$0xf] %v372_v31 }
  0x50   : > { %375 = vst [vmem:[%s3767_s29 + $0x180] sm:$0xf] %v374_v32  ;;  %377 = vst [vmem:[%s3767_s29 + $0x184] sm:$0xf] %v376_v33  ;;  %v378_v34 = vld [vmem:[%s3760_s28 + $0x310] sm:$0xf] }
  0x51   : > { %v380_v35 = vld [vmem:[%s3760_s28 + $0x318] sm:$0xf]  ;;  %v382_v36 = vld [vmem:[%s3760_s28 + $0x320] sm:$0xf]  ;;  %379 = vst [vmem:[%s3767_s29 + $0x188] sm:$0xf] %v378_v34 }
  0x52   : > { %381 = vst [vmem:[%s3767_s29 + $0x18c] sm:$0xf] %v380_v35  ;;  %383 = vst [vmem:[%s3767_s29 + $0x190] sm:$0xf] %v382_v36  ;;  %v384_v37 = vld [vmem:[%s3760_s28 + $0x328] sm:$0xf] }
  0x53   : > { %v386_v38 = vld [vmem:[%s3760_s28 + $0x330] sm:$0xf]  ;;  %v388_v39 = vld [vmem:[%s3760_s28 + $0x338] sm:$0xf]  ;;  %385 = vst [vmem:[%s3767_s29 + $0x194] sm:$0xf] %v384_v37 }
  0x54   : > { %387 = vst [vmem:[%s3767_s29 + $0x198] sm:$0xf] %v386_v38  ;;  %389 = vst [vmem:[%s3767_s29 + $0x19c] sm:$0xf] %v388_v39  ;;  %v390_v40 = vld [vmem:[%s3760_s28 + $0x340] sm:$0xf] }
  0x55   : > { %v392_v41 = vld [vmem:[%s3760_s28 + $0x348] sm:$0xf]  ;;  %v394_v42 = vld [vmem:[%s3760_s28 + $0x350] sm:$0xf]  ;;  %391 = vst [vmem:[%s3767_s29 + $0x1a0] sm:$0xf] %v390_v40 }
  0x56   : > { %393 = vst [vmem:[%s3767_s29 + $0x1a4] sm:$0xf] %v392_v41  ;;  %395 = vst [vmem:[%s3767_s29 + $0x1a8] sm:$0xf] %v394_v42  ;;  %v396_v43 = vld [vmem:[%s3760_s28 + $0x358] sm:$0xf] }
  0x57   : > { %v398_v44 = vld [vmem:[%s3760_s28 + $0x360] sm:$0xf]  ;;  %v400_v45 = vld [vmem:[%s3760_s28 + $0x368] sm:$0xf]  ;;  %397 = vst [vmem:[%s3767_s29 + $0x1ac] sm:$0xf] %v396_v43 }
  0x58   : > { %399 = vst [vmem:[%s3767_s29 + $0x1b0] sm:$0xf] %v398_v44  ;;  %401 = vst [vmem:[%s3767_s29 + $0x1b4] sm:$0xf] %v400_v45  ;;  %v402_v46 = vld [vmem:[%s3760_s28 + $0x370] sm:$0xf] }
  0x59   : > { %v404_v47 = vld [vmem:[%s3760_s28 + $0x378] sm:$0xf]  ;;  %v406_v48 = vld [vmem:[%s3760_s28 + $0x380] sm:$0xf]  ;;  %403 = vst [vmem:[%s3767_s29 + $0x1b8] sm:$0xf] %v402_v46 }
  0x5a   : > { %405 = vst [vmem:[%s3767_s29 + $0x1bc] sm:$0xf] %v404_v47  ;;  %407 = vst [vmem:[%s3767_s29 + $0x1c0] sm:$0xf] %v406_v48  ;;  %v408_v49 = vld [vmem:[%s3760_s28 + $0x388] sm:$0xf] }
  0x5b   : > { %v410_v50 = vld [vmem:[%s3760_s28 + $0x390] sm:$0xf]  ;;  %v412_v51 = vld [vmem:[%s3760_s28 + $0x398] sm:$0xf]  ;;  %409 = vst [vmem:[%s3767_s29 + $0x1c4] sm:$0xf] %v408_v49 }
  0x5c   : > { %411 = vst [vmem:[%s3767_s29 + $0x1c8] sm:$0xf] %v410_v50  ;;  %413 = vst [vmem:[%s3767_s29 + $0x1cc] sm:$0xf] %v412_v51  ;;  %v414_v52 = vld [vmem:[%s3760_s28 + $0x3a0] sm:$0xf] }
  0x5d   : > { %v416_v53 = vld [vmem:[%s3760_s28 + $0x3a8] sm:$0xf]  ;;  %v418_v54 = vld [vmem:[%s3760_s28 + $0x3b0] sm:$0xf]  ;;  %415 = vst [vmem:[%s3767_s29 + $0x1d0] sm:$0xf] %v414_v52 }
  0x5e   : > { %417 = vst [vmem:[%s3767_s29 + $0x1d4] sm:$0xf] %v416_v53  ;;  %419 = vst [vmem:[%s3767_s29 + $0x1d8] sm:$0xf] %v418_v54  ;;  %v420_v55 = vld [vmem:[%s3760_s28 + $0x3b8] sm:$0xf] }
  0x5f   : > { %v422_v56 = vld [vmem:[%s3760_s28 + $0x3c0] sm:$0xf]  ;;  %v424_v57 = vld [vmem:[%s3760_s28 + $0x3c8] sm:$0xf]  ;;  %421 = vst [vmem:[%s3767_s29 + $0x1dc] sm:$0xf] %v420_v55 }
  0x60   : > { %423 = vst [vmem:[%s3767_s29 + $0x1e0] sm:$0xf] %v422_v56  ;;  %425 = vst [vmem:[%s3767_s29 + $0x1e4] sm:$0xf] %v424_v57  ;;  %v426_v58 = vld [vmem:[%s3760_s28 + $0x3d0] sm:$0xf] }
  0x61   : > { %v428_v59 = vld [vmem:[%s3760_s28 + $0x3d8] sm:$0xf]  ;;  %v430_v60 = vld [vmem:[%s3760_s28 + $0x3e0] sm:$0xf]  ;;  %427 = vst [vmem:[%s3767_s29 + $0x1e8] sm:$0xf] %v426_v58 }
  0x62   : > { %429 = vst [vmem:[%s3767_s29 + $0x1ec] sm:$0xf] %v428_v59  ;;  %431 = vst [vmem:[%s3767_s29 + $0x1f0] sm:$0xf] %v430_v60  ;;  %v432_v61 = vld [vmem:[%s3760_s28 + $0x3e8] sm:$0xf] }
  0x63   : > { %v434_v62 = vld [vmem:[%s3760_s28 + $0x3f0] sm:$0xf]  ;;  %v436_v63 = vld [vmem:[%s3760_s28 + $0x3f8] sm:$0xf]  ;;  %433 = vst [vmem:[%s3767_s29 + $0x1f4] sm:$0xf] %v432_v61 }
  0x64   : > { %435 = vst [vmem:[%s3767_s29 + $0x1f8] sm:$0xf] %v434_v62  ;;  %437 = vst [vmem:[%s3767_s29 + $0x1fc] sm:$0xf] %v436_v63  ;;  %v438_v0 = vld [vmem:[%s3760_s28 + $0x400] sm:$0xf] }
  0x65   : > { %v440_v1 = vld [vmem:[%s3760_s28 + $0x408] sm:$0xf]  ;;  %v442_v2 = vld [vmem:[%s3760_s28 + $0x410] sm:$0xf]  ;;  %439 = vst [vmem:[%s3767_s29 + $0x200] sm:$0xf] %v438_v0 }
  0x66   : > { %441 = vst [vmem:[%s3767_s29 + $0x204] sm:$0xf] %v440_v1  ;;  %443 = vst [vmem:[%s3767_s29 + $0x208] sm:$0xf] %v442_v2  ;;  %v444_v3 = vld [vmem:[%s3760_s28 + $0x418] sm:$0xf] }
  0x67   : > { %v446_v4 = vld [vmem:[%s3760_s28 + $0x420] sm:$0xf]  ;;  %v448_v5 = vld [vmem:[%s3760_s28 + $0x428] sm:$0xf]  ;;  %445 = vst [vmem:[%s3767_s29 + $0x20c] sm:$0xf] %v444_v3 }
  0x68   : > { %447 = vst [vmem:[%s3767_s29 + $0x210] sm:$0xf] %v446_v4  ;;  %449 = vst [vmem:[%s3767_s29 + $0x214] sm:$0xf] %v448_v5  ;;  %v450_v6 = vld [vmem:[%s3760_s28 + $0x430] sm:$0xf] }
  0x69   : > { %v452_v7 = vld [vmem:[%s3760_s28 + $0x438] sm:$0xf]  ;;  %v454_v8 = vld [vmem:[%s3760_s28 + $0x440] sm:$0xf]  ;;  %451 = vst [vmem:[%s3767_s29 + $0x218] sm:$0xf] %v450_v6 }
  0x6a   : > { %453 = vst [vmem:[%s3767_s29 + $0x21c] sm:$0xf] %v452_v7  ;;  %455 = vst [vmem:[%s3767_s29 + $0x220] sm:$0xf] %v454_v8  ;;  %v456_v9 = vld [vmem:[%s3760_s28 + $0x448] sm:$0xf] }
  0x6b   : > { %v458_v10 = vld [vmem:[%s3760_s28 + $0x450] sm:$0xf]  ;;  %v460_v11 = vld [vmem:[%s3760_s28 + $0x458] sm:$0xf]  ;;  %457 = vst [vmem:[%s3767_s29 + $0x224] sm:$0xf] %v456_v9 }
  0x6c   : > { %459 = vst [vmem:[%s3767_s29 + $0x228] sm:$0xf] %v458_v10  ;;  %461 = vst [vmem:[%s3767_s29 + $0x22c] sm:$0xf] %v460_v11  ;;  %v462_v12 = vld [vmem:[%s3760_s28 + $0x460] sm:$0xf] }
  0x6d   : > { %v464_v13 = vld [vmem:[%s3760_s28 + $0x468] sm:$0xf]  ;;  %v466_v14 = vld [vmem:[%s3760_s28 + $0x470] sm:$0xf]  ;;  %463 = vst [vmem:[%s3767_s29 + $0x230] sm:$0xf] %v462_v12 }
  0x6e   : > { %465 = vst [vmem:[%s3767_s29 + $0x234] sm:$0xf] %v464_v13  ;;  %467 = vst [vmem:[%s3767_s29 + $0x238] sm:$0xf] %v466_v14  ;;  %v468_v15 = vld [vmem:[%s3760_s28 + $0x478] sm:$0xf] }
  0x6f   : > { %v470_v16 = vld [vmem:[%s3760_s28 + $0x480] sm:$0xf]  ;;  %v472_v17 = vld [vmem:[%s3760_s28 + $0x488] sm:$0xf]  ;;  %469 = vst [vmem:[%s3767_s29 + $0x23c] sm:$0xf] %v468_v15 }
  0x70   : > { %471 = vst [vmem:[%s3767_s29 + $0x240] sm:$0xf] %v470_v16  ;;  %473 = vst [vmem:[%s3767_s29 + $0x244] sm:$0xf] %v472_v17  ;;  %v474_v18 = vld [vmem:[%s3760_s28 + $0x490] sm:$0xf] }
  0x71   : > { %v476_v19 = vld [vmem:[%s3760_s28 + $0x498] sm:$0xf]  ;;  %v478_v20 = vld [vmem:[%s3760_s28 + $0x4a0] sm:$0xf]  ;;  %475 = vst [vmem:[%s3767_s29 + $0x248] sm:$0xf] %v474_v18 }
  0x72   : > { %477 = vst [vmem:[%s3767_s29 + $0x24c] sm:$0xf] %v476_v19  ;;  %479 = vst [vmem:[%s3767_s29 + $0x250] sm:$0xf] %v478_v20  ;;  %v480_v21 = vld [vmem:[%s3760_s28 + $0x4a8] sm:$0xf] }
  0x73   : > { %v482_v22 = vld [vmem:[%s3760_s28 + $0x4b0] sm:$0xf]  ;;  %v484_v23 = vld [vmem:[%s3760_s28 + $0x4b8] sm:$0xf]  ;;  %481 = vst [vmem:[%s3767_s29 + $0x254] sm:$0xf] %v480_v21 }
  0x74   : > { %483 = vst [vmem:[%s3767_s29 + $0x258] sm:$0xf] %v482_v22  ;;  %485 = vst [vmem:[%s3767_s29 + $0x25c] sm:$0xf] %v484_v23  ;;  %v486_v24 = vld [vmem:[%s3760_s28 + $0x4c0] sm:$0xf] }
  0x75   : > { %v488_v25 = vld [vmem:[%s3760_s28 + $0x4c8] sm:$0xf]  ;;  %v490_v26 = vld [vmem:[%s3760_s28 + $0x4d0] sm:$0xf]  ;;  %487 = vst [vmem:[%s3767_s29 + $0x260] sm:$0xf] %v486_v24 }
  0x76   : > { %489 = vst [vmem:[%s3767_s29 + $0x264] sm:$0xf] %v488_v25  ;;  %491 = vst [vmem:[%s3767_s29 + $0x268] sm:$0xf] %v490_v26  ;;  %v492_v27 = vld [vmem:[%s3760_s28 + $0x4d8] sm:$0xf] }
  0x77   : > { %v494_v28 = vld [vmem:[%s3760_s28 + $0x4e0] sm:$0xf]  ;;  %v496_v29 = vld [vmem:[%s3760_s28 + $0x4e8] sm:$0xf]  ;;  %493 = vst [vmem:[%s3767_s29 + $0x26c] sm:$0xf] %v492_v27 }
  0x78   : > { %495 = vst [vmem:[%s3767_s29 + $0x270] sm:$0xf] %v494_v28  ;;  %497 = vst [vmem:[%s3767_s29 + $0x274] sm:$0xf] %v496_v29  ;;  %v498_v30 = vld [vmem:[%s3760_s28 + $0x4f0] sm:$0xf] }
  0x79   : > { %v500_v31 = vld [vmem:[%s3760_s28 + $0x4f8] sm:$0xf]  ;;  %v502_v32 = vld [vmem:[%s3760_s28 + $0x500] sm:$0xf]  ;;  %499 = vst [vmem:[%s3767_s29 + $0x278] sm:$0xf] %v498_v30 }
  0x7a   : > { %501 = vst [vmem:[%s3767_s29 + $0x27c] sm:$0xf] %v500_v31  ;;  %503 = vst [vmem:[%s3767_s29 + $0x280] sm:$0xf] %v502_v32  ;;  %v504_v33 = vld [vmem:[%s3760_s28 + $0x508] sm:$0xf] }
  0x7b   : > { %v506_v34 = vld [vmem:[%s3760_s28 + $0x510] sm:$0xf]  ;;  %v508_v35 = vld [vmem:[%s3760_s28 + $0x518] sm:$0xf]  ;;  %505 = vst [vmem:[%s3767_s29 + $0x284] sm:$0xf] %v504_v33 }
  0x7c   : > { %507 = vst [vmem:[%s3767_s29 + $0x288] sm:$0xf] %v506_v34  ;;  %509 = vst [vmem:[%s3767_s29 + $0x28c] sm:$0xf] %v508_v35  ;;  %v510_v36 = vld [vmem:[%s3760_s28 + $0x520] sm:$0xf] }
  0x7d   : > { %v512_v37 = vld [vmem:[%s3760_s28 + $0x528] sm:$0xf]  ;;  %v514_v38 = vld [vmem:[%s3760_s28 + $0x530] sm:$0xf]  ;;  %511 = vst [vmem:[%s3767_s29 + $0x290] sm:$0xf] %v510_v36 }
  0x7e   : > { %513 = vst [vmem:[%s3767_s29 + $0x294] sm:$0xf] %v512_v37  ;;  %515 = vst [vmem:[%s3767_s29 + $0x298] sm:$0xf] %v514_v38  ;;  %v516_v39 = vld [vmem:[%s3760_s28 + $0x538] sm:$0xf] }
  0x7f   : > { %v518_v40 = vld [vmem:[%s3760_s28 + $0x540] sm:$0xf]  ;;  %v520_v41 = vld [vmem:[%s3760_s28 + $0x548] sm:$0xf]  ;;  %517 = vst [vmem:[%s3767_s29 + $0x29c] sm:$0xf] %v516_v39 }
  0x80   : > { %519 = vst [vmem:[%s3767_s29 + $0x2a0] sm:$0xf] %v518_v40  ;;  %521 = vst [vmem:[%s3767_s29 + $0x2a4] sm:$0xf] %v520_v41  ;;  %v522_v42 = vld [vmem:[%s3760_s28 + $0x550] sm:$0xf] }
  0x81   : > { %v524_v43 = vld [vmem:[%s3760_s28 + $0x558] sm:$0xf]  ;;  %v526_v44 = vld [vmem:[%s3760_s28 + $0x560] sm:$0xf]  ;;  %523 = vst [vmem:[%s3767_s29 + $0x2a8] sm:$0xf] %v522_v42 }
  0x82   : > { %525 = vst [vmem:[%s3767_s29 + $0x2ac] sm:$0xf] %v524_v43  ;;  %527 = vst [vmem:[%s3767_s29 + $0x2b0] sm:$0xf] %v526_v44  ;;  %v528_v45 = vld [vmem:[%s3760_s28 + $0x568] sm:$0xf] }
  0x83   : > { %v530_v46 = vld [vmem:[%s3760_s28 + $0x570] sm:$0xf]  ;;  %v532_v47 = vld [vmem:[%s3760_s28 + $0x578] sm:$0xf]  ;;  %529 = vst [vmem:[%s3767_s29 + $0x2b4] sm:$0xf] %v528_v45 }
  0x84   : > { %531 = vst [vmem:[%s3767_s29 + $0x2b8] sm:$0xf] %v530_v46  ;;  %533 = vst [vmem:[%s3767_s29 + $0x2bc] sm:$0xf] %v532_v47  ;;  %v534_v48 = vld [vmem:[%s3760_s28 + $0x580] sm:$0xf] }
  0x85   : > { %v536_v49 = vld [vmem:[%s3760_s28 + $0x588] sm:$0xf]  ;;  %v538_v50 = vld [vmem:[%s3760_s28 + $0x590] sm:$0xf]  ;;  %535 = vst [vmem:[%s3767_s29 + $0x2c0] sm:$0xf] %v534_v48 }
  0x86   : > { %537 = vst [vmem:[%s3767_s29 + $0x2c4] sm:$0xf] %v536_v49  ;;  %539 = vst [vmem:[%s3767_s29 + $0x2c8] sm:$0xf] %v538_v50  ;;  %v540_v51 = vld [vmem:[%s3760_s28 + $0x598] sm:$0xf] }
  0x87   : > { %v542_v52 = vld [vmem:[%s3760_s28 + $0x5a0] sm:$0xf]  ;;  %v544_v53 = vld [vmem:[%s3760_s28 + $0x5a8] sm:$0xf]  ;;  %541 = vst [vmem:[%s3767_s29 + $0x2cc] sm:$0xf] %v540_v51 }
  0x88   : > { %543 = vst [vmem:[%s3767_s29 + $0x2d0] sm:$0xf] %v542_v52  ;;  %545 = vst [vmem:[%s3767_s29 + $0x2d4] sm:$0xf] %v544_v53  ;;  %v546_v54 = vld [vmem:[%s3760_s28 + $0x5b0] sm:$0xf] }
  0x89   : > { %v548_v55 = vld [vmem:[%s3760_s28 + $0x5b8] sm:$0xf]  ;;  %v550_v56 = vld [vmem:[%s3760_s28 + $0x5c0] sm:$0xf]  ;;  %547 = vst [vmem:[%s3767_s29 + $0x2d8] sm:$0xf] %v546_v54 }
  0x8a   : > { %549 = vst [vmem:[%s3767_s29 + $0x2dc] sm:$0xf] %v548_v55  ;;  %551 = vst [vmem:[%s3767_s29 + $0x2e0] sm:$0xf] %v550_v56  ;;  %v552_v57 = vld [vmem:[%s3760_s28 + $0x5c8] sm:$0xf] }
  0x8b   : > { %v554_v58 = vld [vmem:[%s3760_s28 + $0x5d0] sm:$0xf]  ;;  %v556_v59 = vld [vmem:[%s3760_s28 + $0x5d8] sm:$0xf]  ;;  %553 = vst [vmem:[%s3767_s29 + $0x2e4] sm:$0xf] %v552_v57 }
  0x8c   : > { %555 = vst [vmem:[%s3767_s29 + $0x2e8] sm:$0xf] %v554_v58  ;;  %557 = vst [vmem:[%s3767_s29 + $0x2ec] sm:$0xf] %v556_v59  ;;  %v558_v60 = vld [vmem:[%s3760_s28 + $0x5e0] sm:$0xf] }
  0x8d   : > { %v560_v61 = vld [vmem:[%s3760_s28 + $0x5e8] sm:$0xf]  ;;  %v562_v62 = vld [vmem:[%s3760_s28 + $0x5f0] sm:$0xf]  ;;  %559 = vst [vmem:[%s3767_s29 + $0x2f0] sm:$0xf] %v558_v60 }
  0x8e   : > { %561 = vst [vmem:[%s3767_s29 + $0x2f4] sm:$0xf] %v560_v61  ;;  %563 = vst [vmem:[%s3767_s29 + $0x2f8] sm:$0xf] %v562_v62  ;;  %v564_v63 = vld [vmem:[%s3760_s28 + $0x5f8] sm:$0xf] }
  0x8f   : > { %v566_v0 = vld [vmem:[%s3760_s28 + $0x600] sm:$0xf]  ;;  %v568_v1 = vld [vmem:[%s3760_s28 + $0x608] sm:$0xf]  ;;  %565 = vst [vmem:[%s3767_s29 + $0x2fc] sm:$0xf] %v564_v63 }
  0x90   : > { %567 = vst [vmem:[%s3767_s29 + $0x300] sm:$0xf] %v566_v0  ;;  %569 = vst [vmem:[%s3767_s29 + $0x304] sm:$0xf] %v568_v1  ;;  %v570_v2 = vld [vmem:[%s3760_s28 + $0x610] sm:$0xf] }
  0x91   : > { %v572_v3 = vld [vmem:[%s3760_s28 + $0x618] sm:$0xf]  ;;  %v574_v4 = vld [vmem:[%s3760_s28 + $0x620] sm:$0xf]  ;;  %571 = vst [vmem:[%s3767_s29 + $0x308] sm:$0xf] %v570_v2 }
  0x92   : > { %573 = vst [vmem:[%s3767_s29 + $0x30c] sm:$0xf] %v572_v3  ;;  %575 = vst [vmem:[%s3767_s29 + $0x310] sm:$0xf] %v574_v4  ;;  %v576_v5 = vld [vmem:[%s3760_s28 + $0x628] sm:$0xf] }
  0x93   : > { %v578_v6 = vld [vmem:[%s3760_s28 + $0x630] sm:$0xf]  ;;  %v580_v7 = vld [vmem:[%s3760_s28 + $0x638] sm:$0xf]  ;;  %577 = vst [vmem:[%s3767_s29 + $0x314] sm:$0xf] %v576_v5 }
  0x94   : > { %579 = vst [vmem:[%s3767_s29 + $0x318] sm:$0xf] %v578_v6  ;;  %581 = vst [vmem:[%s3767_s29 + $0x31c] sm:$0xf] %v580_v7  ;;  %v582_v8 = vld [vmem:[%s3760_s28 + $0x640] sm:$0xf] }
  0x95   : > { %v584_v9 = vld [vmem:[%s3760_s28 + $0x648] sm:$0xf]  ;;  %v586_v10 = vld [vmem:[%s3760_s28 + $0x650] sm:$0xf]  ;;  %583 = vst [vmem:[%s3767_s29 + $0x320] sm:$0xf] %v582_v8 }
  0x96   : > { %585 = vst [vmem:[%s3767_s29 + $0x324] sm:$0xf] %v584_v9  ;;  %587 = vst [vmem:[%s3767_s29 + $0x328] sm:$0xf] %v586_v10  ;;  %v588_v11 = vld [vmem:[%s3760_s28 + $0x658] sm:$0xf] }
  0x97   : > { %v590_v12 = vld [vmem:[%s3760_s28 + $0x660] sm:$0xf]  ;;  %v592_v13 = vld [vmem:[%s3760_s28 + $0x668] sm:$0xf]  ;;  %589 = vst [vmem:[%s3767_s29 + $0x32c] sm:$0xf] %v588_v11 }
  0x98   : > { %591 = vst [vmem:[%s3767_s29 + $0x330] sm:$0xf] %v590_v12  ;;  %593 = vst [vmem:[%s3767_s29 + $0x334] sm:$0xf] %v592_v13  ;;  %v594_v14 = vld [vmem:[%s3760_s28 + $0x670] sm:$0xf] }
  0x99   : > { %v596_v15 = vld [vmem:[%s3760_s28 + $0x678] sm:$0xf]  ;;  %v598_v16 = vld [vmem:[%s3760_s28 + $0x680] sm:$0xf]  ;;  %595 = vst [vmem:[%s3767_s29 + $0x338] sm:$0xf] %v594_v14 }
  0x9a   : > { %597 = vst [vmem:[%s3767_s29 + $0x33c] sm:$0xf] %v596_v15  ;;  %599 = vst [vmem:[%s3767_s29 + $0x340] sm:$0xf] %v598_v16  ;;  %v600_v17 = vld [vmem:[%s3760_s28 + $0x688] sm:$0xf] }
  0x9b   : > { %v602_v18 = vld [vmem:[%s3760_s28 + $0x690] sm:$0xf]  ;;  %v604_v19 = vld [vmem:[%s3760_s28 + $0x698] sm:$0xf]  ;;  %601 = vst [vmem:[%s3767_s29 + $0x344] sm:$0xf] %v600_v17 }
  0x9c   : > { %603 = vst [vmem:[%s3767_s29 + $0x348] sm:$0xf] %v602_v18  ;;  %605 = vst [vmem:[%s3767_s29 + $0x34c] sm:$0xf] %v604_v19  ;;  %v606_v20 = vld [vmem:[%s3760_s28 + $0x6a0] sm:$0xf] }
  0x9d   : > { %v608_v21 = vld [vmem:[%s3760_s28 + $0x6a8] sm:$0xf]  ;;  %v610_v22 = vld [vmem:[%s3760_s28 + $0x6b0] sm:$0xf]  ;;  %607 = vst [vmem:[%s3767_s29 + $0x350] sm:$0xf] %v606_v20 }
  0x9e   : > { %609 = vst [vmem:[%s3767_s29 + $0x354] sm:$0xf] %v608_v21  ;;  %611 = vst [vmem:[%s3767_s29 + $0x358] sm:$0xf] %v610_v22  ;;  %v612_v23 = vld [vmem:[%s3760_s28 + $0x6b8] sm:$0xf] }
  0x9f   : > { %v614_v24 = vld [vmem:[%s3760_s28 + $0x6c0] sm:$0xf]  ;;  %v616_v25 = vld [vmem:[%s3760_s28 + $0x6c8] sm:$0xf]  ;;  %613 = vst [vmem:[%s3767_s29 + $0x35c] sm:$0xf] %v612_v23 }
  0xa0   : > { %615 = vst [vmem:[%s3767_s29 + $0x360] sm:$0xf] %v614_v24  ;;  %617 = vst [vmem:[%s3767_s29 + $0x364] sm:$0xf] %v616_v25  ;;  %v618_v26 = vld [vmem:[%s3760_s28 + $0x6d0] sm:$0xf] }
  0xa1   : > { %v620_v27 = vld [vmem:[%s3760_s28 + $0x6d8] sm:$0xf]  ;;  %v622_v28 = vld [vmem:[%s3760_s28 + $0x6e0] sm:$0xf]  ;;  %619 = vst [vmem:[%s3767_s29 + $0x368] sm:$0xf] %v618_v26 }
  0xa2   : > { %621 = vst [vmem:[%s3767_s29 + $0x36c] sm:$0xf] %v620_v27  ;;  %623 = vst [vmem:[%s3767_s29 + $0x370] sm:$0xf] %v622_v28  ;;  %v624_v29 = vld [vmem:[%s3760_s28 + $0x6e8] sm:$0xf] }
  0xa3   : > { %v626_v30 = vld [vmem:[%s3760_s28 + $0x6f0] sm:$0xf]  ;;  %v628_v31 = vld [vmem:[%s3760_s28 + $0x6f8] sm:$0xf]  ;;  %625 = vst [vmem:[%s3767_s29 + $0x374] sm:$0xf] %v624_v29 }
  0xa4   : > { %627 = vst [vmem:[%s3767_s29 + $0x378] sm:$0xf] %v626_v30  ;;  %629 = vst [vmem:[%s3767_s29 + $0x37c] sm:$0xf] %v628_v31  ;;  %v630_v32 = vld [vmem:[%s3760_s28 + $0x700] sm:$0xf] }
  0xa5   : > { %v632_v33 = vld [vmem:[%s3760_s28 + $0x708] sm:$0xf]  ;;  %v634_v34 = vld [vmem:[%s3760_s28 + $0x710] sm:$0xf]  ;;  %631 = vst [vmem:[%s3767_s29 + $0x380] sm:$0xf] %v630_v32 }
  0xa6   : > { %633 = vst [vmem:[%s3767_s29 + $0x384] sm:$0xf] %v632_v33  ;;  %635 = vst [vmem:[%s3767_s29 + $0x388] sm:$0xf] %v634_v34  ;;  %v636_v35 = vld [vmem:[%s3760_s28 + $0x718] sm:$0xf] }
  0xa7   : > { %v638_v36 = vld [vmem:[%s3760_s28 + $0x720] sm:$0xf]  ;;  %v640_v37 = vld [vmem:[%s3760_s28 + $0x728] sm:$0xf]  ;;  %637 = vst [vmem:[%s3767_s29 + $0x38c] sm:$0xf] %v636_v35 }
  0xa8   : > { %639 = vst [vmem:[%s3767_s29 + $0x390] sm:$0xf] %v638_v36  ;;  %641 = vst [vmem:[%s3767_s29 + $0x394] sm:$0xf] %v640_v37  ;;  %v642_v38 = vld [vmem:[%s3760_s28 + $0x730] sm:$0xf] }
  0xa9   : > { %v644_v39 = vld [vmem:[%s3760_s28 + $0x738] sm:$0xf]  ;;  %v646_v40 = vld [vmem:[%s3760_s28 + $0x740] sm:$0xf]  ;;  %643 = vst [vmem:[%s3767_s29 + $0x398] sm:$0xf] %v642_v38 }
  0xaa   : > { %645 = vst [vmem:[%s3767_s29 + $0x39c] sm:$0xf] %v644_v39  ;;  %647 = vst [vmem:[%s3767_s29 + $0x3a0] sm:$0xf] %v646_v40  ;;  %v648_v41 = vld [vmem:[%s3760_s28 + $0x748] sm:$0xf] }
  0xab   : > { %v650_v42 = vld [vmem:[%s3760_s28 + $0x750] sm:$0xf]  ;;  %v652_v43 = vld [vmem:[%s3760_s28 + $0x758] sm:$0xf]  ;;  %649 = vst [vmem:[%s3767_s29 + $0x3a4] sm:$0xf] %v648_v41 }
  0xac   : > { %651 = vst [vmem:[%s3767_s29 + $0x3a8] sm:$0xf] %v650_v42  ;;  %653 = vst [vmem:[%s3767_s29 + $0x3ac] sm:$0xf] %v652_v43  ;;  %v654_v44 = vld [vmem:[%s3760_s28 + $0x760] sm:$0xf] }
  0xad   : > { %v656_v45 = vld [vmem:[%s3760_s28 + $0x768] sm:$0xf]  ;;  %v658_v46 = vld [vmem:[%s3760_s28 + $0x770] sm:$0xf]  ;;  %655 = vst [vmem:[%s3767_s29 + $0x3b0] sm:$0xf] %v654_v44 }
  0xae   : > { %657 = vst [vmem:[%s3767_s29 + $0x3b4] sm:$0xf] %v656_v45  ;;  %659 = vst [vmem:[%s3767_s29 + $0x3b8] sm:$0xf] %v658_v46  ;;  %v660_v47 = vld [vmem:[%s3760_s28 + $0x778] sm:$0xf] }
  0xaf   : > { %v662_v48 = vld [vmem:[%s3760_s28 + $0x780] sm:$0xf]  ;;  %v664_v49 = vld [vmem:[%s3760_s28 + $0x788] sm:$0xf]  ;;  %661 = vst [vmem:[%s3767_s29 + $0x3bc] sm:$0xf] %v660_v47 }
  0xb0   : > { %663 = vst [vmem:[%s3767_s29 + $0x3c0] sm:$0xf] %v662_v48  ;;  %665 = vst [vmem:[%s3767_s29 + $0x3c4] sm:$0xf] %v664_v49  ;;  %v666_v50 = vld [vmem:[%s3760_s28 + $0x790] sm:$0xf] }
  0xb1   : > { %v668_v51 = vld [vmem:[%s3760_s28 + $0x798] sm:$0xf]  ;;  %v670_v52 = vld [vmem:[%s3760_s28 + $0x7a0] sm:$0xf]  ;;  %667 = vst [vmem:[%s3767_s29 + $0x3c8] sm:$0xf] %v666_v50 }
  0xb2   : > { %669 = vst [vmem:[%s3767_s29 + $0x3cc] sm:$0xf] %v668_v51  ;;  %671 = vst [vmem:[%s3767_s29 + $0x3d0] sm:$0xf] %v670_v52  ;;  %v672_v53 = vld [vmem:[%s3760_s28 + $0x7a8] sm:$0xf] }
  0xb3   : > { %v674_v54 = vld [vmem:[%s3760_s28 + $0x7b0] sm:$0xf]  ;;  %v676_v55 = vld [vmem:[%s3760_s28 + $0x7b8] sm:$0xf]  ;;  %673 = vst [vmem:[%s3767_s29 + $0x3d4] sm:$0xf] %v672_v53 }
  0xb4   : > { %675 = vst [vmem:[%s3767_s29 + $0x3d8] sm:$0xf] %v674_v54  ;;  %677 = vst [vmem:[%s3767_s29 + $0x3dc] sm:$0xf] %v676_v55  ;;  %v678_v56 = vld [vmem:[%s3760_s28 + $0x7c0] sm:$0xf] }
  0xb5   : > { %v680_v57 = vld [vmem:[%s3760_s28 + $0x7c8] sm:$0xf]  ;;  %v682_v58 = vld [vmem:[%s3760_s28 + $0x7d0] sm:$0xf]  ;;  %679 = vst [vmem:[%s3767_s29 + $0x3e0] sm:$0xf] %v678_v56 }
  0xb6   : > { %681 = vst [vmem:[%s3767_s29 + $0x3e4] sm:$0xf] %v680_v57  ;;  %683 = vst [vmem:[%s3767_s29 + $0x3e8] sm:$0xf] %v682_v58  ;;  %v684_v59 = vld [vmem:[%s3760_s28 + $0x7d8] sm:$0xf] }
  0xb7   : > { %v686_v60 = vld [vmem:[%s3760_s28 + $0x7e0] sm:$0xf]  ;;  %v688_v61 = vld [vmem:[%s3760_s28 + $0x7e8] sm:$0xf]  ;;  %685 = vst [vmem:[%s3767_s29 + $0x3ec] sm:$0xf] %v684_v59 }
  0xb8   : > { %687 = vst [vmem:[%s3767_s29 + $0x3f0] sm:$0xf] %v686_v60  ;;  %689 = vst [vmem:[%s3767_s29 + $0x3f4] sm:$0xf] %v688_v61  ;;  %v690_v62 = vld [vmem:[%s3760_s28 + $0x7f0] sm:$0xf] }
  0xb9   : > { %v692_v63 = vld [vmem:[%s3760_s28 + $0x7f8] sm:$0xf]  ;;  %v694_v0 = vld [vmem:[%s3760_s28 + $0x800] sm:$0xf]  ;;  %691 = vst [vmem:[%s3767_s29 + $0x3f8] sm:$0xf] %v690_v62 }
  0xba   : > { %693 = vst [vmem:[%s3767_s29 + $0x3fc] sm:$0xf] %v692_v63  ;;  %695 = vst [vmem:[%s3767_s29 + $0x400] sm:$0xf] %v694_v0  ;;  %v696_v1 = vld [vmem:[%s3760_s28 + $0x808] sm:$0xf] }
  0xbb   : > { %v698_v2 = vld [vmem:[%s3760_s28 + $0x810] sm:$0xf]  ;;  %v700_v3 = vld [vmem:[%s3760_s28 + $0x818] sm:$0xf]  ;;  %697 = vst [vmem:[%s3767_s29 + $0x404] sm:$0xf] %v696_v1 }
  0xbc   : > { %699 = vst [vmem:[%s3767_s29 + $0x408] sm:$0xf] %v698_v2  ;;  %701 = vst [vmem:[%s3767_s29 + $0x40c] sm:$0xf] %v700_v3  ;;  %v702_v4 = vld [vmem:[%s3760_s28 + $0x820] sm:$0xf] }
  0xbd   : > { %v704_v5 = vld [vmem:[%s3760_s28 + $0x828] sm:$0xf]  ;;  %v706_v6 = vld [vmem:[%s3760_s28 + $0x830] sm:$0xf]  ;;  %703 = vst [vmem:[%s3767_s29 + $0x410] sm:$0xf] %v702_v4 }
  0xbe   : > { %705 = vst [vmem:[%s3767_s29 + $0x414] sm:$0xf] %v704_v5  ;;  %707 = vst [vmem:[%s3767_s29 + $0x418] sm:$0xf] %v706_v6  ;;  %v708_v7 = vld [vmem:[%s3760_s28 + $0x838] sm:$0xf] }
  0xbf   : > { %v710_v8 = vld [vmem:[%s3760_s28 + $0x840] sm:$0xf]  ;;  %v712_v9 = vld [vmem:[%s3760_s28 + $0x848] sm:$0xf]  ;;  %709 = vst [vmem:[%s3767_s29 + $0x41c] sm:$0xf] %v708_v7 }
  0xc0   : > { %711 = vst [vmem:[%s3767_s29 + $0x420] sm:$0xf] %v710_v8  ;;  %713 = vst [vmem:[%s3767_s29 + $0x424] sm:$0xf] %v712_v9  ;;  %v714_v10 = vld [vmem:[%s3760_s28 + $0x850] sm:$0xf] }
  0xc1   : > { %v716_v11 = vld [vmem:[%s3760_s28 + $0x858] sm:$0xf]  ;;  %v718_v12 = vld [vmem:[%s3760_s28 + $0x860] sm:$0xf]  ;;  %715 = vst [vmem:[%s3767_s29 + $0x428] sm:$0xf] %v714_v10 }
  0xc2   : > { %717 = vst [vmem:[%s3767_s29 + $0x42c] sm:$0xf] %v716_v11  ;;  %719 = vst [vmem:[%s3767_s29 + $0x430] sm:$0xf] %v718_v12  ;;  %v720_v13 = vld [vmem:[%s3760_s28 + $0x868] sm:$0xf] }
  0xc3   : > { %v722_v14 = vld [vmem:[%s3760_s28 + $0x870] sm:$0xf]  ;;  %v724_v15 = vld [vmem:[%s3760_s28 + $0x878] sm:$0xf]  ;;  %721 = vst [vmem:[%s3767_s29 + $0x434] sm:$0xf] %v720_v13 }
  0xc4   : > { %723 = vst [vmem:[%s3767_s29 + $0x438] sm:$0xf] %v722_v14  ;;  %725 = vst [vmem:[%s3767_s29 + $0x43c] sm:$0xf] %v724_v15  ;;  %v726_v16 = vld [vmem:[%s3760_s28 + $0x880] sm:$0xf] }
  0xc5   : > { %v728_v17 = vld [vmem:[%s3760_s28 + $0x888] sm:$0xf]  ;;  %v730_v18 = vld [vmem:[%s3760_s28 + $0x890] sm:$0xf]  ;;  %727 = vst [vmem:[%s3767_s29 + $0x440] sm:$0xf] %v726_v16 }
  0xc6   : > { %729 = vst [vmem:[%s3767_s29 + $0x444] sm:$0xf] %v728_v17  ;;  %731 = vst [vmem:[%s3767_s29 + $0x448] sm:$0xf] %v730_v18  ;;  %v732_v19 = vld [vmem:[%s3760_s28 + $0x898] sm:$0xf] }
  0xc7   : > { %v734_v20 = vld [vmem:[%s3760_s28 + $0x8a0] sm:$0xf]  ;;  %v736_v21 = vld [vmem:[%s3760_s28 + $0x8a8] sm:$0xf]  ;;  %733 = vst [vmem:[%s3767_s29 + $0x44c] sm:$0xf] %v732_v19 }
  0xc8   : > { %735 = vst [vmem:[%s3767_s29 + $0x450] sm:$0xf] %v734_v20  ;;  %737 = vst [vmem:[%s3767_s29 + $0x454] sm:$0xf] %v736_v21  ;;  %v738_v22 = vld [vmem:[%s3760_s28 + $0x8b0] sm:$0xf] }
  0xc9   : > { %v740_v23 = vld [vmem:[%s3760_s28 + $0x8b8] sm:$0xf]  ;;  %v742_v24 = vld [vmem:[%s3760_s28 + $0x8c0] sm:$0xf]  ;;  %739 = vst [vmem:[%s3767_s29 + $0x458] sm:$0xf] %v738_v22 }
  0xca   : > { %741 = vst [vmem:[%s3767_s29 + $0x45c] sm:$0xf] %v740_v23  ;;  %743 = vst [vmem:[%s3767_s29 + $0x460] sm:$0xf] %v742_v24  ;;  %v744_v25 = vld [vmem:[%s3760_s28 + $0x8c8] sm:$0xf] }
  0xcb   : > { %v746_v26 = vld [vmem:[%s3760_s28 + $0x8d0] sm:$0xf]  ;;  %v748_v27 = vld [vmem:[%s3760_s28 + $0x8d8] sm:$0xf]  ;;  %745 = vst [vmem:[%s3767_s29 + $0x464] sm:$0xf] %v744_v25 }
  0xcc   : > { %747 = vst [vmem:[%s3767_s29 + $0x468] sm:$0xf] %v746_v26  ;;  %749 = vst [vmem:[%s3767_s29 + $0x46c] sm:$0xf] %v748_v27  ;;  %v750_v28 = vld [vmem:[%s3760_s28 + $0x8e0] sm:$0xf] }
  0xcd   : > { %v752_v29 = vld [vmem:[%s3760_s28 + $0x8e8] sm:$0xf]  ;;  %v754_v30 = vld [vmem:[%s3760_s28 + $0x8f0] sm:$0xf]  ;;  %751 = vst [vmem:[%s3767_s29 + $0x470] sm:$0xf] %v750_v28 }
  0xce   : > { %753 = vst [vmem:[%s3767_s29 + $0x474] sm:$0xf] %v752_v29  ;;  %755 = vst [vmem:[%s3767_s29 + $0x478] sm:$0xf] %v754_v30  ;;  %v756_v31 = vld [vmem:[%s3760_s28 + $0x8f8] sm:$0xf] }
  0xcf   : > { %757 = vst [vmem:[%s3767_s29 + $0x47c] sm:$0xf] %v756_v31 }
  0xd0 PF: > { %p3123_p5 = scmp.ge.s32.totalorder %s3699_s17, 1  ;;  %p1368_p6 = scmp.lt.s32.totalorder %s3699_s17, 3 }
  0xd2   : > { %p1369_p7 = pnand %p3123_p5, %p1368_p6 }
  0xd3   : > { %s1375_s30 = sand.u32 (!%p1369_p7), 1, %s3691_s15   ;;  %p1405_p8 = scmp.lt.s32.totalorder (!%p1369_p7), %s3118_s18, 1 }
  0xd4   : > { %1372 = sbr.rel (%p1369_p7) target bundleno = 628 (0x274), region = 73 }
  0xd5   : > { %s3488_s9 = smul.u32 (!%p1369_p7), 1152, %s1375_s30 }
  0xd7   : > { %s4357_s10 = scalar_lea.vmem (!%p1369_p7), [#allocation2], %s3488_s9 }
  0xd9   : > { %v4346_v32 = vld [vmem:[%s4575_s0] sm:$0xff]  ;;  %v4351_v33 = vld [vmem:[%s4575_s0 + $0x8] sm:$0xff]  ;;  %v3513_v36 = vld [vmem:[%s4357_s10 + $0x78] sm:$0xff]   ;;  %s4584_s18 = smov (!%p1405_p8, %s3118_s18), 1 }
  0xda   : > { %v3126_v34 = vcombine.high %v4346_v32, %v4346_v32  ;;  %v3128_v35 = vcombine.high %v4351_v33, %v4351_v33  ;;  %v3514_v37 = vld [vmem:[%s4357_s10 + $0xf8] sm:$0xff]   ;;  %3289 = vmatprep.subr.bf16.mxu0 %v3513_v36  ;;  %v3517_v40 = vld [vmem:[%s4357_s10 + $0x70] sm:$0xff]   ;;  %v3521_v44 = vld [vmem:[%s4357_s10 + $0x68] sm:$0xff]   ;;  %v3125_v6 = vcombine.low %v4346_v32, %v4346_v32  ;;  %v3127_v7 = vcombine.low %v4351_v33, %v4351_v33  ;;  %s1407_s6 = scalar_lea.vmem %s4577_s2, %s4584_s18  ;;  %s1410_s9 = scalar_lea.vmem %s4578_s3, %s4584_s18 }
  0xdb   : > { %v3515_v38 = vld [vmem:[%s4357_s10 + $0x38] sm:$0xff]   ;;  %3311 = vmatprep.subr.bf16.mxu1 %v3514_v37  ;;  %v3518_v41 = vld [vmem:[%s4357_s10 + $0xf0] sm:$0xff]   ;;  %v3522_v45 = vld [vmem:[%s4357_s10 + $0xe8] sm:$0xff]   ;;  %s3124_s17 = sshll.u32 %s4584_s18, 3 }
  0xdc   : > { %2672 = vmatprep.mubr.bf16.mxu0 %v3126_v34  ;;  %2712 = vmatprep.mubr.bf16.mxu1 %v3128_v35  ;;  %v3516_v39 = vld [vmem:[%s4357_s10 + $0xb8] sm:$0xff]   ;;  %v3519_v42 = vld [vmem:[%s4357_s10 + $0x30] sm:$0xff]   ;;  %v3523_v46 = vld [vmem:[%s4357_s10 + $0x28] sm:$0xff]   ;;  %s1414_s12 = scalar_lea.vmem %s4579_s4, %s3124_s17 }
  0xdd   : > { %3290 = vmatpush3.bf16.msra.mxu0 %v3515_v38  ;;  %3312 = vmatpush3.bf16.msra.mxu1 %v3516_v39  ;;  %v3520_v43 = vld [vmem:[%s4357_s10 + $0xb0] sm:$0xff]   ;;  %v3524_v47 = vld [vmem:[%s4357_s10 + $0xa8] sm:$0xff]   ;;  %v3525_v48 = vld [vmem:[%s4357_s10 + $0x60] sm:$0xff]  }
  0xde   : > { %3291 = vmatprep.subr.bf16.mxu0 %v3517_v40  ;;  %3313 = vmatprep.subr.bf16.mxu1 %v3518_v41  ;;  %v3526_v49 = vld [vmem:[%s4357_s10 + $0xe0] sm:$0xff]   ;;  %v3529_v52 = vld [vmem:[%s4357_s10 + $0x58] sm:$0xff]   ;;  %v3533_v56 = vld [vmem:[%s4357_s10 + $0x50] sm:$0xff]  }
  0xdf   : > { %v3527_v50 = vld [vmem:[%s4357_s10 + $0x20] sm:$0xff]   ;;  %v3530_v53 = vld [vmem:[%s4357_s10 + $0xd8] sm:$0xff]   ;;  %v3534_v57 = vld [vmem:[%s4357_s10 + $0xd0] sm:$0xff]  }
  0xe0   : > { %v3528_v51 = vld [vmem:[%s4357_s10 + $0xa0] sm:$0xff]   ;;  %v3531_v54 = vld [vmem:[%s4357_s10 + $0x18] sm:$0xff]   ;;  %v3535_v58 = vld [vmem:[%s4357_s10 + $0x10] sm:$0xff]  }
  0xe1   : > { %3292 = vmatpush3.bf16.msra.mxu0 %v3519_v42  ;;  %3314 = vmatpush3.bf16.msra.mxu1 %v3520_v43  ;;  %v3532_v55 = vld [vmem:[%s4357_s10 + $0x98] sm:$0xff]   ;;  %v3536_v59 = vld [vmem:[%s4357_s10 + $0x90] sm:$0xff]   ;;  %v3537_v60 = vld [vmem:[%s4357_s10 + $0x48] sm:$0xff]  }
  0xe2   : > { %3293 = vmatprep.subr.bf16.mxu0 %v3521_v44  ;;  %3315 = vmatprep.subr.bf16.mxu1 %v3522_v45  ;;  %v3538_v61 = vld [vmem:[%s4357_s10 + $0xc8] sm:$0xff]   ;;  %v3541_v0 = vld [vmem:[%s4357_s10 + $0x40] sm:$0xff]   ;;  %v4391_v1 = vld [vmem:[%s4575_s0 + $0x10] sm:$0xff] }
  0xe3   : > { %v3539_v62 = vld [vmem:[%s4357_s10 + $0x8] sm:$0xff]   ;;  %v3542_v2 = vld [vmem:[%s4357_s10 + $0xc0] sm:$0xff]   ;;  %v4398_v4 = vld [vmem:[%s4575_s0 + $0x18] sm:$0xff]  ;;  %v3130_v10 = vcombine.high %v4391_v1, %v4391_v1  ;;  %v3129_v43 = vcombine.low %v4391_v1, %v4391_v1 }
  0xe4   : > { %v3540_v63 = vld [vmem:[%s4357_s10 + $0x88] sm:$0xff]   ;;  %v3543_v3 = vld [vmem:[%s4357_s10] sm:$0xff]   ;;  %v3549_v8 = vld [vmem:[%s4357_s10 + $0x178] sm:$0xff]   ;;  %v3132_v13 = vcombine.high %v4398_v4, %v4398_v4 }
  0xe5   : > { %3294 = vmatpush3.bf16.msra.mxu0 %v3523_v46  ;;  %3316 = vmatpush3.bf16.msra.mxu1 %v3524_v47  ;;  %v3544_v5 = vld [vmem:[%s4357_s10 + $0x80] sm:$0xff]   ;;  %v3550_v9 = vld [vmem:[%s4357_s10 + $0x138] sm:$0xff]   ;;  %v3553_v14 = vld [vmem:[%s4357_s10 + $0x170] sm:$0xff]   ;;  %v3131_v46 = vcombine.low %v4398_v4, %v4398_v4 }
  0xe6   : > { %3295 = vmatprep.subr.bf16.mxu0 %v3525_v48  ;;  %3317 = vmatprep.subr.bf16.mxu1 %v3526_v49  ;;  %v3551_v11 = vld [vmem:[%s4357_s10 + $0x1f8] sm:$0xff]   ;;  %v3554_v15 = vld [vmem:[%s4357_s10 + $0x130] sm:$0xff]   ;;  %v3557_v18 = vld [vmem:[%s4357_s10 + $0x168] sm:$0xff]  }
  0xe7   : > { %v3552_v12 = vld [vmem:[%s4357_s10 + $0x1b8] sm:$0xff]   ;;  %v3555_v16 = vld [vmem:[%s4357_s10 + $0x1f0] sm:$0xff]   ;;  %v3558_v19 = vld [vmem:[%s4357_s10 + $0x128] sm:$0xff]  }
  0xe8   : > { %v3556_v17 = vld [vmem:[%s4357_s10 + $0x1b0] sm:$0xff]   ;;  %v3559_v20 = vld [vmem:[%s4357_s10 + $0x1e8] sm:$0xff]   ;;  %v3561_v22 = vld [vmem:[%s4357_s10 + $0x160] sm:$0xff]  }
  0xe9   : > { %3296 = vmatpush3.bf16.msra.mxu0 %v3527_v50  ;;  %3318 = vmatpush3.bf16.msra.mxu1 %v3528_v51  ;;  %v3560_v21 = vld [vmem:[%s4357_s10 + $0x1a8] sm:$0xff]   ;;  %v3562_v23 = vld [vmem:[%s4357_s10 + $0x120] sm:$0xff]   ;;  %v3565_v26 = vld [vmem:[%s4357_s10 + $0x158] sm:$0xff]  }
  0xea   : > { %3297 = vmatprep.subr.bf16.mxu0 %v3529_v52  ;;  %3319 = vmatprep.subr.bf16.mxu1 %v3530_v53  ;;  %v3563_v24 = vld [vmem:[%s4357_s10 + $0x1e0] sm:$0xff]   ;;  %v3566_v27 = vld [vmem:[%s4357_s10 + $0x118] sm:$0xff]   ;;  %v3569_v30 = vld [vmem:[%s4357_s10 + $0x150] sm:$0xff]  }
  0xeb   : > { %v3564_v25 = vld [vmem:[%s4357_s10 + $0x1a0] sm:$0xff]   ;;  %v3567_v28 = vld [vmem:[%s4357_s10 + $0x1d8] sm:$0xff]   ;;  %v3570_v31 = vld [vmem:[%s4357_s10 + $0x110] sm:$0xff]  }
  0xec   : > { %v3568_v29 = vld [vmem:[%s4357_s10 + $0x198] sm:$0xff]   ;;  %v3571_v32 = vld [vmem:[%s4357_s10 + $0x1d0] sm:$0xff]   ;;  %v3573_v34 = vld [vmem:[%s4357_s10 + $0x148] sm:$0xff]  }
  0xed   : > { %3298 = vmatpush3.bf16.msra.mxu0 %v3531_v54  ;;  %3320 = vmatpush3.bf16.msra.mxu1 %v3532_v55  ;;  %v3572_v33 = vld [vmem:[%s4357_s10 + $0x190] sm:$0xff]   ;;  %v3574_v35 = vld [vmem:[%s4357_s10 + $0x108] sm:$0xff]   ;;  %v3577_v38 = vld [vmem:[%s4357_s10 + $0x140] sm:$0xff]  }
  0xee   : > { %3299 = vmatprep.subr.bf16.mxu0 %v3533_v56  ;;  %3321 = vmatprep.subr.bf16.mxu1 %v3534_v57  ;;  %v3575_v36 = vld [vmem:[%s4357_s10 + $0x1c8] sm:$0xff]   ;;  %v4441_v39 = vld [vmem:[%s4575_s0 + $0x20] sm:$0xff]  ;;  %v3583_v45 = vld [vmem:[%s4357_s10 + $0x278] sm:$0xff]  }
  0xef   : > { %v3576_v37 = vld [vmem:[%s4357_s10 + $0x188] sm:$0xff]   ;;  %v3578_v40 = vld [vmem:[%s4357_s10 + $0x100] sm:$0xff]   ;;  %v3586_v47 = vld [vmem:[%s4357_s10 + $0x238] sm:$0xff]   ;;  %v3134_v48 = vcombine.high %v4441_v39, %v4441_v39 }
  0xf0   : > { %v3579_v41 = vld [vmem:[%s4357_s10 + $0x1c0] sm:$0xff]   ;;  %v4448_v42 = vld [vmem:[%s4575_s0 + $0x28] sm:$0xff]  ;;  %v3587_v49 = vld [vmem:[%s4357_s10 + $0x2f8] sm:$0xff]  }
  0xf1   : > { %3300 = vmatpush3.bf16.msra.mxu0 %v3535_v58  ;;  %3322 = vmatpush3.bf16.msra.mxu1 %v3536_v59  ;;  %v3582_v44 = vld [vmem:[%s4357_s10 + $0x180] sm:$0xff]   ;;  %v3588_v50 = vld [vmem:[%s4357_s10 + $0x2b8] sm:$0xff]   ;;  %v3136_v51 = vcombine.high %v4448_v42, %v4448_v42  ;;  %v3589_v52 = vld [vmem:[%s4357_s10 + $0x270] sm:$0xff]  }
  0xf2   : > { %3301 = vmatprep.subr.bf16.mxu0 %v3537_v60  ;;  %3323 = vmatprep.subr.bf16.mxu1 %v3538_v61  ;;  %v3590_v53 = vld [vmem:[%s4357_s10 + $0x230] sm:$0xff]   ;;  %v3593_v56 = vld [vmem:[%s4357_s10 + $0x268] sm:$0xff]   ;;  %v3597_v60 = vld [vmem:[%s4357_s10 + $0x260] sm:$0xff]  }
  0xf3   : > { %v3591_v54 = vld [vmem:[%s4357_s10 + $0x2f0] sm:$0xff]   ;;  %v3594_v57 = vld [vmem:[%s4357_s10 + $0x228] sm:$0xff]   ;;  %v3598_v61 = vld [vmem:[%s4357_s10 + $0x220] sm:$0xff]  }
  0xf4   : > { %v3592_v55 = vld [vmem:[%s4357_s10 + $0x2b0] sm:$0xff]   ;;  %v3595_v58 = vld [vmem:[%s4357_s10 + $0x2e8] sm:$0xff]   ;;  %v3602_v1 = vld [vmem:[%s4357_s10 + $0x218] sm:$0xff]  }
  0xf5   : > { %3302 = vmatpush3.bf16.msra.mxu0 %v3539_v62  ;;  %3324 = vmatpush3.bf16.msra.mxu1 %v3540_v63  ;;  %v3596_v59 = vld [vmem:[%s4357_s10 + $0x2a8] sm:$0xff]   ;;  %v3599_v62 = vld [vmem:[%s4357_s10 + $0x2e0] sm:$0xff]   ;;  %v3605_v4 = vld [vmem:[%s4357_s10 + $0x250] sm:$0xff]  }
  0xf6   : > { %3303 = vmatprep.subr.bf16.mxu0 %v3541_v0  ;;  %3325 = vmatprep.subr.bf16.mxu1 %v3542_v2  ;;  %v3600_v63 = vld [vmem:[%s4357_s10 + $0x2a0] sm:$0xff]   ;;  %v3601_v0 = vld [vmem:[%s4357_s10 + $0x258] sm:$0xff]  }
  0xf7   : > { %v3603_v2 = vld [vmem:[%s4357_s10 + $0x2d8] sm:$0xff]  }
  0xf9   : > { %3304 = vmatpush3.bf16.msra.mxu0 %v3543_v3  ;;  %3326 = vmatpush3.bf16.msra.mxu1 %v3544_v5  ;;  %v3604_v3 = vld [vmem:[%s4357_s10 + $0x298] sm:$0xff]   ;;  %v3606_v5 = vld [vmem:[%s4357_s10 + $0x210] sm:$0xff]  }
  0xfa   : > { %3333 = vmatprep.subr.bf16.mxu0 %v3549_v8  ;;  %3355 = vmatprep.subr.bf16.mxu1 %v3551_v11  ;;  %v3609_v8 = vld [vmem:[%s4357_s10 + $0x248] sm:$0xff]  }
  0xfb   : > { %v3612_v11 = vld [vmem:[%s4357_s10 + $0x288] sm:$0xff]  }
  0xfc   : > { %2673 = vmatmul.mubr.bf16.vlgmr.msra.gmra.mxu0 %v3125_v6  ;;  %2713 = vmatmul.mubr.bf16.vlgmr.msra.gmra.mxu1 %v3127_v7  ;;  %v3607_v6 = vld [vmem:[%s4357_s10 + $0x2d0] sm:$0xff]  }
  0xfd   : > { %3334 = vmatpush3.bf16.msra.mxu0 %v3550_v9  ;;  %2752 = vmatprep.mubr.bf16.mxu0 %v3130_v10  ;;  %v3608_v7 = vld [vmem:[%s4357_s10 + $0x290] sm:$0xff]   ;;  %v3610_v9 = vld [vmem:[%s4357_s10 + $0x208] sm:$0xff]  }
  0xfe   : > { %3356 = vmatpush3.bf16.msra.mxu1 %v3552_v12  ;;  %3335 = vmatprep.subr.bf16.mxu0 %v3553_v14  ;;  %v3611_v10 = vld [vmem:[%s4357_s10 + $0x2c8] sm:$0xff]   ;;  %v3613_v12 = vld [vmem:[%s4357_s10 + $0x240] sm:$0xff]  }
  0xff   : > { %2792 = vmatprep.mubr.bf16.mxu1 %v3132_v13  ;;  %3357 = vmatprep.subr.bf16.mxu1 %v3555_v16  ;;  %v3614_v13 = vld [vmem:[%s4357_s10 + $0x200] sm:$0xff]  }
 0x100   : > { %v3615_v14 = vld [vmem:[%s4357_s10 + $0x2c0] sm:$0xff]  }
 0x101   : > { %3336 = vmatpush3.bf16.msra.mxu0 %v3554_v15  ;;  %v3133_v15 = vcombine.low %v4441_v39, %v4441_v39  ;;  %v3618_v16 = vld [vmem:[%s4357_s10 + $0x280] sm:$0xff]   ;;  %v3642_v39 = vld [vmem:[%s4357_s10 + $0x310] sm:$0xff]  }
 0x102   : > { %3358 = vmatpush3.bf16.msra.mxu1 %v3556_v17  ;;  %3337 = vmatprep.subr.bf16.mxu0 %v3557_v18  ;;  %v3619_v17 = vld [vmem:[%s4357_s10 + $0x378] sm:$0xff]   ;;  %v3135_v18 = vcombine.low %v4448_v42, %v4448_v42  ;;  %v3645_v42 = vld [vmem:[%s4357_s10 + $0x348] sm:$0xff]  }
 0x103   : > { %3359 = vmatprep.subr.bf16.mxu1 %v3559_v20  ;;  %v3623_v20 = vld [vmem:[%s4357_s10 + $0x3f8] sm:$0xff]  }
 0x105   : > { %3338 = vmatpush3.bf16.msra.mxu0 %v3558_v19  ;;  %v3622_v19 = vld [vmem:[%s4357_s10 + $0x338] sm:$0xff]  }
 0x106   : > { %3360 = vmatpush3.bf16.msra.mxu1 %v3560_v21  ;;  %3339 = vmatprep.subr.bf16.mxu0 %v3561_v22  ;;  %v3624_v21 = vld [vmem:[%s4357_s10 + $0x3b8] sm:$0xff]   ;;  %v3625_v22 = vld [vmem:[%s4357_s10 + $0x370] sm:$0xff]  }
 0x107   : > { %3361 = vmatprep.subr.bf16.mxu1 %v3563_v24  ;;  %v3627_v24 = vld [vmem:[%s4357_s10 + $0x3f0] sm:$0xff]  }
 0x109   : > { %3340 = vmatpush3.bf16.msra.mxu0 %v3562_v23  ;;  %v3626_v23 = vld [vmem:[%s4357_s10 + $0x330] sm:$0xff]  }
 0x10a   : > { %3362 = vmatpush3.bf16.msra.mxu1 %v3564_v25  ;;  %3341 = vmatprep.subr.bf16.mxu0 %v3565_v26  ;;  %v3628_v25 = vld [vmem:[%s4357_s10 + $0x3b0] sm:$0xff]   ;;  %v3629_v26 = vld [vmem:[%s4357_s10 + $0x368] sm:$0xff]  }
 0x10b   : > { %3363 = vmatprep.subr.bf16.mxu1 %v3567_v28  ;;  %v3631_v28 = vld [vmem:[%s4357_s10 + $0x3e8] sm:$0xff]  }
 0x10d   : > { %3342 = vmatpush3.bf16.msra.mxu0 %v3566_v27  ;;  %v3630_v27 = vld [vmem:[%s4357_s10 + $0x328] sm:$0xff]  }
 0x10e   : > { %3364 = vmatpush3.bf16.msra.mxu1 %v3568_v29  ;;  %3343 = vmatprep.subr.bf16.mxu0 %v3569_v30  ;;  %v3632_v29 = vld [vmem:[%s4357_s10 + $0x3a8] sm:$0xff]   ;;  %v3633_v30 = vld [vmem:[%s4357_s10 + $0x360] sm:$0xff]  }
 0x10f   : > { %3365 = vmatprep.subr.bf16.mxu1 %v3571_v32  ;;  %v3635_v32 = vld [vmem:[%s4357_s10 + $0x3e0] sm:$0xff]  }
 0x111   : > { %3344 = vmatpush3.bf16.msra.mxu0 %v3570_v31  ;;  %v3634_v31 = vld [vmem:[%s4357_s10 + $0x320] sm:$0xff]  }
 0x112   : > { %3366 = vmatpush3.bf16.msra.mxu1 %v3572_v33  ;;  %3345 = vmatprep.subr.bf16.mxu0 %v3573_v34  ;;  %v3636_v33 = vld [vmem:[%s4357_s10 + $0x3a0] sm:$0xff]   ;;  %v3637_v34 = vld [vmem:[%s4357_s10 + $0x358] sm:$0xff]  }
 0x113   : > { %3367 = vmatprep.subr.bf16.mxu1 %v3575_v36  ;;  %v3639_v36 = vld [vmem:[%s4357_s10 + $0x3d8] sm:$0xff]  }
 0x115   : > { %3346 = vmatpush3.bf16.msra.mxu0 %v3574_v35  ;;  %v3638_v35 = vld [vmem:[%s4357_s10 + $0x318] sm:$0xff]  }
 0x116   : > { %3368 = vmatpush3.bf16.msra.mxu1 %v3576_v37  ;;  %3347 = vmatprep.subr.bf16.mxu0 %v3577_v38  ;;  %v3640_v37 = vld [vmem:[%s4357_s10 + $0x398] sm:$0xff]   ;;  %v3641_v38 = vld [vmem:[%s4357_s10 + $0x350] sm:$0xff]  }
 0x117   : > { %3369 = vmatprep.subr.bf16.mxu1 %v3579_v41  ;;  %v3644_v41 = vld [vmem:[%s4357_s10 + $0x390] sm:$0xff]  }
 0x119   : > { %3348 = vmatpush3.bf16.msra.mxu0 %v3578_v40  ;;  %v3643_v40 = vld [vmem:[%s4357_s10 + $0x3d0] sm:$0xff]  }
 0x11a   : > { %3370 = vmatpush3.bf16.msra.mxu1 %v3582_v44  ;;  %3377 = vmatprep.subr.bf16.mxu0 %v3583_v45  ;;  %v3647_v44 = vld [vmem:[%s4357_s10 + $0x3c8] sm:$0xff]  }
 0x11b   : > { %3399 = vmatprep.subr.bf16.mxu1 %v3587_v49  ;;  %v3648_v45 = vld [vmem:[%s4357_s10 + $0x388] sm:$0xff]   ;;  %v1422_v49 = vld [vmem:[%s4575_s0 + $0x30] sm:$0xff] }
 0x11c   : > { %2753 = vmatmul.mubr.bf16.vlgmr.msra.gmra.mxu0 %v3129_v43  ;;  %v3646_v43 = vld [vmem:[%s4357_s10 + $0x308] sm:$0xff]  }
 0x11d   : > { %3378 = vmatpush3.bf16.msra.mxu0 %v3586_v47  ;;  %2793 = vmatmul.mubr.bf16.vlgmr.msra.gmra.mxu1 %v3131_v46  ;;  %v3649_v46 = vld [vmem:[%s4357_s10 + $0x340] sm:$0xff]  }
 0x11e   : > { %2832 = vmatprep.mubr.bf16.mxu0 %v3134_v48  ;;  %3400 = vmatpush3.bf16.msra.mxu1 %v3588_v50  ;;  %v3650_v47 = vld [vmem:[%s4357_s10 + $0x300] sm:$0xff]   ;;  %v3137_v50 = vcombine.low %v1422_v49, %v1422_v49 }
 0x11f   : > { %3379 = vmatprep.subr.bf16.mxu0 %v3589_v52  ;;  %2872 = vmatprep.mubr.bf16.mxu1 %v3136_v51  ;;  %v3651_v48 = vld [vmem:[%s4357_s10 + $0x3c0] sm:$0xff]   ;;  %v3138_v51 = vcombine.high %v1422_v49, %v1422_v49 }
 0x120   : > { %3401 = vmatprep.subr.bf16.mxu1 %v3591_v54  ;;  %v3654_v52 = vld [vmem:[%s4357_s10 + $0x380] sm:$0xff]   ;;  %v1423_v54 = vld [vmem:[%s4575_s0 + $0x38] sm:$0xff] }
 0x121   : > { %3380 = vmatpush3.bf16.msra.mxu0 %v3590_v53  ;;  %v3655_v53 = vld [vmem:[%s4357_s10 + $0x478] sm:$0xff]  }
 0x122   : > { %3402 = vmatpush3.bf16.msra.mxu1 %v3592_v55  ;;  %3381 = vmatprep.subr.bf16.mxu0 %v3593_v56  ;;  %v3139_v55 = vcombine.low %v1423_v54, %v1423_v54  ;;  %v3140_v56 = vcombine.high %v1423_v54, %v1423_v54 }
 0x123   : > { %3403 = vmatprep.subr.bf16.mxu1 %v3595_v58  ;;  %v3659_v58 = vld [vmem:[%s4357_s10 + $0x470] sm:$0xff]  }
 0x125   : > { %3382 = vmatpush3.bf16.msra.mxu0 %v3594_v57  ;;  %v3658_v57 = vld [vmem:[%s4357_s10 + $0x438] sm:$0xff]  }
 0x126   : > { %3404 = vmatpush3.bf16.msra.mxu1 %v3596_v59  ;;  %3383 = vmatprep.subr.bf16.mxu0 %v3597_v60  ;;  %v3660_v59 = vld [vmem:[%s4357_s10 + $0x430] sm:$0xff]   ;;  %v3661_v60 = vld [vmem:[%s4357_s10 + $0x468] sm:$0xff]  }
 0x127   : > { %3405 = vmatprep.subr.bf16.mxu1 %v3599_v62  ;;  %v3663_v62 = vld [vmem:[%s4357_s10 + $0x460] sm:$0xff]  }
 0x129   : > { %3384 = vmatpush3.bf16.msra.mxu0 %v3598_v61  ;;  %v3662_v61 = vld [vmem:[%s4357_s10 + $0x428] sm:$0xff]  }
 0x12a   : > { %3406 = vmatpush3.bf16.msra.mxu1 %v3600_v63  ;;  %3385 = vmatprep.subr.bf16.mxu0 %v3601_v0  ;;  %v3664_v63 = vld [vmem:[%s4357_s10 + $0x420] sm:$0xff]   ;;  %v3665_v0 = vld [vmem:[%s4357_s10 + $0x458] sm:$0xff]  }
 0x12b   : > { %3407 = vmatprep.subr.bf16.mxu1 %v3603_v2  ;;  %v1424_v2 = vld [vmem:[%s4575_s0 + $0x40] sm:$0xff] }
 0x12d   : > { %3386 = vmatpush3.bf16.msra.mxu0 %v3602_v1  ;;  %v3666_v1 = vld [vmem:[%s4357_s10 + $0x418] sm:$0xff]  }
 0x12e   : > { %3408 = vmatpush3.bf16.msra.mxu1 %v3604_v3  ;;  %3387 = vmatprep.subr.bf16.mxu0 %v3605_v4  ;;  %v3667_v3 = vld [vmem:[%s4357_s10 + $0x450] sm:$0xff]   ;;  %v3142_v4 = vcombine.high %v1424_v2, %v1424_v2 }
 0x12f   : > { %3409 = vmatprep.subr.bf16.mxu1 %v3607_v6  ;;  %v3669_v6 = vld [vmem:[%s4357_s10 + $0x448] sm:$0xff]  }
 0x131   : > { %3388 = vmatpush3.bf16.msra.mxu0 %v3606_v5  ;;  %v3668_v5 = vld [vmem:[%s4357_s10 + $0x410] sm:$0xff]  }
 0x132   : > { %3410 = vmatpush3.bf16.msra.mxu1 %v3608_v7  ;;  %3389 = vmatprep.subr.bf16.mxu0 %v3609_v8  ;;  %v3670_v7 = vld [vmem:[%s4357_s10 + $0x408] sm:$0xff]   ;;  %v3671_v8 = vld [vmem:[%s4357_s10 + $0x440] sm:$0xff]  }
 0x133   : > { %3411 = vmatprep.subr.bf16.mxu1 %v3611_v10  ;;  %v3141_v10 = vcombine.low %v1424_v2, %v1424_v2 }
 0x135   : > { %3390 = vmatpush3.bf16.msra.mxu0 %v3610_v9  ;;  %v3672_v9 = vld [vmem:[%s4357_s10 + $0x400] sm:$0xff]  }
 0x136   : > { %3412 = vmatpush3.bf16.msra.mxu1 %v3612_v11  ;;  %3391 = vmatprep.subr.bf16.mxu0 %v3613_v12 }
 0x137   : > { %3413 = vmatprep.subr.bf16.mxu1 %v3615_v14 }
 0x139   : > { %3392 = vmatpush3.bf16.msra.mxu0 %v3614_v13 }
 0x13a   : > { %3414 = vmatpush3.bf16.msra.mxu1 %v3618_v16  ;;  %3421 = vmatprep.subr.bf16.mxu0 %v3619_v17 }
 0x13b   : > { %3443 = vmatprep.subr.bf16.mxu1 %v3623_v20 }
 0x13c   : > { %2833 = vmatmul.mubr.bf16.vlgmr.msra.gmra.mxu0 %v3133_v15 }
 0x13d   : > { %3422 = vmatpush3.bf16.msra.mxu0 %v3622_v19  ;;  %2873 = vmatmul.mubr.bf16.vlgmr.msra.gmra.mxu1 %v3135_v18 }
 0x13e   : > { %3444 = vmatpush3.bf16.msra.mxu1 %v3624_v21  ;;  %3423 = vmatprep.subr.bf16.mxu0 %v3625_v22 }
 0x13f   : > { %3445 = vmatprep.subr.bf16.mxu1 %v3627_v24  ;;  %2912 = vmatprep.mubr.bf16.mxu0 %v3138_v51 }
 0x140   : > { %2952 = vmatprep.mubr.bf16.mxu1 %v3140_v56 }
 0x141   : > { %3424 = vmatpush3.bf16.msra.mxu0 %v3626_v23 }
 0x142   : > { %3446 = vmatpush3.bf16.msra.mxu1 %v3628_v25  ;;  %3425 = vmatprep.subr.bf16.mxu0 %v3629_v26 }
 0x143   : > { %3447 = vmatprep.subr.bf16.mxu1 %v3631_v28 }
 0x145   : > { %3426 = vmatpush3.bf16.msra.mxu0 %v3630_v27 }
 0x146   : > { %3448 = vmatpush3.bf16.msra.mxu1 %v3632_v29  ;;  %3427 = vmatprep.subr.bf16.mxu0 %v3633_v30 }
 0x147   : > { %3449 = vmatprep.subr.bf16.mxu1 %v3635_v32 }
 0x149   : > { %3428 = vmatpush3.bf16.msra.mxu0 %v3634_v31 }
 0x14a   : > { %3450 = vmatpush3.bf16.msra.mxu1 %v3636_v33  ;;  %3429 = vmatprep.subr.bf16.mxu0 %v3637_v34 }
 0x14b   : > { %3451 = vmatprep.subr.bf16.mxu1 %v3639_v36 }
 0x14d   : > { %3430 = vmatpush3.bf16.msra.mxu0 %v3638_v35 }
 0x14e   : > { %3452 = vmatpush3.bf16.msra.mxu1 %v3640_v37  ;;  %3431 = vmatprep.subr.bf16.mxu0 %v3641_v38 }
 0x14f   : > { %3453 = vmatprep.subr.bf16.mxu1 %v3643_v40 }
 0x151   : > { %3432 = vmatpush3.bf16.msra.mxu0 %v3642_v39 }
 0x152   : > { %3454 = vmatpush3.bf16.msra.mxu1 %v3644_v41  ;;  %3433 = vmatprep.subr.bf16.mxu0 %v3645_v42 }
 0x153   : > { %3455 = vmatprep.subr.bf16.mxu1 %v3647_v44 }
 0x155   : > { %3434 = vmatpush3.bf16.msra.mxu0 %v3646_v43 }
 0x156   : > { %3456 = vmatpush3.bf16.msra.mxu1 %v3648_v45  ;;  %3435 = vmatprep.subr.bf16.mxu0 %v3649_v46 }
 0x157   : > { %3457 = vmatprep.subr.bf16.mxu1 %v3651_v48 }
 0x159   : > { %3436 = vmatpush3.bf16.msra.mxu0 %v3650_v47 }
 0x15a   : > { %3458 = vmatpush3.bf16.msra.mxu1 %v3654_v52  ;;  %3465 = vmatprep.subr.bf16.mxu0 %v3655_v53 }
 0x15c   : > { %2913 = vmatmul.mubr.bf16.vlgmr.msra.gmra.mxu0 %v3137_v50 }
 0x15d   : > { %3466 = vmatpush3.bf16.msra.mxu0 %v3658_v57  ;;  %2953 = vmatmul.mubr.bf16.vlgmr.msra.gmra.mxu1 %v3139_v55 }
 0x15e   : > { %3467 = vmatprep.subr.bf16.mxu0 %v3659_v58  ;;  %2992 = vmatprep.mubr.bf16.mxu0 %v3142_v4 }
 0x161   : > { %3468 = vmatpush3.bf16.msra.mxu0 %v3660_v59 }
 0x162   : > { %3469 = vmatprep.subr.bf16.mxu0 %v3661_v60 }
 0x165   : > { %3470 = vmatpush3.bf16.msra.mxu0 %v3662_v61 }
 0x166   : > { %3471 = vmatprep.subr.bf16.mxu0 %v3663_v62 }
 0x169   : > { %3472 = vmatpush3.bf16.msra.mxu0 %v3664_v63 }
 0x16a   : > { %3473 = vmatprep.subr.bf16.mxu0 %v3665_v0 }
 0x16d   : > { %3474 = vmatpush3.bf16.msra.mxu0 %v3666_v1 }
 0x16e   : > { %3475 = vmatprep.subr.bf16.mxu0 %v3667_v3 }
 0x171   : > { %3476 = vmatpush3.bf16.msra.mxu0 %v3668_v5 }
 0x172   : > { %3477 = vmatprep.subr.bf16.mxu0 %v3669_v6 }
 0x175   : > { %3478 = vmatpush3.bf16.msra.mxu0 %v3670_v7 }
 0x176   : > { %3479 = vmatprep.subr.bf16.mxu0 %v3671_v8 }
 0x179   : > { %3480 = vmatpush3.bf16.msra.mxu0 %v3672_v9 }
 0x17c   : > { %2993 = vmatmul.mubr.bf16.vlgmr.msra.gmra.mxu0 %v3141_v10 }
 0x1bc   : > { %v3305_v11 = vpop.f32.mrf.mxu0  ;;  %v3327_v12 = vpop.f32.mrf.mxu1 }
 0x1be   : > { %v3306_v13 = vpop.f32.mrf.mxu0  ;;  %v3328_v15 = vpop.f32.mrf.mxu1 }
 0x1bf   : > { %v3307_v14 = vadd.f32 %v3306_v13, %v3305_v11  ;;  %v3329_v16 = vadd.f32 %v3328_v15, %v3327_v12 }
 0x1c0   : > { %v3308_v17 = vpop.f32.mrf.mxu0  ;;  %v3330_v18 = vpop.f32.mrf.mxu1 }
 0x1c1   : > { %v2715_v19 = vadd.f32 %v3329_v16, %v3307_v14 }
 0x1c2   : > { %v3309_v20 = vpop.f32.mrf.mxu0  ;;  %v3331_v21 = vpop.f32.mrf.mxu1 }
 0x1c3   : > { %v3000_v21 = vld [vmem:[%s1407_s6] sm:$0x1] }
 0x1dc   : > { %v3349_v22 = vpop.f32.mrf.mxu0 }
 0x1dd   : > { %v3371_v24 = vpop.f32.mrf.mxu1 }
 0x1de   : > { %v3350_v23 = vpop.f32.mrf.mxu0 }
 0x1df   : > { %v3351_v25 = vadd.f32 %v3350_v23, %v3349_v22  ;;  %v3372_v27 = vpop.f32.mrf.mxu1 }
 0x1e0   : > { %v3352_v26 = vpop.f32.mrf.mxu0  ;;  %v3373_v29 = vadd.f32 %v3372_v27, %v3371_v24 }
 0x1e1   : > { %v2755_v28 = vadd.f32 %v3351_v25, %v2715_v19  ;;  %v3374_v31 = vpop.f32.mrf.mxu1  ;;  %v3026_v19 = vlaneseq  ;;  %v3001_v25 = vld [vmem:[%s1410_s9] sm:$0x1] }
 0x1e2   : > { %v3353_v30 = vpop.f32.mrf.mxu0 }
 0x1e3   : > { %v2795_v32 = vadd.f32 %v3373_v29, %v2755_v28  ;;  %v3375_v33 = vpop.f32.mrf.mxu1  ;;  %v3027_v20 = vshrl.u32 %v3026_v19, 7 }
 0x1e5   : > { %v3028_v22 = vsub.s32 0, %v3027_v20 }
 0x1fc   : > { %v3393_v34 = vpop.f32.mrf.mxu0 }
 0x1fd   : > { %v3415_v36 = vpop.f32.mrf.mxu1 }
 0x1fe   : > { %v3394_v35 = vpop.f32.mrf.mxu0 }
 0x1ff   : > { %v3416_v38 = vpop.f32.mrf.mxu1  ;;  %v3395_v50 = vadd.f32 %v3394_v35, %v3393_v34 }
 0x200   : > { %v3396_v37 = vpop.f32.mrf.mxu0  ;;  %v3417_v52 = vadd.f32 %v3416_v38, %v3415_v36 }
 0x201   : > { %v3418_v40 = vpop.f32.mrf.mxu1  ;;  %v2835_v51 = vadd.f32 %v3395_v50, %v2795_v32 }
 0x202   : > { %v3397_v39 = vpop.f32.mrf.mxu0 }
 0x203   : > { %v3419_v41 = vpop.f32.mrf.mxu1  ;;  %v2875_v54 = vadd.f32 %v3417_v52, %v2835_v51 }
 0x21c   : > { %v3437_v42 = vpop.f32.mrf.mxu0 }
 0x21d   : > { %v3459_v44 = vpop.f32.mrf.mxu1 }
 0x21e   : > { %v3438_v43 = vpop.f32.mrf.mxu0 }
 0x21f   : > { %v3460_v46 = vpop.f32.mrf.mxu1  ;;  %v3439_v53 = vadd.f32 %v3438_v43, %v3437_v42 }
 0x220   : > { %v3440_v45 = vpop.f32.mrf.mxu0  ;;  %v3461_v56 = vadd.f32 %v3460_v46, %v3459_v44 }
 0x221   : > { %v3462_v48 = vpop.f32.mrf.mxu1  ;;  %v2915_v55 = vadd.f32 %v3439_v53, %v2875_v54 }
 0x222   : > { %v3441_v47 = vpop.f32.mrf.mxu0 }
 0x223   : > { %v3463_v49 = vpop.f32.mrf.mxu1  ;;  %v2955_v59 = vadd.f32 %v3461_v56, %v2915_v55 }
 0x23c   : > { %v3481_v57 = vpop.f32.mrf.mxu0 }
 0x23e   : > { %v3482_v58 = vpop.f32.mrf.mxu0 }
 0x23f   : > { %v3483_v60 = vadd.f32 %v3482_v58, %v3481_v57 }
 0x240   : > { %v3484_v61 = vpop.f32.mrf.mxu0 }
 0x241   : > { %v2995_v62 = vadd.f32 %v3483_v60, %v2955_v59 }
 0x242   : > { %v3485_v63 = vpop.f32.mrf.mxu0 }
 0x243   : > { %v3002_v0 = vrot.slane %v2995_v62, 4  ;;  %v3009_v1 = vmul.f32 %v2995_v62, %v2995_v62 }
 0x245   : > { %v3003_v2 = vadd.f32 %v3002_v0, %v2995_v62  ;;  %v3010_v3 = vrot.slane %v3009_v1, 4 }
 0x247   : > { %v3004_v4 = vrot.slane %v3003_v2, 2  ;;  %v3011_v5 = vadd.f32 %v3010_v3, %v3009_v1 }
 0x249   : > { %v3005_v6 = vadd.f32 %v3004_v4, %v3003_v2  ;;  %v3012_v7 = vrot.slane %v3011_v5, 2 }
 0x24b   : > { %v3006_v8 = vrot.slane %v3005_v6, 1  ;;  %v3013_v9 = vadd.f32 %v3012_v7, %v3011_v5 }
 0x24d   : > { %v3007_v10 = vadd.f32 %v3006_v8, %v3005_v6  ;;  %v3014_v11 = vrot.slane %v3013_v9, 1 }
 0x24f   : > { %v3008_v12 = vmul.f32 0.125, %v3007_v10  ;;  %v3015_v13 = vadd.f32 %v3014_v11, %v3013_v9 }
 0x251   : > { %v3016_v14 = vmul.f32 0.125, %v3015_v13  ;;  %v3017_v15 = vmul.f32 %v3008_v12, %v3008_v12 }
 0x253   : > { %v3018_v16 = vsub.f32 %v3016_v14, %v3017_v15 }
 0x255   : > { %v3019_v17 = vmax.f32 %v3018_v16, 0.0 }
 0x257   : > { %v3020_v18 = vadd.f32 1e-05, %v3019_v17 }
 0x259   : > { %3675 = vrsqrt.f32 %v3020_v18 }
 0x266   : > { %v3676_v23 = vpop.eup %3675 }
 0x267   : > { %v3022_v24 = vmul.f32 %v3676_v23, %v3000_v21 }
 0x269   : > { %v3023_v26 = vmul.f32 %v3022_v24, %v3008_v12  ;;  %v3029_v27 = vrot.slane %v3022_v24, %v3028_v22 }
 0x26b   : > { %v3024_v28 = vsub.f32 %v3001_v25, %v3023_v26  ;;  %v3031_v29 = vmul.f32 %v3029_v27, %v2995_v62 }
 0x26d   : > { %v3036_v30 = vrot.slane %v3024_v28, %v3028_v22 }
 0x26f   : > { %v3038_v31 = vadd.f32 %v3036_v30, %v3031_v29 }
 0x271   : > { %v3039_v32 = vmax.f32 %v3038_v31, 0.0 }
 0x273   : > { %3040 = vst [vmem:[%s1414_s12] sm:$0xff] %v3039_v32 }
 0x274 PF: > { %p11_p9 = scmp.ge.s32.totalorder %s3743_s19, 4   ;;  %s4580_s15 = smov %s3695_s16 }
 0x275   : > { %s4581_s16 = smov %s3752_s22  ;;  %s4582_s17 = smov %s3743_s19 }
 0x276   :  { %13 = sbr.rel (!%p11_p9) target bundleno = 2 (0x2), region = 118 }

</bundles_post_ra>
